<compile_context>
chip_gen: v7x
topology: tpu7x:2x2x1
jax: 0.10.0
libtpu: 0.0.40
codegen_flags: <defaults>
</compile_context>

<pallas_src>
import functools

import jax
import jax.numpy as jnp
from jax import lax
from jax.experimental import pallas as pl
from jax.experimental.pallas import tpu as pltpu

DILATIONS = (1, 6, 12, 18)  # output_stride = 16


# ----------------------------- fused kernel ----------------------------------

def _aspp_fused_kernel(xp_ref, wb_ref, w5_ref, wc_ref, bb_ref, b5_ref, bc_ref,
                       o_ref, *, H, W, pad, dils):
    """One grid step = one image; everything stays VMEM-resident.

      x5   = relu(gap(x) @ W5 + b5)                        (global-pool branch)
      y_i  = relu(conv_i(x) + b_i),  i = 1..4              (ASPP branches)
      out  = relu(sum_i y_i @ Wc_i + x5 @ Wc_5 + bc)       (fused 1x1 projection)

    BN scales are pre-folded into W*, biases applied here.  Inputs/weights are
    bf16; all accumulation and the epilogue are f32.
    xp_ref: (1, H+2*pad, W+2*pad, Cin)  bf16, padded once with pad=max(dil).
    """
    cin = xp_ref.shape[-1]
    n = H * W
    cdt = jnp.bfloat16

    def patch(hoff, woff):
        # Static slice into the single max-dilation-padded image.
        # NOTE: sublane (W) offsets that are not multiples of 8 cost a Mosaic
        # retiling copy per tap; cheap at these tile sizes (see TODO above).
        return xp_ref[0, hoff:hoff + H, woff:woff + W, :].reshape(n, cin)

    center = patch(pad, pad)                                           # (n, cin) bf16

    # ---- global-average-pool branch: pooled here so x is read only once -----
    pooled = jnp.mean(center.astype(jnp.float32), axis=0, keepdims=True)  # (1, cin)
    g = jnp.dot(pooled.astype(cdt), w5_ref[...],
                preferred_element_type=jnp.float32)                    # (1, cout)
    x5 = jnp.maximum(g + b5_ref[...], 0.0)                             # (1, cout)
    # Bilinear upsample of a constant 1x1 field == broadcast -> fold it into
    # the fused projection as a spatially-constant row.
    g_proj = jnp.dot(x5.astype(cdt), wc_ref[4],
                     preferred_element_type=jnp.float32)               # (1, cout)

    # ---- branch 1: 1x1 conv --------------------------------------------------
    y = jnp.dot(center, wb_ref[0], preferred_element_type=jnp.float32)
    y = jnp.maximum(y + bb_ref[0], 0.0)
    acc = jnp.dot(y.astype(cdt), wc_ref[0], preferred_element_type=jnp.float32)

    # ---- branches 2..4: dilated 3x3 convs, projected + accumulated -----------
    for bi, d in enumerate(dils):
        yb = None
        for t in range(9):
            kh, kw = divmod(t, 3)
            p = patch(pad + (kh - 1) * d, pad + (kw - 1) * d)
            c = jnp.dot(p, wb_ref[1 + 9 * bi + t],
                        preferred_element_type=jnp.float32)
            yb = c if yb is None else yb + c
        yb = jnp.maximum(yb + bb_ref[bi + 1], 0.0)
        acc = acc + jnp.dot(yb.astype(cdt), wc_ref[bi + 1],
                            preferred_element_type=jnp.float32)

    # ---- fused projection epilogue (BN scale already folded into Wc) ---------
    o_ref[0] = jnp.maximum(acc + g_proj + bc_ref[...], 0.0).astype(o_ref.dtype)


# ----------------------------- pallas wrapper ---------------------------------

def _aspp_fused(xp, fp, *, H, W, pad):
    B, Hp, Wp, Cin = xp.shape
    Cout = fp["wc"].shape[-1]
    n_taps = fp["wb"].shape[0]
    kern = functools.partial(_aspp_fused_kernel, H=H, W=W, pad=pad,
                             dils=DILATIONS[1:])
    return pl.pallas_call(
        kern,
        out_shape=jax.ShapeDtypeStruct((B, H * W, Cout), jnp.float32),
        grid=(B,),
        in_specs=[
            pl.BlockSpec((1, Hp, Wp, Cin), lambda b: (b, 0, 0, 0)),     # padded x
            pl.BlockSpec((n_taps, Cin, Cout), lambda b: (0, 0, 0)),     # branch W
            pl.BlockSpec((Cin, Cout), lambda b: (0, 0)),                # pool W
            pl.BlockSpec((5, Cout, Cout), lambda b: (0, 0, 0)),         # fuse W
            pl.BlockSpec((4, Cout), lambda b: (0, 0)),                  # branch biases
            pl.BlockSpec((1, Cout), lambda b: (0, 0)),                  # pool bias
            pl.BlockSpec((1, Cout), lambda b: (0, 0)),                  # fuse bias
        ],
        out_specs=pl.BlockSpec((1, H * W, Cout), lambda b: (b, 0, 0)),  # lane-dense
        compiler_params=pltpu.CompilerParams(
            dimension_semantics=("parallel",),
            vmem_limit_bytes=64 * 1024 * 1024),
    )(xp, fp["wb"], fp["w5"], fp["wc"], fp["bb"], fp["b5"], fp["bc"])


# ----------------------------- parameters ------------------------------------

def init_aspp_params(key, inplanes, planes=256, eps=1e-5):
    """Deterministic init matching the module's __init__:
    kaiming_normal_ (fan_in) conv weights, BN gamma=1 / beta=0, running stats."""
    k1, k2, k3, k4, k5, kc = jax.random.split(key, 6)

    def kaiming(k, kh, kw, cin, cout):
        std = (2.0 / (cin * kh * kw)) ** 0.5
        # stored as [KH*KW, Cin, Cout] (tap-major), equivalent distribution.
        return std * jax.random.normal(k, (kh * kw, cin, cout), jnp.float32)

    def bn(c):
        gamma = jnp.ones((c,), jnp.float32)
        beta = jnp.zeros((c,), jnp.float32)
        mean = jnp.zeros((c,), jnp.float32)
        var = jnp.ones((c,), jnp.float32)
        scale = gamma / jnp.sqrt(var + eps)
        return scale, beta - mean * scale

    return {
        "w1": kaiming(k1, 1, 1, inplanes, planes), "bn1": bn(planes),
        "w2": kaiming(k2, 3, 3, inplanes, planes), "bn2": bn(planes),
        "w3": kaiming(k3, 3, 3, inplanes, planes), "bn3": bn(planes),
        "w4": kaiming(k4, 3, 3, inplanes, planes), "bn4": bn(planes),
        "w5": kaiming(k5, 1, 1, inplanes, planes)[0], "bn5": bn(planes),
        # 1280 -> 256, split into 5 per-branch (256, 256) blocks (concat order).
        "wcat": kaiming(kc, 1, 1, 5 * planes, planes).reshape(5, planes, planes),
        "bncat": bn(planes),
    }


def _prepare_fused_params(p):
    """Fold BN scales into the conv weights, stack branch taps, cast to bf16."""
    def fold(w, scale):                     # w: (T, Cin, Cout)
        return (w * scale[None, None, :]).astype(jnp.bfloat16)

    s1, b1 = p["bn1"]; s2, b2 = p["bn2"]; s3, b3 = p["bn3"]; s4, b4 = p["bn4"]
    s5, b5 = p["bn5"]; sc, bc = p["bncat"]
    wb = jnp.concatenate(
        [fold(p["w1"], s1), fold(p["w2"], s2),
         fold(p["w3"], s3), fold(p["w4"], s4)], axis=0)          # (1+9*3, Cin, 256)
    w5 = (p["w5"] * s5[None, :]).astype(jnp.bfloat16)            # (Cin, 256)
    wc = (p["wcat"] * sc[None, None, :]).astype(jnp.bfloat16)    # (5, 256, 256)
    bb = jnp.stack([b1, b2, b3, b4], axis=0)                     # (4, 256) f32
    return {"wb": wb, "w5": w5, "wc": wc, "bb": bb,
            "b5": b5[None, :], "bc": bc[None, :]}


# ----------------------------- forward ---------------------------------------

@jax.jit
def aspp_forward(x_nchw, params):
    fused = _prepare_fused_params(params)
    x = jnp.transpose(x_nchw, (0, 2, 3, 1))                 # NCHW -> NHWC
    B, H, W, _ = x.shape
    pad = max(DILATIONS)                                    # pad once, max dilation
    xp = jnp.pad(x.astype(jnp.bfloat16),
                 ((0, 0), (pad, pad), (pad, pad), (0, 0)))
    y = _aspp_fused(xp, fused, H=H, W=W, pad=pad)           # (B, H*W, 256) f32
    y = y.reshape(B, H, W, -1)
    # Dropout(0.5): identity in eval mode.
    return jnp.transpose(y, (0, 3, 1, 2))                   # NHWC -> NCHW


# ----------------------------- pure-JAX reference ----------------------------

def aspp_reference(x, p):
    B, Cin, H, W = x.shape

    def conv_bn_relu(x, w, scale, bias, k, d):
        wf = w.reshape(k, k, Cin, -1)  # HWIO
        pad = [(d, d), (d, d)] if k == 3 else [(0, 0), (0, 0)]
        y = lax.conv_general_dilated(x, wf, (1, 1), pad, rhs_dilation=(d, d),
                                     dimension_numbers=("NCHW", "HWIO", "NCHW"))
        return jnp.maximum(y * scale[None, :, None, None] + bias[None, :, None, None], 0.0)

    x1 = conv_bn_relu(x, p["w1"], *p["bn1"], 1, 1)
    x2 = conv_bn_relu(x, p["w2"], *p["bn2"], 3, DILATIONS[1])
    x3 = conv_bn_relu(x, p["w3"], *p["bn3"], 3, DILATIONS[2])
    x4 = conv_bn_relu(x, p["w4"], *p["bn4"], 3, DILATIONS[3])
    g = jnp.mean(x, axis=(2, 3)) @ p["w5"]
    g = jnp.maximum(g * p["bn5"][0] + p["bn5"][1], 0.0)
    x5 = jnp.broadcast_to(g[:, :, None, None], (B, g.shape[1], H, W))
    cat = jnp.concatenate([x1, x2, x3, x4, x5], axis=1)
    wc = p["wcat"].reshape(-1, p["wcat"].shape[-1])
    y = jnp.einsum("bchw,cd->bdhw", cat, wc)
    sc, bi = p["bncat"]
    return jnp.maximum(y * sc[None, :, None, None] + bi[None, :, None, None], 0.0)


# ----------------------------- main -------------------------------------------

if __name__ == "__main__":
    key = jax.random.PRNGKey(0)
    kx, kp = jax.random.split(key)
    B, Cin, H, W = 2, 4, 16, 16
    x = jax.random.normal(kx, (B, Cin, H, W), jnp.float32)
    params = init_aspp_params(kp, Cin)

    out = jax.block_until_ready(aspp_forward(x, params))
    assert out.shape == (B, 256, H, W), out.shape
    assert bool(jnp.all(jnp.isfinite(out)))

    ref = aspp_reference(x, params)
    max_err = float(jnp.max(jnp.abs(out - ref)))
    # bf16 inputs/weights with f32 accumulation -> bf16-level tolerance.
    assert bool(jnp.allclose(out, ref, atol=1e-1, rtol=1e-1)), max_err

    print("KERNEL_OK")
</pallas_src>

<mosaic_0001>
module attributes {stable_mosaic.version = 11 : i64} {
  func.func @_aspp_fused_kernel(%arg0: i32, %arg1: memref<1x52x52x4xbf16, #tpu.memory_space<vmem>>, %arg2: memref<28x4x256xbf16, #tpu.memory_space<vmem>>, %arg3: memref<4x256xbf16, #tpu.memory_space<vmem>>, %arg4: memref<5x256x256xbf16, #tpu.memory_space<vmem>>, %arg5: memref<4x256xf32, #tpu.memory_space<vmem>>, %arg6: memref<1x256xf32, #tpu.memory_space<vmem>>, %arg7: memref<1x256xf32, #tpu.memory_space<vmem>>, %arg8: memref<1x256x256xf32, #tpu.memory_space<vmem>>) attributes {dimension_semantics = [#tpu.dimension_semantics<parallel>], iteration_bounds = array<i64: 2>, scalar_prefetch = 0 : i64, scratch_operands = 0 : i64, tpu.core_type = #tpu.core_type<tc>, window_params = [{transform_indices = @transform_0, window_bounds = array<i64: 1, 52, 52, 4>}, {pipeline_mode = #tpu.pipeline_mode<synchronous>, transform_indices = @transform_1, window_bounds = array<i64: 28, 4, 256>}, {pipeline_mode = #tpu.pipeline_mode<synchronous>, transform_indices = @transform_2, window_bounds = array<i64: 4, 256>}, {pipeline_mode = #tpu.pipeline_mode<synchronous>, transform_indices = @transform_3, window_bounds = array<i64: 5, 256, 256>}, {pipeline_mode = #tpu.pipeline_mode<synchronous>, transform_indices = @transform_4, window_bounds = array<i64: 4, 256>}, {pipeline_mode = #tpu.pipeline_mode<synchronous>, transform_indices = @transform_5, window_bounds = array<i64: 1, 256>}, {pipeline_mode = #tpu.pipeline_mode<synchronous>, transform_indices = @transform_6, window_bounds = array<i64: 1, 256>}, {transform_indices = @transform_7, window_bounds = array<i64: 1, 256, 256>}]} {
    %c0 = arith.constant 0 : index
    %c18 = arith.constant 18 : index
    %c18_0 = arith.constant 18 : index
    %c0_1 = arith.constant 0 : index
    %0 = vector.load %arg1[%c0, %c18, %c18_0, %c0_1] : memref<1x52x52x4xbf16, #tpu.memory_space<vmem>>, vector<1x16x16x4xbf16>
    %1 = vector.shape_cast %0 : vector<1x16x16x4xbf16> to vector<16x16x4xbf16>
    %2 = vector.shape_cast %1 : vector<16x16x4xbf16> to vector<256x4xbf16>
    %3 = arith.extf %2 : vector<256x4xbf16> to vector<256x4xf32>
    %cst = arith.constant dense<0.000000e+00> : vector<4xf32>
    %4 = vector.multi_reduction <add>, %3, %cst [0] : vector<256x4xf32> to vector<4xf32>
    %5 = vector.shape_cast %4 : vector<4xf32> to vector<1x4xf32>
    %cst_2 = arith.constant 2.560000e+02 : f32
    %6 = vector.broadcast %cst_2 : f32 to vector<1x4xf32>
    %7 = arith.divf %5, %6 : vector<1x4xf32>
    %8 = arith.truncf %7 : vector<1x4xf32> to vector<1x4xbf16>
    %c0_3 = arith.constant 0 : index
    %c0_4 = arith.constant 0 : index
    %9 = vector.load %arg3[%c0_3, %c0_4] : memref<4x256xbf16, #tpu.memory_space<vmem>>, vector<4x256xbf16>
    %cst_5 = arith.constant dense<0.000000e+00> : vector<1x256xf32>
    %10 = tpu.matmul %8, %9, %cst_5 {dimension_numbers = #tpu.dot_dimension_numbers<[1], [0], [0], [1], [0, 0, 1, 1], [], []>} : vector<1x4xbf16>, vector<4x256xbf16>, vector<1x256xf32> -> vector<1x256xf32>
    %c0_6 = arith.constant 0 : index
    %c0_7 = arith.constant 0 : index
    %11 = vector.load %arg6[%c0_6, %c0_7] : memref<1x256xf32, #tpu.memory_space<vmem>>, vector<1x256xf32>
    %12 = arith.addf %10, %11 : vector<1x256xf32>
    %cst_8 = arith.constant 0.000000e+00 : f32
    %13 = vector.broadcast %cst_8 : f32 to vector<1x256xf32>
    %14 = arith.maximumf %12, %13 : vector<1x256xf32>
    %15 = arith.truncf %14 : vector<1x256xf32> to vector<1x256xbf16>
    %c4 = arith.constant 4 : index
    %c0_9 = arith.constant 0 : index
    %c0_10 = arith.constant 0 : index
    %16 = vector.load %arg4[%c4, %c0_9, %c0_10] : memref<5x256x256xbf16, #tpu.memory_space<vmem>>, vector<1x256x256xbf16>
    %17 = vector.shape_cast %16 : vector<1x256x256xbf16> to vector<256x256xbf16>
    %cst_11 = arith.constant dense<0.000000e+00> : vector<1x256xf32>
    %18 = tpu.matmul %15, %17, %cst_11 {dimension_numbers = #tpu.dot_dimension_numbers<[1], [0], [0], [1], [0, 0, 1, 1], [], []>} : vector<1x256xbf16>, vector<256x256xbf16>, vector<1x256xf32> -> vector<1x256xf32>
    %c0_12 = arith.constant 0 : index
    %c0_13 = arith.constant 0 : index
    %c0_14 = arith.constant 0 : index
    %19 = vector.load %arg2[%c0_12, %c0_13, %c0_14] : memref<28x4x256xbf16, #tpu.memory_space<vmem>>, vector<1x4x256xbf16>
    %20 = vector.shape_cast %19 : vector<1x4x256xbf16> to vector<4x256xbf16>
    %cst_15 = arith.constant dense<0.000000e+00> : vector<256x256xf32>
    %21 = tpu.matmul %2, %20, %cst_15 {dimension_numbers = #tpu.dot_dimension_numbers<[1], [0], [0], [1], [0, 0, 1, 1], [], []>} : vector<256x4xbf16>, vector<4x256xbf16>, vector<256x256xf32> -> vector<256x256xf32>
    %c0_16 = arith.constant 0 : index
    %c0_17 = arith.constant 0 : index
    %22 = vector.load %arg5[%c0_16, %c0_17] : memref<4x256xf32, #tpu.memory_space<vmem>>, vector<1x256xf32>
    %23 = vector.shape_cast %22 : vector<1x256xf32> to vector<256xf32>
    %24 = vector.shape_cast %23 : vector<256xf32> to vector<1x256xf32>
    %25 = vector.broadcast %24 : vector<1x256xf32> to vector<256x256xf32>
    %26 = arith.addf %21, %25 : vector<256x256xf32>
    %cst_18 = arith.constant 0.000000e+00 : f32
    %27 = vector.broadcast %cst_18 : f32 to vector<256x256xf32>
    %28 = arith.maximumf %26, %27 : vector<256x256xf32>
    %29 = arith.truncf %28 : vector<256x256xf32> to vector<256x256xbf16>
    %c0_19 = arith.constant 0 : index
    %c0_20 = arith.constant 0 : index
    %c0_21 = arith.constant 0 : index
    %30 = vector.load %arg4[%c0_19, %c0_20, %c0_21] : memref<5x256x256xbf16, #tpu.memory_space<vmem>>, vector<1x256x256xbf16>
    %31 = vector.shape_cast %30 : vector<1x256x256xbf16> to vector<256x256xbf16>
    %cst_22 = arith.constant dense<0.000000e+00> : vector<256x256xf32>
    %32 = tpu.matmul %29, %31, %cst_22 {dimension_numbers = #tpu.dot_dimension_numbers<[1], [0], [0], [1], [0, 0, 1, 1], [], []>} : vector<256x256xbf16>, vector<256x256xbf16>, vector<256x256xf32> -> vector<256x256xf32>
    %c0_23 = arith.constant 0 : index
    %c12 = arith.constant 12 : index
    %c12_24 = arith.constant 12 : index
    %c0_25 = arith.constant 0 : index
    %33 = vector.load %arg1[%c0_23, %c12, %c12_24, %c0_25] : memref<1x52x52x4xbf16, #tpu.memory_space<vmem>>, vector<1x16x16x4xbf16>
    %34 = vector.shape_cast %33 : vector<1x16x16x4xbf16> to vector<16x16x4xbf16>
    %35 = vector.shape_cast %34 : vector<16x16x4xbf16> to vector<256x4xbf16>
    %c1 = arith.constant 1 : index
    %c0_26 = arith.constant 0 : index
    %c0_27 = arith.constant 0 : index
    %36 = vector.load %arg2[%c1, %c0_26, %c0_27] : memref<28x4x256xbf16, #tpu.memory_space<vmem>>, vector<1x4x256xbf16>
    %37 = vector.shape_cast %36 : vector<1x4x256xbf16> to vector<4x256xbf16>
    %cst_28 = arith.constant dense<0.000000e+00> : vector<256x256xf32>
    %38 = tpu.matmul %35, %37, %cst_28 {dimension_numbers = #tpu.dot_dimension_numbers<[1], [0], [0], [1], [0, 0, 1, 1], [], []>} : vector<256x4xbf16>, vector<4x256xbf16>, vector<256x256xf32> -> vector<256x256xf32>
    %c0_29 = arith.constant 0 : index
    %c12_30 = arith.constant 12 : index
    %c18_31 = arith.constant 18 : index
    %c0_32 = arith.constant 0 : index
    %39 = vector.load %arg1[%c0_29, %c12_30, %c18_31, %c0_32] : memref<1x52x52x4xbf16, #tpu.memory_space<vmem>>, vector<1x16x16x4xbf16>
    %40 = vector.shape_cast %39 : vector<1x16x16x4xbf16> to vector<16x16x4xbf16>
    %41 = vector.shape_cast %40 : vector<16x16x4xbf16> to vector<256x4xbf16>
    %c2 = arith.constant 2 : index
    %c0_33 = arith.constant 0 : index
    %c0_34 = arith.constant 0 : index
    %42 = vector.load %arg2[%c2, %c0_33, %c0_34] : memref<28x4x256xbf16, #tpu.memory_space<vmem>>, vector<1x4x256xbf16>
    %43 = vector.shape_cast %42 : vector<1x4x256xbf16> to vector<4x256xbf16>
    %cst_35 = arith.constant dense<0.000000e+00> : vector<256x256xf32>
    %44 = tpu.matmul %41, %43, %cst_35 {dimension_numbers = #tpu.dot_dimension_numbers<[1], [0], [0], [1], [0, 0, 1, 1], [], []>} : vector<256x4xbf16>, vector<4x256xbf16>, vector<256x256xf32> -> vector<256x256xf32>
    %45 = arith.addf %38, %44 : vector<256x256xf32>
    %c0_36 = arith.constant 0 : index
    %c12_37 = arith.constant 12 : index
    %c24 = arith.constant 24 : index
    %c0_38 = arith.constant 0 : index
    %46 = vector.load %arg1[%c0_36, %c12_37, %c24, %c0_38] : memref<1x52x52x4xbf16, #tpu.memory_space<vmem>>, vector<1x16x16x4xbf16>
    %47 = vector.shape_cast %46 : vector<1x16x16x4xbf16> to vector<16x16x4xbf16>
    %48 = vector.shape_cast %47 : vector<16x16x4xbf16> to vector<256x4xbf16>
    %c3 = arith.constant 3 : index
    %c0_39 = arith.constant 0 : index
    %c0_40 = arith.constant 0 : index
    %49 = vector.load %arg2[%c3, %c0_39, %c0_40] : memref<28x4x256xbf16, #tpu.memory_space<vmem>>, vector<1x4x256xbf16>
    %50 = vector.shape_cast %49 : vector<1x4x256xbf16> to vector<4x256xbf16>
    %cst_41 = arith.constant dense<0.000000e+00> : vector<256x256xf32>
    %51 = tpu.matmul %48, %50, %cst_41 {dimension_numbers = #tpu.dot_dimension_numbers<[1], [0], [0], [1], [0, 0, 1, 1], [], []>} : vector<256x4xbf16>, vector<4x256xbf16>, vector<256x256xf32> -> vector<256x256xf32>
    %52 = arith.addf %45, %51 : vector<256x256xf32>
    %c0_42 = arith.constant 0 : index
    %c18_43 = arith.constant 18 : index
    %c12_44 = arith.constant 12 : index
    %c0_45 = arith.constant 0 : index
    %53 = vector.load %arg1[%c0_42, %c18_43, %c12_44, %c0_45] : memref<1x52x52x4xbf16, #tpu.memory_space<vmem>>, vector<1x16x16x4xbf16>
    %54 = vector.shape_cast %53 : vector<1x16x16x4xbf16> to vector<16x16x4xbf16>
    %55 = vector.shape_cast %54 : vector<16x16x4xbf16> to vector<256x4xbf16>
    %c4_46 = arith.constant 4 : index
    %c0_47 = arith.constant 0 : index
    %c0_48 = arith.constant 0 : index
    %56 = vector.load %arg2[%c4_46, %c0_47, %c0_48] : memref<28x4x256xbf16, #tpu.memory_space<vmem>>, vector<1x4x256xbf16>
    %57 = vector.shape_cast %56 : vector<1x4x256xbf16> to vector<4x256xbf16>
    %cst_49 = arith.constant dense<0.000000e+00> : vector<256x256xf32>
    %58 = tpu.matmul %55, %57, %cst_49 {dimension_numbers = #tpu.dot_dimension_numbers<[1], [0], [0], [1], [0, 0, 1, 1], [], []>} : vector<256x4xbf16>, vector<4x256xbf16>, vector<256x256xf32> -> vector<256x256xf32>
    %59 = arith.addf %52, %58 : vector<256x256xf32>
    %c0_50 = arith.constant 0 : index
    %c18_51 = arith.constant 18 : index
    %c18_52 = arith.constant 18 : index
    %c0_53 = arith.constant 0 : index
    %60 = vector.load %arg1[%c0_50, %c18_51, %c18_52, %c0_53] : memref<1x52x52x4xbf16, #tpu.memory_space<vmem>>, vector<1x16x16x4xbf16>
    %61 = vector.shape_cast %60 : vector<1x16x16x4xbf16> to vector<16x16x4xbf16>
    %62 = vector.shape_cast %61 : vector<16x16x4xbf16> to vector<256x4xbf16>
    %c5 = arith.constant 5 : index
    %c0_54 = arith.constant 0 : index
    %c0_55 = arith.constant 0 : index
    %63 = vector.load %arg2[%c5, %c0_54, %c0_55] : memref<28x4x256xbf16, #tpu.memory_space<vmem>>, vector<1x4x256xbf16>
    %64 = vector.shape_cast %63 : vector<1x4x256xbf16> to vector<4x256xbf16>
    %cst_56 = arith.constant dense<0.000000e+00> : vector<256x256xf32>
    %65 = tpu.matmul %62, %64, %cst_56 {dimension_numbers = #tpu.dot_dimension_numbers<[1], [0], [0], [1], [0, 0, 1, 1], [], []>} : vector<256x4xbf16>, vector<4x256xbf16>, vector<256x256xf32> -> vector<256x256xf32>
    %66 = arith.addf %59, %65 : vector<256x256xf32>
    %c0_57 = arith.constant 0 : index
    %c18_58 = arith.constant 18 : index
    %c24_59 = arith.constant 24 : index
    %c0_60 = arith.constant 0 : index
    %67 = vector.load %arg1[%c0_57, %c18_58, %c24_59, %c0_60] : memref<1x52x52x4xbf16, #tpu.memory_space<vmem>>, vector<1x16x16x4xbf16>
    %68 = vector.shape_cast %67 : vector<1x16x16x4xbf16> to vector<16x16x4xbf16>
    %69 = vector.shape_cast %68 : vector<16x16x4xbf16> to vector<256x4xbf16>
    %c6 = arith.constant 6 : index
    %c0_61 = arith.constant 0 : index
    %c0_62 = arith.constant 0 : index
    %70 = vector.load %arg2[%c6, %c0_61, %c0_62] : memref<28x4x256xbf16, #tpu.memory_space<vmem>>, vector<1x4x256xbf16>
    %71 = vector.shape_cast %70 : vector<1x4x256xbf16> to vector<4x256xbf16>
    %cst_63 = arith.constant dense<0.000000e+00> : vector<256x256xf32>
    %72 = tpu.matmul %69, %71, %cst_63 {dimension_numbers = #tpu.dot_dimension_numbers<[1], [0], [0], [1], [0, 0, 1, 1], [], []>} : vector<256x4xbf16>, vector<4x256xbf16>, vector<256x256xf32> -> vector<256x256xf32>
    %73 = arith.addf %66, %72 : vector<256x256xf32>
    %c0_64 = arith.constant 0 : index
    %c24_65 = arith.constant 24 : index
    %c12_66 = arith.constant 12 : index
    %c0_67 = arith.constant 0 : index
    %74 = vector.load %arg1[%c0_64, %c24_65, %c12_66, %c0_67] : memref<1x52x52x4xbf16, #tpu.memory_space<vmem>>, vector<1x16x16x4xbf16>
    %75 = vector.shape_cast %74 : vector<1x16x16x4xbf16> to vector<16x16x4xbf16>
    %76 = vector.shape_cast %75 : vector<16x16x4xbf16> to vector<256x4xbf16>
    %c7 = arith.constant 7 : index
    %c0_68 = arith.constant 0 : index
    %c0_69 = arith.constant 0 : index
    %77 = vector.load %arg2[%c7, %c0_68, %c0_69] : memref<28x4x256xbf16, #tpu.memory_space<vmem>>, vector<1x4x256xbf16>
    %78 = vector.shape_cast %77 : vector<1x4x256xbf16> to vector<4x256xbf16>
    %cst_70 = arith.constant dense<0.000000e+00> : vector<256x256xf32>
    %79 = tpu.matmul %76, %78, %cst_70 {dimension_numbers = #tpu.dot_dimension_numbers<[1], [0], [0], [1], [0, 0, 1, 1], [], []>} : vector<256x4xbf16>, vector<4x256xbf16>, vector<256x256xf32> -> vector<256x256xf32>
    %80 = arith.addf %73, %79 : vector<256x256xf32>
    %c0_71 = arith.constant 0 : index
    %c24_72 = arith.constant 24 : index
    %c18_73 = arith.constant 18 : index
    %c0_74 = arith.constant 0 : index
    %81 = vector.load %arg1[%c0_71, %c24_72, %c18_73, %c0_74] : memref<1x52x52x4xbf16, #tpu.memory_space<vmem>>, vector<1x16x16x4xbf16>
    %82 = vector.shape_cast %81 : vector<1x16x16x4xbf16> to vector<16x16x4xbf16>
    %83 = vector.shape_cast %82 : vector<16x16x4xbf16> to vector<256x4xbf16>
    %c8 = arith.constant 8 : index
    %c0_75 = arith.constant 0 : index
    %c0_76 = arith.constant 0 : index
    %84 = vector.load %arg2[%c8, %c0_75, %c0_76] : memref<28x4x256xbf16, #tpu.memory_space<vmem>>, vector<1x4x256xbf16>
    %85 = vector.shape_cast %84 : vector<1x4x256xbf16> to vector<4x256xbf16>
    %cst_77 = arith.constant dense<0.000000e+00> : vector<256x256xf32>
    %86 = tpu.matmul %83, %85, %cst_77 {dimension_numbers = #tpu.dot_dimension_numbers<[1], [0], [0], [1], [0, 0, 1, 1], [], []>} : vector<256x4xbf16>, vector<4x256xbf16>, vector<256x256xf32> -> vector<256x256xf32>
    %87 = arith.addf %80, %86 : vector<256x256xf32>
    %c0_78 = arith.constant 0 : index
    %c24_79 = arith.constant 24 : index
    %c24_80 = arith.constant 24 : index
    %c0_81 = arith.constant 0 : index
    %88 = vector.load %arg1[%c0_78, %c24_79, %c24_80, %c0_81] : memref<1x52x52x4xbf16, #tpu.memory_space<vmem>>, vector<1x16x16x4xbf16>
    %89 = vector.shape_cast %88 : vector<1x16x16x4xbf16> to vector<16x16x4xbf16>
    %90 = vector.shape_cast %89 : vector<16x16x4xbf16> to vector<256x4xbf16>
    %c9 = arith.constant 9 : index
    %c0_82 = arith.constant 0 : index
    %c0_83 = arith.constant 0 : index
    %91 = vector.load %arg2[%c9, %c0_82, %c0_83] : memref<28x4x256xbf16, #tpu.memory_space<vmem>>, vector<1x4x256xbf16>
    %92 = vector.shape_cast %91 : vector<1x4x256xbf16> to vector<4x256xbf16>
    %cst_84 = arith.constant dense<0.000000e+00> : vector<256x256xf32>
    %93 = tpu.matmul %90, %92, %cst_84 {dimension_numbers = #tpu.dot_dimension_numbers<[1], [0], [0], [1], [0, 0, 1, 1], [], []>} : vector<256x4xbf16>, vector<4x256xbf16>, vector<256x256xf32> -> vector<256x256xf32>
    %94 = arith.addf %87, %93 : vector<256x256xf32>
    %c1_85 = arith.constant 1 : index
    %c0_86 = arith.constant 0 : index
    %95 = vector.load %arg5[%c1_85, %c0_86] : memref<4x256xf32, #tpu.memory_space<vmem>>, vector<1x256xf32>
    %96 = vector.shape_cast %95 : vector<1x256xf32> to vector<256xf32>
    %97 = vector.shape_cast %96 : vector<256xf32> to vector<1x256xf32>
    %98 = vector.broadcast %97 : vector<1x256xf32> to vector<256x256xf32>
    %99 = arith.addf %94, %98 : vector<256x256xf32>
    %cst_87 = arith.constant 0.000000e+00 : f32
    %100 = vector.broadcast %cst_87 : f32 to vector<256x256xf32>
    %101 = arith.maximumf %99, %100 : vector<256x256xf32>
    %102 = arith.truncf %101 : vector<256x256xf32> to vector<256x256xbf16>
    %c1_88 = arith.constant 1 : index
    %c0_89 = arith.constant 0 : index
    %c0_90 = arith.constant 0 : index
    %103 = vector.load %arg4[%c1_88, %c0_89, %c0_90] : memref<5x256x256xbf16, #tpu.memory_space<vmem>>, vector<1x256x256xbf16>
    %104 = vector.shape_cast %103 : vector<1x256x256xbf16> to vector<256x256xbf16>
    %cst_91 = arith.constant dense<0.000000e+00> : vector<256x256xf32>
    %105 = tpu.matmul %102, %104, %cst_91 {dimension_numbers = #tpu.dot_dimension_numbers<[1], [0], [0], [1], [0, 0, 1, 1], [], []>} : vector<256x256xbf16>, vector<256x256xbf16>, vector<256x256xf32> -> vector<256x256xf32>
    %106 = arith.addf %32, %105 : vector<256x256xf32>
    %c0_92 = arith.constant 0 : index
    %c6_93 = arith.constant 6 : index
    %c6_94 = arith.constant 6 : index
    %c0_95 = arith.constant 0 : index
    %107 = vector.load %arg1[%c0_92, %c6_93, %c6_94, %c0_95] : memref<1x52x52x4xbf16, #tpu.memory_space<vmem>>, vector<1x16x16x4xbf16>
    %108 = vector.shape_cast %107 : vector<1x16x16x4xbf16> to vector<16x16x4xbf16>
    %109 = vector.shape_cast %108 : vector<16x16x4xbf16> to vector<256x4xbf16>
    %c10 = arith.constant 10 : index
    %c0_96 = arith.constant 0 : index
    %c0_97 = arith.constant 0 : index
    %110 = vector.load %arg2[%c10, %c0_96, %c0_97] : memref<28x4x256xbf16, #tpu.memory_space<vmem>>, vector<1x4x256xbf16>
    %111 = vector.shape_cast %110 : vector<1x4x256xbf16> to vector<4x256xbf16>
    %cst_98 = arith.constant dense<0.000000e+00> : vector<256x256xf32>
    %112 = tpu.matmul %109, %111, %cst_98 {dimension_numbers = #tpu.dot_dimension_numbers<[1], [0], [0], [1], [0, 0, 1, 1], [], []>} : vector<256x4xbf16>, vector<4x256xbf16>, vector<256x256xf32> -> vector<256x256xf32>
    %c0_99 = arith.constant 0 : index
    %c6_100 = arith.constant 6 : index
    %c18_101 = arith.constant 18 : index
    %c0_102 = arith.constant 0 : index
    %113 = vector.load %arg1[%c0_99, %c6_100, %c18_101, %c0_102] : memref<1x52x52x4xbf16, #tpu.memory_space<vmem>>, vector<1x16x16x4xbf16>
    %114 = vector.shape_cast %113 : vector<1x16x16x4xbf16> to vector<16x16x4xbf16>
    %115 = vector.shape_cast %114 : vector<16x16x4xbf16> to vector<256x4xbf16>
    %c11 = arith.constant 11 : index
    %c0_103 = arith.constant 0 : index
    %c0_104 = arith.constant 0 : index
    %116 = vector.load %arg2[%c11, %c0_103, %c0_104] : memref<28x4x256xbf16, #tpu.memory_space<vmem>>, vector<1x4x256xbf16>
    %117 = vector.shape_cast %116 : vector<1x4x256xbf16> to vector<4x256xbf16>
    %cst_105 = arith.constant dense<0.000000e+00> : vector<256x256xf32>
    %118 = tpu.matmul %115, %117, %cst_105 {dimension_numbers = #tpu.dot_dimension_numbers<[1], [0], [0], [1], [0, 0, 1, 1], [], []>} : vector<256x4xbf16>, vector<4x256xbf16>, vector<256x256xf32> -> vector<256x256xf32>
    %119 = arith.addf %112, %118 : vector<256x256xf32>
    %c0_106 = arith.constant 0 : index
    %c6_107 = arith.constant 6 : index
    %c30 = arith.constant 30 : index
    %c0_108 = arith.constant 0 : index
    %120 = vector.load %arg1[%c0_106, %c6_107, %c30, %c0_108] : memref<1x52x52x4xbf16, #tpu.memory_space<vmem>>, vector<1x16x16x4xbf16>
    %121 = vector.shape_cast %120 : vector<1x16x16x4xbf16> to vector<16x16x4xbf16>
    %122 = vector.shape_cast %121 : vector<16x16x4xbf16> to vector<256x4xbf16>
    %c12_109 = arith.constant 12 : index
    %c0_110 = arith.constant 0 : index
    %c0_111 = arith.constant 0 : index
    %123 = vector.load %arg2[%c12_109, %c0_110, %c0_111] : memref<28x4x256xbf16, #tpu.memory_space<vmem>>, vector<1x4x256xbf16>
    %124 = vector.shape_cast %123 : vector<1x4x256xbf16> to vector<4x256xbf16>
    %cst_112 = arith.constant dense<0.000000e+00> : vector<256x256xf32>
    %125 = tpu.matmul %122, %124, %cst_112 {dimension_numbers = #tpu.dot_dimension_numbers<[1], [0], [0], [1], [0, 0, 1, 1], [], []>} : vector<256x4xbf16>, vector<4x256xbf16>, vector<256x256xf32> -> vector<256x256xf32>
    %126 = arith.addf %119, %125 : vector<256x256xf32>
    %c0_113 = arith.constant 0 : index
    %c18_114 = arith.constant 18 : index
    %c6_115 = arith.constant 6 : index
    %c0_116 = arith.constant 0 : index
    %127 = vector.load %arg1[%c0_113, %c18_114, %c6_115, %c0_116] : memref<1x52x52x4xbf16, #tpu.memory_space<vmem>>, vector<1x16x16x4xbf16>
    %128 = vector.shape_cast %127 : vector<1x16x16x4xbf16> to vector<16x16x4xbf16>
    %129 = vector.shape_cast %128 : vector<16x16x4xbf16> to vector<256x4xbf16>
    %c13 = arith.constant 13 : index
    %c0_117 = arith.constant 0 : index
    %c0_118 = arith.constant 0 : index
    %130 = vector.load %arg2[%c13, %c0_117, %c0_118] : memref<28x4x256xbf16, #tpu.memory_space<vmem>>, vector<1x4x256xbf16>
    %131 = vector.shape_cast %130 : vector<1x4x256xbf16> to vector<4x256xbf16>
    %cst_119 = arith.constant dense<0.000000e+00> : vector<256x256xf32>
    %132 = tpu.matmul %129, %131, %cst_119 {dimension_numbers = #tpu.dot_dimension_numbers<[1], [0], [0], [1], [0, 0, 1, 1], [], []>} : vector<256x4xbf16>, vector<4x256xbf16>, vector<256x256xf32> -> vector<256x256xf32>
    %133 = arith.addf %126, %132 : vector<256x256xf32>
    %c0_120 = arith.constant 0 : index
    %c18_121 = arith.constant 18 : index
    %c18_122 = arith.constant 18 : index
    %c0_123 = arith.constant 0 : index
    %134 = vector.load %arg1[%c0_120, %c18_121, %c18_122, %c0_123] : memref<1x52x52x4xbf16, #tpu.memory_space<vmem>>, vector<1x16x16x4xbf16>
    %135 = vector.shape_cast %134 : vector<1x16x16x4xbf16> to vector<16x16x4xbf16>
    %136 = vector.shape_cast %135 : vector<16x16x4xbf16> to vector<256x4xbf16>
    %c14 = arith.constant 14 : index
    %c0_124 = arith.constant 0 : index
    %c0_125 = arith.constant 0 : index
    %137 = vector.load %arg2[%c14, %c0_124, %c0_125] : memref<28x4x256xbf16, #tpu.memory_space<vmem>>, vector<1x4x256xbf16>
    %138 = vector.shape_cast %137 : vector<1x4x256xbf16> to vector<4x256xbf16>
    %cst_126 = arith.constant dense<0.000000e+00> : vector<256x256xf32>
    %139 = tpu.matmul %136, %138, %cst_126 {dimension_numbers = #tpu.dot_dimension_numbers<[1], [0], [0], [1], [0, 0, 1, 1], [], []>} : vector<256x4xbf16>, vector<4x256xbf16>, vector<256x256xf32> -> vector<256x256xf32>
    %140 = arith.addf %133, %139 : vector<256x256xf32>
    %c0_127 = arith.constant 0 : index
    %c18_128 = arith.constant 18 : index
    %c30_129 = arith.constant 30 : index
    %c0_130 = arith.constant 0 : index
    %141 = vector.load %arg1[%c0_127, %c18_128, %c30_129, %c0_130] : memref<1x52x52x4xbf16, #tpu.memory_space<vmem>>, vector<1x16x16x4xbf16>
    %142 = vector.shape_cast %141 : vector<1x16x16x4xbf16> to vector<16x16x4xbf16>
    %143 = vector.shape_cast %142 : vector<16x16x4xbf16> to vector<256x4xbf16>
    %c15 = arith.constant 15 : index
    %c0_131 = arith.constant 0 : index
    %c0_132 = arith.constant 0 : index
    %144 = vector.load %arg2[%c15, %c0_131, %c0_132] : memref<28x4x256xbf16, #tpu.memory_space<vmem>>, vector<1x4x256xbf16>
    %145 = vector.shape_cast %144 : vector<1x4x256xbf16> to vector<4x256xbf16>
    %cst_133 = arith.constant dense<0.000000e+00> : vector<256x256xf32>
    %146 = tpu.matmul %143, %145, %cst_133 {dimension_numbers = #tpu.dot_dimension_numbers<[1], [0], [0], [1], [0, 0, 1, 1], [], []>} : vector<256x4xbf16>, vector<4x256xbf16>, vector<256x256xf32> -> vector<256x256xf32>
    %147 = arith.addf %140, %146 : vector<256x256xf32>
    %c0_134 = arith.constant 0 : index
    %c30_135 = arith.constant 30 : index
    %c6_136 = arith.constant 6 : index
    %c0_137 = arith.constant 0 : index
    %148 = vector.load %arg1[%c0_134, %c30_135, %c6_136, %c0_137] : memref<1x52x52x4xbf16, #tpu.memory_space<vmem>>, vector<1x16x16x4xbf16>
    %149 = vector.shape_cast %148 : vector<1x16x16x4xbf16> to vector<16x16x4xbf16>
    %150 = vector.shape_cast %149 : vector<16x16x4xbf16> to vector<256x4xbf16>
    %c16 = arith.constant 16 : index
    %c0_138 = arith.constant 0 : index
    %c0_139 = arith.constant 0 : index
    %151 = vector.load %arg2[%c16, %c0_138, %c0_139] : memref<28x4x256xbf16, #tpu.memory_space<vmem>>, vector<1x4x256xbf16>
    %152 = vector.shape_cast %151 : vector<1x4x256xbf16> to vector<4x256xbf16>
    %cst_140 = arith.constant dense<0.000000e+00> : vector<256x256xf32>
    %153 = tpu.matmul %150, %152, %cst_140 {dimension_numbers = #tpu.dot_dimension_numbers<[1], [0], [0], [1], [0, 0, 1, 1], [], []>} : vector<256x4xbf16>, vector<4x256xbf16>, vector<256x256xf32> -> vector<256x256xf32>
    %154 = arith.addf %147, %153 : vector<256x256xf32>
    %c0_141 = arith.constant 0 : index
    %c30_142 = arith.constant 30 : index
    %c18_143 = arith.constant 18 : index
    %c0_144 = arith.constant 0 : index
    %155 = vector.load %arg1[%c0_141, %c30_142, %c18_143, %c0_144] : memref<1x52x52x4xbf16, #tpu.memory_space<vmem>>, vector<1x16x16x4xbf16>
    %156 = vector.shape_cast %155 : vector<1x16x16x4xbf16> to vector<16x16x4xbf16>
    %157 = vector.shape_cast %156 : vector<16x16x4xbf16> to vector<256x4xbf16>
    %c17 = arith.constant 17 : index
    %c0_145 = arith.constant 0 : index
    %c0_146 = arith.constant 0 : index
    %158 = vector.load %arg2[%c17, %c0_145, %c0_146] : memref<28x4x256xbf16, #tpu.memory_space<vmem>>, vector<1x4x256xbf16>
    %159 = vector.shape_cast %158 : vector<1x4x256xbf16> to vector<4x256xbf16>
    %cst_147 = arith.constant dense<0.000000e+00> : vector<256x256xf32>
    %160 = tpu.matmul %157, %159, %cst_147 {dimension_numbers = #tpu.dot_dimension_numbers<[1], [0], [0], [1], [0, 0, 1, 1], [], []>} : vector<256x4xbf16>, vector<4x256xbf16>, vector<256x256xf32> -> vector<256x256xf32>
    %161 = arith.addf %154, %160 : vector<256x256xf32>
    %c0_148 = arith.constant 0 : index
    %c30_149 = arith.constant 30 : index
    %c30_150 = arith.constant 30 : index
    %c0_151 = arith.constant 0 : index
    %162 = vector.load %arg1[%c0_148, %c30_149, %c30_150, %c0_151] : memref<1x52x52x4xbf16, #tpu.memory_space<vmem>>, vector<1x16x16x4xbf16>
    %163 = vector.shape_cast %162 : vector<1x16x16x4xbf16> to vector<16x16x4xbf16>
    %164 = vector.shape_cast %163 : vector<16x16x4xbf16> to vector<256x4xbf16>
    %c18_152 = arith.constant 18 : index
    %c0_153 = arith.constant 0 : index
    %c0_154 = arith.constant 0 : index
    %165 = vector.load %arg2[%c18_152, %c0_153, %c0_154] : memref<28x4x256xbf16, #tpu.memory_space<vmem>>, vector<1x4x256xbf16>
    %166 = vector.shape_cast %165 : vector<1x4x256xbf16> to vector<4x256xbf16>
    %cst_155 = arith.constant dense<0.000000e+00> : vector<256x256xf32>
    %167 = tpu.matmul %164, %166, %cst_155 {dimension_numbers = #tpu.dot_dimension_numbers<[1], [0], [0], [1], [0, 0, 1, 1], [], []>} : vector<256x4xbf16>, vector<4x256xbf16>, vector<256x256xf32> -> vector<256x256xf32>
    %168 = arith.addf %161, %167 : vector<256x256xf32>
    %c2_156 = arith.constant 2 : index
    %c0_157 = arith.constant 0 : index
    %169 = vector.load %arg5[%c2_156, %c0_157] : memref<4x256xf32, #tpu.memory_space<vmem>>, vector<1x256xf32>
    %170 = vector.shape_cast %169 : vector<1x256xf32> to vector<256xf32>
    %171 = vector.shape_cast %170 : vector<256xf32> to vector<1x256xf32>
    %172 = vector.broadcast %171 : vector<1x256xf32> to vector<256x256xf32>
    %173 = arith.addf %168, %172 : vector<256x256xf32>
    %cst_158 = arith.constant 0.000000e+00 : f32
    %174 = vector.broadcast %cst_158 : f32 to vector<256x256xf32>
    %175 = arith.maximumf %173, %174 : vector<256x256xf32>
    %176 = arith.truncf %175 : vector<256x256xf32> to vector<256x256xbf16>
    %c2_159 = arith.constant 2 : index
    %c0_160 = arith.constant 0 : index
    %c0_161 = arith.constant 0 : index
    %177 = vector.load %arg4[%c2_159, %c0_160, %c0_161] : memref<5x256x256xbf16, #tpu.memory_space<vmem>>, vector<1x256x256xbf16>
    %178 = vector.shape_cast %177 : vector<1x256x256xbf16> to vector<256x256xbf16>
    %cst_162 = arith.constant dense<0.000000e+00> : vector<256x256xf32>
    %179 = tpu.matmul %176, %178, %cst_162 {dimension_numbers = #tpu.dot_dimension_numbers<[1], [0], [0], [1], [0, 0, 1, 1], [], []>} : vector<256x256xbf16>, vector<256x256xbf16>, vector<256x256xf32> -> vector<256x256xf32>
    %180 = arith.addf %106, %179 : vector<256x256xf32>
    %c0_163 = arith.constant 0 : index
    %c0_164 = arith.constant 0 : index
    %c0_165 = arith.constant 0 : index
    %c0_166 = arith.constant 0 : index
    %181 = vector.load %arg1[%c0_163, %c0_164, %c0_165, %c0_166] : memref<1x52x52x4xbf16, #tpu.memory_space<vmem>>, vector<1x16x16x4xbf16>
    %182 = vector.shape_cast %181 : vector<1x16x16x4xbf16> to vector<16x16x4xbf16>
    %183 = vector.shape_cast %182 : vector<16x16x4xbf16> to vector<256x4xbf16>
    %c19 = arith.constant 19 : index
    %c0_167 = arith.constant 0 : index
    %c0_168 = arith.constant 0 : index
    %184 = vector.load %arg2[%c19, %c0_167, %c0_168] : memref<28x4x256xbf16, #tpu.memory_space<vmem>>, vector<1x4x256xbf16>
    %185 = vector.shape_cast %184 : vector<1x4x256xbf16> to vector<4x256xbf16>
    %cst_169 = arith.constant dense<0.000000e+00> : vector<256x256xf32>
    %186 = tpu.matmul %183, %185, %cst_169 {dimension_numbers = #tpu.dot_dimension_numbers<[1], [0], [0], [1], [0, 0, 1, 1], [], []>} : vector<256x4xbf16>, vector<4x256xbf16>, vector<256x256xf32> -> vector<256x256xf32>
    %c0_170 = arith.constant 0 : index
    %c0_171 = arith.constant 0 : index
    %c18_172 = arith.constant 18 : index
    %c0_173 = arith.constant 0 : index
    %187 = vector.load %arg1[%c0_170, %c0_171, %c18_172, %c0_173] : memref<1x52x52x4xbf16, #tpu.memory_space<vmem>>, vector<1x16x16x4xbf16>
    %188 = vector.shape_cast %187 : vector<1x16x16x4xbf16> to vector<16x16x4xbf16>
    %189 = vector.shape_cast %188 : vector<16x16x4xbf16> to vector<256x4xbf16>
    %c20 = arith.constant 20 : index
    %c0_174 = arith.constant 0 : index
    %c0_175 = arith.constant 0 : index
    %190 = vector.load %arg2[%c20, %c0_174, %c0_175] : memref<28x4x256xbf16, #tpu.memory_space<vmem>>, vector<1x4x256xbf16>
    %191 = vector.shape_cast %190 : vector<1x4x256xbf16> to vector<4x256xbf16>
    %cst_176 = arith.constant dense<0.000000e+00> : vector<256x256xf32>
    %192 = tpu.matmul %189, %191, %cst_176 {dimension_numbers = #tpu.dot_dimension_numbers<[1], [0], [0], [1], [0, 0, 1, 1], [], []>} : vector<256x4xbf16>, vector<4x256xbf16>, vector<256x256xf32> -> vector<256x256xf32>
    %193 = arith.addf %186, %192 : vector<256x256xf32>
    %c0_177 = arith.constant 0 : index
    %c0_178 = arith.constant 0 : index
    %c36 = arith.constant 36 : index
    %c0_179 = arith.constant 0 : index
    %194 = vector.load %arg1[%c0_177, %c0_178, %c36, %c0_179] : memref<1x52x52x4xbf16, #tpu.memory_space<vmem>>, vector<1x16x16x4xbf16>
    %195 = vector.shape_cast %194 : vector<1x16x16x4xbf16> to vector<16x16x4xbf16>
    %196 = vector.shape_cast %195 : vector<16x16x4xbf16> to vector<256x4xbf16>
    %c21 = arith.constant 21 : index
    %c0_180 = arith.constant 0 : index
    %c0_181 = arith.constant 0 : index
    %197 = vector.load %arg2[%c21, %c0_180, %c0_181] : memref<28x4x256xbf16, #tpu.memory_space<vmem>>, vector<1x4x256xbf16>
    %198 = vector.shape_cast %197 : vector<1x4x256xbf16> to vector<4x256xbf16>
    %cst_182 = arith.constant dense<0.000000e+00> : vector<256x256xf32>
    %199 = tpu.matmul %196, %198, %cst_182 {dimension_numbers = #tpu.dot_dimension_numbers<[1], [0], [0], [1], [0, 0, 1, 1], [], []>} : vector<256x4xbf16>, vector<4x256xbf16>, vector<256x256xf32> -> vector<256x256xf32>
    %200 = arith.addf %193, %199 : vector<256x256xf32>
    %c0_183 = arith.constant 0 : index
    %c18_184 = arith.constant 18 : index
    %c0_185 = arith.constant 0 : index
    %c0_186 = arith.constant 0 : index
    %201 = vector.load %arg1[%c0_183, %c18_184, %c0_185, %c0_186] : memref<1x52x52x4xbf16, #tpu.memory_space<vmem>>, vector<1x16x16x4xbf16>
    %202 = vector.shape_cast %201 : vector<1x16x16x4xbf16> to vector<16x16x4xbf16>
    %203 = vector.shape_cast %202 : vector<16x16x4xbf16> to vector<256x4xbf16>
    %c22 = arith.constant 22 : index
    %c0_187 = arith.constant 0 : index
    %c0_188 = arith.constant 0 : index
    %204 = vector.load %arg2[%c22, %c0_187, %c0_188] : memref<28x4x256xbf16, #tpu.memory_space<vmem>>, vector<1x4x256xbf16>
    %205 = vector.shape_cast %204 : vector<1x4x256xbf16> to vector<4x256xbf16>
    %cst_189 = arith.constant dense<0.000000e+00> : vector<256x256xf32>
    %206 = tpu.matmul %203, %205, %cst_189 {dimension_numbers = #tpu.dot_dimension_numbers<[1], [0], [0], [1], [0, 0, 1, 1], [], []>} : vector<256x4xbf16>, vector<4x256xbf16>, vector<256x256xf32> -> vector<256x256xf32>
    %207 = arith.addf %200, %206 : vector<256x256xf32>
    %c0_190 = arith.constant 0 : index
    %c18_191 = arith.constant 18 : index
    %c18_192 = arith.constant 18 : index
    %c0_193 = arith.constant 0 : index
    %208 = vector.load %arg1[%c0_190, %c18_191, %c18_192, %c0_193] : memref<1x52x52x4xbf16, #tpu.memory_space<vmem>>, vector<1x16x16x4xbf16>
    %209 = vector.shape_cast %208 : vector<1x16x16x4xbf16> to vector<16x16x4xbf16>
    %210 = vector.shape_cast %209 : vector<16x16x4xbf16> to vector<256x4xbf16>
    %c23 = arith.constant 23 : index
    %c0_194 = arith.constant 0 : index
    %c0_195 = arith.constant 0 : index
    %211 = vector.load %arg2[%c23, %c0_194, %c0_195] : memref<28x4x256xbf16, #tpu.memory_space<vmem>>, vector<1x4x256xbf16>
    %212 = vector.shape_cast %211 : vector<1x4x256xbf16> to vector<4x256xbf16>
    %cst_196 = arith.constant dense<0.000000e+00> : vector<256x256xf32>
    %213 = tpu.matmul %210, %212, %cst_196 {dimension_numbers = #tpu.dot_dimension_numbers<[1], [0], [0], [1], [0, 0, 1, 1], [], []>} : vector<256x4xbf16>, vector<4x256xbf16>, vector<256x256xf32> -> vector<256x256xf32>
    %214 = arith.addf %207, %213 : vector<256x256xf32>
    %c0_197 = arith.constant 0 : index
    %c18_198 = arith.constant 18 : index
    %c36_199 = arith.constant 36 : index
    %c0_200 = arith.constant 0 : index
    %215 = vector.load %arg1[%c0_197, %c18_198, %c36_199, %c0_200] : memref<1x52x52x4xbf16, #tpu.memory_space<vmem>>, vector<1x16x16x4xbf16>
    %216 = vector.shape_cast %215 : vector<1x16x16x4xbf16> to vector<16x16x4xbf16>
    %217 = vector.shape_cast %216 : vector<16x16x4xbf16> to vector<256x4xbf16>
    %c24_201 = arith.constant 24 : index
    %c0_202 = arith.constant 0 : index
    %c0_203 = arith.constant 0 : index
    %218 = vector.load %arg2[%c24_201, %c0_202, %c0_203] : memref<28x4x256xbf16, #tpu.memory_space<vmem>>, vector<1x4x256xbf16>
    %219 = vector.shape_cast %218 : vector<1x4x256xbf16> to vector<4x256xbf16>
    %cst_204 = arith.constant dense<0.000000e+00> : vector<256x256xf32>
    %220 = tpu.matmul %217, %219, %cst_204 {dimension_numbers = #tpu.dot_dimension_numbers<[1], [0], [0], [1], [0, 0, 1, 1], [], []>} : vector<256x4xbf16>, vector<4x256xbf16>, vector<256x256xf32> -> vector<256x256xf32>
    %221 = arith.addf %214, %220 : vector<256x256xf32>
    %c0_205 = arith.constant 0 : index
    %c36_206 = arith.constant 36 : index
    %c0_207 = arith.constant 0 : index
    %c0_208 = arith.constant 0 : index
    %222 = vector.load %arg1[%c0_205, %c36_206, %c0_207, %c0_208] : memref<1x52x52x4xbf16, #tpu.memory_space<vmem>>, vector<1x16x16x4xbf16>
    %223 = vector.shape_cast %222 : vector<1x16x16x4xbf16> to vector<16x16x4xbf16>
    %224 = vector.shape_cast %223 : vector<16x16x4xbf16> to vector<256x4xbf16>
    %c25 = arith.constant 25 : index
    %c0_209 = arith.constant 0 : index
    %c0_210 = arith.constant 0 : index
    %225 = vector.load %arg2[%c25, %c0_209, %c0_210] : memref<28x4x256xbf16, #tpu.memory_space<vmem>>, vector<1x4x256xbf16>
    %226 = vector.shape_cast %225 : vector<1x4x256xbf16> to vector<4x256xbf16>
    %cst_211 = arith.constant dense<0.000000e+00> : vector<256x256xf32>
    %227 = tpu.matmul %224, %226, %cst_211 {dimension_numbers = #tpu.dot_dimension_numbers<[1], [0], [0], [1], [0, 0, 1, 1], [], []>} : vector<256x4xbf16>, vector<4x256xbf16>, vector<256x256xf32> -> vector<256x256xf32>
    %228 = arith.addf %221, %227 : vector<256x256xf32>
    %c0_212 = arith.constant 0 : index
    %c36_213 = arith.constant 36 : index
    %c18_214 = arith.constant 18 : index
    %c0_215 = arith.constant 0 : index
    %229 = vector.load %arg1[%c0_212, %c36_213, %c18_214, %c0_215] : memref<1x52x52x4xbf16, #tpu.memory_space<vmem>>, vector<1x16x16x4xbf16>
    %230 = vector.shape_cast %229 : vector<1x16x16x4xbf16> to vector<16x16x4xbf16>
    %231 = vector.shape_cast %230 : vector<16x16x4xbf16> to vector<256x4xbf16>
    %c26 = arith.constant 26 : index
    %c0_216 = arith.constant 0 : index
    %c0_217 = arith.constant 0 : index
    %232 = vector.load %arg2[%c26, %c0_216, %c0_217] : memref<28x4x256xbf16, #tpu.memory_space<vmem>>, vector<1x4x256xbf16>
    %233 = vector.shape_cast %232 : vector<1x4x256xbf16> to vector<4x256xbf16>
    %cst_218 = arith.constant dense<0.000000e+00> : vector<256x256xf32>
    %234 = tpu.matmul %231, %233, %cst_218 {dimension_numbers = #tpu.dot_dimension_numbers<[1], [0], [0], [1], [0, 0, 1, 1], [], []>} : vector<256x4xbf16>, vector<4x256xbf16>, vector<256x256xf32> -> vector<256x256xf32>
    %235 = arith.addf %228, %234 : vector<256x256xf32>
    %c0_219 = arith.constant 0 : index
    %c36_220 = arith.constant 36 : index
    %c36_221 = arith.constant 36 : index
    %c0_222 = arith.constant 0 : index
    %236 = vector.load %arg1[%c0_219, %c36_220, %c36_221, %c0_222] : memref<1x52x52x4xbf16, #tpu.memory_space<vmem>>, vector<1x16x16x4xbf16>
    %237 = vector.shape_cast %236 : vector<1x16x16x4xbf16> to vector<16x16x4xbf16>
    %238 = vector.shape_cast %237 : vector<16x16x4xbf16> to vector<256x4xbf16>
    %c27 = arith.constant 27 : index
    %c0_223 = arith.constant 0 : index
    %c0_224 = arith.constant 0 : index
    %239 = vector.load %arg2[%c27, %c0_223, %c0_224] : memref<28x4x256xbf16, #tpu.memory_space<vmem>>, vector<1x4x256xbf16>
    %240 = vector.shape_cast %239 : vector<1x4x256xbf16> to vector<4x256xbf16>
    %cst_225 = arith.constant dense<0.000000e+00> : vector<256x256xf32>
    %241 = tpu.matmul %238, %240, %cst_225 {dimension_numbers = #tpu.dot_dimension_numbers<[1], [0], [0], [1], [0, 0, 1, 1], [], []>} : vector<256x4xbf16>, vector<4x256xbf16>, vector<256x256xf32> -> vector<256x256xf32>
    %242 = arith.addf %235, %241 : vector<256x256xf32>
    %c3_226 = arith.constant 3 : index
    %c0_227 = arith.constant 0 : index
    %243 = vector.load %arg5[%c3_226, %c0_227] : memref<4x256xf32, #tpu.memory_space<vmem>>, vector<1x256xf32>
    %244 = vector.shape_cast %243 : vector<1x256xf32> to vector<256xf32>
    %245 = vector.shape_cast %244 : vector<256xf32> to vector<1x256xf32>
    %246 = vector.broadcast %245 : vector<1x256xf32> to vector<256x256xf32>
    %247 = arith.addf %242, %246 : vector<256x256xf32>
    %cst_228 = arith.constant 0.000000e+00 : f32
    %248 = vector.broadcast %cst_228 : f32 to vector<256x256xf32>
    %249 = arith.maximumf %247, %248 : vector<256x256xf32>
    %250 = arith.truncf %249 : vector<256x256xf32> to vector<256x256xbf16>
    %c3_229 = arith.constant 3 : index
    %c0_230 = arith.constant 0 : index
    %c0_231 = arith.constant 0 : index
    %251 = vector.load %arg4[%c3_229, %c0_230, %c0_231] : memref<5x256x256xbf16, #tpu.memory_space<vmem>>, vector<1x256x256xbf16>
    %252 = vector.shape_cast %251 : vector<1x256x256xbf16> to vector<256x256xbf16>
    %cst_232 = arith.constant dense<0.000000e+00> : vector<256x256xf32>
    %253 = tpu.matmul %250, %252, %cst_232 {dimension_numbers = #tpu.dot_dimension_numbers<[1], [0], [0], [1], [0, 0, 1, 1], [], []>} : vector<256x256xbf16>, vector<256x256xbf16>, vector<256x256xf32> -> vector<256x256xf32>
    %254 = arith.addf %180, %253 : vector<256x256xf32>
    %255 = vector.broadcast %18 : vector<1x256xf32> to vector<256x256xf32>
    %256 = arith.addf %254, %255 : vector<256x256xf32>
    %c0_233 = arith.constant 0 : index
    %c0_234 = arith.constant 0 : index
    %257 = vector.load %arg7[%c0_233, %c0_234] : memref<1x256xf32, #tpu.memory_space<vmem>>, vector<1x256xf32>
    %258 = vector.broadcast %257 : vector<1x256xf32> to vector<256x256xf32>
    %259 = arith.addf %256, %258 : vector<256x256xf32>
    %cst_235 = arith.constant 0.000000e+00 : f32
    %260 = vector.broadcast %cst_235 : f32 to vector<256x256xf32>
    %261 = arith.maximumf %259, %260 : vector<256x256xf32>
    %c0_236 = arith.constant 0 : index
    %c0_237 = arith.constant 0 : index
    %c0_238 = arith.constant 0 : index
    %262 = vector.load %arg8[%c0_236, %c0_237, %c0_238] : memref<1x256x256xf32, #tpu.memory_space<vmem>>, vector<1x256x256xf32>
    %263 = vector.shape_cast %262 : vector<1x256x256xf32> to vector<256x256xf32>
    %264 = vector.shape_cast %261 : vector<256x256xf32> to vector<1x256x256xf32>
    tpu.vector_store %arg8[%c0_236, %c0_237, %c0_238], %264 {strides = array<i32>} : memref<1x256x256xf32, #tpu.memory_space<vmem>>, vector<1x256x256xf32>,
    return
  }
  func.func @transform_0(%arg0: i32) -> (i32, i32, i32, i32) {
    %c0_i32 = arith.constant 0 : i32
    %c0_i32_0 = arith.constant 0 : i32
    %c0_i32_1 = arith.constant 0 : i32
    %c0_i32_2 = arith.constant 0 : i32
    return %arg0, %c0_i32, %c0_i32_0, %c0_i32_1 : i32, i32, i32, i32
  }
  func.func @transform_1(%arg0: i32) -> (i32, i32, i32) {
    %c0_i32 = arith.constant 0 : i32
    %c0_i32_0 = arith.constant 0 : i32
    %c0_i32_1 = arith.constant 0 : i32
    %c0_i32_2 = arith.constant 0 : i32
    return %c0_i32, %c0_i32_0, %c0_i32_1 : i32, i32, i32
  }
  func.func @transform_2(%arg0: i32) -> (i32, i32) {
    %c0_i32 = arith.constant 0 : i32
    %c0_i32_0 = arith.constant 0 : i32
    %c0_i32_1 = arith.constant 0 : i32
    return %c0_i32, %c0_i32_0 : i32, i32
  }
  func.func @transform_3(%arg0: i32) -> (i32, i32, i32) {
    %c0_i32 = arith.constant 0 : i32
    %c0_i32_0 = arith.constant 0 : i32
    %c0_i32_1 = arith.constant 0 : i32
    %c0_i32_2 = arith.constant 0 : i32
    return %c0_i32, %c0_i32_0, %c0_i32_1 : i32, i32, i32
  }
  func.func @transform_4(%arg0: i32) -> (i32, i32) {
    %c0_i32 = arith.constant 0 : i32
    %c0_i32_0 = arith.constant 0 : i32
    %c0_i32_1 = arith.constant 0 : i32
    return %c0_i32, %c0_i32_0 : i32, i32
  }
  func.func @transform_5(%arg0: i32) -> (i32, i32) {
    %c0_i32 = arith.constant 0 : i32
    %c0_i32_0 = arith.constant 0 : i32
    %c0_i32_1 = arith.constant 0 : i32
    return %c0_i32, %c0_i32_0 : i32, i32
  }
  func.func @transform_6(%arg0: i32) -> (i32, i32) {
    %c0_i32 = arith.constant 0 : i32
    %c0_i32_0 = arith.constant 0 : i32
    %c0_i32_1 = arith.constant 0 : i32
    return %c0_i32, %c0_i32_0 : i32, i32
  }
  func.func @transform_7(%arg0: i32) -> (i32, i32, i32) {
    %c0_i32 = arith.constant 0 : i32
    %c0_i32_0 = arith.constant 0 : i32
    %c0_i32_1 = arith.constant 0 : i32
    return %arg0, %c0_i32, %c0_i32_0 : i32, i32, i32
  }
}

</mosaic_0001>

<bundles_post_ra>
// kernel: aspp_forward.1
= control target key start
LH: loop header
LB: loop body
LE: loop exit
PB: predicated region body
PF: predicated region fallthrough
CT: control target
= control target key end

     0   :  { %s27323_s0 = inlined_call_operand.hbm [shape: bf16[2,52,52,4], index: 0, kind: input, shape index: {}]   ;;  %s27324_s1 = inlined_call_operand.hbm [shape: bf16[28,4,256], index: 1, kind: input, shape index: {}]   ;;  %s27325_s2 = inlined_call_operand.hbm [shape: bf16[4,256], index: 2, kind: input, shape index: {}]   ;;  %s27326_s3 = inlined_call_operand.hbm [shape: bf16[5,256,256], index: 3, kind: input, shape index: {}]   ;;  %s27327_s4 = inlined_call_operand.hbm [shape: f32[4,256], index: 4, kind: input, shape index: {}]   ;;  %s27328_s5 = inlined_call_operand.hbm [shape: f32[1,256], index: 5, kind: input, shape index: {}]   ;;  %s27329_s6 = inlined_call_operand.hbm [shape: f32[1,256], index: 6, kind: input, shape index: {}]   ;;  %s27330_s7 = inlined_call_operand.hbm [shape: f32[2,256,256], index: 7, kind: output, shape index: {}]  }
   0x1   :  { %27382 = sst [smem:[#allocation98_spill]] %s27324_s1 }
   0x2   :  { %12 = vsyncpa [#allocation3], 0 }
   0x3   :  { %14 = vsyncpa [#allocation3 + $0x1], 0 }
   0x4   :  { %15 = vsyncpa [#allocation6], 0 }
   0x5   :  { %16 = vsyncpa [#allocation9], 0 }
   0x6   :  { %17 = vsyncpa [#allocation12], 0 }
   0x7   :  { %18 = vsyncpa [#allocation4], 0 }
   0x8   :  { %20 = vsyncpa [#allocation4 + $0x1], 0  ;;  %s22402_s24 = smov 0   ;;  %s22404_s25 = smov 0  }
   0x9   :  { %s22406_s26 = smov 0   ;;  %s22408_s27 = smov 0  }
   0xa LB: > { %s22347_s28 = smov [#allocation5]   ;;  %s22423_s30 = sadd.s32 4294967295, %s22345_s27   ;;  %s22345_s27 = sphi %s22408_s27, %s27585_s27   ;;  %s22341_s26 = sphi %s22406_s26, %s27584_s26   ;;  %s22337_s25 = sphi %s22404_s25, %s27583_s25   ;;  %s22333_s24 = sphi %s22402_s24, %s27582_s24  }
   0xb   : > { %s221_s29 = sshll.u32 %s22347_s28, 4  ;;  %p17518_p0 = scmp.ge.s32.totalorder %s22345_s27, 1  ;;  %s22428_s29 = int_to_ptr.vmem [resolvable:$true] %s221_s29 }
   0xc   : > { %p27331_p1 = scmp.eq.s32.totalorder %s22423_s30, 0  ;;  %p209_p2 = scmp.lt.s32.totalorder %s22345_s27, 3 }
   0xd   : > { %s22348_s9 = smov [#allocation8]   ;;  %s22349_s12 = smov [#allocation11]  }
   0xe   : > { %p22430_p3 = pnand %p17518_p0, %p209_p2  ;;  %s245_s10 = sshll.u32 %s22348_s9, 4  ;;  %s22443_s10 = int_to_ptr.vmem [resolvable:$true] %s245_s10 }
   0xf   : > { %s22445_s13 = sshll.u32 %s22349_s12, 4  ;;  %s27385_s1 = sld [smem:[#allocation98_spill]]  ;;  %s271_s13 = int_to_ptr.vmem [resolvable:$true] %s22445_s13 }
  0x10   : > { %s27383_s8 = scalar_select %p22430_p3, 1, 0 }
  0x11   : > { %p21647_p5 = pneg %p22430_p3 }
  0x13   : > { %p22439_p6 = pnand %p21647_p5, %p27331_p1 }
  0x15   : > { %s22069_s16 = scalar_lea.hbm %s27385_s1, 1792  ;;  %p22455_p8 = pneg %p22439_p6 }
  0x16   : > { %p22070_p7 = scmp.ne.s32.totalorder %s27385_s1, %s22069_s16  ;;  %p22076_p11 = scmp.lt.u32.totalorder %s22069_s16, %s27385_s1 }
  0x18   : > { %p22072_p9 = pnand %p22455_p8, %p22070_p7 }
  0x1a   : > { %p22073_p10 = pneg %p22072_p9 }
  0x1c   : > { %p22078_p12 = pnand %p22076_p11, %p22073_p10 }
  0x1e   : > { %22081 = shalt.err (!%p22078_p12)
}
  0x1f   : > { %s22082_s22 = scalar_lea.vmem %s22428_s29, 1792  ;;  %p22090_p5 = scmp.lt.s32.totalorder %s22428_s29, %s22428_s29 }
  0x20   : > { %p22083_p13 = scmp.ne.s32.totalorder %s22428_s29, %s22082_s22  ;;  %p22091_p4 = scmp.lt.s32.totalorder %s22082_s22, %s22082_s22 }
  0x22   : > { %p22085_p0 = pnand %p22083_p13, %p22455_p8  ;;  %p22092_p7 = por %p22091_p4, %p22090_p5 }
  0x24   : > { %p22086_p2 = pneg %p22085_p0 }
  0x26   : > { %p22093_p9 = pnand %p22092_p7, %p22086_p2 }
  0x28   : > { %22096 = shalt.err (!%p22093_p9)
}
  0x29   : > { %s27333_s23 = smov 64   ;;  %s27334_s28 = smov 4  }
  0x2a   : > { %21650 = dma.hbm_to_vmem [thread:$0]  (!%p22439_p6), %s27385_s1, 1792, %s22428_s29, [#allocation6], %s27333_s23, %s27333_s23, %s27334_s28  }
  0x2b   : > { %s22097_s16 = scalar_lea.hbm %s27326_s3, 20480 }
  0x2c   : > { %p22098_p4 = scmp.ne.s32.totalorder %s27326_s3, %s22097_s16  ;;  %p22104_p12 = scmp.lt.u32.totalorder %s22097_s16, %s27326_s3 }
  0x2e   : > { %p22100_p10 = pnand %p22098_p4, %p22455_p8 }
  0x30   : > { %p22101_p11 = pneg %p22100_p10 }
  0x32   : > { %p22106_p13 = pnand %p22104_p12, %p22101_p11 }
  0x34   : > { %22109 = shalt.err (!%p22106_p13)
}
  0x35   : > { %s22110_s29 = scalar_lea.vmem %s22443_s10, 20480  ;;  %p22118_p7 = scmp.lt.s32.totalorder %s22443_s10, %s22443_s10 }
  0x36   : > { %p22111_p0 = scmp.ne.s32.totalorder %s22443_s10, %s22110_s29  ;;  %p22119_p9 = scmp.lt.s32.totalorder %s22110_s29, %s22110_s29 }
  0x38   : > { %p22113_p2 = pnand %p22111_p0, %p22455_p8  ;;  %p22120_p4 = por %p22119_p9, %p22118_p7 }
  0x3a   : > { %p22114_p5 = pneg %p22113_p2 }
  0x3c   : > { %p22121_p10 = pnand %p22120_p4, %p22114_p5 }
  0x3e   : > { %22124 = shalt.err (!%p22121_p10)
}
  0x3f   : > { %s22352_s22 = smov 128   ;;  %s22353_s9 = smov 8  }
  0x40   : > { %21656 = dma.hbm_to_vmem [thread:$0]  (!%p22439_p6), %s27326_s3, 20480, %s22443_s10, [#allocation9], %s22352_s22, %s22352_s22, %s22353_s9  }
  0x41   : > { %s22125_s17 = scalar_lea.hbm %s27328_s5, 32 }
  0x42   : > { %p22126_p11 = scmp.ne.s32.totalorder %s27328_s5, %s22125_s17  ;;  %p22132_p0 = scmp.lt.u32.totalorder %s22125_s17, %s27328_s5 }
  0x44   : > { %p22128_p12 = pnand %p22126_p11, %p22455_p8 }
  0x46   : > { %p22129_p13 = pneg %p22128_p12 }
  0x48   : > { %p22134_p2 = pnand %p22132_p0, %p22129_p13 }
  0x4a   : > { %22137 = shalt.err (!%p22134_p2)
}
  0x4b   : > { %s22138_s12 = scalar_lea.vmem %s271_s13, 32  ;;  %p22146_p4 = scmp.lt.s32.totalorder %s271_s13, %s271_s13 }
  0x4c   : > { %p22139_p5 = scmp.ne.s32.totalorder %s271_s13, %s22138_s12  ;;  %p22147_p10 = scmp.lt.s32.totalorder %s22138_s12, %s22138_s12 }
  0x4e   : > { %p22141_p7 = pnand %p22139_p5, %p22455_p8  ;;  %p22148_p1 = por %p22147_p10, %p22146_p4 }
  0x50   : > { %p22142_p9 = pneg %p22141_p7 }
  0x52   : > { %p22149_p3 = pnand %p22148_p1, %p22142_p9 }
  0x54   : > { %22152 = shalt.err (!%p22149_p3)
}
  0x55   : > { %21662 = dma.hbm_to_vmem [thread:$0]  (!%p22439_p6), %s27328_s5, 32, %s271_s13, [#allocation12]  }
  0x56   : > { %s22354_s9 = smov [#allocation7]   ;;  %s22355_s15 = smov [#allocation10]  }
  0x57   : > { %s235_s14 = sshll.u32 %s22354_s9, 4  ;;  %s259_s16 = sshll.u32 %s22355_s15, 4  ;;  %s236_s14 = int_to_ptr.vmem [resolvable:$true] %s235_s14  ;;  %s260_s16 = int_to_ptr.vmem [resolvable:$true] %s259_s16 }
  0x58   : > { %s22153_s20 = scalar_lea.hbm %s27325_s2, 64 }
  0x59   : > { %p22154_p1 = scmp.ne.s32.totalorder %s27325_s2, %s22153_s20  ;;  %p22160_p12 = scmp.lt.u32.totalorder %s22153_s20, %s27325_s2 }
  0x5b   : > { %p22156_p3 = pnand %p22154_p1, %p22455_p8 }
  0x5d   : > { %p22157_p11 = pneg %p22156_p3 }
  0x5f   : > { %p22162_p13 = pnand %p22160_p12, %p22157_p11 }
  0x61   : > { %22165 = shalt.err (!%p22162_p13)
}
  0x62   : > { %s22166_s13 = scalar_lea.vmem %s236_s14, 64  ;;  %p22174_p7 = scmp.lt.s32.totalorder %s236_s14, %s236_s14 }
  0x63   : > { %p22167_p0 = scmp.ne.s32.totalorder %s236_s14, %s22166_s13  ;;  %p22175_p9 = scmp.lt.s32.totalorder %s22166_s13, %s22166_s13 }
  0x65   : > { %p22169_p2 = pnand %p22167_p0, %p22455_p8  ;;  %p22176_p4 = por %p22175_p9, %p22174_p7 }
  0x67   : > { %p22170_p5 = pneg %p22169_p2 }
  0x69   : > { %p22177_p10 = pnand %p22176_p4, %p22170_p5 }
  0x6b   : > { %22180 = shalt.err (!%p22177_p10)
}
  0x6c   : > { %21653 = dma.hbm_to_vmem [thread:$0]  (!%p22439_p6), %s27325_s2, 64, %s236_s14, [#allocation6]  }
  0x6d   : > { %s22181_s18 = scalar_lea.hbm %s27327_s4, 128 }
  0x6e   : > { %p22182_p1 = scmp.ne.s32.totalorder %s27327_s4, %s22181_s18  ;;  %p22188_p12 = scmp.lt.u32.totalorder %s22181_s18, %s27327_s4 }
  0x70   : > { %p22184_p3 = pnand %p22182_p1, %p22455_p8 }
  0x72   : > { %p22185_p11 = pneg %p22184_p3 }
  0x74   : > { %p22190_p13 = pnand %p22188_p12, %p22185_p11 }
  0x76   : > { %22193 = shalt.err (!%p22190_p13)
}
  0x77   : > { %s22194_s10 = scalar_lea.vmem %s260_s16, 128  ;;  %p22202_p7 = scmp.lt.s32.totalorder %s260_s16, %s260_s16 }
  0x78   : > { %p22195_p0 = scmp.ne.s32.totalorder %s260_s16, %s22194_s10  ;;  %p22203_p9 = scmp.lt.s32.totalorder %s22194_s10, %s22194_s10 }
  0x7a   : > { %p22197_p2 = pnand %p22195_p0, %p22455_p8  ;;  %p22204_p4 = por %p22203_p9, %p22202_p7 }
  0x7c   : > { %p22198_p5 = pneg %p22197_p2 }
  0x7e   : > { %p22205_p10 = pnand %p22204_p4, %p22198_p5 }
  0x80   : > { %22208 = shalt.err (!%p22205_p10)
}
  0x81   : > { %21659 = dma.hbm_to_vmem [thread:$0]  (!%p22439_p6), %s27327_s4, 128, %s260_s16, [#allocation9]  }
  0x82   : > { %s22356_s22 = smov [#allocation13]   ;;  %s22209_s18 = scalar_lea.hbm %s27329_s6, 32 }
  0x83   : > { %s281_s9 = sshll.u32 %s22356_s22, 4  ;;  %p22210_p1 = scmp.ne.s32.totalorder %s27329_s6, %s22209_s18  ;;  %s282_s9 = int_to_ptr.vmem [resolvable:$true] %s281_s9 }
  0x84   : > { %p22216_p12 = scmp.lt.u32.totalorder %s22209_s18, %s27329_s6 }
  0x85   : > { %p22212_p3 = pnand %p22210_p1, %p22455_p8 }
  0x87   : > { %p22213_p11 = pneg %p22212_p3 }
  0x89   : > { %p22218_p13 = pnand %p22216_p12, %p22213_p11 }
  0x8b   : > { %22221 = shalt.err (!%p22218_p13)
}
  0x8c   : > { %s22222_s16 = scalar_lea.vmem %s282_s9, 32  ;;  %p22230_p7 = scmp.lt.s32.totalorder %s282_s9, %s282_s9 }
  0x8d   : > { %p22223_p0 = scmp.ne.s32.totalorder %s282_s9, %s22222_s16  ;;  %p22231_p9 = scmp.lt.s32.totalorder %s22222_s16, %s22222_s16 }
  0x8f   : > { %p22225_p2 = pnand %p22223_p0, %p22455_p8  ;;  %p22232_p4 = por %p22231_p9, %p22230_p7 }
  0x91   : > { %p22226_p5 = pneg %p22225_p2 }
  0x93   : > { %p22233_p10 = pnand %p22232_p4, %p22226_p5 }
  0x95   : > { %22236 = shalt.err (!%p22233_p10)
}
  0x96   : > { %21665 = dma.hbm_to_vmem [thread:$0]  (!%p22439_p6), %s27329_s6, 32, %s282_s9, [#allocation12]  }
  0x97   : > { %s17517_s19 = sadd.s32 4294967294, %s22345_s27   ;;  %s22577_s11 = sadd.s32 1, %s22345_s27  }
  0x98   : > { %s30_s13 = ssub.s32 %s22345_s27, %s22577_s11  ;;  %s33_s22 = sadd.s32 1, %s22341_s26 }
  0x99   : > { %p31_p8 = scmp.eq.s32.totalorder %s30_s13, 0  ;;  %p40_p1 = scmp.ne.s32.totalorder %s22341_s26, %s22337_s25 }
  0x9a   : > { %p41_p3 = scmp.eq.s32.totalorder %s22345_s27, 0  ;;  %p46_p11 = scmp.ne.s32.totalorder %s22337_s25, %s22333_s24 }
  0x9b   : > { %s22588_s15 = scalar_select %p31_p8, %s22341_s26, %s33_s22  }
  0x9c   : > { %p42_p12 = por %p41_p3, %p40_p1  ;;  %p27387_p13 = scmp.eq.s32.totalorder %s22423_s30, 0 }
  0x9d   : > { %p196_p6 = scmp.eq.s32.totalorder %s22423_s30, 1  ;;  %p202_p2 = scmp.eq.s32.totalorder %s17517_s19, 1 }
  0x9e   : > { %p22592_p0 = por %p27387_p13, %p46_p11  ;;  %p21680_p5 = scmp.lt.s32.totalorder %s22345_s27, 2 }
  0x9f   : > { %s292_s9 = sand.u32 1, %s22341_s26   ;;  %p22599_p7 = por %p196_p6, %p40_p1 }
  0xa0   : > { %p22603_p9 = por %p202_p2, %p46_p11  ;;  %s21616_s21 = smul.u32 1456, %s292_s9 }
  0xa1   : > { %s27389_s18 = scalar_select %p22599_p7, 1, 0 }
  0xa2   : > { %s27390_s20 = scalar_select %p22603_p9, 1, 0 }
  0xa3   : > { %s21617_s29 = smul.u32 23296, %s22345_s27  ;;  %p22608_p4 = pnand %p21680_p5, %p42_p12 }
  0xa4   : > { %s296_s19 = scalar_lea.vmem [#allocation2], %s21616_s21  ;;  %s22619_s22 = scalar_lea.sflag [#allocation3], %s292_s9 }
  0xa5   : > { %s22615_s14 = scalar_lea.hbm %s27323_s0, %s21617_s29  ;;  %s303_s13 = sshll.u32 %s296_s19, 4  ;;  %s22617_s13 = int_to_ptr.vmem [resolvable:$true] %s303_s13 }
  0xa6   : > { %s22237_s23 = scalar_lea.hbm %s22615_s14, 23296  ;;  %p22239_p8 = pneg %p22608_p4 }
  0xa7   : > { %p22238_p10 = scmp.ne.s32.totalorder %s22615_s14, %s22237_s23  ;;  %s22242_s10 = scalar_lea.hbm %s27323_s0, 46592 }
  0xa8   : > { %p22243_p11 = scmp.lt.u32.totalorder %s22615_s14, %s27323_s0  ;;  %p22244_p12 = scmp.lt.u32.totalorder %s22242_s10, %s22237_s23 }
  0xa9   : > { %p22240_p1 = pnand %p22239_p8, %p22238_p10  ;;  %p22246_p6 = scmp.lt.u32.totalorder %s22237_s23, %s22615_s14 }
  0xaa   : > { %p22245_p13 = por %p22244_p12, %p22243_p11 }
  0xab   : > { %p22241_p3 = pneg %p22240_p1 }
  0xac   : > { %p22247_p2 = por %p22246_p6, %p22245_p13 }
  0xae   : > { %p22248_p5 = pnand %p22247_p2, %p22241_p3 }
  0xb0   : > { %22251 = shalt.err (!%p22248_p5)
}
  0xb1   : > { %s22252_s9 = scalar_lea.vmem %s22617_s13, 23296  ;;  %s22357_s21 = smov [#allocation2]  }
  0xb2   : > { %p22253_p10 = scmp.ne.s32.totalorder %s22617_s13, %s22252_s9  ;;  %s22257_s19 = sshll.u32 %s22357_s21, 4  ;;  %s22258_s19 = int_to_ptr.vmem [resolvable:$false] %s22257_s19 }
  0xb3   : > { %s22259_s1 = scalar_lea.vmem %s22258_s19, 46592  ;;  %p22260_p7 = scmp.lt.s32.totalorder %s22617_s13, %s22258_s19 }
  0xb4   : > { %p22255_p1 = pnand %p22253_p10, %p22239_p8  ;;  %p22261_p11 = scmp.lt.s32.totalorder %s22259_s1, %s22252_s9 }
  0xb6   : > { %p22256_p9 = pneg %p22255_p1  ;;  %p22262_p12 = por %p22261_p11, %p22260_p7 }
  0xb8   : > { %p22263_p13 = pnand %p22262_p12, %p22256_p9 }
  0xba   : > { %22266 = shalt.err (!%p22263_p13)
}
  0xbb   : > { %s27392_s23 = smov 4   ;;  %s27393_s28 = smov 64  }
  0xbc   : > { %21669 = dma.hbm_to_vmem [thread:$0]  (!%p22608_p4), %s22615_s14, 23296, %s22617_s13, %s22619_s22, %s27393_s28, %s27393_s28, %s27392_s23  }
  0xbd   : > { %p27394_p8 = scmp.ne.s32.totalorder %s27383_s8, 0 }
  0xbf   : > { %315 = sbr.rel (%p27394_p8) target bundleno = 3531 (0xdcb), region = 48 }
  0xc6   : > { %s22653_s29 = sand.u32 1, %s22337_s25  }
  0xc7   : > { %s21618_s16 = smul.u32 1456, %s22653_s29  ;;  %s318_s10 = scalar_lea.sflag [#allocation3], %s22653_s29 }
  0xc9   : > { %s22657_s9 = scalar_lea.vmem [#allocation2], %s21618_s16 }
  0xca   : > { %22312 = dma.done.wait (%p22592_p0), %s318_s10, 23296  }
  0xcb   : > { %22314 = vsyncadd (%p22592_p0), %s318_s10, 4294944000  ;;  %p27395_p7 = scmp.eq.s32.totalorder %s22423_s30, 0 }
  0xcd   : > { %22316 = dma.done.wait (%p27395_p7), [#allocation6], 1856   ;;  %p27396_p9 = pmov %p27395_p7 }
  0xce   : > { %p27397_p4 = pmov %p27395_p7 }
  0xcf   : > { %22318 = vsyncadd (%p27396_p9), [#allocation6], 4294965440 }
  0xd0   : > { %22320 = dma.done.wait (%p27397_p4), [#allocation9], 20608   ;;  %p27398_p3 = pmov %p27397_p4 }
  0xd2   : > { %22322 = vsyncadd (%p27398_p3), [#allocation9], 4294946688  ;;  %p27399_p6 = pmov %p27398_p3 }
  0xd3   : > { %p27400_p2 = pmov %p27398_p3 }
  0xd4   : > { %22324 = dma.done.wait (%p27399_p6), [#allocation12], 64  }
  0xd5   : > { %22326 = vsyncadd (%p27400_p2), [#allocation12], 4294967232  ;;  %v27336_v0 = vmov 0   ;;  %vm751_vm0 = vcmask 1041408   ;;  %v21733_v4 = vld [vmem:[#allocation8 + $0x404] ss:$8 sps:$4 sm:$0xff]  }
  0xd6   : > { %790 = vmatprep.mubr.bf16.mxu0 %v27336_v0  ;;  %v17599_v1 = vld.sshfl [vmem:[#allocation7] sm:$0x33 pattern:$0x76325410]  ;;  %v21735_v5 = vld [vmem:[#allocation8 + $0x400] ss:$8 sps:$4 sm:$0xff]   ;;  %996 = vmatprep.subr.bf16.mxu1 %v21733_v4 }
  0xd7   : > { %v736_v2 = vcombine.high %v17599_v1, %v17599_v1  ;;  %v753_v3 = vsel %vm751_vm0, %v17599_v1, 0  ;;  %v21736_v6 = vld [vmem:[#allocation8 + $0x414] ss:$8 sps:$4 sm:$0xff]   ;;  %997 = vmatpush1.bf16.msra.mxu1 %v21735_v5  ;;  %v21738_v7 = vld [vmem:[#allocation8 + $0x410] ss:$8 sps:$4 sm:$0xff]   ;;  %vm474_vm1 = vcmask 1042432  }
  0xd8   : > { %998 = vmatprep.subr.bf16.mxu1 %v21736_v6  ;;  %v21739_v8 = vld [vmem:[#allocation8 + $0x424] ss:$8 sps:$4 sm:$0xff]   ;;  %v22682_v10 = vld [vmem:[%s22657_s9 + $0x204] sm:$0xf]  ;;  %v22691_v13 = vld [vmem:[%s22657_s9 + $0x21c] sm:$0xe] }
  0xd9   : > { %17600 = vmatprep.subr.msk.bf16.mxu0 %vm751_vm0, %v736_v2  ;;  %v22679_v9 = vld [vmem:[%s22657_s9 + $0x200] sm:$0xe]  ;;  %v22685_v11 = vld [vmem:[%s22657_s9 + $0x208] sm:$0x1]  ;;  %v22694_v14 = vld [vmem:[%s22657_s9 + $0x23c] sm:$0xf] }
  0xda   : > { %759 = vmatpush1.bf16.msra.mxu0 %v753_v3  ;;  %v22688_v12 = vld [vmem:[%s22657_s9 + $0x220] sm:$0xf]  ;;  %v21741_v15 = vld [vmem:[#allocation8 + $0x420] ss:$8 sps:$4 sm:$0xff]   ;;  %v22700_v17 = vld [vmem:[%s22657_s9 + $0x238] sm:$0xe] }
  0xdb   : > { %999 = vmatpush1.bf16.msra.mxu1 %v21738_v7  ;;  %v22697_v16 = vld [vmem:[%s22657_s9 + $0x224] sm:$0x1]  ;;  %v22703_v18 = vld [vmem:[%s22657_s9 + $0x240] sm:$0x1]  ;;  %v22706_v19 = vld [vmem:[%s22657_s9 + $0x258] sm:$0xf] }
  0xdc   : > { %1000 = vmatprep.subr.bf16.mxu1 %v21739_v8  ;;  %v21742_v20 = vld [vmem:[#allocation8 + $0x434] ss:$8 sps:$4 sm:$0xff]   ;;  %v22709_v21 = vld [vmem:[%s22657_s9 + $0x274] sm:$0xf]  ;;  %vm475_vm2 = vcmask 1046532   ;;  %v17583_v22 = vrot.slane %v22679_v9, 9 }
  0xdd   : > { %v22713_v23 = vld [vmem:[%s22657_s9 + $0x254] sm:$0xe]  ;;  %v22716_v24 = vld [vmem:[%s22657_s9 + $0x25c] sm:$0x1]  ;;  %v22719_v25 = vld [vmem:[%s22657_s9 + $0x270] sm:$0xe] }
  0xde   : > { %v22722_v26 = vld [vmem:[%s22657_s9 + $0x290] sm:$0xf]  ;;  %v479_v27 = vrot.slane %v22682_v10, 5  ;;  %v486_v28 = vrot.slane %v22688_v12, 5  ;;  %v493_v29 = vrot.slane %v22694_v14, 5  ;;  %v482_v33 = vrot.slane %v22685_v11, 5  ;;  %vm22828_vm3 = vmor %vm474_vm1, %vm475_vm2 }
  0xdf   : > { %v22728_v30 = vld [vmem:[%s22657_s9 + $0x278] sm:$0x1]  ;;  %v22731_v31 = vld [vmem:[%s22657_s9 + $0x28c] sm:$0xe]  ;;  %1001 = vmatpush1.bf16.msra.mxu1 %v21741_v15  ;;  %v22738_v35 = vld [vmem:[%s22657_s9 + $0x294] sm:$0x1] }
  0xe0   : > { %v22734_v32 = vld [vmem:[%s22657_s9 + $0x2ac] sm:$0xf]  ;;  %v22741_v36 = vld [vmem:[%s22657_s9 + $0x2a8] sm:$0xe]  ;;  %v17584_v38 = vrot.slane %v22691_v13, 9  ;;  %v27340_v39 = vrot.slane %v22706_v19, 5  ;;  %1002 = vmatprep.subr.bf16.mxu1 %v21742_v20 }
  0xe1   : > { %v21744_v34 = vld [vmem:[#allocation8 + $0x430] ss:$8 sps:$4 sm:$0xff]   ;;  %v22744_v37 = vld [vmem:[%s22657_s9 + $0x2c8] sm:$0xf]  ;;  %v22749_v41 = vld [vmem:[%s22657_s9 + $0x2b0] sm:$0x1] }
  0xe2   : > { %v21745_v40 = vld [vmem:[#allocation8 + $0x444] ss:$8 sps:$4 sm:$0xff]   ;;  %v22752_v42 = vld [vmem:[%s22657_s9 + $0x2c4] sm:$0xe]  ;;  %v489_v44 = vrot.slane %v22697_v16, 5  ;;  %v27338_v47 = vrot.slane %v22709_v21, 5 }
  0xe3   : > { %v22755_v43 = vld [vmem:[%s22657_s9 + $0x2e4] sm:$0xf]  ;;  %v22762_v48 = vld [vmem:[%s22657_s9 + $0x2cc] sm:$0x1]  ;;  %v22765_v49 = vld [vmem:[%s22657_s9 + $0x300] sm:$0xf]  ;;  %1003 = vmatpush1.bf16.msra.mxu1 %v21744_v34 }
  0xe4   : > { %v481_v50 = vrot.slane %v479_v27, 4  ;;  %v22771_v51 = vrot.slane %v486_v28, 4  ;;  %v22775_v52 = vrot.slane %v493_v29, 4  ;;  %v27339_v53 = vrot.slane %v22722_v26, 5  ;;  %v22779_v54 = vld [vmem:[%s22657_s9 + $0x2e0] sm:$0xe]  ;;  %1004 = vmatprep.subr.bf16.mxu1 %v21745_v40 }
  0xe5   : > { %v22782_v55 = vld [vmem:[%s22657_s9 + $0x31c] sm:$0xf]  ;;  %v22785_v56 = vld [vmem:[%s22657_s9 + $0x338] sm:$0xf]  ;;  %v27341_v60 = vrot.slane %v22734_v32, 5  ;;  %v502_v2 = vrot.slane %v27340_v39, 4 }
  0xe6   : > { %v21747_v61 = vld [vmem:[#allocation8 + $0x440] ss:$8 sps:$4 sm:$0xff]   ;;  %v22792_v62 = vld [vmem:[%s22657_s9 + $0x2e8] sm:$0x1]  ;;  %v510_v3 = vrot.slane %v22728_v30, 5  ;;  %v17588_v4 = vrot.slane %v22731_v31, 9  ;;  %v22869_v12 = vsel %vm22828_vm3, %v481_v50, %v482_v33  ;;  %v22885_v11 = vsel %vm22828_vm3, %v22771_v51, %v489_v44 }
  0xe7   : > { %v22795_v63 = vld [vmem:[%s22657_s9 + $0x2fc] sm:$0xe]  ;;  %v22798_v1 = vld [vmem:[%s22657_s9 + $0x304] sm:$0x1]  ;;  %v21748_v5 = vld [vmem:[#allocation8 + $0x454] ss:$8 sps:$4 sm:$0xff]   ;;  %1005 = vmatpush1.bf16.msra.mxu1 %v21747_v61  ;;  %v622_v51 = vunpack.c.l.bf16 %v22869_v12 }
  0xe8   : > { %v22805_v6 = vld [vmem:[%s22657_s9 + $0x318] sm:$0xe]  ;;  %v509_v7 = vrot.slane %v27338_v47, 4  ;;  %v517_v8 = vrot.slane %v22738_v35, 5  ;;  %v17589_v15 = vrot.slane %v22741_v36, 9  ;;  %v528_v20 = vrot.slane %v22744_v37, 5  ;;  %1006 = vmatprep.subr.bf16.mxu1 %v21748_v5 }
  0xe9   : > { %v22813_v34 = vld [vmem:[%s22657_s9 + $0x320] sm:$0x1]  ;;  %v22816_v0 = vld [vmem:[%s22657_s9 + $0x334] sm:$0xe]  ;;  %v516_v30 = vrot.slane %v27339_v53, 4  ;;  %v524_v31 = vrot.slane %v22749_v41, 5 }
  0xea   : > { %v17590_v40 = vrot.slane %v22752_v42, 9  ;;  %v535_v59 = vrot.slane %v22755_v43, 5  ;;  %v22824_v47 = vld [vmem:[%s22657_s9 + $0x33c] sm:$0x1]  ;;  %v523_v36 = vrot.slane %v27341_v60, 4  ;;  %v531_v37 = vrot.slane %v22762_v48, 5 }
  0xeb   : > { %v542_v53 = vrot.slane %v22765_v49, 5  ;;  %vm653_vm4 = vcmask 31744   ;;  %v21750_v41 = vld [vmem:[#allocation8 + $0x450] ss:$8 sps:$4 sm:$0xff]   ;;  %v17591_v42 = vrot.slane %v22779_v54, 9  ;;  %v27343_v43 = vrot.slane %v22782_v55, 5 }
  0xec   : > { %v27342_v58 = vrot.slane %v22785_v56, 5  ;;  %v21751_v57 = vld [vmem:[#allocation8 + $0x464] ss:$8 sps:$4 sm:$0xff]   ;;  %v530_v39 = vrot.slane %v528_v20, 4  ;;  %v538_v46 = vrot.slane %v22792_v62, 5  ;;  %v17592_v60 = vrot.slane %v22795_v63, 9  ;;  %1007 = vmatpush1.bf16.msra.mxu1 %v21750_v41 }
  0xed   : > { %v545_v48 = vrot.slane %v22798_v1, 5  ;;  %v22848_v54 = vsel %vm22828_vm3, %v17583_v22, %v479_v27  ;;  %v537_v61 = vrot.slane %v535_v59, 4  ;;  %v21753_v5 = vld [vmem:[#allocation8 + $0x460] ss:$8 sps:$4 sm:$0xff]   ;;  %v22857_v62 = vsel %vm22828_vm3, %v17584_v38, %v486_v28  ;;  %v21754_v27 = vld [vmem:[#allocation8 + $0x474] ss:$8 sps:$4 sm:$0xff]   ;;  %1008 = vmatprep.subr.bf16.mxu1 %v21751_v57 }
  0xee   : > { %v22861_v10 = vrot.slane %v542_v53, 4  ;;  %v22873_v13 = vrot.slane %v27343_v43, 4  ;;  %v22877_v28 = vrot.slane %v27342_v58, 4  ;;  %v21756_v22 = vld [vmem:[#allocation8 + $0x470] ss:$8 sps:$4 sm:$0xff]   ;;  %v27403_v33 = vrot.slane %v22700_v17, 9 }
  0xef   : > { %v27404_v41 = vrot.slane %v22703_v18, 5  ;;  %v621_v16 = vunpack.c.l.bf16 %v22848_v54  ;;  %v21757_v38 = vld [vmem:[#allocation8 + $0x484] ss:$8 sps:$4 sm:$0xff]   ;;  %v27405_v44 = vrot.slane %v22706_v19, 5  ;;  %v27406_v14 = vrot.slane %v22713_v23, 9  ;;  %s17534_s8 = sshll.u32 %s22653_s29, 9 }
  0xf0   : > { %v22893_v50 = vsel %vm22828_vm3, %v27403_v33, %v493_v29  ;;  %v27407_v29 = vrot.slane %v22716_v24, 5  ;;  %1009 = vmatpush1.bf16.msra.mxu1 %v21753_v5  ;;  %v27408_v33 = vrot.slane %v22709_v21, 5  ;;  %v27409_v19 = vrot.slane %v22719_v25, 9  ;;  %v21765_v43 = vld [vmem:[#allocation8 + $0x4a0] ss:$8 sps:$4 sm:$0xff]   ;;  %s27086_s17 = scalar_lea.vmem [#allocation14], %s17534_s8 }
  0xf1   : > { %v22900_v57 = vsel %vm22828_vm3, %v22775_v52, %v27404_v41  ;;  %v22909_v17 = vsel %vm22828_vm3, %v27406_v14, %v27405_v44  ;;  %v623_v52 = vunpack.c.l.bf16 %v22857_v62  ;;  %v22929_v24 = vsel %vm22828_vm3, %v509_v7, %v510_v3  ;;  %1010 = vmatprep.subr.bf16.mxu1 %v21754_v27  ;;  %v17573_v63 = vld [vmem:[%s22657_s9 + $0x358] sm:$0x1]  ;;  %s19887_s12 = sshll.u32 %s22423_s30, 13  ;;  %s17387_s14 = sshll.u32 %s27086_s17, 4  ;;  %s27276_s14 = int_to_ptr.vmem [resolvable:$true] %s17387_s14 }
  0xf2   : > { %v22915_v18 = vsel %vm22828_vm3, %v502_v2, %v27407_v29  ;;  %v22925_v23 = vsel %vm22828_vm3, %v27409_v19, %v27408_v33  ;;  %v27410_v2 = vrot.slane %v22722_v26, 5  ;;  %v22939_v5 = vsel %vm22828_vm3, %v516_v30, %v517_v8  ;;  %s27274_s21 = scalar_lea.hbm %s27330_s7, %s19887_s12  ;;  %s17374_s30 = scalar_lea.sflag [#allocation4], %s22653_s29 }
  0xf3   : > { %v27411_v21 = vrot.slane %v22734_v32, 5  ;;  %v22949_v3 = vsel %vm22828_vm3, %v523_v36, %v524_v31  ;;  %v22953_v26 = vsel %vm22828_vm3, %v17590_v40, %v528_v20  ;;  %v22958_v7 = vsel %vm22828_vm3, %v530_v39, %v531_v37  ;;  %v21759_v39 = vld [vmem:[#allocation8 + $0x480] ss:$8 sps:$4 sm:$0xff]   ;;  %s22267_s19 = scalar_lea.vmem %s27276_s14, 8192  ;;  %p27579_p5 = scmp.ne.s32.totalorder %s27389_s18, 0 }
  0xf4   : > { %v22935_v41 = vsel %vm22828_vm3, %v17588_v4, %v27410_v2  ;;  %v624_v4 = vunpack.c.l.bf16 %v22885_v11  ;;  %v22962_v32 = vsel %vm22828_vm3, %v17591_v42, %v535_v59  ;;  %v22966_v8 = vsel %vm22828_vm3, %v537_v61, %v538_v46  ;;  %1011 = vmatpush1.bf16.msra.mxu1 %v21756_v22  ;;  %v21760_v42 = vld [vmem:[#allocation8 + $0x494] ss:$8 sps:$4 sm:$0xff]   ;;  %p22268_p0 = scmp.ne.s32.totalorder %s27276_s14, %s22267_s19  ;;  %s22359_s1 = smov [#allocation14]  }
  0xf5   : > { %v22945_v25 = vsel %vm22828_vm3, %v17589_v15, %v27411_v21  ;;  %v654_v15 = vsel %vm653_vm4, %v621_v16, 0.0  ;;  %v625_v30 = vunpack.c.l.bf16 %v22893_v50  ;;  %v626_v20 = vunpack.c.l.bf16 %v22900_v57  ;;  %1012 = vmatprep.subr.bf16.mxu1 %v21757_v38  ;;  %v21763_v21 = vld [vmem:[#allocation8 + $0x4a4] ss:$8 sps:$4 sm:$0xff]   ;;  %s22271_s23 = sshll.u32 %s22359_s1, 4  ;;  %s22272_s23 = int_to_ptr.vmem [resolvable:$false] %s22271_s23 }
  0xf6   : > { %v655_v31 = vsel %vm653_vm4, %v622_v51, 0.0  ;;  %v657_v40 = vsel %vm653_vm4, %v623_v52, 0.0  ;;  %v627_v36 = vunpack.c.l.bf16 %v22909_v17  ;;  %v628_v59 = vunpack.c.l.bf16 %v22915_v18  ;;  %v21762_v52 = vld [vmem:[#allocation8 + $0x490] ss:$8 sps:$4 sm:$0xff]   ;;  %p22269_p10 = pnand %p22268_p0, %p27579_p5  ;;  %s22273_s28 = scalar_lea.vmem %s22272_s23, 16384 }
  0xf7   : > { %v629_v37 = vunpack.c.l.bf16 %v22925_v23  ;;  %v656_v46 = vadd.f32 %v655_v31, %v654_v15  ;;  %v630_v61 = vunpack.c.l.bf16 %v22929_v24  ;;  %v631_v27 = vunpack.c.l.bf16 %v22935_v41  ;;  %p22274_p11 = scmp.lt.s32.totalorder %s27276_s14, %s22272_s23  ;;  %p22275_p12 = scmp.lt.s32.totalorder %s22273_s28, %s22267_s19 }
  0xf8   : > { %v632_v16 = vunpack.c.l.bf16 %v22939_v5  ;;  %v659_v44 = vsel %vm653_vm4, %v624_v4, 0.0  ;;  %v633_v22 = vunpack.c.l.bf16 %v22945_v25  ;;  %v634_v14 = vunpack.c.l.bf16 %v22949_v3  ;;  %1013 = vmatpush1.bf16.msra.mxu1 %v21759_v39  ;;  %p22270_p1 = pneg %p22269_p10 }
  0xf9   : > { %v635_v29 = vunpack.c.l.bf16 %v22953_v26  ;;  %v658_v51 = vadd.f32 %v657_v40, %v656_v46  ;;  %v636_v33 = vunpack.c.l.bf16 %v22958_v7  ;;  %v637_v38 = vunpack.c.l.bf16 %v22962_v32  ;;  %1014 = vmatprep.subr.bf16.mxu1 %v21760_v42  ;;  %p22276_p13 = por %p22275_p12, %p22274_p11 }
  0xfa   : > { %v638_v19 = vunpack.c.l.bf16 %v22966_v8  ;;  %v661_v2 = vsel %vm653_vm4, %v625_v30, 0.0  ;;  %v663_v4 = vsel %vm653_vm4, %v626_v20, 0.0  ;;  %v665_v31 = vsel %vm653_vm4, %v627_v36, 0.0  ;;  %v21766_v36 = vld [vmem:[#allocation8 + $0x4b4] ss:$8 sps:$4 sm:$0xff]  }
  0xfb   : > { %v660_v15 = vadd.f32 %v659_v44, %v658_v51  ;;  %v667_v58 = vsel %vm653_vm4, %v628_v59, 0.0  ;;  %v669_v40 = vsel %vm653_vm4, %v629_v37, 0.0  ;;  %v671_v46 = vsel %vm653_vm4, %v630_v61, 0.0  ;;  %v21769_v51 = vld [vmem:[#allocation8 + $0x4c4] ss:$8 sps:$4 sm:$0xff]   ;;  %p22277_p8 = pnand %p22276_p13, %p22270_p1 }
  0xfc   : > { %v673_v9 = vsel %vm653_vm4, %v631_v27, 0.0  ;;  %v675_v45 = vsel %vm653_vm4, %v632_v16, 0.0  ;;  %v677_v39 = vsel %vm653_vm4, %v633_v22, 0.0  ;;  %v679_v44 = vsel %vm653_vm4, %v634_v14, 0.0  ;;  %1015 = vmatpush1.bf16.msra.mxu1 %v21762_v52  ;;  %v21768_v27 = vld [vmem:[#allocation8 + $0x4b0] ss:$8 sps:$4 sm:$0xff]  }
  0xfd   : > { %v662_v30 = vadd.f32 %v661_v2, %v660_v15  ;;  %v681_v20 = vsel %vm653_vm4, %v635_v29, 0.0  ;;  %v683_v59 = vsel %vm653_vm4, %v636_v33, 0.0  ;;  %v685_v42 = vsel %vm653_vm4, %v637_v38, 0.0  ;;  %1016 = vmatprep.subr.bf16.mxu1 %v21763_v21  ;;  %v21771_v22 = vld [vmem:[#allocation8 + $0x4c0] ss:$8 sps:$4 sm:$0xff]  }
  0xfe   : > { %v687_v37 = vsel %vm653_vm4, %v638_v19, 0.0  ;;  %v21772_v29 = vld [vmem:[#allocation8 + $0x4d4] ss:$8 sps:$4 sm:$0xff]   ;;  %v21774_v38 = vld [vmem:[#allocation8 + $0x4d0] ss:$8 sps:$4 sm:$0xff]   ;;  %vm1580_vm5 = vcmask 1045508  }
  0xff   : > { %v664_v61 = vadd.f32 %v663_v4, %v662_v30  ;;  %v17572_v15 = vld [vmem:[%s22657_s9 + $0x354] sm:$0xf]  ;;  %v17571_v4 = vld [vmem:[%s22657_s9 + $0x350] sm:$0xe]  ;;  %vm23185_vm6 = vmor %vm751_vm0, %vm1580_vm5  ;;  %vm6834_vm7 = vcmask 1040384   ;;  %vm6835_vm8 = vcmask 1044484  }
 0x100   : > { %1017 = vmatpush1.bf16.msra.mxu1 %v21765_v43  ;;  %v563_v30 = vrot.slane %v17572_v15, 5  ;;  %vm25176_vm9 = vmor %vm6834_vm7, %vm6835_vm8 }
 0x101   : > { %v666_v16 = vadd.f32 %v665_v31, %v664_v61  ;;  %1018 = vmatprep.subr.bf16.mxu1 %v21766_v36  ;;  %v27412_v31 = vrot.slane %v22782_v55, 5  ;;  %v17574_v55 = vld [vmem:[%s22657_s9 + $0x36c] sm:$0xe]  ;;  %v27415_v36 = vrot.slane %v22785_v56, 5 }
 0x103   : > { %v668_v2 = vadd.f32 %v667_v58, %v666_v16  ;;  %v23006_v58 = vsel %vm22828_vm3, %v17592_v60, %v542_v53  ;;  %v27413_v53 = vrot.slane %v22805_v6, 9 }
 0x104   : > { %1019 = vmatpush1.bf16.msra.mxu1 %v21768_v27  ;;  %v639_v49 = vunpack.c.l.bf16 %v23006_v58  ;;  %v566_v27 = vrot.slane %v17573_v63, 5 }
 0x105   : > { %v670_v14 = vadd.f32 %v669_v40, %v668_v2  ;;  %1020 = vmatprep.subr.bf16.mxu1 %v21769_v51  ;;  %v23025_v60 = vsel %vm22828_vm3, %v27413_v53, %v27412_v31  ;;  %v17575_v40 = vld [vmem:[%s22657_s9 + $0x370] sm:$0xf]  ;;  %v27417_v2 = vrot.slane %v22824_v47, 5  ;;  %v17596_v47 = vrot.slane %v17574_v55, 9  ;;  %v17580_v31 = vld [vmem:[%s22657_s9 + $0x3a4] sm:$0xe] }
 0x106   : > { %v641_v6 = vunpack.c.l.bf16 %v23025_v60 }
 0x107   : > { %v672_v33 = vadd.f32 %v671_v46, %v670_v14  ;;  %v23056_v56 = vsel %vm22828_vm3, %v22877_v28, %v27417_v2 }
 0x108   : > { %1021 = vmatpush1.bf16.msra.mxu1 %v21771_v22  ;;  %v570_v22 = vrot.slane %v17575_v40, 5  ;;  %v17582_v40 = vld [vmem:[%s22657_s9 + $0x3ac] sm:$0x1] }
 0x109   : > { %v674_v19 = vadd.f32 %v673_v9, %v672_v33  ;;  %1022 = vmatprep.subr.bf16.mxu1 %v21772_v29  ;;  %v17577_v29 = vld [vmem:[%s22657_s9 + $0x388] sm:$0xe]  ;;  %v693_v33 = vsel %vm653_vm4, %v641_v6, 0.0 }
 0x10b   : > { %v676_v52 = vadd.f32 %v675_v45, %v674_v19  ;;  %v23014_v45 = vsel %vm22828_vm3, %v22861_v10, %v545_v48  ;;  %v27414_v48 = vrot.slane %v22813_v34, 5 }
 0x10c   : > { %1023 = vmatpush1.bf16.msra.mxu1 %v21774_v38  ;;  %v640_v46 = vunpack.c.l.bf16 %v23014_v45  ;;  %v17579_v38 = vld [vmem:[%s22657_s9 + $0x390] sm:$0x1] }
 0x10d   : > { %v678_v21 = vadd.f32 %v677_v39, %v676_v52  ;;  %v23034_v10 = vsel %vm22828_vm3, %v22873_v13, %v27414_v48  ;;  %v17595_v13 = vrot.slane %v17571_v4, 9  ;;  %v572_v4 = vrot.slane %v570_v22, 4 }
 0x10e   : > { %v642_v16 = vunpack.c.l.bf16 %v23034_v10  ;;  %v691_v51 = vsel %vm653_vm4, %v640_v46, 0.0  ;;  %v23079_v46 = vsel %vm22828_vm3, %v17596_v47, %v570_v22  ;;  %v17597_v48 = vrot.slane %v17577_v29, 9 }
 0x10f   : > { %v680_v43 = vadd.f32 %v679_v44, %v678_v21  ;;  %v689_v44 = vsel %vm653_vm4, %v639_v49, 0.0  ;;  %v23064_v19 = vsel %vm22828_vm3, %v17595_v13, %v563_v30  ;;  %v17581_v21 = vld [vmem:[%s22657_s9 + $0x3a8] sm:$0xf]  ;;  %v647_v13 = vunpack.c.l.bf16 %v23079_v46 }
 0x110   : > { %v695_v15 = vsel %vm653_vm4, %v642_v16, 0.0  ;;  %v645_v53 = vunpack.c.l.bf16 %v23064_v19 }
 0x111   : > { %v682_v9 = vadd.f32 %v681_v20, %v680_v43  ;;  %v17576_v20 = vld [vmem:[%s22657_s9 + $0x374] sm:$0x1]  ;;  %v644_v43 = vunpack.c.l.bf16 %v23056_v56 }
 0x112   : > { %v573_v28 = vrot.slane %v17576_v20, 5 }
 0x113   : > { %v684_v1 = vadd.f32 %v683_v59, %v682_v9  ;;  %v27416_v59 = vrot.slane %v22816_v0, 9  ;;  %v565_v0 = vrot.slane %v563_v30, 4  ;;  %v699_v6 = vsel %vm653_vm4, %v644_v43, 0.0 }
 0x115   : > { %v686_v39 = vadd.f32 %v685_v42, %v684_v1  ;;  %v23046_v34 = vsel %vm22828_vm3, %v27416_v59, %v27415_v36  ;;  %v17578_v42 = vld [vmem:[%s22657_s9 + $0x38c] sm:$0xf]  ;;  %v23071_v9 = vsel %vm22828_vm3, %v565_v0, %v566_v27  ;;  %v584_v36 = vrot.slane %v17581_v21, 5 }
 0x116   : > { %v577_v49 = vrot.slane %v17578_v42, 5  ;;  %v646_v55 = vunpack.c.l.bf16 %v23071_v9  ;;  %v17598_v27 = vrot.slane %v17580_v31, 9 }
 0x117   : > { %v688_v61 = vadd.f32 %v687_v37, %v686_v39  ;;  %v643_v37 = vunpack.c.l.bf16 %v23046_v34  ;;  %v580_v39 = vrot.slane %v17579_v38, 5 }
 0x118   : > { %v579_v20 = vrot.slane %v577_v49, 4  ;;  %v23091_v42 = vsel %vm22828_vm3, %v17597_v48, %v577_v49  ;;  %v703_v0 = vsel %vm653_vm4, %v646_v55, 0.0  ;;  %v23103_v38 = vsel %vm22828_vm3, %v17598_v27, %v584_v36 }
 0x119   : > { %v690_v14 = vadd.f32 %v689_v44, %v688_v61  ;;  %v697_v1 = vsel %vm653_vm4, %v643_v37, 0.0  ;;  %v23085_v44 = vsel %vm22828_vm3, %v572_v4, %v573_v28  ;;  %v701_v61 = vsel %vm653_vm4, %v645_v53, 0.0 }
 0x11a   : > { %v648_v2 = vunpack.c.l.bf16 %v23085_v44  ;;  %v23097_v22 = vsel %vm22828_vm3, %v579_v20, %v580_v39  ;;  %v649_v37 = vunpack.c.l.bf16 %v23091_v42 }
 0x11b   : > { %v692_v52 = vadd.f32 %v691_v51, %v690_v14  ;;  %v587_v51 = vrot.slane %v17582_v40, 5  ;;  %v586_v14 = vrot.slane %v584_v36, 4 }
 0x11c   : > { %v707_v21 = vsel %vm653_vm4, %v648_v2, 0.0  ;;  %v709_v4 = vsel %vm653_vm4, %v649_v37, 0.0  ;;  %v21777_v2 = vld [vmem:[#allocation8 + $0x4e0] ss:$8 sps:$4 sm:$0xff]  }
 0x11d   : > { %v694_v63 = vadd.f32 %v693_v33, %v692_v52  ;;  %v705_v33 = vsel %vm653_vm4, %v647_v13, 0.0  ;;  %v650_v52 = vunpack.c.l.bf16 %v23097_v22  ;;  %v23109_v28 = vsel %vm22828_vm3, %v586_v14, %v587_v51  ;;  %v21775_v51 = vld [vmem:[#allocation8 + $0x4e4] ss:$8 sps:$4 sm:$0xff]   ;;  %v21780_v14 = vld [vmem:[#allocation8 + $0x4f0] ss:$8 sps:$4 sm:$0xff]  }
 0x11e   : > { %1024 = vmatprep.subr.bf16.mxu1 %v21775_v51  ;;  %v21782_v51 = vld [vmem:[%s22657_s9 + $0x178] sm:$0xff]  }
 0x11f   : > { %v696_v30 = vadd.f32 %v695_v15, %v694_v63  ;;  %v651_v15 = vunpack.c.l.bf16 %v23103_v38  ;;  %v652_v63 = vunpack.c.l.bf16 %v23109_v28  ;;  %v711_v31 = vsel %vm653_vm4, %v650_v52, 0.0  ;;  %1025 = vmatpush1.bf16.msra.mxu1 %v21777_v2  ;;  %v21783_v2 = vld [vmem:[%s22657_s9 + $0x194] sm:$0xff]  }
 0x121   : > { %v698_v59 = vadd.f32 %v697_v1, %v696_v30  ;;  %v713_v1 = vsel %vm653_vm4, %v651_v15, 0.0  ;;  %v715_v48 = vsel %vm653_vm4, %v652_v63, 0.0 }
 0x123   : > { %v700_v16 = vadd.f32 %v699_v6, %v698_v59 }
 0x125   : > { %v702_v29 = vadd.f32 %v701_v61, %v700_v16  ;;  %v27418_v16 = vmov 0  }
 0x127   : > { %v704_v47 = vadd.f32 %v703_v0, %v702_v29  ;;  %v21778_v0 = vld [vmem:[#allocation8 + $0x4f4] ss:$8 sps:$4 sm:$0xff]   ;;  %v17912_v29 = vld.sshfl [vmem:[#allocation5 + $0xc] sm:$0x33 pattern:$0x76325410] }
 0x128   : > { %1026 = vmatprep.subr.bf16.mxu1 %v21778_v0  ;;  %v2636_v37 = vcombine.high %v17912_v29, %v17912_v29  ;;  %v21784_v0 = vld [vmem:[%s22657_s9 + $0x1b0] sm:$0xff]  }
 0x129   : > { %v706_v43 = vadd.f32 %v705_v33, %v704_v47  ;;  %1027 = vmatpush1.bf16.msra.mxu1 %v21780_v14  ;;  %v738_v33 = vlaneseq  ;;  %v21785_v14 = vld [vmem:[%s22657_s9 + $0x1cc] sm:$0xff]  }
 0x12a   : > { %17913 = vmatprep.subr.msk.bf16.mxu1 %vm751_vm0, %v2636_v37  ;;  %v21787_v37 = vld [vmem:[%s22657_s9 + $0x204] sm:$0xff]  }
 0x12b   : > { %v708_v49 = vadd.f32 %v707_v21, %v706_v43  ;;  %v739_v47 = vshrl.u32 %v738_v33, 7  ;;  %v727_v21 = vld [vmem:[#allocation11] sm:$0x3]  ;;  %v21788_v33 = vld [vmem:[%s22657_s9 + $0x220] sm:$0xff]  }
 0x12d   : > { %v710_v53 = vadd.f32 %v709_v4, %v708_v49  ;;  %v23120_v52 = vsub.s32 0, %v739_v47  ;;  %v23122_v43 = vsub.s32 1, %v739_v47  ;;  %v21789_v47 = vld [vmem:[%s22657_s9 + $0x23c] sm:$0xff]  }
 0x12f   : > { %v712_v40 = vadd.f32 %v711_v31, %v710_v53  ;;  %27419 = vst [vmem:[#allocation20_spill] sm:$0xff] %v23120_v52  ;;  %27420 = vst [vmem:[#allocation21_spill] sm:$0xff] %v23122_v43  ;;  %v741_v15 = vrot.slane %v727_v21, %v23120_v52  ;;  %v745_v4 = vrot.slane %v727_v21, %v23122_v43  ;;  %v21790_v21 = vld [vmem:[%s22657_s9 + $0x258] sm:$0xff]  }
 0x131   : > { %v714_v30 = vadd.f32 %v713_v1, %v712_v40 }
 0x133   : > { %v716_v39 = vadd.f32 %v715_v48, %v714_v30 }
 0x135   : > { %v717_v55 = vrot.slane %v716_v39, 4 }
 0x137   : > { %v718_v6 = vadd.f32 %v717_v55, %v716_v39  ;;  %v18010_v39 = vld.sshfl [vmem:[#allocation5 + $0x10] sm:$0x33 pattern:$0x76325410] }
 0x139   : > { %v719_v20 = vrot.slane %v718_v6, 2 }
 0x13b   : > { %v720_v36 = vadd.f32 %v719_v20, %v718_v6  ;;  %v2686_v20 = vsel %vm751_vm0, %v17912_v29, 0  ;;  %v21786_v29 = vld [vmem:[%s22657_s9 + $0x1e8] sm:$0xff]  }
 0x13d   : > { %v721_v59 = vrot.slane %v720_v36, 1 }
 0x13f   : > { %v722_v13 = vadd.f32 %v721_v59, %v720_v36  ;;  %v3214_v36 = vcombine.high %v18010_v39, %v18010_v39  ;;  %v23129_v59 = vld.sshfl [vmem:[#allocation5 + $0x14] sm:$0x33 pattern:$0x76325410] }
 0x141   : > { %v724_v61 = vmul.f32 0.00390625, %v722_v13  ;;  %v21781_v13 = vld [vmem:[%s22657_s9 + $0x15c] sm:$0xff]  }
 0x143   : > { %v725_v27 = vpack.c.bf16 %v724_v61, %v724_v61  ;;  %v3264_v61 = vsel %vm751_vm0, %v18010_v39, 0 }
 0x145   : > { %17601 = vmatmul.mubr.msk.bf16.vlgmr.msra.gmra.mrb[0].mxu0 %vm653_vm4, %v725_v27  ;;  %v3536_v27 = vcombine.high %v23129_v59, %v23129_v59 }
 0x146   : > { %1193 = vmatprep.mubr.bf16.mxu0 %v27418_v16 }
 0x218   : > { %v792_v49 = vpop.f32.mrb[0].mxu0 }
 0x219   : > { %v794_v63 = vpop.f32.mrb[1].mxu0  ;;  %v793_v31 = vadd.f32 %v792_v49, %v741_v15  ;;  %v21791_v15 = vld [vmem:[%s22657_s9 + $0x274] sm:$0xff]   ;;  %v21793_v49 = vld [vmem:[%s22657_s9 + $0x2ac] sm:$0xff]  }
 0x21a   : > { %v796_v53 = vpop.f32.mrb[2].mxu0  ;;  %v795_v1 = vadd.f32 %v794_v63, %v745_v4  ;;  %v21792_v4 = vld [vmem:[%s22657_s9 + $0x290] sm:$0xff]   ;;  %v21794_v63 = vld [vmem:[%s22657_s9 + $0x2c8] sm:$0xff]  }
 0x21b   : > { %v797_v40 = vpop.f32.mrb[3].mxu0  ;;  %v799_v48 = vmax.f32 %v793_v31, 0.0  ;;  %v21795_v31 = vld [vmem:[%s22657_s9 + $0x2e4] sm:$0xff]   ;;  %v17931_v53 = vld [vmem:[%s22657_s9 + $0x200] sm:$0xf] }
 0x21c   : > { %v800_v30 = vmax.f32 %v795_v1, 0.0  ;;  %v3046_v1 = vrot.slane %v17931_v53, 6  ;;  %v17930_v40 = vld [vmem:[%s22657_s9 + $0x1fc] sm:$0xc] }
 0x21d   : > { %v801_v6 = vpack.c.bf16 %v799_v48, %v799_v48  ;;  %v17932_v48 = vld [vmem:[%s22657_s9 + $0x204] sm:$0x3]  ;;  %v17978_v39 = vrot.slane %v17930_v40, 10 }
 0x21e   : > { %v802_v55 = vpack.c.bf16 %v800_v30, %v800_v30  ;;  %v21796_v30 = vld [vmem:[%s22657_s9 + $0x300] sm:$0xff]  }
 0x220   : > { %1028 = vmatprep.mubr.bf16.mxu1 %v802_v55  ;;  %v3048_v55 = vrot.slane %v3046_v1, 4 }
 0x221   : > { %1029 = vmatmul.mubr.bf16.vlgmr.msra.gmra.mrb[0].mxu1 %v801_v6  ;;  %v3049_v6 = vrot.slane %v17932_v48, 6 }
 0x222   : > { %2692 = vmatpush1.bf16.msra.mxu1 %v2686_v20  ;;  %2723 = vmatprep.mubr.bf16.mxu1 %v27418_v16  ;;  %v27421_v20 = vmov 0 }
 0x223   : > { %18011 = vmatprep.subr.msk.bf16.mxu1 %vm751_vm0, %v3214_v36  ;;  %v27422_v20 = vsel %vm23185_vm6, 4294967295, %v27421_v20  ;;  %v17934_v36 = vld [vmem:[%s22657_s9 + $0x21c] sm:$0xf] }
 0x224   : > { %27423 = vst [vmem:[#allocation22_spill] sm:$0xff] %v27422_v20 }
 0x229   : > { %17914 = vmatmul.mubr.msk.bf16.vlgmr.msra.gmra.mrb[4].mxu1 %vm653_vm4, %v21781_v13  ;;  %v3047_v13 = vsel %vm23185_vm6, %v17978_v39, %v3046_v1 }
 0x22a   : > { %3270 = vmatpush1.bf16.msra.mxu1 %v3264_v61  ;;  %2733 = vmatprep.mubr.bf16.mxu1 %v27418_v16  ;;  %v3050_v61 = vsel %vm23185_vm6, %v3048_v55, %v3049_v6 }
 0x22b   : > { %18029 = vmatprep.subr.msk.bf16.mxu1 %vm751_vm0, %v3536_v27  ;;  %v3053_v27 = vrot.slane %v17934_v36, 6  ;;  %v17939_v36 = vld [vmem:[%s22657_s9 + $0x250] sm:$0xc] }
 0x231   : > { %17915 = vmatmul.mubr.msk.bf16.gmra.mrb[8].mxu1 %vm653_vm4, %v21782_v51  ;;  %v17933_v51 = vld [vmem:[%s22657_s9 + $0x218] sm:$0xc] }
 0x232   : > { %2743 = vmatprep.mubr.bf16.mxu1 %v27418_v16 }
 0x239   : > { %17916 = vmatmul.mubr.msk.bf16.gmra.mrb[12].mxu1 %vm653_vm4, %v21783_v2  ;;  %v17935_v2 = vld [vmem:[%s22657_s9 + $0x220] sm:$0x3] }
 0x23a   : > { %2753 = vmatprep.mubr.bf16.mxu1 %v27418_v16 }
 0x241   : > { %17917 = vmatmul.mubr.msk.bf16.gmra.mrb[16].mxu1 %vm653_vm4, %v21784_v0  ;;  %v23198_v0 = vld.sshfl [vmem:[#allocation5 + $0x18] sm:$0x33 pattern:$0x76325410] }
 0x242   : > { %2763 = vmatprep.mubr.bf16.mxu1 %v27418_v16 }
 0x249   : > { %17918 = vmatmul.mubr.msk.bf16.gmra.mrb[20].mxu1 %vm653_vm4, %v21785_v14  ;;  %v17994_v14 = vcombine.low %v3047_v13, %v3050_v61  ;;  %v17941_v13 = vld [vmem:[%s22657_s9 + $0x258] sm:$0x3] }
 0x24a   : > { %2773 = vmatprep.mubr.bf16.mxu1 %v27418_v16 }
 0x251   : > { %17919 = vmatmul.mubr.msk.bf16.gmra.mrb[24].mxu1 %vm653_vm4, %v21786_v29  ;;  %v17979_v29 = vrot.slane %v17933_v51, 10 }
 0x252   : > { %2783 = vmatprep.mubr.bf16.mxu1 %v27418_v16 }
 0x259   : > { %17920 = vmatmul.mubr.msk.bf16.gmra.mrb[28].mxu1 %vm653_vm4, %v21787_v37  ;;  %v3055_v37 = vrot.slane %v3053_v27, 4 }
 0x25a   : > { %2793 = vmatprep.mubr.bf16.mxu1 %v27418_v16 }
 0x261   : > { %17921 = vmatmul.mubr.msk.bf16.gmra.mrb[32].mxu1 %vm653_vm4, %v21788_v33  ;;  %v3056_v33 = vrot.slane %v17935_v2, 6  ;;  %v3070_v2 = vrot.slane %v17941_v13, 6 }
 0x262   : > { %2803 = vmatprep.mubr.bf16.mxu1 %v27418_v16 }
 0x269   : > { %17922 = vmatmul.mubr.msk.bf16.gmra.mrb[36].mxu1 %vm653_vm4, %v21789_v47  ;;  %v3538_v47 = vsel %vm751_vm0, %v23129_v59, 0  ;;  %v17936_v59 = vld [vmem:[%s22657_s9 + $0x234] sm:$0xc] }
 0x26a   : > { %2813 = vmatprep.mubr.bf16.mxu1 %v27418_v16  ;;  %v17980_v1 = vrot.slane %v17936_v59, 10  ;;  %v17946_v59 = vld [vmem:[%s22657_s9 + $0x28c] sm:$0xf] }
 0x271   : > { %17923 = vmatmul.mubr.msk.bf16.gmra.mrb[40].mxu1 %vm653_vm4, %v21790_v21  ;;  %v17937_v21 = vld [vmem:[%s22657_s9 + $0x238] sm:$0xf] }
 0x272   : > { %2823 = vmatprep.mubr.bf16.mxu1 %v27418_v16 }
 0x279   : > { %17924 = vmatmul.mubr.msk.bf16.gmra.mrb[44].mxu1 %vm653_vm4, %v21791_v15  ;;  %v3922_v15 = vcombine.high %v23198_v0, %v23198_v0 }
 0x27a   : > { %2833 = vmatprep.mubr.bf16.mxu1 %v27418_v16 }
 0x281   : > { %17925 = vmatmul.mubr.msk.bf16.gmra.mrb[48].mxu1 %vm653_vm4, %v21792_v4  ;;  %v3054_v4 = vsel %vm23185_vm6, %v17979_v29, %v3053_v27  ;;  %v17981_v27 = vrot.slane %v17939_v36, 10  ;;  %v17949_v36 = vld [vmem:[%s22657_s9 + $0x2a8] sm:$0xf] }
 0x282   : > { %2843 = vmatprep.mubr.bf16.mxu1 %v27418_v16 }
 0x289   : > { %17926 = vmatmul.mubr.msk.bf16.gmra.mrb[52].mxu1 %vm653_vm4, %v21793_v49  ;;  %v3057_v49 = vsel %vm23185_vm6, %v3055_v37, %v3056_v33 }
 0x28a   : > { %2853 = vmatprep.mubr.bf16.mxu1 %v27418_v16  ;;  %v17995_v53 = vcombine.low %v3054_v4, %v3057_v49 }
 0x291   : > { %17927 = vmatmul.mubr.msk.bf16.gmra.mrb[56].mxu1 %vm653_vm4, %v21794_v63  ;;  %v3060_v63 = vrot.slane %v17937_v21, 6  ;;  %v17944_v21 = vld [vmem:[%s22657_s9 + $0x274] sm:$0x3] }
 0x292   : > { %2863 = vmatprep.mubr.bf16.mxu1 %v27418_v16 }
 0x293   : > { %v3062_v40 = vrot.slane %v3060_v63, 4  ;;  %v3061_v39 = vsel %vm23185_vm6, %v17980_v1, %v3060_v63  ;;  %v3077_v63 = vrot.slane %v17944_v21, 6  ;;  %v3081_v1 = vrot.slane %v17946_v59, 6 }
 0x299   : > { %17928 = vmatmul.mubr.msk.bf16.gmra.mrb[60].mxu1 %vm653_vm4, %v21795_v31  ;;  %v17938_v31 = vld [vmem:[%s22657_s9 + $0x23c] sm:$0x3] }
 0x29a   : > { %2873 = vmatprep.mubr.bf16.mxu1 %v27418_v16  ;;  %v3063_v48 = vrot.slane %v17938_v31, 6 }
 0x29c   : > { %v3064_v55 = vsel %vm23185_vm6, %v3062_v40, %v3063_v48  ;;  %v17945_v40 = vld [vmem:[%s22657_s9 + $0x288] sm:$0xc]  ;;  %v17947_v48 = vld [vmem:[%s22657_s9 + $0x290] sm:$0x3] }
 0x29d   : > { %v17996_v61 = vcombine.low %v3061_v39, %v3064_v55  ;;  %v17983_v39 = vrot.slane %v17945_v40, 10  ;;  %v3083_v55 = vrot.slane %v3081_v1, 4  ;;  %v17955_v40 = vld [vmem:[%s22657_s9 + $0x2e0] sm:$0xf] }
 0x29f   : > { %v3082_v13 = vsel %vm23185_vm6, %v17983_v39, %v3081_v1  ;;  %v3102_v39 = vrot.slane %v17955_v40, 6 }
 0x2a1   : > { %17929 = vmatmul.mubr.msk.bf16.gmra.mrb[64].mxu1 %vm653_vm4, %v21796_v30  ;;  %v17940_v30 = vld [vmem:[%s22657_s9 + $0x254] sm:$0xf] }
 0x2a2   : > { %3301 = vmatprep.mubr.bf16.mxu1 %v27418_v16  ;;  %v3067_v6 = vrot.slane %v17940_v30, 6 }
 0x2a4   : > { %v3069_v51 = vrot.slane %v3067_v6, 4  ;;  %v3068_v29 = vsel %vm23185_vm6, %v17981_v27, %v3067_v6  ;;  %v3084_v6 = vrot.slane %v17947_v48, 6  ;;  %v3088_v27 = vrot.slane %v17949_v36, 6 }
 0x2a6   : > { %v3071_v37 = vsel %vm23185_vm6, %v3069_v51, %v3070_v2  ;;  %v17948_v51 = vld [vmem:[%s22657_s9 + $0x2a4] sm:$0xc]  ;;  %v17950_v2 = vld [vmem:[%s22657_s9 + $0x2ac] sm:$0x3] }
 0x2a9   : > { %18012 = vmatmul.mubr.msk.bf16.vlgmr.msra.gmra.mrb[4].mxu1 %vm653_vm4, %v17994_v14  ;;  %v17943_v14 = vld [vmem:[%s22657_s9 + $0x270] sm:$0xf] }
 0x2aa   : > { %3544 = vmatpush1.bf16.msra.mxu1 %v3538_v47  ;;  %3311 = vmatprep.mubr.bf16.mxu1 %v27418_v16  ;;  %v3074_v33 = vrot.slane %v17943_v14, 6  ;;  %v17942_v47 = vld [vmem:[%s22657_s9 + $0x26c] sm:$0xc] }
 0x2ab   : > { %18095 = vmatprep.subr.msk.bf16.mxu1 %vm751_vm0, %v3922_v15  ;;  %v17997_v15 = vcombine.low %v3068_v29, %v3071_v37  ;;  %v17982_v4 = vrot.slane %v17942_v47, 10  ;;  %v17984_v29 = vrot.slane %v17948_v51, 10  ;;  %v3090_v37 = vrot.slane %v3088_v27, 4  ;;  %v17952_v47 = vld [vmem:[%s22657_s9 + $0x2c4] sm:$0xf] }
 0x2ac   : > { %v3076_v49 = vrot.slane %v3074_v33, 4  ;;  %v17958_v51 = vld [vmem:[%s22657_s9 + $0x2fc] sm:$0xf] }
 0x2ad   : > { %v3075_v31 = vsel %vm23185_vm6, %v17982_v4, %v3074_v33  ;;  %v3091_v33 = vrot.slane %v17950_v2, 6  ;;  %v3089_v21 = vsel %vm23185_vm6, %v17984_v29, %v3088_v27  ;;  %v3095_v4 = vrot.slane %v17952_v47, 6 }
 0x2ae   : > { %v3109_v29 = vrot.slane %v17958_v51, 6 }
 0x2b1   : > { %18013 = vmatmul.mubr.msk.bf16.gmra.mrb[8].mxu1 %vm653_vm4, %v17995_v53  ;;  %v3078_v53 = vsel %vm23185_vm6, %v3076_v49, %v3077_v63  ;;  %v17951_v49 = vld [vmem:[%s22657_s9 + $0x2c0] sm:$0xc]  ;;  %v17953_v63 = vld [vmem:[%s22657_s9 + $0x2c8] sm:$0x3] }
 0x2b2   : > { %3321 = vmatprep.mubr.bf16.mxu1 %v27418_v16  ;;  %v17998_v30 = vcombine.low %v3075_v31, %v3078_v53  ;;  %v17985_v31 = vrot.slane %v17951_v49, 10  ;;  %v3097_v53 = vrot.slane %v3095_v4, 4  ;;  %v3098_v1 = vrot.slane %v17953_v63, 6  ;;  %v17961_v49 = vld [vmem:[%s22657_s9 + $0x318] sm:$0xf] }
 0x2b4   : > { %v3096_v48 = vsel %vm23185_vm6, %v17985_v31, %v3095_v4  ;;  %v3116_v31 = vrot.slane %v17961_v49, 6 }
 0x2b9   : > { %18014 = vmatmul.mubr.msk.bf16.gmra.mrb[12].mxu1 %vm653_vm4, %v17996_v61  ;;  %v3085_v61 = vsel %vm23185_vm6, %v3083_v55, %v3084_v6  ;;  %v17954_v55 = vld [vmem:[%s22657_s9 + $0x2dc] sm:$0xc]  ;;  %v17956_v6 = vld [vmem:[%s22657_s9 + $0x2e4] sm:$0x3] }
 0x2ba   : > { %3331 = vmatprep.mubr.bf16.mxu1 %v27418_v16  ;;  %v17999_v14 = vcombine.low %v3082_v13, %v3085_v61  ;;  %v17986_v13 = vrot.slane %v17954_v55, 10  ;;  %v3104_v61 = vrot.slane %v3102_v39, 4  ;;  %v3105_v27 = vrot.slane %v17956_v6, 6  ;;  %v17964_v55 = vld [vmem:[%s22657_s9 + $0x334] sm:$0xf] }
 0x2bc   : > { %v3103_v2 = vsel %vm23185_vm6, %v17986_v13, %v3102_v39  ;;  %v3123_v13 = vrot.slane %v17964_v55, 6 }
 0x2c1   : > { %18015 = vmatmul.mubr.msk.bf16.gmra.mrb[16].mxu1 %vm653_vm4, %v17997_v15  ;;  %v3092_v15 = vsel %vm23185_vm6, %v3090_v37, %v3091_v33  ;;  %v17957_v37 = vld [vmem:[%s22657_s9 + $0x2f8] sm:$0xc]  ;;  %v17959_v33 = vld [vmem:[%s22657_s9 + $0x300] sm:$0x3] }
 0x2c2   : > { %3341 = vmatprep.mubr.bf16.mxu1 %v27418_v16  ;;  %v18000_v59 = vcombine.low %v3089_v21, %v3092_v15  ;;  %v17987_v21 = vrot.slane %v17957_v37, 10  ;;  %v3111_v15 = vrot.slane %v3109_v29, 4  ;;  %v3112_v4 = vrot.slane %v17959_v33, 6 }
 0x2c3   : > { %v3125_v33 = vrot.slane %v3123_v13, 4 }
 0x2c4   : > { %v3110_v63 = vsel %vm23185_vm6, %v17987_v21, %v3109_v29 }
 0x2c9   : > { %18016 = vmatmul.mubr.msk.bf16.gmra.mrb[20].mxu1 %vm653_vm4, %v17998_v30  ;;  %v3099_v30 = vsel %vm23185_vm6, %v3097_v53, %v3098_v1  ;;  %v17960_v53 = vld [vmem:[%s22657_s9 + $0x314] sm:$0xc]  ;;  %v17962_v1 = vld [vmem:[%s22657_s9 + $0x31c] sm:$0x3] }
 0x2ca   : > { %3351 = vmatprep.mubr.bf16.mxu1 %v27418_v16  ;;  %v18001_v36 = vcombine.low %v3096_v48, %v3099_v30  ;;  %v17988_v48 = vrot.slane %v17960_v53, 10  ;;  %v3118_v30 = vrot.slane %v3116_v31, 4  ;;  %v3119_v39 = vrot.slane %v17962_v1, 6 }
 0x2cc   : > { %v3117_v6 = vsel %vm23185_vm6, %v17988_v48, %v3116_v31  ;;  %v17968_v31 = vld [vmem:[%s22657_s9 + $0x354] sm:$0x3] }
 0x2cd   : > { %v3133_v48 = vrot.slane %v17968_v31, 6 }
 0x2d1   : > { %18017 = vmatmul.mubr.msk.bf16.gmra.mrb[24].mxu1 %vm653_vm4, %v17999_v14  ;;  %v3106_v14 = vsel %vm23185_vm6, %v3104_v61, %v3105_v27  ;;  %v17963_v61 = vld [vmem:[%s22657_s9 + $0x330] sm:$0xc]  ;;  %v17965_v27 = vld [vmem:[%s22657_s9 + $0x338] sm:$0x3] }
 0x2d2   : > { %3361 = vmatprep.mubr.bf16.mxu1 %v27418_v16  ;;  %v18002_v47 = vcombine.low %v3103_v2, %v3106_v14  ;;  %v17989_v37 = vrot.slane %v17963_v61, 10 }
 0x2d9   : > { %18018 = vmatmul.mubr.msk.bf16.gmra.mrb[28].mxu1 %vm653_vm4, %v18000_v59  ;;  %v3113_v59 = vsel %vm23185_vm6, %v3111_v15, %v3112_v4  ;;  %v17967_v15 = vld [vmem:[%s22657_s9 + $0x350] sm:$0xf]  ;;  %v3124_v4 = vsel %vm23185_vm6, %v17989_v37, %v3123_v13  ;;  %v17973_v37 = vld [vmem:[%s22657_s9 + $0x388] sm:$0xf] }
 0x2da   : > { %3371 = vmatprep.mubr.bf16.mxu1 %v27418_v16  ;;  %v18003_v40 = vcombine.low %v3110_v63, %v3113_v59  ;;  %v3130_v63 = vrot.slane %v17967_v15, 6  ;;  %v17966_v59 = vld [vmem:[%s22657_s9 + $0x34c] sm:$0xc]  ;;  %v17971_v13 = vld [vmem:[%s22657_s9 + $0x370] sm:$0x3] }
 0x2db   : > { %v17990_v1 = vrot.slane %v17966_v59, 10  ;;  %v17972_v15 = vld [vmem:[%s22657_s9 + $0x384] sm:$0xc] }
 0x2e1   : > { %18019 = vmatmul.mubr.msk.bf16.gmra.mrb[32].mxu1 %vm653_vm4, %v18001_v36  ;;  %v3120_v36 = vsel %vm23185_vm6, %v3118_v30, %v3119_v39  ;;  %v17970_v30 = vld [vmem:[%s22657_s9 + $0x36c] sm:$0xf]  ;;  %v3131_v39 = vsel %vm23185_vm6, %v17990_v1, %v3130_v63 }
 0x2e2   : > { %3381 = vmatprep.mubr.bf16.mxu1 %v27418_v16  ;;  %v18004_v14 = vcombine.low %v3117_v6, %v3120_v36  ;;  %v3137_v6 = vrot.slane %v17970_v30, 6  ;;  %v17969_v36 = vld [vmem:[%s22657_s9 + $0x368] sm:$0xc]  ;;  %v17975_v30 = vld [vmem:[%s22657_s9 + $0x3a0] sm:$0xc] }
 0x2e9   : > { %18020 = vmatmul.mubr.msk.bf16.gmra.mrb[36].mxu1 %vm653_vm4, %v18002_v47  ;;  %v3126_v47 = vrot.slane %v17965_v27, 6  ;;  %v17991_v27 = vrot.slane %v17969_v36, 10 }
 0x2ea   : > { %3391 = vmatprep.mubr.bf16.mxu1 %v27418_v16 }
 0x2eb   : > { %v3127_v49 = vsel %vm23185_vm6, %v3125_v33, %v3126_v47  ;;  %v3138_v33 = vsel %vm23185_vm6, %v17991_v27, %v3137_v6 }
 0x2ec   : > { %v18005_v53 = vcombine.low %v3124_v4, %v3127_v49  ;;  %v17974_v4 = vld [vmem:[%s22657_s9 + $0x38c] sm:$0x3] }
 0x2ed   : > { %v3147_v31 = vrot.slane %v17974_v4, 6 }
 0x2f1   : > { %18021 = vmatmul.mubr.msk.bf16.gmra.mrb[40].mxu1 %vm653_vm4, %v18003_v40  ;;  %v3132_v40 = vrot.slane %v3130_v63, 4  ;;  %v17992_v63 = vrot.slane %v17972_v15, 10  ;;  %v3972_v15 = vsel %vm751_vm0, %v23198_v0, 0 }
 0x2f2   : > { %3401 = vmatprep.mubr.bf16.mxu1 %v27418_v16 }
 0x2f3   : > { %v3134_v55 = vsel %vm23185_vm6, %v3132_v40, %v3133_v48 }
 0x2f4   : > { %v23295_v51 = vpop.f32.mrb[0].mxu1  ;;  %v18006_v61 = vcombine.low %v3131_v39, %v3134_v55  ;;  %v17977_v39 = vld [vmem:[%s22657_s9 + $0x3a8] sm:$0x3] }
 0x2f5   : > { %27424 = vst [vmem:[#allocation23_spill] sm:$0xff] %v23295_v51  ;;  %v23297_v2 = vpop.f32.mrb[1].mxu1 }
 0x2f6   : > { %27425 = vst [vmem:[#allocation24_spill] sm:$0xff] %v23297_v2  ;;  %v1034_v29 = vpop.f32.mrb[2].mxu1 }
 0x2f7   : > { %v1035_v21 = vpop.f32.mrb[3].mxu1  ;;  %v3140_v29 = vrot.slane %v17971_v13, 6  ;;  %v3154_v13 = vrot.slane %v17977_v39, 6 }
 0x2f8   : > { %v3144_v21 = vrot.slane %v17973_v37, 6 }
 0x2f9   : > { %18022 = vmatmul.mubr.msk.bf16.gmra.mrb[44].mxu1 %vm653_vm4, %v18004_v14  ;;  %v3139_v14 = vrot.slane %v3137_v6, 4  ;;  %v17993_v6 = vrot.slane %v17975_v30, 10  ;;  %v21798_v30 = vld [vmem:[%s22657_s9 + $0x220] sm:$0xff]  }
 0x2fa   : > { %3411 = vmatprep.mubr.bf16.mxu1 %v27418_v16  ;;  %v3146_v59 = vrot.slane %v3144_v21, 4  ;;  %v3145_v1 = vsel %vm23185_vm6, %v17992_v63, %v3144_v21  ;;  %v23349_v21 = vld.sshfl [vmem:[#allocation5 + $0x1c] sm:$0x33 pattern:$0x76325410] }
 0x2fb   : > { %v3141_v47 = vsel %vm23185_vm6, %v3139_v14, %v3140_v29  ;;  %v17650_v29 = vld.sshfl [vmem:[#allocation5] sm:$0x33 pattern:$0x76325410]  ;;  %v4501_v4 = vcombine.high %v23349_v21, %v23349_v21  ;;  %v17735_v63 = vld [vmem:[%s22657_s9 + $0x174] sm:$0xe] }
 0x2fc   : > { %v18007_v49 = vcombine.low %v3138_v33, %v3141_v47  ;;  %v3148_v40 = vsel %vm23185_vm6, %v3146_v59, %v3147_v31  ;;  %v1106_v37 = vcombine.high %v17650_v29, %v17650_v29  ;;  %v1156_v33 = vsel %vm751_vm0, %v17650_v29, 0  ;;  %v17737_v59 = vld [vmem:[%s22657_s9 + $0x17c] sm:$0x1] }
 0x2fd   : > { %v18008_v55 = vcombine.low %v3145_v1, %v3148_v40  ;;  %v23347_v47 = vcombine.low %v22848_v54, %v22869_v12  ;;  %v23364_v54 = vcombine.low %v22857_v62, %v22885_v11  ;;  %v23374_v12 = vcombine.low %v22893_v50, %v22900_v57 }
 0x2fe   : > { %17651 = vmatprep.subr.msk.bf16.mxu0 %vm751_vm0, %v1106_v37  ;;  %v23384_v62 = vcombine.low %v22909_v17, %v22915_v18  ;;  %v23394_v11 = vcombine.low %v22925_v23, %v22929_v24  ;;  %v23404_v50 = vcombine.low %v22935_v41, %v22939_v5  ;;  %v23414_v57 = vcombine.low %v22945_v25, %v22949_v3 }
 0x2ff   : > { %1162 = vmatpush1.bf16.msra.mxu0 %v1156_v33  ;;  %27426 = vst [vmem:[#allocation25_spill] sm:$0xff] %v23347_v47  ;;  %27427 = vst [vmem:[#allocation26_spill] sm:$0xff] %v23364_v54  ;;  %v23424_v17 = vcombine.low %v22953_v26, %v22958_v7  ;;  %v23434_v18 = vcombine.low %v22962_v32, %v22966_v8  ;;  %v23444_v23 = vcombine.low %v23006_v58, %v23014_v45  ;;  %v17733_v7 = vld [vmem:[%s22657_s9 + $0x15c] sm:$0xf]  ;;  %v17732_v45 = vld [vmem:[%s22657_s9 + $0x158] sm:$0xe] }
 0x300   : > { %27428 = vst [vmem:[#allocation27_spill] sm:$0xff] %v23374_v12  ;;  %27429 = vst [vmem:[#allocation28_spill] sm:$0xff] %v23384_v62  ;;  %v23454_v24 = vcombine.low %v23025_v60, %v23034_v10  ;;  %v23464_v41 = vcombine.low %v23046_v34, %v23056_v56  ;;  %v23474_v5 = vcombine.low %v23064_v19, %v23071_v9  ;;  %v17812_v32 = vld.sshfl [vmem:[#allocation5 + $0x8] sm:$0x33 pattern:$0x76325410] }
 0x301   : > { %18023 = vmatmul.mubr.msk.bf16.gmra.mrb[48].mxu1 %vm653_vm4, %v18005_v53  ;;  %v17976_v53 = vld [vmem:[%s22657_s9 + $0x3a4] sm:$0xf]  ;;  %27430 = vst [vmem:[#allocation29_spill] sm:$0xff] %v23394_v11  ;;  %27431 = vst [vmem:[#allocation30_spill] sm:$0xff] %v23404_v50  ;;  %v23484_v25 = vcombine.low %v23079_v46, %v23085_v44  ;;  %v23494_v3 = vcombine.low %v23091_v42, %v23097_v22  ;;  %v23504_v26 = vcombine.low %v23103_v38, %v23109_v28  ;;  %v17734_v60 = vld [vmem:[%s22657_s9 + $0x160] sm:$0x1] }
 0x302   : > { %3421 = vmatprep.mubr.bf16.mxu1 %v27418_v16  ;;  %v3151_v48 = vrot.slane %v17976_v53, 6  ;;  %17652 = vmatmul.mubr.msk.bf16.vlgmr.msra.gmra.mrb[4].mxu0 %vm653_vm4, %v23347_v47  ;;  %27432 = vst [vmem:[#allocation31_spill] sm:$0xff] %v23414_v57  ;;  %27433 = vst [vmem:[#allocation32_spill] sm:$0xff] %v23424_v17  ;;  %v1794_v8 = vrot.slane %v17733_v7, 5  ;;  %v1962_v58 = vcombine.high %v17812_v32, %v17812_v32  ;;  %v2012_v10 = vsel %vm751_vm0, %v17812_v32, 0  ;;  %v21797_v22 = vld [vmem:[%s22657_s9 + $0x204] sm:$0xff]  }
 0x303   : > { %1203 = vmatprep.mubr.bf16.mxu0 %v27418_v16  ;;  %27434 = vst [vmem:[#allocation33_spill] sm:$0xff] %v23434_v18  ;;  %27435 = vst [vmem:[#allocation34_spill] sm:$0xff] %v23444_v23  ;;  %v17780_v34 = vrot.slane %v17732_v45, 9  ;;  %v1797_v19 = vrot.slane %v17734_v60, 5  ;;  %v17736_v38 = vld [vmem:[%s22657_s9 + $0x178] sm:$0xf] }
 0x304   : > { %v3153_v36 = vrot.slane %v3151_v48, 4  ;;  %27436 = vst [vmem:[#allocation35_spill] sm:$0xff] %v23454_v24  ;;  %27437 = vst [vmem:[#allocation36_spill] sm:$0xff] %v23464_v41  ;;  %v1796_v56 = vrot.slane %v1794_v8, 4  ;;  %17813 = vmatprep.subr.msk.bf16.mxu0 %vm751_vm0, %v1962_v58  ;;  %v4551_v28 = vsel %vm751_vm0, %v23349_v21, 0  ;;  %v17781_v31 = vrot.slane %v17735_v63, 9 }
 0x305   : > { %27438 = vst [vmem:[#allocation37_spill] sm:$0xff] %v23474_v5  ;;  %27439 = vst [vmem:[#allocation38_spill] sm:$0xff] %v23484_v25  ;;  %2018 = vmatpush1.bf16.msra.mxu0 %v2012_v10  ;;  %v1795_v9 = vsel %vm22828_vm3, %v17780_v34, %v1794_v8  ;;  %v23521_v42 = vld.sshfl [vmem:[#allocation5 + $0x20] sm:$0x33 pattern:$0x76325410] }
 0x306   : > { %v3155_v27 = vsel %vm23185_vm6, %v3153_v36, %v3154_v13  ;;  %27440 = vst [vmem:[#allocation39_spill] sm:$0xff] %v23494_v3  ;;  %27441 = vst [vmem:[#allocation40_spill] sm:$0xff] %v23504_v26  ;;  %v1798_v46 = vsel %vm22828_vm3, %v1796_v56, %v1797_v19  ;;  %v5079_v0 = vcombine.high %v23521_v42, %v23521_v42  ;;  %v1804_v1 = vrot.slane %v17737_v59, 5  ;;  %v17738_v36 = vld [vmem:[%s22657_s9 + $0x190] sm:$0xe]  ;;  %v21799_v21 = vld [vmem:[%s22657_s9 + $0x23c] sm:$0xff]  }
 0x307   : > { %v17796_v44 = vcombine.low %v1795_v9, %v1798_v46  ;;  %v17740_v13 = vld [vmem:[%s22657_s9 + $0x198] sm:$0x1]  ;;  %v17741_v7 = vld [vmem:[%s22657_s9 + $0x1ac] sm:$0xe]  ;;  %v17743_v32 = vld [vmem:[%s22657_s9 + $0x1b4] sm:$0x1] }
 0x308   : > { %v17783_v8 = vrot.slane %v17741_v7, 9  ;;  %v1818_v45 = vrot.slane %v17743_v32, 5  ;;  %v21800_v56 = vld [vmem:[%s22657_s9 + $0x258] sm:$0xff]   ;;  %v17745_v19 = vld [vmem:[%s22657_s9 + $0x1cc] sm:$0xf] }
 0x309   : > { %18024 = vmatmul.mubr.msk.bf16.gmra.mrb[52].mxu1 %vm653_vm4, %v18006_v61  ;;  %v3152_v61 = vsel %vm23185_vm6, %v17993_v6, %v3151_v48  ;;  %v1822_v9 = vrot.slane %v17745_v19, 5  ;;  %v17744_v46 = vld [vmem:[%s22657_s9 + $0x1c8] sm:$0xe]  ;;  %v21801_v59 = vld [vmem:[%s22657_s9 + $0x274] sm:$0xff]   ;;  %v21803_v32 = vld [vmem:[%s22657_s9 + $0x2ac] sm:$0xff]  }
 0x30a   : > { %3431 = vmatprep.mubr.bf16.mxu1 %v27418_v16  ;;  %v18009_v14 = vcombine.low %v3152_v61, %v3155_v27  ;;  %17653 = vmatmul.mubr.msk.bf16.gmra.mrb[8].mxu0 %vm653_vm4, %v23364_v54  ;;  %v17782_v61 = vrot.slane %v17738_v36, 9 }
 0x30b   : > { %1213 = vmatprep.mubr.bf16.mxu0 %v27418_v16 }
 0x311   : > { %18025 = vmatmul.mubr.msk.bf16.gmra.mrb[56].mxu1 %vm653_vm4, %v18007_v49  ;;  %v1801_v49 = vrot.slane %v17736_v38, 5  ;;  %v1824_v38 = vrot.slane %v1822_v9, 4 }
 0x312   : > { %3441 = vmatprep.mubr.bf16.mxu1 %v27418_v16  ;;  %17654 = vmatmul.mubr.msk.bf16.gmra.mrb[12].mxu0 %vm653_vm4, %v23374_v12 }
 0x313   : > { %1223 = vmatprep.mubr.bf16.mxu0 %v27418_v16  ;;  %v1803_v53 = vrot.slane %v1801_v49, 4  ;;  %v1802_v40 = vsel %vm22828_vm3, %v17781_v31, %v1801_v49  ;;  %v17748_v31 = vld [vmem:[%s22657_s9 + $0x1e8] sm:$0xf] }
 0x315   : > { %v1805_v48 = vsel %vm22828_vm3, %v1803_v53, %v1804_v1  ;;  %v1829_v53 = vrot.slane %v17748_v31, 5  ;;  %v17747_v1 = vld [vmem:[%s22657_s9 + $0x1e4] sm:$0xe] }
 0x316   : > { %v17797_v39 = vcombine.low %v1802_v40, %v1805_v48  ;;  %v17749_v40 = vld [vmem:[%s22657_s9 + $0x1ec] sm:$0x1]  ;;  %v17785_v48 = vrot.slane %v17747_v1, 9 }
 0x319   : > { %18026 = vmatmul.mubr.msk.bf16.gmra.mrb[60].mxu1 %vm653_vm4, %v18008_v55  ;;  %v17739_v55 = vld [vmem:[%s22657_s9 + $0x194] sm:$0xf] }
 0x31a   : > { %3451 = vmatprep.mubr.bf16.mxu1 %v27418_v16  ;;  %17655 = vmatmul.mubr.msk.bf16.gmra.mrb[16].mxu0 %vm653_vm4, %v23384_v62  ;;  %v1808_v6 = vrot.slane %v17739_v55, 5  ;;  %v1830_v55 = vsel %vm22828_vm3, %v17785_v48, %v1829_v53  ;;  %v17760_v48 = vld [vmem:[%s22657_s9 + $0x258] sm:$0xf] }
 0x31b   : > { %1233 = vmatprep.mubr.bf16.mxu0 %v27418_v16 }
 0x31c   : > { %v1810_v27 = vrot.slane %v1808_v6, 4  ;;  %v1809_v29 = vsel %vm22828_vm3, %v17782_v61, %v1808_v6  ;;  %v17751_v61 = vld [vmem:[%s22657_s9 + $0x204] sm:$0xf] }
 0x321   : > { %18027 = vmatmul.mubr.msk.bf16.gmra.mrb[64].mxu1 %vm653_vm4, %v18009_v14  ;;  %v1811_v14 = vrot.slane %v17740_v13, 5  ;;  %v21802_v13 = vld [vmem:[%s22657_s9 + $0x290] sm:$0xff]  }
 0x322   : > { %3575 = vmatprep.mubr.bf16.mxu1 %v27418_v16  ;;  %17656 = vmatmul.mubr.msk.bf16.gmra.mrb[20].mxu0 %vm653_vm4, %v23394_v11 }
 0x323   : > { %1243 = vmatprep.mubr.bf16.mxu0 %v27418_v16  ;;  %v1812_v37 = vsel %vm22828_vm3, %v1810_v27, %v1811_v14  ;;  %v1836_v27 = vrot.slane %v17751_v61, 5  ;;  %v17750_v14 = vld [vmem:[%s22657_s9 + $0x200] sm:$0xe] }
 0x324   : > { %v17798_v33 = vcombine.low %v1809_v29, %v1812_v37  ;;  %v17752_v29 = vld [vmem:[%s22657_s9 + $0x208] sm:$0x1]  ;;  %v17786_v37 = vrot.slane %v17750_v14, 9 }
 0x329   : > { %18030 = vmatmul.mubr.msk.bf16.vlgmr.msra.gmra.mrb[4].mxu1 %vm653_vm4, %v23347_v47  ;;  %v21835_v47 = vld [vmem:[#allocation8 + $0x124] ss:$8 sps:$4 sm:$0xff]  }
 0x32a   : > { %3978 = vmatpush1.bf16.msra.mxu1 %v3972_v15  ;;  %3585 = vmatprep.mubr.bf16.mxu1 %v27418_v16  ;;  %v17742_v15 = vld [vmem:[%s22657_s9 + $0x1b0] sm:$0xf] }
 0x32b   : > { %18193 = vmatprep.subr.msk.bf16.mxu1 %vm751_vm0, %v4501_v4  ;;  %17657 = vmatmul.mubr.msk.bf16.gmra.mrb[24].mxu0 %vm653_vm4, %v23404_v50  ;;  %v1815_v4 = vrot.slane %v17742_v15, 5  ;;  %v1837_v15 = vsel %vm22828_vm3, %v17786_v37, %v1836_v27  ;;  %v17763_v37 = vld [vmem:[%s22657_s9 + $0x274] sm:$0xf] }
 0x32c   : > { %1253 = vmatprep.mubr.bf16.mxu0 %v27418_v16 }
 0x32d   : > { %v1817_v58 = vrot.slane %v1815_v4, 4  ;;  %v1816_v60 = vsel %vm22828_vm3, %v17783_v8, %v1815_v4  ;;  %v17754_v8 = vld [vmem:[%s22657_s9 + $0x220] sm:$0xf] }
 0x32f   : > { %v1819_v10 = vsel %vm22828_vm3, %v1817_v58, %v1818_v45  ;;  %v1843_v58 = vrot.slane %v17754_v8, 5  ;;  %v17753_v45 = vld [vmem:[%s22657_s9 + $0x21c] sm:$0xe] }
 0x330   : > { %v17799_v34 = vcombine.low %v1816_v60, %v1819_v10  ;;  %v17755_v60 = vld [vmem:[%s22657_s9 + $0x224] sm:$0x1]  ;;  %v17787_v10 = vrot.slane %v17753_v45, 9 }
 0x331   : > { %18031 = vmatmul.mubr.msk.bf16.gmra.mrb[8].mxu1 %vm653_vm4, %v23364_v54 }
 0x332   : > { %3595 = vmatprep.mubr.bf16.mxu1 %v27418_v16  ;;  %v1844_v19 = vsel %vm22828_vm3, %v17787_v10, %v1843_v58  ;;  %v17766_v10 = vld [vmem:[%s22657_s9 + $0x290] sm:$0xf] }
 0x333   : > { %17658 = vmatmul.mubr.msk.bf16.gmra.mrb[28].mxu0 %vm653_vm4, %v23414_v57 }
 0x334   : > { %1263 = vmatprep.mubr.bf16.mxu0 %v27418_v16 }
 0x339   : > { %18032 = vmatmul.mubr.msk.bf16.gmra.mrb[12].mxu1 %vm653_vm4, %v23374_v12 }
 0x33a   : > { %3605 = vmatprep.mubr.bf16.mxu1 %v27418_v16 }
 0x33b   : > { %17659 = vmatmul.mubr.msk.bf16.gmra.mrb[32].mxu0 %vm653_vm4, %v23424_v17 }
 0x33c   : > { %1273 = vmatprep.mubr.bf16.mxu0 %v27418_v16 }
 0x341   : > { %18033 = vmatmul.mubr.msk.bf16.gmra.mrb[16].mxu1 %vm653_vm4, %v23384_v62 }
 0x342   : > { %3615 = vmatprep.mubr.bf16.mxu1 %v27418_v16 }
 0x343   : > { %17660 = vmatmul.mubr.msk.bf16.gmra.mrb[36].mxu0 %vm653_vm4, %v23434_v18 }
 0x344   : > { %1283 = vmatprep.mubr.bf16.mxu0 %v27418_v16 }
 0x349   : > { %18034 = vmatmul.mubr.msk.bf16.gmra.mrb[20].mxu1 %vm653_vm4, %v23394_v11  ;;  %v18254_v11 = vld [vmem:[%s22657_s9 + $0x438] sm:$0x1] }
 0x34a   : > { %3625 = vmatprep.mubr.bf16.mxu1 %v27418_v16 }
 0x34b   : > { %17661 = vmatmul.mubr.msk.bf16.gmra.mrb[40].mxu0 %vm653_vm4, %v23444_v23 }
 0x34c   : > { %1293 = vmatprep.mubr.bf16.mxu0 %v27418_v16 }
 0x351   : > { %18035 = vmatmul.mubr.msk.bf16.gmra.mrb[24].mxu1 %vm653_vm4, %v23404_v50 }
 0x352   : > { %3635 = vmatprep.mubr.bf16.mxu1 %v27418_v16 }
 0x353   : > { %17662 = vmatmul.mubr.msk.bf16.gmra.mrb[44].mxu0 %vm653_vm4, %v23454_v24 }
 0x354   : > { %1303 = vmatprep.mubr.bf16.mxu0 %v27418_v16 }
 0x359   : > { %18036 = vmatmul.mubr.msk.bf16.gmra.mrb[28].mxu1 %vm653_vm4, %v23414_v57 }
 0x35a   : > { %3645 = vmatprep.mubr.bf16.mxu1 %v27418_v16 }
 0x35b   : > { %17663 = vmatmul.mubr.msk.bf16.gmra.mrb[48].mxu0 %vm653_vm4, %v23464_v41 }
 0x35c   : > { %1313 = vmatprep.mubr.bf16.mxu0 %v27418_v16 }
 0x361   : > { %18037 = vmatmul.mubr.msk.bf16.gmra.mrb[32].mxu1 %vm653_vm4, %v23424_v17 }
 0x362   : > { %3655 = vmatprep.mubr.bf16.mxu1 %v27418_v16 }
 0x363   : > { %17664 = vmatmul.mubr.msk.bf16.gmra.mrb[52].mxu0 %vm653_vm4, %v23474_v5 }
 0x364   : > { %1323 = vmatprep.mubr.bf16.mxu0 %v27418_v16 }
 0x369   : > { %18038 = vmatmul.mubr.msk.bf16.gmra.mrb[36].mxu1 %vm653_vm4, %v23434_v18 }
 0x36a   : > { %3665 = vmatprep.mubr.bf16.mxu1 %v27418_v16 }
 0x36b   : > { %17665 = vmatmul.mubr.msk.bf16.gmra.mrb[56].mxu0 %vm653_vm4, %v23484_v25 }
 0x36c   : > { %1333 = vmatprep.mubr.bf16.mxu0 %v27418_v16 }
 0x371   : > { %18039 = vmatmul.mubr.msk.bf16.gmra.mrb[40].mxu1 %vm653_vm4, %v23444_v23 }
 0x372   : > { %3675 = vmatprep.mubr.bf16.mxu1 %v27418_v16 }
 0x373   : > { %17666 = vmatmul.mubr.msk.bf16.gmra.mrb[60].mxu0 %vm653_vm4, %v23494_v3 }
 0x374   : > { %1343 = vmatprep.mubr.bf16.mxu0 %v27418_v16 }
 0x379   : > { %18040 = vmatmul.mubr.msk.bf16.gmra.mrb[44].mxu1 %vm653_vm4, %v23454_v24 }
 0x37a   : > { %3685 = vmatprep.mubr.bf16.mxu1 %v27418_v16 }
 0x37b   : > { %17667 = vmatmul.mubr.msk.bf16.gmra.mrb[64].mxu0 %vm653_vm4, %v23504_v26 }
 0x37c   : > { %2049 = vmatprep.mubr.bf16.mxu0 %v27418_v16 }
 0x381   : > { %18041 = vmatmul.mubr.msk.bf16.gmra.mrb[48].mxu1 %vm653_vm4, %v23464_v41 }
 0x382   : > { %3695 = vmatprep.mubr.bf16.mxu1 %v27418_v16 }
 0x383   : > { %17814 = vmatmul.mubr.msk.bf16.vlgmr.msra.gmra.mrb[68].mxu0 %vm653_vm4, %v17796_v44  ;;  %v17746_v44 = vld [vmem:[%s22657_s9 + $0x1d0] sm:$0x1] }
 0x384   : > { %2059 = vmatprep.mubr.bf16.mxu0 %v27418_v16 }
 0x389   : > { %18042 = vmatmul.mubr.msk.bf16.gmra.mrb[52].mxu1 %vm653_vm4, %v23474_v5 }
 0x38a   : > { %3705 = vmatprep.mubr.bf16.mxu1 %v27418_v16 }
 0x38b   : > { %17815 = vmatmul.mubr.msk.bf16.gmra.mrb[72].mxu0 %vm653_vm4, %v17797_v39  ;;  %v1832_v39 = vrot.slane %v17749_v40, 5  ;;  %v21805_v40 = vld [vmem:[%s22657_s9 + $0x2e4] sm:$0xff]  }
 0x38c   : > { %2069 = vmatprep.mubr.bf16.mxu0 %v27418_v16 }
 0x391   : > { %18043 = vmatmul.mubr.msk.bf16.gmra.mrb[56].mxu1 %vm653_vm4, %v23484_v25 }
 0x392   : > { %3715 = vmatprep.mubr.bf16.mxu1 %v27418_v16 }
 0x393   : > { %17816 = vmatmul.mubr.msk.bf16.gmra.mrb[76].mxu0 %vm653_vm4, %v17798_v33  ;;  %v1838_v33 = vrot.slane %v1836_v27, 4 }
 0x394   : > { %2079 = vmatprep.mubr.bf16.mxu0 %v27418_v16 }
 0x399   : > { %18044 = vmatmul.mubr.msk.bf16.gmra.mrb[60].mxu1 %vm653_vm4, %v23494_v3 }
 0x39a   : > { %3725 = vmatprep.mubr.bf16.mxu1 %v27418_v16 }
 0x39b   : > { %17817 = vmatmul.mubr.msk.bf16.gmra.mrb[80].mxu0 %vm653_vm4, %v17799_v34  ;;  %v1845_v34 = vrot.slane %v1843_v58, 4 }
 0x39c   : > { %2089 = vmatprep.mubr.bf16.mxu0 %v27418_v16 }
 0x3a1   : > { %18045 = vmatmul.mubr.msk.bf16.gmra.mrb[64].mxu1 %vm653_vm4, %v23504_v26 }
 0x3a2   : > { %4009 = vmatprep.mubr.bf16.mxu1 %v27418_v16 }
 0x3a9   : > { %18096 = vmatmul.mubr.msk.bf16.vlgmr.msra.gmra.mrb[4].mxu1 %vm653_vm4, %v21797_v22  ;;  %v17784_v22 = vrot.slane %v17744_v46, 9 }
 0x3aa   : > { %4557 = vmatpush1.bf16.msra.mxu1 %v4551_v28  ;;  %4019 = vmatprep.mubr.bf16.mxu1 %v27418_v16  ;;  %v1825_v28 = vrot.slane %v17746_v44, 5  ;;  %v21804_v44 = vld [vmem:[%s22657_s9 + $0x2c8] sm:$0xff]  }
 0x3ab   : > { %18291 = vmatprep.subr.msk.bf16.mxu1 %vm751_vm0, %v5079_v0  ;;  %v1823_v0 = vsel %vm22828_vm3, %v17784_v22, %v1822_v9  ;;  %v17757_v22 = vld [vmem:[%s22657_s9 + $0x23c] sm:$0xf] }
 0x3ac   : > { %v1826_v49 = vsel %vm22828_vm3, %v1824_v38, %v1825_v28  ;;  %v1850_v38 = vrot.slane %v17757_v22, 5  ;;  %v17756_v28 = vld [vmem:[%s22657_s9 + $0x238] sm:$0xe] }
 0x3ad   : > { %v17800_v63 = vcombine.low %v1823_v0, %v1826_v49  ;;  %v17758_v0 = vld [vmem:[%s22657_s9 + $0x240] sm:$0x1]  ;;  %v17788_v49 = vrot.slane %v17756_v28, 9 }
 0x3af   : > { %17818 = vmatmul.mubr.msk.bf16.gmra.mrb[84].mxu0 %vm653_vm4, %v17800_v63  ;;  %v1852_v63 = vrot.slane %v1850_v38, 4  ;;  %v1851_v31 = vsel %vm22828_vm3, %v17788_v49, %v1850_v38  ;;  %v17769_v49 = vld [vmem:[%s22657_s9 + $0x2ac] sm:$0xf] }
 0x3b0   : > { %2099 = vmatprep.mubr.bf16.mxu0 %v27418_v16 }
 0x3b1   : > { %18097 = vmatmul.mubr.msk.bf16.gmra.mrb[8].mxu1 %vm653_vm4, %v21798_v30  ;;  %v1831_v30 = vrot.slane %v1829_v53, 4 }
 0x3b2   : > { %4029 = vmatprep.mubr.bf16.mxu1 %v27418_v16 }
 0x3b3   : > { %v1833_v6 = vsel %vm22828_vm3, %v1831_v30, %v1832_v39  ;;  %v1857_v30 = vrot.slane %v17760_v48, 5  ;;  %v17759_v39 = vld [vmem:[%s22657_s9 + $0x254] sm:$0xe] }
 0x3b4   : > { %v17801_v36 = vcombine.low %v1830_v55, %v1833_v6  ;;  %v17761_v55 = vld [vmem:[%s22657_s9 + $0x25c] sm:$0x1]  ;;  %v17789_v6 = vrot.slane %v17759_v39, 9 }
 0x3b6   : > { %v1858_v61 = vsel %vm22828_vm3, %v17789_v6, %v1857_v30  ;;  %v17772_v6 = vld [vmem:[%s22657_s9 + $0x2c8] sm:$0xf] }
 0x3b7   : > { %17819 = vmatmul.mubr.msk.bf16.gmra.mrb[88].mxu0 %vm653_vm4, %v17801_v36  ;;  %v1859_v36 = vrot.slane %v1857_v30, 4 }
 0x3b8   : > { %2109 = vmatprep.mubr.bf16.mxu0 %v27418_v16 }
 0x3b9   : > { %18098 = vmatmul.mubr.msk.bf16.gmra.mrb[12].mxu1 %vm653_vm4, %v21799_v21  ;;  %v1839_v21 = vrot.slane %v17752_v29, 5  ;;  %v21806_v29 = vld [vmem:[%s22657_s9 + $0x300] sm:$0xff]  }
 0x3ba   : > { %4039 = vmatprep.mubr.bf16.mxu1 %v27418_v16 }
 0x3bb   : > { %v1840_v4 = vsel %vm22828_vm3, %v1838_v33, %v1839_v21  ;;  %v1864_v33 = vrot.slane %v17763_v37, 5  ;;  %v17762_v21 = vld [vmem:[%s22657_s9 + $0x270] sm:$0xe] }
 0x3bc   : > { %v17802_v7 = vcombine.low %v1837_v15, %v1840_v4  ;;  %v17764_v15 = vld [vmem:[%s22657_s9 + $0x278] sm:$0x1]  ;;  %v17790_v4 = vrot.slane %v17762_v21, 9 }
 0x3be   : > { %v1865_v8 = vsel %vm22828_vm3, %v17790_v4, %v1864_v33  ;;  %v17775_v4 = vld [vmem:[%s22657_s9 + $0x2e4] sm:$0xf] }
 0x3bf   : > { %17820 = vmatmul.mubr.msk.bf16.gmra.mrb[92].mxu0 %vm653_vm4, %v17802_v7  ;;  %v1866_v7 = vrot.slane %v1864_v33, 4 }
 0x3c0   : > { %2119 = vmatprep.mubr.bf16.mxu0 %v27418_v16 }
 0x3c1   : > { %18099 = vmatmul.mubr.msk.bf16.gmra.mrb[16].mxu1 %vm653_vm4, %v21800_v56  ;;  %v1846_v56 = vrot.slane %v17755_v60, 5  ;;  %v21807_v60 = vld [vmem:[%s22657_s9 + $0x31c] sm:$0xff]  }
 0x3c2   : > { %4049 = vmatprep.mubr.bf16.mxu1 %v27418_v16 }
 0x3c3   : > { %v1847_v9 = vsel %vm22828_vm3, %v1845_v34, %v1846_v56  ;;  %v1871_v34 = vrot.slane %v17766_v10, 5  ;;  %v17765_v56 = vld [vmem:[%s22657_s9 + $0x28c] sm:$0xe] }
 0x3c4   : > { %v17803_v46 = vcombine.low %v1844_v19, %v1847_v9  ;;  %v17767_v19 = vld [vmem:[%s22657_s9 + $0x294] sm:$0x1]  ;;  %v17791_v9 = vrot.slane %v17765_v56, 9 }
 0x3c6   : > { %v1872_v22 = vsel %vm22828_vm3, %v17791_v9, %v1871_v34  ;;  %v17778_v9 = vld [vmem:[%s22657_s9 + $0x300] sm:$0xf] }
 0x3c7   : > { %17821 = vmatmul.mubr.msk.bf16.gmra.mrb[96].mxu0 %vm653_vm4, %v17803_v46  ;;  %v1873_v46 = vrot.slane %v1871_v34, 4 }
 0x3c8   : > { %2129 = vmatprep.mubr.bf16.mxu0 %v27418_v16 }
 0x3c9   : > { %18100 = vmatmul.mubr.msk.bf16.gmra.mrb[20].mxu1 %vm653_vm4, %v21801_v59  ;;  %v1853_v59 = vrot.slane %v17758_v0, 5  ;;  %v21808_v0 = vld [vmem:[%s22657_s9 + $0x338] sm:$0xff]  }
 0x3ca   : > { %4059 = vmatprep.mubr.bf16.mxu1 %v27418_v16 }
 0x3cb   : > { %v1854_v53 = vsel %vm22828_vm3, %v1852_v63, %v1853_v59  ;;  %v1878_v63 = vrot.slane %v17769_v49, 5  ;;  %v17768_v59 = vld [vmem:[%s22657_s9 + $0x2a8] sm:$0xe] }
 0x3cc   : > { %v17804_v1 = vcombine.low %v1851_v31, %v1854_v53  ;;  %v17770_v31 = vld [vmem:[%s22657_s9 + $0x2b0] sm:$0x1]  ;;  %v17792_v53 = vrot.slane %v17768_v59, 9 }
 0x3ce   : > { %v1879_v48 = vsel %vm22828_vm3, %v17792_v53, %v1878_v63 }
 0x3cf   : > { %17822 = vmatmul.mubr.msk.bf16.gmra.mrb[100].mxu0 %vm653_vm4, %v17804_v1  ;;  %v1880_v1 = vrot.slane %v1878_v63, 4  ;;  %v18112_v63 = vld [vmem:[%s22657_s9 + $0x2a4] sm:$0xc] }
 0x3d0   : > { %2139 = vmatprep.mubr.bf16.mxu0 %v27418_v16 }
 0x3d1   : > { %18101 = vmatmul.mubr.msk.bf16.gmra.mrb[24].mxu1 %vm653_vm4, %v21802_v13  ;;  %v1860_v13 = vrot.slane %v17761_v55, 5  ;;  %v21809_v55 = vld [vmem:[%s22657_s9 + $0x354] sm:$0xff]  }
 0x3d2   : > { %4069 = vmatprep.mubr.bf16.mxu1 %v27418_v16 }
 0x3d3   : > { %v1861_v27 = vsel %vm22828_vm3, %v1859_v36, %v1860_v13  ;;  %v1885_v36 = vrot.slane %v17772_v6, 5  ;;  %v17771_v13 = vld [vmem:[%s22657_s9 + $0x2c4] sm:$0xe] }
 0x3d4   : > { %v17805_v14 = vcombine.low %v1858_v61, %v1861_v27  ;;  %v17773_v61 = vld [vmem:[%s22657_s9 + $0x2cc] sm:$0x1]  ;;  %v17793_v27 = vrot.slane %v17771_v13, 9  ;;  %v18116_v6 = vld [vmem:[%s22657_s9 + $0x2c4] sm:$0xf] }
 0x3d5   : > { %v17846_v13 = vld.sshfl [vmem:[#allocation5 + $0x4] sm:$0x33 pattern:$0x76325410] }
 0x3d6   : > { %v1886_v37 = vsel %vm22828_vm3, %v17793_v27, %v1885_v36  ;;  %v2266_v27 = vcombine.high %v17846_v13, %v17846_v13 }
 0x3d7   : > { %17823 = vmatmul.mubr.msk.bf16.gmra.mrb[104].mxu0 %vm653_vm4, %v17805_v14  ;;  %v1887_v14 = vrot.slane %v1885_v36, 4  ;;  %v17669_v36 = vld [vmem:[%s22657_s9 + $0x158] sm:$0xf] }
 0x3d8   : > { %2149 = vmatprep.mubr.bf16.mxu0 %v27418_v16  ;;  %17847 = vmatprep.subr.msk.bf16.mxu0 %vm751_vm0, %v2266_v27 }
 0x3d9   : > { %18102 = vmatmul.mubr.msk.bf16.gmra.mrb[28].mxu1 %vm653_vm4, %v21803_v32  ;;  %v1867_v32 = vrot.slane %v17764_v15, 5  ;;  %v21810_v15 = vld [vmem:[%s22657_s9 + $0x370] sm:$0xff]  }
 0x3da   : > { %4079 = vmatprep.mubr.bf16.mxu1 %v27418_v16 }
 0x3db   : > { %v1868_v58 = vsel %vm22828_vm3, %v1866_v7, %v1867_v32  ;;  %v1892_v7 = vrot.slane %v17775_v4, 5  ;;  %v17774_v32 = vld [vmem:[%s22657_s9 + $0x2e0] sm:$0xe] }
 0x3dc   : > { %v17806_v45 = vcombine.low %v1865_v8, %v1868_v58  ;;  %v17776_v8 = vld [vmem:[%s22657_s9 + $0x2e8] sm:$0x1]  ;;  %v17794_v58 = vrot.slane %v17774_v32, 9  ;;  %v4340_v32 = vrot.slane %v18116_v6, 6 }
 0x3de   : > { %v1893_v10 = vsel %vm22828_vm3, %v17794_v58, %v1892_v7  ;;  %v18117_v58 = vld [vmem:[%s22657_s9 + $0x2c8] sm:$0x3] }
 0x3df   : > { %17824 = vmatmul.mubr.msk.bf16.gmra.mrb[108].mxu0 %vm653_vm4, %v17806_v45  ;;  %v1894_v45 = vrot.slane %v1892_v7, 4 }
 0x3e0   : > { %2159 = vmatprep.mubr.bf16.mxu0 %v27418_v16 }
 0x3e1   : > { %18103 = vmatmul.mubr.msk.bf16.gmra.mrb[32].mxu1 %vm653_vm4, %v21804_v44  ;;  %v1874_v44 = vrot.slane %v17767_v19, 5  ;;  %v21811_v19 = vld [vmem:[%s22657_s9 + $0x38c] sm:$0xff]  }
 0x3e2   : > { %4089 = vmatprep.mubr.bf16.mxu1 %v27418_v16 }
 0x3e3   : > { %v1875_v38 = vsel %vm22828_vm3, %v1873_v46, %v1874_v44  ;;  %v18113_v46 = vld [vmem:[%s22657_s9 + $0x2a8] sm:$0xf]  ;;  %v1899_v44 = vrot.slane %v17778_v9, 5  ;;  %v4342_v9 = vrot.slane %v4340_v32, 4 }
 0x3e4   : > { %v17807_v28 = vcombine.low %v1872_v22, %v1875_v38  ;;  %v17777_v22 = vld [vmem:[%s22657_s9 + $0x2fc] sm:$0xe]  ;;  %v17779_v38 = vld [vmem:[%s22657_s9 + $0x304] sm:$0x1]  ;;  %v4333_v59 = vrot.slane %v18113_v46, 6  ;;  %v4343_v46 = vrot.slane %v18117_v58, 6 }
 0x3e5   : > { %v1902_v49 = vrot.slane %v17779_v38, 5  ;;  %v18119_v38 = vld [vmem:[%s22657_s9 + $0x2e0] sm:$0xf] }
 0x3e7   : > { %17825 = vmatmul.mubr.msk.bf16.gmra.mrb[112].mxu0 %vm653_vm4, %v17807_v28  ;;  %v17795_v28 = vrot.slane %v17777_v22, 9  ;;  %v5129_v22 = vsel %vm751_vm0, %v23521_v42, 0 }
 0x3e8   : > { %2169 = vmatprep.mubr.bf16.mxu0 %v27418_v16 }
 0x3e9   : > { %18104 = vmatmul.mubr.msk.bf16.gmra.mrb[36].mxu1 %vm653_vm4, %v21805_v40  ;;  %v1881_v40 = vrot.slane %v17770_v31, 5  ;;  %v18114_v31 = vld [vmem:[%s22657_s9 + $0x2ac] sm:$0x3]  ;;  %v1900_v53 = vsel %vm22828_vm3, %v17795_v28, %v1899_v44 }
 0x3ea   : > { %4099 = vmatprep.mubr.bf16.mxu1 %v27418_v16 }
 0x3eb   : > { %v1882_v30 = vsel %vm22828_vm3, %v1880_v1, %v1881_v40 }
 0x3ec   : > { %v17808_v39 = vcombine.low %v1879_v48, %v1882_v30  ;;  %v21812_v48 = vld [vmem:[%s22657_s9 + $0x3a8] sm:$0xff]   ;;  %v18160_v30 = vrot.slane %v18112_v63, 10  ;;  %v17673_v63 = vld [vmem:[%s22657_s9 + $0x178] sm:$0x3] }
 0x3ee   : > { %v4334_v4 = vsel %vm23185_vm6, %v18160_v30, %v4333_v59  ;;  %v18120_v30 = vld [vmem:[%s22657_s9 + $0x2e4] sm:$0x3] }
 0x3ef   : > { %17826 = vmatmul.mubr.msk.bf16.gmra.mrb[116].mxu0 %vm653_vm4, %v17808_v39  ;;  %v4335_v39 = vrot.slane %v4333_v59, 4  ;;  %v4350_v27 = vrot.slane %v18120_v30, 6  ;;  %v18126_v30 = vld [vmem:[%s22657_s9 + $0x31c] sm:$0x3] }
 0x3f0   : > { %2179 = vmatprep.mubr.bf16.mxu0 %v27418_v16 }
 0x3f1   : > { %18105 = vmatmul.mubr.msk.bf16.gmra.mrb[40].mxu1 %vm653_vm4, %v21806_v29  ;;  %v1888_v29 = vrot.slane %v17773_v61, 5  ;;  %v1584_v61 = vrot.slane %v17669_v36, 6 }
 0x3f2   : > { %4109 = vmatprep.mubr.bf16.mxu1 %v27418_v16 }
 0x3f3   : > { %v1889_v33 = vsel %vm22828_vm3, %v1887_v14, %v1888_v29  ;;  %v17668_v14 = vld [vmem:[%s22657_s9 + $0x154] sm:$0xc]  ;;  %v17670_v29 = vld [vmem:[%s22657_s9 + $0x15c] sm:$0x3] }
 0x3f4   : > { %v17809_v21 = vcombine.low %v1886_v37, %v1889_v33  ;;  %v2316_v37 = vsel %vm751_vm0, %v17846_v13, 0  ;;  %v17716_v33 = vrot.slane %v17668_v14, 10  ;;  %v17675_v14 = vld [vmem:[%s22657_s9 + $0x190] sm:$0xf] }
 0x3f5   : > { %2322 = vmatpush1.bf16.msra.mxu0 %v2316_v37  ;;  %v1598_v37 = vrot.slane %v17675_v14, 6  ;;  %v17681_v14 = vld [vmem:[%s22657_s9 + $0x1c8] sm:$0xf] }
 0x3f7   : > { %17827 = vmatmul.mubr.msk.bf16.gmra.mrb[120].mxu0 %vm653_vm4, %v17809_v21  ;;  %v1586_v21 = vrot.slane %v1584_v61, 4 }
 0x3f8   : > { %2189 = vmatprep.mubr.bf16.mxu0 %v27418_v16 }
 0x3f9   : > { %18106 = vmatmul.mubr.msk.bf16.gmra.mrb[44].mxu1 %vm653_vm4, %v21807_v60  ;;  %v1895_v60 = vrot.slane %v17776_v8, 5  ;;  %v18115_v8 = vld [vmem:[%s22657_s9 + $0x2c0] sm:$0xc] }
 0x3fa   : > { %4119 = vmatprep.mubr.bf16.mxu1 %v27418_v16 }
 0x3fb   : > { %v1896_v34 = vsel %vm22828_vm3, %v1894_v45, %v1895_v60  ;;  %v1585_v45 = vsel %vm23185_vm6, %v17716_v33, %v1584_v61  ;;  %v17674_v33 = vld [vmem:[%s22657_s9 + $0x18c] sm:$0xc] }
 0x3fc   : > { %v17810_v56 = vcombine.low %v1893_v10, %v1896_v34  ;;  %v23732_v34 = vld.sshfl [vmem:[#allocation5 + $0x24] sm:$0x33 pattern:$0x76325410] }
 0x3fd   : > { %v5513_v28 = vcombine.high %v23732_v34, %v23732_v34 }
 0x3ff   : > { %17828 = vmatmul.mubr.msk.bf16.gmra.mrb[124].mxu0 %vm653_vm4, %v17810_v56 }
 0x400   : > { %2199 = vmatprep.mubr.bf16.mxu0 %v27418_v16 }
 0x401   : > { %18107 = vmatmul.mubr.msk.bf16.gmra.mrb[48].mxu1 %vm653_vm4, %v21808_v0  ;;  %v1901_v0 = vrot.slane %v1899_v44, 4  ;;  %v17672_v44 = vld [vmem:[%s22657_s9 + $0x174] sm:$0xf] }
 0x402   : > { %4129 = vmatprep.mubr.bf16.mxu1 %v27418_v16 }
 0x403   : > { %v1903_v1 = vsel %vm22828_vm3, %v1901_v0, %v1902_v49  ;;  %v1591_v0 = vrot.slane %v17672_v44, 6  ;;  %v17671_v49 = vld [vmem:[%s22657_s9 + $0x170] sm:$0xc] }
 0x404   : > { %v17811_v40 = vcombine.low %v1900_v53, %v1903_v1  ;;  %v17717_v59 = vrot.slane %v17671_v49, 10  ;;  %v4344_v53 = vsel %vm23185_vm6, %v4342_v9, %v4343_v46  ;;  %v4347_v1 = vrot.slane %v18119_v38, 6  ;;  %v17678_v38 = vld [vmem:[%s22657_s9 + $0x1ac] sm:$0xf]  ;;  %v17677_v49 = vld [vmem:[%s22657_s9 + $0x1a8] sm:$0xc] }
 0x406   : > { %v4349_v61 = vrot.slane %v4347_v1, 4 }
 0x407   : > { %17829 = vmatmul.mubr.msk.bf16.gmra.mrb[128].mxu0 %vm653_vm4, %v17811_v40  ;;  %v1594_v40 = vrot.slane %v17673_v63, 6  ;;  %v17679_v63 = vld [vmem:[%s22657_s9 + $0x1b0] sm:$0x3] }
 0x408   : > { %2353 = vmatprep.mubr.bf16.mxu0 %v27418_v16 }
 0x409   : > { %18108 = vmatmul.mubr.msk.bf16.gmra.mrb[52].mxu1 %vm653_vm4, %v21809_v55  ;;  %v4336_v55 = vrot.slane %v18114_v31, 6  ;;  %v1593_v31 = vrot.slane %v1591_v0, 4 }
 0x40a   : > { %4139 = vmatprep.mubr.bf16.mxu1 %v27418_v16 }
 0x40b   : > { %v4337_v7 = vsel %vm23185_vm6, %v4335_v39, %v4336_v55  ;;  %v1592_v39 = vsel %vm23185_vm6, %v17717_v59, %v1591_v0  ;;  %v1595_v55 = vsel %vm23185_vm6, %v1593_v31, %v1594_v40  ;;  %v1605_v0 = vrot.slane %v17678_v38, 6  ;;  %v17684_v38 = vld [vmem:[%s22657_s9 + $0x1e4] sm:$0xf] }
 0x40c   : > { %v18176_v56 = vcombine.low %v4334_v4, %v4337_v7  ;;  %v17831_v36 = vcombine.low %v1592_v39, %v1595_v55  ;;  %v1600_v4 = vrot.slane %v1598_v37, 4  ;;  %v17719_v59 = vrot.slane %v17677_v49, 10  ;;  %v17683_v49 = vld [vmem:[%s22657_s9 + $0x1e0] sm:$0xc] }
 0x40d   : > { %v1607_v31 = vrot.slane %v1605_v0, 4 }
 0x40e   : > { %v1606_v39 = vsel %vm23185_vm6, %v17719_v59, %v1605_v0  ;;  %v1619_v0 = vrot.slane %v17684_v38, 6  ;;  %v17721_v59 = vrot.slane %v17683_v49, 10  ;;  %v17690_v38 = vld [vmem:[%s22657_s9 + $0x21c] sm:$0xf]  ;;  %v17689_v49 = vld [vmem:[%s22657_s9 + $0x218] sm:$0xc] }
 0x411   : > { %18109 = vmatmul.mubr.msk.bf16.gmra.mrb[56].mxu1 %vm653_vm4, %v21810_v15  ;;  %v1587_v15 = vrot.slane %v17670_v29, 6  ;;  %v18122_v29 = vld [vmem:[%s22657_s9 + $0x2fc] sm:$0xf] }
 0x412   : > { %4149 = vmatprep.mubr.bf16.mxu1 %v27418_v16  ;;  %v4354_v58 = vrot.slane %v18122_v29, 6  ;;  %v18128_v29 = vld [vmem:[%s22657_s9 + $0x334] sm:$0xf] }
 0x413   : > { %v1588_v60 = vsel %vm23185_vm6, %v1586_v21, %v1587_v15  ;;  %v17676_v21 = vld [vmem:[%s22657_s9 + $0x194] sm:$0x3]  ;;  %v17718_v15 = vrot.slane %v17674_v33, 10  ;;  %v17680_v33 = vld [vmem:[%s22657_s9 + $0x1c4] sm:$0xc] }
 0x414   : > { %v17830_v10 = vcombine.low %v1585_v45, %v1588_v60  ;;  %v1601_v7 = vrot.slane %v17676_v21, 6  ;;  %v18121_v45 = vld [vmem:[%s22657_s9 + $0x2f8] sm:$0xc]  ;;  %v18123_v60 = vld [vmem:[%s22657_s9 + $0x300] sm:$0x3]  ;;  %v4356_v44 = vrot.slane %v4354_v58, 4 }
 0x415   : > { %v18163_v46 = vrot.slane %v18121_v45, 10  ;;  %v17682_v21 = vld [vmem:[%s22657_s9 + $0x1cc] sm:$0x3]  ;;  %v18127_v45 = vld [vmem:[%s22657_s9 + $0x330] sm:$0xc] }
 0x416   : > { %17848 = vmatmul.mubr.msk.bf16.vlgmr.msra.gmra.mrb[68].mxu0 %vm653_vm4, %v17830_v10  ;;  %v1599_v10 = vsel %vm23185_vm6, %v17718_v15, %v1598_v37  ;;  %v1612_v37 = vrot.slane %v17681_v14, 6  ;;  %v17720_v15 = vrot.slane %v17680_v33, 10  ;;  %v17687_v14 = vld [vmem:[%s22657_s9 + $0x200] sm:$0xf]  ;;  %v17686_v33 = vld [vmem:[%s22657_s9 + $0x1fc] sm:$0xc] }
 0x417   : > { %2363 = vmatprep.mubr.bf16.mxu0 %v27418_v16 }
 0x419   : > { %18110 = vmatmul.mubr.msk.bf16.gmra.mrb[60].mxu1 %vm653_vm4, %v21811_v19  ;;  %v18161_v19 = vrot.slane %v18115_v8, 10  ;;  %v4351_v8 = vsel %vm23185_vm6, %v4349_v61, %v4350_v27  ;;  %v4364_v27 = vrot.slane %v18126_v30, 6  ;;  %v18132_v30 = vld [vmem:[%s22657_s9 + $0x354] sm:$0x3] }
 0x41a   : > { %4159 = vmatprep.mubr.bf16.mxu1 %v27418_v16 }
 0x41b   : > { %v4341_v42 = vsel %vm23185_vm6, %v18161_v19, %v4340_v32 }
 0x41c   : > { %v18177_v6 = vcombine.low %v4341_v42, %v4344_v53  ;;  %v1608_v42 = vrot.slane %v17679_v63, 6  ;;  %v4355_v53 = vsel %vm23185_vm6, %v18163_v46, %v4354_v58  ;;  %v4368_v58 = vrot.slane %v18128_v29, 6  ;;  %v17685_v63 = vld [vmem:[%s22657_s9 + $0x1e8] sm:$0x3]  ;;  %v18134_v29 = vld [vmem:[%s22657_s9 + $0x36c] sm:$0xf] }
 0x41d   : > { %v18165_v46 = vrot.slane %v18127_v45, 10  ;;  %v18133_v45 = vld [vmem:[%s22657_s9 + $0x368] sm:$0xc] }
 0x41e   : > { %17849 = vmatmul.mubr.msk.bf16.gmra.mrb[72].mxu0 %vm653_vm4, %v17831_v36  ;;  %v1609_v55 = vsel %vm23185_vm6, %v1607_v31, %v1608_v42  ;;  %v1621_v31 = vrot.slane %v1619_v0, 4  ;;  %v1622_v42 = vrot.slane %v17685_v63, 6  ;;  %v17691_v63 = vld [vmem:[%s22657_s9 + $0x220] sm:$0x3] }
 0x41f   : > { %2373 = vmatprep.mubr.bf16.mxu0 %v27418_v16 }
 0x421   : > { %18111 = vmatmul.mubr.msk.bf16.gmra.mrb[64].mxu1 %vm653_vm4, %v21812_v48  ;;  %v18118_v48 = vld [vmem:[%s22657_s9 + $0x2dc] sm:$0xc] }
 0x422   : > { %4588 = vmatprep.mubr.bf16.mxu1 %v27418_v16  ;;  %v18162_v13 = vrot.slane %v18118_v48, 10  ;;  %v18124_v48 = vld [vmem:[%s22657_s9 + $0x314] sm:$0xc] }
 0x424   : > { %v4348_v32 = vsel %vm23185_vm6, %v18162_v13, %v4347_v1  ;;  %v18164_v13 = vrot.slane %v18124_v48, 10  ;;  %v18130_v48 = vld [vmem:[%s22657_s9 + $0x34c] sm:$0xc] }
 0x425   : > { %v18178_v9 = vcombine.low %v4348_v32, %v4351_v8 }
 0x429   : > { %18194 = vmatmul.mubr.msk.bf16.vlgmr.msra.gmra.mrb[4].mxu1 %vm653_vm4, %v18176_v56  ;;  %v1602_v56 = vsel %vm23185_vm6, %v1600_v4, %v1601_v7  ;;  %v1614_v4 = vrot.slane %v1612_v37, 4  ;;  %v1615_v7 = vrot.slane %v17682_v21, 6  ;;  %v17688_v21 = vld [vmem:[%s22657_s9 + $0x204] sm:$0x3] }
 0x42a   : > { %5135 = vmatpush1.bf16.msra.mxu1 %v5129_v22  ;;  %4598 = vmatprep.mubr.bf16.mxu1 %v27418_v16  ;;  %v17832_v19 = vcombine.low %v1599_v10, %v1602_v56  ;;  %v4357_v22 = vrot.slane %v18123_v60, 6  ;;  %v18129_v60 = vld [vmem:[%s22657_s9 + $0x338] sm:$0x3]  ;;  %v1613_v10 = vsel %vm23185_vm6, %v17720_v15, %v1612_v37  ;;  %v1626_v37 = vrot.slane %v17687_v14, 6 }
 0x42b   : > { %18357 = vmatprep.subr.msk.bf16.mxu1 %vm751_vm0, %v5513_v28  ;;  %v18125_v28 = vld [vmem:[%s22657_s9 + $0x318] sm:$0xf]  ;;  %v1616_v56 = vsel %vm23185_vm6, %v1614_v4, %v1615_v7  ;;  %v17722_v15 = vrot.slane %v17686_v33, 10  ;;  %v1629_v7 = vrot.slane %v17688_v21, 6  ;;  %v17692_v33 = vld [vmem:[%s22657_s9 + $0x234] sm:$0xc] }
 0x42c   : > { %17850 = vmatmul.mubr.msk.bf16.gmra.mrb[76].mxu0 %vm653_vm4, %v17832_v19  ;;  %v4358_v1 = vsel %vm23185_vm6, %v4356_v44, %v4357_v22  ;;  %v4361_v40 = vrot.slane %v18125_v28, 6  ;;  %v17834_v19 = vcombine.low %v1613_v10, %v1616_v56  ;;  %v4370_v44 = vrot.slane %v4368_v58, 4  ;;  %v18131_v28 = vld [vmem:[%s22657_s9 + $0x350] sm:$0xf]  ;;  %v17693_v14 = vld [vmem:[%s22657_s9 + $0x238] sm:$0xf] }
 0x42d   : > { %2383 = vmatprep.mubr.bf16.mxu0 %v27418_v16  ;;  %v18179_v36 = vcombine.low %v4355_v53, %v4358_v1  ;;  %v4371_v22 = vrot.slane %v18129_v60, 6  ;;  %v4369_v53 = vsel %vm23185_vm6, %v18165_v46, %v4368_v58  ;;  %v1628_v4 = vrot.slane %v1626_v37, 4  ;;  %v18135_v60 = vld [vmem:[%s22657_s9 + $0x370] sm:$0x3]  ;;  %v17694_v21 = vld [vmem:[%s22657_s9 + $0x23c] sm:$0x3] }
 0x42e   : > { %v4363_v61 = vrot.slane %v4361_v40, 4  ;;  %v4362_v32 = vsel %vm23185_vm6, %v18164_v13, %v4361_v40  ;;  %v4375_v40 = vrot.slane %v18131_v28, 6  ;;  %v18166_v13 = vrot.slane %v18130_v48, 10  ;;  %v18137_v28 = vld [vmem:[%s22657_s9 + $0x388] sm:$0xf] }
 0x42f   : > { %v4372_v1 = vsel %vm23185_vm6, %v4370_v44, %v4371_v22  ;;  %v4382_v58 = vrot.slane %v18134_v29, 6  ;;  %v1627_v10 = vsel %vm23185_vm6, %v17722_v15, %v1626_v37  ;;  %v1630_v56 = vsel %vm23185_vm6, %v1628_v4, %v1629_v7  ;;  %v18136_v48 = vld [vmem:[%s22657_s9 + $0x384] sm:$0xc] }
 0x430   : > { %v4365_v8 = vsel %vm23185_vm6, %v4363_v61, %v4364_v27  ;;  %v4377_v61 = vrot.slane %v4375_v40, 4  ;;  %v4378_v27 = vrot.slane %v18132_v30, 6  ;;  %v18167_v46 = vrot.slane %v18133_v45, 10  ;;  %v18138_v30 = vld [vmem:[%s22657_s9 + $0x38c] sm:$0x3] }
 0x431   : > { %18195 = vmatmul.mubr.msk.bf16.gmra.mrb[8].mxu1 %vm653_vm4, %v18177_v6  ;;  %v17833_v6 = vcombine.low %v1606_v39, %v1609_v55  ;;  %v1620_v39 = vsel %vm23185_vm6, %v17721_v59, %v1619_v0  ;;  %v1623_v55 = vsel %vm23185_vm6, %v1621_v31, %v1622_v42  ;;  %v4384_v44 = vrot.slane %v4382_v58, 4  ;;  %v18140_v29 = vld [vmem:[%s22657_s9 + $0x3a4] sm:$0xf]  ;;  %v18139_v45 = vld [vmem:[%s22657_s9 + $0x3a0] sm:$0xc] }
 0x432   : > { %4608 = vmatprep.mubr.bf16.mxu1 %v27418_v16  ;;  %v4385_v22 = vrot.slane %v18135_v60, 6  ;;  %v1633_v0 = vrot.slane %v17690_v38, 6  ;;  %v17723_v59 = vrot.slane %v17689_v49, 10  ;;  %v1636_v42 = vrot.slane %v17691_v63, 6  ;;  %v18141_v60 = vld [vmem:[%s22657_s9 + $0x3a8] sm:$0x3] }
 0x433   : > { %v1640_v37 = vrot.slane %v17693_v14, 6  ;;  %v17724_v15 = vrot.slane %v17692_v33, 10  ;;  %v1643_v7 = vrot.slane %v17694_v21, 6  ;;  %v17696_v38 = vld [vmem:[%s22657_s9 + $0x254] sm:$0xf] }
 0x434   : > { %17851 = vmatmul.mubr.msk.bf16.gmra.mrb[80].mxu0 %vm653_vm4, %v17833_v6  ;;  %v17835_v6 = vcombine.low %v1620_v39, %v1623_v55  ;;  %v1635_v31 = vrot.slane %v1633_v0, 4  ;;  %v1634_v39 = vsel %vm23185_vm6, %v17723_v59, %v1633_v0  ;;  %v1647_v0 = vrot.slane %v17696_v38, 6  ;;  %v17695_v49 = vld [vmem:[%s22657_s9 + $0x250] sm:$0xc]  ;;  %v17697_v63 = vld [vmem:[%s22657_s9 + $0x258] sm:$0x3] }
 0x435   : > { %2393 = vmatprep.mubr.bf16.mxu0 %v27418_v16  ;;  %v1642_v4 = vrot.slane %v1640_v37, 4  ;;  %v17725_v59 = vrot.slane %v17695_v49, 10  ;;  %v17699_v14 = vld [vmem:[%s22657_s9 + $0x270] sm:$0xf]  ;;  %v17698_v21 = vld [vmem:[%s22657_s9 + $0x26c] sm:$0xc] }
 0x436   : > { %v1637_v55 = vsel %vm23185_vm6, %v1635_v31, %v1636_v42  ;;  %v1649_v31 = vrot.slane %v1647_v0, 4  ;;  %v1650_v42 = vrot.slane %v17697_v63, 6  ;;  %v1654_v33 = vrot.slane %v17699_v14, 6  ;;  %v17702_v63 = vld [vmem:[%s22657_s9 + $0x28c] sm:$0xf] }
 0x437   : > { %v18150_v14 = vld [vmem:[%s22657_s9 + $0x3fc] sm:$0x3] }
 0x439   : > { %18196 = vmatmul.mubr.msk.bf16.gmra.mrb[12].mxu1 %vm653_vm4, %v18178_v9  ;;  %v18180_v9 = vcombine.low %v4362_v32, %v4365_v8  ;;  %v4376_v32 = vsel %vm23185_vm6, %v18166_v13, %v4375_v40  ;;  %v4379_v8 = vsel %vm23185_vm6, %v4377_v61, %v4378_v27  ;;  %v4389_v40 = vrot.slane %v18137_v28, 6  ;;  %v18143_v28 = vld [vmem:[%s22657_s9 + $0x3c0] sm:$0xf] }
 0x43a   : > { %4618 = vmatprep.mubr.bf16.mxu1 %v27418_v16  ;;  %v18168_v13 = vrot.slane %v18136_v48, 10  ;;  %v4392_v27 = vrot.slane %v18138_v30, 6  ;;  %v18142_v48 = vld [vmem:[%s22657_s9 + $0x3bc] sm:$0xc]  ;;  %v18144_v30 = vld [vmem:[%s22657_s9 + $0x3c4] sm:$0x3] }
 0x43b   : > { %v4391_v61 = vrot.slane %v4389_v40, 4 }
 0x43c   : > { %17852 = vmatmul.mubr.msk.bf16.gmra.mrb[84].mxu0 %vm653_vm4, %v17834_v19  ;;  %v17836_v19 = vcombine.low %v1627_v10, %v1630_v56  ;;  %v1641_v10 = vsel %vm23185_vm6, %v17724_v15, %v1640_v37  ;;  %v1644_v56 = vsel %vm23185_vm6, %v1642_v4, %v1643_v7  ;;  %v18146_v37 = vld [vmem:[%s22657_s9 + $0x3dc] sm:$0xf]  ;;  %v17700_v15 = vld [vmem:[%s22657_s9 + $0x274] sm:$0x3]  ;;  %v17726_v4 = vrot.slane %v17698_v21, 10 }
 0x43d   : > { %2403 = vmatprep.mubr.bf16.mxu0 %v27418_v16  ;;  %v1656_v7 = vrot.slane %v1654_v33, 4 }
 0x441   : > { %18197 = vmatmul.mubr.msk.bf16.gmra.mrb[16].mxu1 %vm653_vm4, %v18179_v36  ;;  %v18181_v36 = vcombine.low %v4369_v53, %v4372_v1  ;;  %v4383_v53 = vsel %vm23185_vm6, %v18167_v46, %v4382_v58  ;;  %v4386_v1 = vsel %vm23185_vm6, %v4384_v44, %v4385_v22  ;;  %v4396_v58 = vrot.slane %v18140_v29, 6  ;;  %v1038_v29 = vld [vmem:[#allocation10] ss:$4 sm:$0x3] }
 0x442   : > { %4628 = vmatprep.mubr.bf16.mxu1 %v27418_v16  ;;  %v18169_v46 = vrot.slane %v18139_v45, 10  ;;  %v4399_v22 = vrot.slane %v18141_v60, 6  ;;  %v4410_v45 = vrot.slane %v18146_v37, 6  ;;  %v1195_v60 = vpop.f32.mrb[4].mxu0  ;;  %v23923_v38 = vrot.slane %v1038_v29, %v23122_v43 }
 0x443   : > { %v4398_v44 = vrot.slane %v4396_v58, 4 }
 0x444   : > { %17853 = vmatmul.mubr.msk.bf16.gmra.mrb[88].mxu0 %vm653_vm4, %v17835_v6  ;;  %v17837_v6 = vcombine.low %v1634_v39, %v1637_v55  ;;  %v1648_v39 = vsel %vm23185_vm6, %v17725_v59, %v1647_v0  ;;  %v1651_v55 = vsel %vm23185_vm6, %v1649_v31, %v1650_v42  ;;  %v4412_v0 = vrot.slane %v4410_v45, 4  ;;  %v18149_v59 = vld [vmem:[%s22657_s9 + $0x3f8] sm:$0xf] }
 0x445   : > { %2413 = vmatprep.mubr.bf16.mxu0 %v27418_v16  ;;  %v1661_v42 = vrot.slane %v17702_v63, 6  ;;  %v17704_v63 = vld [vmem:[%s22657_s9 + $0x2a4] sm:$0xc] }
 0x449   : > { %18198 = vmatmul.mubr.msk.bf16.gmra.mrb[20].mxu1 %vm653_vm4, %v18180_v9  ;;  %v18182_v9 = vcombine.low %v4376_v32, %v4379_v8  ;;  %v4390_v32 = vsel %vm23185_vm6, %v18168_v13, %v4389_v40  ;;  %v4393_v8 = vsel %vm23185_vm6, %v4391_v61, %v4392_v27  ;;  %v4403_v40 = vrot.slane %v18143_v28, 6 }
 0x44a   : > { %4638 = vmatprep.mubr.bf16.mxu1 %v27418_v16  ;;  %v18170_v13 = vrot.slane %v18142_v48, 10  ;;  %v4406_v27 = vrot.slane %v18144_v30, 6  ;;  %v1663_v30 = vrot.slane %v1661_v42, 4 }
 0x44b   : > { %v4405_v61 = vrot.slane %v4403_v40, 4 }
 0x44c   : > { %17854 = vmatmul.mubr.msk.bf16.gmra.mrb[92].mxu0 %vm653_vm4, %v17836_v19  ;;  %v17838_v19 = vcombine.low %v1641_v10, %v1644_v56  ;;  %v23914_v10 = vrot.slane %v1038_v29, %v23120_v52  ;;  %v18145_v56 = vld [vmem:[%s22657_s9 + $0x3d8] sm:$0xc] }
 0x44d   : > { %2423 = vmatprep.mubr.bf16.mxu0 %v27418_v16  ;;  %v18171_v28 = vrot.slane %v18145_v56, 10 }
 0x44e   : > { %v1196_v31 = vadd.f32 %v1195_v60, %v23914_v10 }
 0x450   : > { %v1354_v29 = vmax.f32 %v1196_v31, 0.0 }
 0x451   : > { %18199 = vmatmul.mubr.msk.bf16.gmra.mrb[24].mxu1 %vm653_vm4, %v18181_v36  ;;  %v18183_v36 = vcombine.low %v4383_v53, %v4386_v1  ;;  %v4397_v53 = vsel %vm23185_vm6, %v18169_v46, %v4396_v58  ;;  %v4400_v1 = vsel %vm23185_vm6, %v4398_v44, %v4399_v22  ;;  %v4407_v58 = vsel %vm23185_vm6, %v4405_v61, %v4406_v27  ;;  %v18148_v27 = vld [vmem:[%s22657_s9 + $0x3f4] sm:$0xc] }
 0x452   : > { %4648 = vmatprep.mubr.bf16.mxu1 %v27418_v16  ;;  %v18172_v60 = vrot.slane %v18148_v27, 10 }
 0x454   : > { %17855 = vmatmul.mubr.msk.bf16.gmra.mrb[96].mxu0 %vm653_vm4, %v17837_v6  ;;  %v17839_v6 = vcombine.low %v1648_v39, %v1651_v55  ;;  %v4411_v55 = vsel %vm23185_vm6, %v18171_v28, %v4410_v45 }
 0x455   : > { %2433 = vmatprep.mubr.bf16.mxu0 %v27418_v16 }
 0x459   : > { %18200 = vmatmul.mubr.msk.bf16.gmra.mrb[28].mxu1 %vm653_vm4, %v18182_v9  ;;  %v18184_v9 = vcombine.low %v4390_v32, %v4393_v8  ;;  %v1657_v32 = vrot.slane %v17700_v15, 6  ;;  %v4404_v8 = vsel %vm23185_vm6, %v18170_v13, %v4403_v40  ;;  %v1197_v40 = vpop.f32.mrb[5].mxu0 }
 0x45a   : > { %4658 = vmatprep.mubr.bf16.mxu1 %v27418_v16  ;;  %v18186_v22 = vcombine.low %v4404_v8, %v4407_v58  ;;  %v1198_v13 = vadd.f32 %v1197_v40, %v23923_v38  ;;  %v1199_v61 = vpop.f32.mrb[6].mxu0 }
 0x45b   : > { %v1658_v46 = vsel %vm23185_vm6, %v1656_v7, %v1657_v32  ;;  %v1200_v37 = vadd.f32 %v1199_v61, %v23914_v10 }
 0x45c   : > { %17856 = vmatmul.mubr.msk.bf16.gmra.mrb[100].mxu0 %vm653_vm4, %v17838_v19  ;;  %v18147_v19 = vld [vmem:[%s22657_s9 + $0x3e0] sm:$0x3] }
 0x45d   : > { %2443 = vmatprep.mubr.bf16.mxu0 %v27418_v16  ;;  %v4413_v49 = vrot.slane %v18147_v19, 6  ;;  %v1356_v45 = vmax.f32 %v1200_v37, 0.0  ;;  %v4420_v19 = vrot.slane %v18150_v14, 6 }
 0x461   : > { %18201 = vmatmul.mubr.msk.bf16.gmra.mrb[32].mxu1 %vm653_vm4, %v18183_v36  ;;  %v18185_v36 = vcombine.low %v4397_v53, %v4400_v1  ;;  %v17701_v53 = vld [vmem:[%s22657_s9 + $0x288] sm:$0xc]  ;;  %v17703_v1 = vld [vmem:[%s22657_s9 + $0x290] sm:$0x3] }
 0x462   : > { %4668 = vmatprep.mubr.bf16.mxu1 %v27418_v16  ;;  %v17727_v48 = vrot.slane %v17701_v53, 10  ;;  %v1664_v39 = vrot.slane %v17703_v1, 6 }
 0x464   : > { %17857 = vmatmul.mubr.msk.bf16.gmra.mrb[104].mxu0 %vm653_vm4, %v17839_v6  ;;  %v4414_v6 = vsel %vm23185_vm6, %v4412_v0, %v4413_v49  ;;  %v1662_v21 = vsel %vm23185_vm6, %v17727_v48, %v1661_v42  ;;  %v1665_v15 = vsel %vm23185_vm6, %v1663_v30, %v1664_v39  ;;  %v17728_v42 = vrot.slane %v17704_v63, 10 }
 0x465   : > { %2453 = vmatprep.mubr.bf16.mxu0 %v27418_v16  ;;  %v17841_v32 = vcombine.low %v1662_v21, %v1665_v15  ;;  %v18187_v58 = vcombine.low %v4411_v55, %v4414_v6  ;;  %v18151_v6 = vld [vmem:[%s22657_s9 + $0x410] sm:$0xc] }
 0x469   : > { %18202 = vmatmul.mubr.msk.bf16.gmra.mrb[36].mxu1 %vm653_vm4, %v18184_v9  ;;  %v1655_v9 = vsel %vm23185_vm6, %v17726_v4, %v1654_v33  ;;  %v1201_v33 = vpop.f32.mrb[7].mxu0  ;;  %v1355_v4 = vmax.f32 %v1198_v13, 0.0  ;;  %v18153_v13 = vld [vmem:[%s22657_s9 + $0x418] sm:$0x3] }
 0x46a   : > { %4678 = vmatprep.mubr.bf16.mxu1 %v27418_v16  ;;  %v17840_v44 = vcombine.low %v1655_v9, %v1658_v46  ;;  %v1202_v7 = vadd.f32 %v1201_v33, %v23923_v38  ;;  %v1205_v8 = vpop.f32.mrb[8].mxu0  ;;  %v17705_v46 = vld [vmem:[%s22657_s9 + $0x2a8] sm:$0xf] }
 0x46b   : > { %v1206_v28 = vadd.f32 %v1205_v8, %v23914_v10  ;;  %v1668_v0 = vrot.slane %v17705_v46, 6  ;;  %v1207_v31 = vpop.f32.mrb[9].mxu0 }
 0x46c   : > { %17858 = vmatmul.mubr.msk.bf16.gmra.mrb[108].mxu0 %vm653_vm4, %v17840_v44  ;;  %v1357_v9 = vmax.f32 %v1202_v7, 0.0  ;;  %v18152_v44 = vld [vmem:[%s22657_s9 + $0x414] sm:$0xf]  ;;  %v1208_v39 = vadd.f32 %v1207_v31, %v23923_v38  ;;  %v1209_v55 = vpop.f32.mrb[10].mxu0 }
 0x46d   : > { %2463 = vmatprep.mubr.bf16.mxu0 %v27418_v16  ;;  %v1670_v53 = vrot.slane %v1668_v0, 4  ;;  %v4424_v30 = vrot.slane %v18152_v44, 6  ;;  %v1358_v61 = vmax.f32 %v1206_v28, 0.0  ;;  %v1210_v27 = vadd.f32 %v1209_v55, %v23914_v10  ;;  %v1211_v14 = vpop.f32.mrb[11].mxu0  ;;  %v17707_v28 = vld [vmem:[%s22657_s9 + $0x2c0] sm:$0xc] }
 0x46e   : > { %v23953_v49 = vpack.c.bf16 %v1357_v9, %v1355_v4  ;;  %v1359_v37 = vmax.f32 %v1208_v39, 0.0  ;;  %v1212_v33 = vadd.f32 %v1211_v14, %v23923_v38  ;;  %v1215_v15 = vpop.f32.mrb[12].mxu0  ;;  %v18154_v55 = vld [vmem:[%s22657_s9 + $0x42c] sm:$0xc] }
 0x46f   : > { %v1360_v7 = vmax.f32 %v1210_v27, 0.0  ;;  %v4426_v8 = vrot.slane %v4424_v30, 4  ;;  %v1216_v9 = vadd.f32 %v1215_v15, %v23914_v10  ;;  %v1217_v63 = vpop.f32.mrb[13].mxu0 }
 0x470   : > { %27443 = vst [vmem:[#allocation42_spill] sm:$0xff] %v23953_v49  ;;  %v1219_v39 = vpop.f32.mrb[14].mxu0 }
 0x471   : > { %18203 = vmatmul.mubr.msk.bf16.gmra.mrb[40].mxu1 %vm653_vm4, %v18185_v36  ;;  %v4417_v36 = vrot.slane %v18149_v59, 6  ;;  %v17706_v59 = vld [vmem:[%s22657_s9 + $0x2ac] sm:$0x3]  ;;  %v1221_v27 = vpop.f32.mrb[15].mxu0 }
 0x472   : > { %4688 = vmatprep.mubr.bf16.mxu1 %v27418_v16  ;;  %v1671_v1 = vrot.slane %v17706_v59, 6  ;;  %v17729_v59 = vrot.slane %v17707_v28, 10  ;;  %v17710_v28 = vld [vmem:[%s22657_s9 + $0x2dc] sm:$0xc] }
 0x473   : > { %v4419_v56 = vrot.slane %v4417_v36, 4  ;;  %v4418_v40 = vsel %vm23185_vm6, %v18172_v60, %v4417_v36  ;;  %v17708_v60 = vld [vmem:[%s22657_s9 + $0x2c4] sm:$0xf] }
 0x474   : > { %17859 = vmatmul.mubr.msk.bf16.gmra.mrb[112].mxu0 %vm653_vm4, %v17841_v32  ;;  %v1672_v36 = vsel %vm23185_vm6, %v1670_v53, %v1671_v1  ;;  %v18173_v32 = vrot.slane %v18151_v6, 10  ;;  %v1675_v46 = vrot.slane %v17708_v60, 6  ;;  %v18156_v6 = vld [vmem:[%s22657_s9 + $0x434] sm:$0x3] }
 0x475   : > { %2473 = vmatprep.mubr.bf16.mxu0 %v27418_v16  ;;  %v4421_v48 = vsel %vm23185_vm6, %v4419_v56, %v4420_v19  ;;  %v18155_v56 = vld [vmem:[%s22657_s9 + $0x430] sm:$0xf]  ;;  %v23975_v19 = vpack.c.bf16 %v1360_v7, %v1358_v61  ;;  %v1220_v61 = vadd.f32 %v1219_v39, %v23914_v10 }
 0x476   : > { %v18188_v4 = vcombine.low %v4418_v40, %v4421_v48  ;;  %v1677_v31 = vrot.slane %v1675_v46, 4  ;;  %v4425_v53 = vsel %vm23185_vm6, %v18173_v32, %v4424_v30  ;;  %v4431_v40 = vrot.slane %v18155_v56, 6 }
 0x477   : > { %27444 = vst [vmem:[#allocation43_spill] sm:$0xff] %v23975_v19  ;;  %v1218_v48 = vadd.f32 %v1217_v63, %v23923_v38  ;;  %v1676_v14 = vsel %vm23185_vm6, %v17729_v59, %v1675_v46  ;;  %v1364_v15 = vmax.f32 %v1220_v61, 0.0  ;;  %v4434_v32 = vrot.slane %v18156_v6, 6  ;;  %v18157_v6 = vld [vmem:[%s22657_s9 + $0x448] sm:$0xc] }
 0x478   : > { %v4433_v7 = vrot.slane %v4431_v40, 4  ;;  %v17730_v59 = vrot.slane %v17710_v28, 10  ;;  %v21865_v19 = vld [vmem:[#allocation8 + $0x1c0] ss:$8 sps:$4 sm:$0xff]  }
 0x479   : > { %18204 = vmatmul.mubr.msk.bf16.gmra.mrb[44].mxu1 %vm653_vm4, %v18186_v22  ;;  %v23949_v22 = vpack.c.bf16 %v1356_v45, %v1354_v29  ;;  %v1669_v29 = vsel %vm23185_vm6, %v17728_v42, %v1668_v0  ;;  %v1361_v45 = vmax.f32 %v1212_v33, 0.0  ;;  %v17709_v0 = vld [vmem:[%s22657_s9 + $0x2c8] sm:$0x3]  ;;  %v1225_v33 = vpop.f32.mrb[16].mxu0 }
 0x47a   : > { %4698 = vmatprep.mubr.bf16.mxu1 %v27418_v16  ;;  %v17842_v21 = vcombine.low %v1669_v29, %v1672_v36  ;;  %v1678_v42 = vrot.slane %v17709_v0, 6  ;;  %v1363_v29 = vmax.f32 %v1218_v48, 0.0  ;;  %v1222_v36 = vadd.f32 %v1221_v27, %v23923_v38  ;;  %v17712_v0 = vld [vmem:[%s22657_s9 + $0x2e4] sm:$0x3]  ;;  %v1227_v63 = vpop.f32.mrb[17].mxu0 }
 0x47b   : > { %27442 = vst [vmem:[#allocation41_spill] sm:$0xff] %v23949_v22  ;;  %v23979_v44 = vpack.c.bf16 %v1361_v45, %v1359_v37  ;;  %v18158_v45 = vld [vmem:[%s22657_s9 + $0x44c] sm:$0xf]  ;;  %v1226_v56 = vadd.f32 %v1225_v33, %v23914_v10  ;;  %v1228_v39 = vadd.f32 %v1227_v63, %v23923_v38  ;;  %v17713_v63 = vld [vmem:[%s22657_s9 + $0x2f8] sm:$0xc] }
 0x47c   : > { %17860 = vmatmul.mubr.msk.bf16.gmra.mrb[116].mxu0 %vm653_vm4, %v17842_v21  ;;  %v1679_v30 = vsel %vm23185_vm6, %v1677_v31, %v1678_v42  ;;  %v1685_v42 = vrot.slane %v17712_v0, 6  ;;  %v4438_v48 = vrot.slane %v18158_v45, 6  ;;  %v18211_v45 = vld [vmem:[%s22657_s9 + $0x2ac] sm:$0xf] }
 0x47d   : > { %27445 = vst [vmem:[#allocation44_spill] sm:$0xff] %v23979_v44  ;;  %2483 = vmatprep.mubr.bf16.mxu0 %v27418_v16  ;;  %v17843_v37 = vcombine.low %v1676_v14, %v1679_v30  ;;  %v1366_v61 = vmax.f32 %v1226_v56, 0.0 }
 0x481   : > { %18205 = vmatmul.mubr.msk.bf16.gmra.mrb[48].mxu1 %vm653_vm4, %v18187_v58  ;;  %v4427_v58 = vrot.slane %v18153_v13, 6  ;;  %v1362_v13 = vmax.f32 %v1216_v9, 0.0 }
 0x482   : > { %4708 = vmatprep.mubr.bf16.mxu1 %v27418_v16 }
 0x483   : > { %v4428_v1 = vsel %vm23185_vm6, %v4426_v8, %v4427_v58  ;;  %v1365_v8 = vmax.f32 %v1222_v36, 0.0  ;;  %v17711_v58 = vld [vmem:[%s22657_s9 + $0x2e0] sm:$0xf]  ;;  %v24001_v60 = vpack.c.bf16 %v1364_v15, %v1362_v13  ;;  %v18159_v13 = vld [vmem:[%s22657_s9 + $0x450] sm:$0x3] }
 0x484   : > { %v18189_v21 = vcombine.low %v4425_v53, %v4428_v1  ;;  %17861 = vmatmul.mubr.msk.bf16.gmra.mrb[120].mxu0 %vm653_vm4, %v17843_v37  ;;  %v1682_v9 = vrot.slane %v17711_v58, 6  ;;  %v4435_v1 = vsel %vm23185_vm6, %v4433_v7, %v4434_v32  ;;  %v4440_v7 = vrot.slane %v4438_v48, 4  ;;  %v17714_v58 = vld [vmem:[%s22657_s9 + $0x2fc] sm:$0xf] }
 0x485   : > { %27446 = vst [vmem:[#allocation45_spill] sm:$0xff] %v24001_v60  ;;  %v24005_v46 = vpack.c.bf16 %v1365_v8, %v1363_v29  ;;  %2493 = vmatprep.mubr.bf16.mxu0 %v27418_v16  ;;  %v1367_v29 = vmax.f32 %v1228_v39, 0.0  ;;  %v4441_v32 = vrot.slane %v18159_v13, 6  ;;  %v1689_v28 = vrot.slane %v17714_v58, 6 }
 0x486   : > { %v1684_v31 = vrot.slane %v1682_v9, 4  ;;  %v1683_v30 = vsel %vm23185_vm6, %v17730_v59, %v1682_v9  ;;  %v17715_v59 = vld [vmem:[%s22657_s9 + $0x300] sm:$0x3] }
 0x487   : > { %27447 = vst [vmem:[#allocation46_spill] sm:$0xff] %v24005_v46 }
 0x489   : > { %18206 = vmatmul.mubr.msk.bf16.gmra.mrb[52].mxu1 %vm653_vm4, %v18188_v4  ;;  %v18174_v4 = vrot.slane %v18154_v55, 10  ;;  %v1229_v55 = vpop.f32.mrb[18].mxu0 }
 0x48a   : > { %4718 = vmatprep.mubr.bf16.mxu1 %v27418_v16  ;;  %v1230_v27 = vadd.f32 %v1229_v55, %v23914_v10  ;;  %v1231_v14 = vpop.f32.mrb[19].mxu0  ;;  %v4442_v55 = vsel %vm23185_vm6, %v4440_v7, %v4441_v32 }
 0x48b   : > { %v4432_v53 = vsel %vm23185_vm6, %v18174_v4, %v4431_v40  ;;  %v1686_v40 = vsel %vm23185_vm6, %v1684_v31, %v1685_v42  ;;  %v1232_v36 = vadd.f32 %v1231_v14, %v23923_v38  ;;  %v1235_v33 = vpop.f32.mrb[20].mxu0  ;;  %v18175_v4 = vrot.slane %v18157_v6, 10  ;;  %v18212_v14 = vld [vmem:[%s22657_s9 + $0x2b0] sm:$0x1] }
 0x48c   : > { %v17844_v37 = vcombine.low %v1683_v30, %v1686_v40  ;;  %v1368_v15 = vmax.f32 %v1230_v27, 0.0  ;;  %v1236_v9 = vadd.f32 %v1235_v33, %v23914_v10  ;;  %v1237_v31 = vpop.f32.mrb[21].mxu0  ;;  %v17731_v42 = vrot.slane %v17713_v63, 10  ;;  %v18210_v27 = vld [vmem:[%s22657_s9 + $0x2a8] sm:$0xe] }
 0x48d   : > { %v1369_v8 = vmax.f32 %v1232_v36, 0.0  ;;  %v4439_v39 = vsel %vm23185_vm6, %v18175_v4, %v4438_v48  ;;  %v4911_v6 = vrot.slane %v18211_v45, 5  ;;  %v1238_v13 = vadd.f32 %v1237_v31, %v23923_v38 }
 0x48e   : > { %v24027_v56 = vpack.c.bf16 %v1368_v15, %v1366_v61  ;;  %17862 = vmatmul.mubr.msk.bf16.gmra.mrb[124].mxu0 %vm653_vm4, %v17844_v37  ;;  %v1239_v61 = vpop.f32.mrb[22].mxu0  ;;  %v1370_v30 = vmax.f32 %v1236_v9, 0.0  ;;  %v1690_v36 = vsel %vm23185_vm6, %v17731_v42, %v1689_v28  ;;  %v18191_v4 = vcombine.low %v4439_v39, %v4442_v55  ;;  %v18214_v9 = vld [vmem:[%s22657_s9 + $0x2c8] sm:$0xf] }
 0x48f   : > { %v24031_v0 = vpack.c.bf16 %v1369_v8, %v1367_v29  ;;  %2503 = vmatprep.mubr.bf16.mxu0 %v27418_v16  ;;  %v1240_v40 = vadd.f32 %v1239_v61, %v23914_v10  ;;  %v1241_v29 = vpop.f32.mrb[23].mxu0  ;;  %v1371_v37 = vmax.f32 %v1238_v13, 0.0  ;;  %v18258_v32 = vrot.slane %v18210_v27, 9  ;;  %v18213_v13 = vld [vmem:[%s22657_s9 + $0x2c4] sm:$0xe] }
 0x490   : > { %27448 = vst [vmem:[#allocation47_spill] sm:$0xff] %v24027_v56  ;;  %v1242_v33 = vadd.f32 %v1241_v29, %v23923_v38  ;;  %v1245_v15 = vpop.f32.mrb[24].mxu0  ;;  %v4913_v8 = vrot.slane %v4911_v6, 4  ;;  %v4914_v58 = vrot.slane %v18212_v14, 5  ;;  %v18215_v61 = vld [vmem:[%s22657_s9 + $0x2cc] sm:$0x1] }
 0x491   : > { %18207 = vmatmul.mubr.msk.bf16.gmra.mrb[56].mxu1 %vm653_vm4, %v18189_v21  ;;  %v18190_v21 = vcombine.low %v4432_v53, %v4435_v1  ;;  %27449 = vst [vmem:[#allocation48_spill] sm:$0xff] %v24031_v0  ;;  %v1691_v53 = vrot.slane %v1689_v28, 4  ;;  %v1692_v1 = vrot.slane %v17715_v59, 6  ;;  %v1372_v7 = vmax.f32 %v1240_v40, 0.0  ;;  %v1247_v31 = vpop.f32.mrb[25].mxu0 }
 0x492   : > { %4728 = vmatprep.mubr.bf16.mxu1 %v27418_v16  ;;  %v1373_v45 = vmax.f32 %v1242_v33, 0.0  ;;  %v1246_v28 = vadd.f32 %v1245_v15, %v23914_v10  ;;  %v4912_v42 = vsel %vm22828_vm3, %v18258_v32, %v4911_v6  ;;  %v1248_v39 = vadd.f32 %v1247_v31, %v23923_v38  ;;  %v1249_v55 = vpop.f32.mrb[26].mxu0  ;;  %v21862_v56 = vld [vmem:[#allocation8 + $0x1b0] ss:$8 sps:$4 sm:$0xff]  }
 0x493   : > { %v1693_v48 = vsel %vm23185_vm6, %v1691_v53, %v1692_v1  ;;  %v24052_v63 = vpack.c.bf16 %v1372_v7, %v1370_v30  ;;  %v4915_v53 = vsel %vm22828_vm3, %v4913_v8, %v4914_v58  ;;  %v4918_v1 = vrot.slane %v18214_v9, 5  ;;  %v1251_v30 = vpop.f32.mrb[27].mxu0  ;;  %v18217_v7 = vld [vmem:[%s22657_s9 + $0x2e4] sm:$0xf] }
 0x494   : > { %v24056_v59 = vpack.c.bf16 %v1373_v45, %v1371_v37  ;;  %v1374_v27 = vmax.f32 %v1246_v28, 0.0  ;;  %v1250_v14 = vadd.f32 %v1249_v55, %v23914_v10  ;;  %v1375_v40 = vmax.f32 %v1248_v39, 0.0  ;;  %v18218_v39 = vld [vmem:[%s22657_s9 + $0x2e8] sm:$0x1] }
 0x495   : > { %27450 = vst [vmem:[#allocation49_spill] sm:$0xff] %v24052_v63  ;;  %v1252_v29 = vadd.f32 %v1251_v30, %v23923_v38  ;;  %v18259_v37 = vrot.slane %v18213_v13, 9  ;;  %v4920_v33 = vrot.slane %v4918_v1, 4 }
 0x496   : > { %27451 = vst [vmem:[#allocation50_spill] sm:$0xff] %v24056_v59  ;;  %v1376_v6 = vmax.f32 %v1250_v14, 0.0 }
 0x497   : > { %v1377_v15 = vmax.f32 %v1252_v29, 0.0  ;;  %v4919_v9 = vsel %vm22828_vm3, %v18259_v37, %v4918_v1  ;;  %v18220_v37 = vld [vmem:[%s22657_s9 + $0x300] sm:$0xf] }
 0x498   : > { %v24072_v32 = vpack.c.bf16 %v1376_v6, %v1374_v27 }
 0x499   : > { %18208 = vmatmul.mubr.msk.bf16.gmra.mrb[60].mxu1 %vm653_vm4, %v18190_v21  ;;  %v17845_v21 = vcombine.low %v1690_v36, %v1693_v48  ;;  %v1255_v36 = vpop.f32.mrb[28].mxu0  ;;  %v18274_v48 = vcombine.low %v4912_v42, %v4915_v53  ;;  %v24075_v58 = vpack.c.bf16 %v1377_v15, %v1375_v40  ;;  %v18216_v53 = vld [vmem:[%s22657_s9 + $0x2e0] sm:$0xe] }
 0x49a   : > { %4738 = vmatprep.mubr.bf16.mxu1 %v27418_v16  ;;  %27452 = vst [vmem:[#allocation51_spill] sm:$0xff] %v24072_v32  ;;  %v1256_v8 = vadd.f32 %v1255_v36, %v23914_v10  ;;  %v1257_v45 = vpop.f32.mrb[29].mxu0  ;;  %v18260_v29 = vrot.slane %v18216_v53, 9 }
 0x49b   : > { %17863 = vmatmul.mubr.msk.bf16.gmra.mrb[128].mxu0 %vm653_vm4, %v17845_v21  ;;  %v4921_v21 = vrot.slane %v18215_v61, 5  ;;  %27453 = vst [vmem:[#allocation52_spill] sm:$0xff] %v24075_v58  ;;  %v1258_v31 = vadd.f32 %v1257_v45, %v23923_v38  ;;  %v1259_v42 = vpop.f32.mrb[30].mxu0  ;;  %v4932_v45 = vrot.slane %v18220_v37, 5  ;;  %v21859_v58 = vld [vmem:[#allocation8 + $0x1a0] ss:$8 sps:$4 sm:$0xff]  }
 0x49c   : > { %v1378_v55 = vmax.f32 %v1256_v8, 0.0  ;;  %v1260_v13 = vadd.f32 %v1259_v42, %v23914_v10  ;;  %v1261_v61 = vpop.f32.mrb[31].mxu0  ;;  %v18221_v42 = vld [vmem:[%s22657_s9 + $0x304] sm:$0x1] }
 0x49d   : > { %v4922_v28 = vsel %vm22828_vm3, %v4920_v33, %v4921_v21  ;;  %v1379_v27 = vmax.f32 %v1258_v31, 0.0  ;;  %v1262_v14 = vadd.f32 %v1261_v61, %v23923_v38  ;;  %v1265_v30 = vpop.f32.mrb[32].mxu0  ;;  %v18219_v31 = vld [vmem:[%s22657_s9 + $0x2fc] sm:$0xe] }
 0x49e   : > { %v18275_v40 = vcombine.low %v4919_v9, %v4922_v28  ;;  %v1380_v1 = vmax.f32 %v1260_v13, 0.0  ;;  %v1266_v21 = vadd.f32 %v1265_v30, %v23914_v10  ;;  %v18261_v30 = vrot.slane %v18219_v31, 9  ;;  %v18222_v31 = vld [vmem:[%s22657_s9 + $0x318] sm:$0xe] }
 0x49f   : > { %v1381_v6 = vmax.f32 %v1262_v14, 0.0 }
 0x4a0   : > { %v24089_v33 = vpack.c.bf16 %v1380_v1, %v1378_v55  ;;  %v1382_v53 = vmax.f32 %v1266_v21, 0.0  ;;  %v4935_v1 = vrot.slane %v18221_v42, 5  ;;  %v18224_v42 = vld [vmem:[%s22657_s9 + $0x320] sm:$0x1] }
 0x4a1   : > { %18209 = vmatmul.mubr.msk.bf16.gmra.mrb[64].mxu1 %vm653_vm4, %v18191_v4  ;;  %v5563_v4 = vsel %vm751_vm0, %v23732_v34, 0  ;;  %v4925_v34 = vrot.slane %v18217_v7, 5  ;;  %v24092_v15 = vpack.c.bf16 %v1381_v6, %v1379_v27 }
 0x4a2   : > { %5166 = vmatprep.mubr.bf16.mxu1 %v27418_v16  ;;  %27454 = vst [vmem:[#allocation53_spill] sm:$0xff] %v24089_v33 }
 0x4a3   : > { %v4927_v36 = vrot.slane %v4925_v34, 4  ;;  %27455 = vst [vmem:[#allocation54_spill] sm:$0xff] %v24092_v15  ;;  %v4926_v7 = vsel %vm22828_vm3, %v18260_v29, %v4925_v34 }
 0x4a9   : > { %18292 = vmatmul.mubr.msk.bf16.vlgmr.msra.gmra.mrb[4].mxu1 %vm653_vm4, %v18274_v48  ;;  %v4928_v48 = vrot.slane %v18218_v39, 5 }
 0x4aa   : > { %5569 = vmatpush1.bf16.msra.mxu1 %v5563_v4  ;;  %5176 = vmatprep.mubr.bf16.mxu1 %v27418_v16  ;;  %v1267_v4 = vpop.f32.mrb[33].mxu0 }
 0x4ab   : > { %v4929_v8 = vsel %vm22828_vm3, %v4927_v36, %v4928_v48  ;;  %v1268_v9 = vadd.f32 %v1267_v4, %v23923_v38  ;;  %v1269_v28 = vpop.f32.mrb[34].mxu0  ;;  %v18223_v36 = vld [vmem:[%s22657_s9 + $0x31c] sm:$0xf]  ;;  %v4933_v4 = vsel %vm22828_vm3, %v18261_v30, %v4932_v45 }
 0x4ac   : > { %v1270_v39 = vadd.f32 %v1269_v28, %v23914_v10  ;;  %v1271_v55 = vpop.f32.mrb[35].mxu0  ;;  %v18276_v14 = vcombine.low %v4926_v7, %v4929_v8  ;;  %v4939_v8 = vrot.slane %v18223_v36, 5 }
 0x4ad   : > { %v1383_v13 = vmax.f32 %v1268_v9, 0.0  ;;  %v1272_v61 = vadd.f32 %v1271_v55, %v23923_v38  ;;  %v1275_v27 = vpop.f32.mrb[36].mxu0 }
 0x4ae   : > { %v1384_v34 = vmax.f32 %v1270_v39, 0.0  ;;  %v1276_v6 = vadd.f32 %v1275_v27, %v23914_v10  ;;  %v1277_v21 = vpop.f32.mrb[37].mxu0  ;;  %v4941_v30 = vrot.slane %v4939_v8, 4 }
 0x4af   : > { %v1385_v29 = vmax.f32 %v1272_v61, 0.0  ;;  %v1278_v9 = vadd.f32 %v1277_v21, %v23923_v38  ;;  %v1279_v28 = vpop.f32.mrb[38].mxu0 }
 0x4b0   : > { %v24106_v48 = vpack.c.bf16 %v1384_v34, %v1382_v53  ;;  %v1386_v53 = vmax.f32 %v1276_v6, 0.0  ;;  %v1280_v39 = vadd.f32 %v1279_v28, %v23914_v10  ;;  %v1281_v55 = vpop.f32.mrb[39].mxu0  ;;  %v18262_v34 = vrot.slane %v18222_v31, 9 }
 0x4b1   : > { %18293 = vmatmul.mubr.msk.bf16.gmra.mrb[8].mxu1 %vm653_vm4, %v18275_v40  ;;  %v4934_v40 = vrot.slane %v4932_v45, 4  ;;  %v24109_v37 = vpack.c.bf16 %v1385_v29, %v1383_v13  ;;  %v1387_v13 = vmax.f32 %v1278_v9, 0.0  ;;  %v1282_v61 = vadd.f32 %v1281_v55, %v23923_v38  ;;  %v1285_v27 = vpop.f32.mrb[40].mxu0  ;;  %v18226_v29 = vld [vmem:[%s22657_s9 + $0x338] sm:$0xf] }
 0x4b2   : > { %5186 = vmatprep.mubr.bf16.mxu1 %v27418_v16  ;;  %27456 = vst [vmem:[#allocation55_spill] sm:$0xff] %v24106_v48  ;;  %v1388_v45 = vmax.f32 %v1280_v39, 0.0  ;;  %v1286_v6 = vadd.f32 %v1285_v27, %v23914_v10  ;;  %v1287_v9 = vpop.f32.mrb[41].mxu0  ;;  %v4946_v28 = vrot.slane %v18226_v29, 5  ;;  %v18227_v39 = vld [vmem:[%s22657_s9 + $0x33c] sm:$0x1] }
 0x4b3   : > { %27457 = vst [vmem:[#allocation56_spill] sm:$0xff] %v24109_v37  ;;  %v4936_v7 = vsel %vm22828_vm3, %v4934_v40, %v4935_v1  ;;  %v4942_v40 = vrot.slane %v18224_v42, 5  ;;  %v1389_v1 = vmax.f32 %v1282_v61, 0.0  ;;  %v1288_v31 = vadd.f32 %v1287_v9, %v23923_v38  ;;  %v1289_v42 = vpop.f32.mrb[42].mxu0  ;;  %v18229_v9 = vld [vmem:[%s22657_s9 + $0x354] sm:$0xf] }
 0x4b4   : > { %v24123_v36 = vpack.c.bf16 %v1388_v45, %v1386_v53  ;;  %v18225_v53 = vld [vmem:[%s22657_s9 + $0x334] sm:$0xe]  ;;  %v1390_v55 = vmax.f32 %v1286_v6, 0.0  ;;  %v1291_v61 = vpop.f32.mrb[43].mxu0 }
 0x4b5   : > { %v24126_v21 = vpack.c.bf16 %v1389_v1, %v1387_v13  ;;  %v1290_v13 = vadd.f32 %v1289_v42, %v23914_v10  ;;  %v1391_v27 = vmax.f32 %v1288_v31, 0.0  ;;  %v1295_v45 = vpop.f32.mrb[44].mxu0  ;;  %v4953_v42 = vrot.slane %v18229_v9, 5  ;;  %v21856_v37 = vld [vmem:[#allocation8 + $0x190] ss:$8 sps:$4 sm:$0xff]  }
 0x4b6   : > { %27458 = vst [vmem:[#allocation57_spill] sm:$0xff] %v24123_v36  ;;  %v1296_v6 = vadd.f32 %v1295_v45, %v23914_v10  ;;  %v1297_v31 = vpop.f32.mrb[45].mxu0 }
 0x4b7   : > { %27459 = vst [vmem:[#allocation58_spill] sm:$0xff] %v24126_v21 }
 0x4b9   : > { %18294 = vmatmul.mubr.msk.bf16.gmra.mrb[12].mxu1 %vm653_vm4, %v18276_v14  ;;  %v18277_v14 = vcombine.low %v4933_v4, %v4936_v7  ;;  %v4940_v4 = vsel %vm22828_vm3, %v18262_v34, %v4939_v8  ;;  %v4943_v7 = vsel %vm22828_vm3, %v4941_v30, %v4942_v40  ;;  %v1392_v8 = vmax.f32 %v1290_v13, 0.0  ;;  %v18230_v13 = vld [vmem:[%s22657_s9 + $0x358] sm:$0x1] }
 0x4ba   : > { %5196 = vmatprep.mubr.bf16.mxu1 %v27418_v16  ;;  %v18278_v1 = vcombine.low %v4940_v4, %v4943_v7  ;;  %v18263_v34 = vrot.slane %v18225_v53, 9  ;;  %v4948_v30 = vrot.slane %v4946_v28, 4  ;;  %v4949_v40 = vrot.slane %v18227_v39, 5  ;;  %v1299_v39 = vpop.f32.mrb[46].mxu0 }
 0x4bb   : > { %v24140_v2 = vpack.c.bf16 %v1392_v8, %v1390_v55  ;;  %v1298_v53 = vadd.f32 %v1297_v31, %v23923_v38  ;;  %v18228_v55 = vld [vmem:[%s22657_s9 + $0x350] sm:$0xe] }
 0x4bc   : > { %v4947_v4 = vsel %vm22828_vm3, %v18263_v34, %v4946_v28  ;;  %v4950_v7 = vsel %vm22828_vm3, %v4948_v30, %v4949_v40  ;;  %v18264_v34 = vrot.slane %v18228_v55, 9  ;;  %v4955_v30 = vrot.slane %v4953_v42, 4  ;;  %v18232_v31 = vld [vmem:[%s22657_s9 + $0x370] sm:$0xf] }
 0x4bd   : > { %27460 = vst [vmem:[#allocation59_spill] sm:$0xff] %v24140_v2  ;;  %v1395_v45 = vmax.f32 %v1298_v53, 0.0  ;;  %v4956_v40 = vrot.slane %v18230_v13, 5 }
 0x4c1   : > { %18295 = vmatmul.mubr.msk.bf16.gmra.mrb[16].mxu1 %vm653_vm4, %v18277_v14  ;;  %v1292_v14 = vadd.f32 %v1291_v61, %v23923_v38  ;;  %v1394_v61 = vmax.f32 %v1296_v6, 0.0 }
 0x4c2   : > { %5206 = vmatprep.mubr.bf16.mxu1 %v27418_v16 }
 0x4c3   : > { %v1393_v29 = vmax.f32 %v1292_v14, 0.0  ;;  %v1301_v14 = vpop.f32.mrb[47].mxu0 }
 0x4c4   : > { %v1305_v8 = vpop.f32.mrb[48].mxu0 }
 0x4c5   : > { %v24143_v51 = vpack.c.bf16 %v1393_v29, %v1391_v27  ;;  %v1300_v27 = vadd.f32 %v1299_v39, %v23914_v10  ;;  %v18279_v29 = vcombine.low %v4947_v4, %v4950_v7  ;;  %v1306_v6 = vadd.f32 %v1305_v8, %v23914_v10  ;;  %v1307_v53 = vpop.f32.mrb[49].mxu0 }
 0x4c6   : > { %v4954_v4 = vsel %vm22828_vm3, %v18264_v34, %v4953_v42  ;;  %v4957_v7 = vsel %vm22828_vm3, %v4955_v30, %v4956_v40  ;;  %v4960_v39 = vrot.slane %v18232_v31, 5  ;;  %v1308_v55 = vadd.f32 %v1307_v53, %v23923_v38  ;;  %v1309_v13 = vpop.f32.mrb[50].mxu0  ;;  %v18235_v53 = vld [vmem:[%s22657_s9 + $0x38c] sm:$0xf] }
 0x4c7   : > { %27461 = vst [vmem:[#allocation60_spill] sm:$0xff] %v24143_v51  ;;  %v1396_v28 = vmax.f32 %v1300_v27, 0.0  ;;  %v18233_v27 = vld [vmem:[%s22657_s9 + $0x374] sm:$0x1] }
 0x4c8   : > { %v1399_v8 = vmax.f32 %v1308_v55, 0.0  ;;  %v4962_v30 = vrot.slane %v4960_v39, 4  ;;  %v4963_v40 = vrot.slane %v18233_v27, 5  ;;  %v21853_v51 = vld [vmem:[#allocation8 + $0x180] ss:$8 sps:$4 sm:$0xff]  }
 0x4c9   : > { %18296 = vmatmul.mubr.msk.bf16.gmra.mrb[20].mxu1 %vm653_vm4, %v18278_v1  ;;  %v1302_v1 = vadd.f32 %v1301_v14, %v23923_v38  ;;  %v24157_v26 = vpack.c.bf16 %v1396_v28, %v1394_v61  ;;  %v18231_v61 = vld [vmem:[%s22657_s9 + $0x36c] sm:$0xe]  ;;  %v1398_v14 = vmax.f32 %v1306_v6, 0.0 }
 0x4ca   : > { %5216 = vmatprep.mubr.bf16.mxu1 %v27418_v16  ;;  %v18265_v34 = vrot.slane %v18231_v61, 9 }
 0x4cb   : > { %v1397_v9 = vmax.f32 %v1302_v1, 0.0  ;;  %27462 = vst [vmem:[#allocation61_spill] sm:$0xff] %v24157_v26  ;;  %v1311_v1 = vpop.f32.mrb[51].mxu0 }
 0x4cc   : > { %v1315_v28 = vpop.f32.mrb[52].mxu0 }
 0x4cd   : > { %v24160_v3 = vpack.c.bf16 %v1397_v9, %v1395_v45  ;;  %v1310_v45 = vadd.f32 %v1309_v13, %v23914_v10  ;;  %v18280_v9 = vcombine.low %v4954_v4, %v4957_v7  ;;  %v1316_v6 = vadd.f32 %v1315_v28, %v23914_v10  ;;  %v1317_v55 = vpop.f32.mrb[53].mxu0 }
 0x4ce   : > { %v4961_v4 = vsel %vm22828_vm3, %v18265_v34, %v4960_v39  ;;  %v4964_v7 = vsel %vm22828_vm3, %v4962_v30, %v4963_v40  ;;  %v4967_v13 = vrot.slane %v18235_v53, 5  ;;  %v1318_v61 = vadd.f32 %v1317_v55, %v23923_v38  ;;  %v1319_v27 = vpop.f32.mrb[54].mxu0  ;;  %v18238_v55 = vld [vmem:[%s22657_s9 + $0x3a8] sm:$0xf] }
 0x4cf   : > { %27463 = vst [vmem:[#allocation62_spill] sm:$0xff] %v24160_v3  ;;  %v1400_v42 = vmax.f32 %v1310_v45, 0.0  ;;  %v18236_v45 = vld [vmem:[%s22657_s9 + $0x390] sm:$0x1] }
 0x4d0   : > { %v1403_v28 = vmax.f32 %v1318_v61, 0.0  ;;  %v4969_v30 = vrot.slane %v4967_v13, 4  ;;  %v4970_v40 = vrot.slane %v18236_v45, 5 }
 0x4d1   : > { %18297 = vmatmul.mubr.msk.bf16.gmra.mrb[24].mxu1 %vm653_vm4, %v18279_v29  ;;  %v1312_v29 = vadd.f32 %v1311_v1, %v23923_v38  ;;  %v24174_v25 = vpack.c.bf16 %v1400_v42, %v1398_v14  ;;  %v18234_v14 = vld [vmem:[%s22657_s9 + $0x388] sm:$0xe]  ;;  %v1402_v1 = vmax.f32 %v1316_v6, 0.0 }
 0x4d2   : > { %5226 = vmatprep.mubr.bf16.mxu1 %v27418_v16  ;;  %v18266_v34 = vrot.slane %v18234_v14, 9 }
 0x4d3   : > { %v1401_v31 = vmax.f32 %v1312_v29, 0.0  ;;  %27464 = vst [vmem:[#allocation63_spill] sm:$0xff] %v24174_v25  ;;  %v1321_v29 = vpop.f32.mrb[55].mxu0 }
 0x4d4   : > { %v1325_v42 = vpop.f32.mrb[56].mxu0 }
 0x4d5   : > { %v24177_v5 = vpack.c.bf16 %v1401_v31, %v1399_v8  ;;  %v1320_v8 = vadd.f32 %v1319_v27, %v23914_v10  ;;  %v18281_v31 = vcombine.low %v4961_v4, %v4964_v7  ;;  %v1326_v6 = vadd.f32 %v1325_v42, %v23914_v10  ;;  %v1327_v61 = vpop.f32.mrb[57].mxu0 }
 0x4d6   : > { %v4968_v4 = vsel %vm22828_vm3, %v18266_v34, %v4967_v13  ;;  %v4971_v7 = vsel %vm22828_vm3, %v4969_v30, %v4970_v40  ;;  %v4974_v27 = vrot.slane %v18238_v55, 5  ;;  %v1328_v14 = vadd.f32 %v1327_v61, %v23923_v38  ;;  %v1329_v45 = vpop.f32.mrb[58].mxu0  ;;  %v18241_v61 = vld [vmem:[%s22657_s9 + $0x3c4] sm:$0xf] }
 0x4d7   : > { %27465 = vst [vmem:[#allocation64_spill] sm:$0xff] %v24177_v5  ;;  %v1404_v39 = vmax.f32 %v1320_v8, 0.0  ;;  %v18239_v8 = vld [vmem:[%s22657_s9 + $0x3ac] sm:$0x1] }
 0x4d8   : > { %v1407_v42 = vmax.f32 %v1328_v14, 0.0  ;;  %v4976_v30 = vrot.slane %v4974_v27, 4  ;;  %v4977_v40 = vrot.slane %v18239_v8, 5  ;;  %v21850_v5 = vld [vmem:[#allocation8 + $0x170] ss:$8 sps:$4 sm:$0xff]  }
 0x4d9   : > { %18298 = vmatmul.mubr.msk.bf16.gmra.mrb[28].mxu1 %vm653_vm4, %v18280_v9  ;;  %v1322_v9 = vadd.f32 %v1321_v29, %v23923_v38  ;;  %v24191_v41 = vpack.c.bf16 %v1404_v39, %v1402_v1  ;;  %v18237_v1 = vld [vmem:[%s22657_s9 + $0x3a4] sm:$0xe]  ;;  %v1406_v29 = vmax.f32 %v1326_v6, 0.0 }
 0x4da   : > { %5236 = vmatprep.mubr.bf16.mxu1 %v27418_v16  ;;  %v18267_v34 = vrot.slane %v18237_v1, 9 }
 0x4db   : > { %v1405_v53 = vmax.f32 %v1322_v9, 0.0  ;;  %27466 = vst [vmem:[#allocation65_spill] sm:$0xff] %v24191_v41  ;;  %v1331_v9 = vpop.f32.mrb[59].mxu0 }
 0x4dc   : > { %v1335_v39 = vpop.f32.mrb[60].mxu0 }
 0x4dd   : > { %v24194_v24 = vpack.c.bf16 %v1405_v53, %v1403_v28  ;;  %v1330_v28 = vadd.f32 %v1329_v45, %v23914_v10  ;;  %v18282_v53 = vcombine.low %v4968_v4, %v4971_v7  ;;  %v1336_v6 = vadd.f32 %v1335_v39, %v23914_v10  ;;  %v1337_v14 = vpop.f32.mrb[61].mxu0 }
 0x4de   : > { %v4975_v4 = vsel %vm22828_vm3, %v18267_v34, %v4974_v27  ;;  %v4978_v7 = vsel %vm22828_vm3, %v4976_v30, %v4977_v40  ;;  %v4981_v45 = vrot.slane %v18241_v61, 5  ;;  %v1338_v1 = vadd.f32 %v1337_v14, %v23923_v38  ;;  %v1339_v8 = vpop.f32.mrb[62].mxu0  ;;  %v18244_v14 = vld [vmem:[%s22657_s9 + $0x3e0] sm:$0xf] }
 0x4df   : > { %27467 = vst [vmem:[#allocation66_spill] sm:$0xff] %v24194_v24  ;;  %v1408_v13 = vmax.f32 %v1330_v28, 0.0  ;;  %v18242_v28 = vld [vmem:[%s22657_s9 + $0x3c8] sm:$0x1] }
 0x4e0   : > { %v1411_v39 = vmax.f32 %v1338_v1, 0.0  ;;  %v4983_v30 = vrot.slane %v4981_v45, 4  ;;  %v4984_v40 = vrot.slane %v18242_v28, 5 }
 0x4e1   : > { %18299 = vmatmul.mubr.msk.bf16.gmra.mrb[32].mxu1 %vm653_vm4, %v18281_v31  ;;  %v1332_v31 = vadd.f32 %v1331_v9, %v23923_v38  ;;  %v24208_v23 = vpack.c.bf16 %v1408_v13, %v1406_v29  ;;  %v18240_v29 = vld [vmem:[%s22657_s9 + $0x3c0] sm:$0xe]  ;;  %v1410_v9 = vmax.f32 %v1336_v6, 0.0 }
 0x4e2   : > { %5246 = vmatprep.mubr.bf16.mxu1 %v27418_v16  ;;  %v18268_v34 = vrot.slane %v18240_v29, 9 }
 0x4e3   : > { %v1409_v55 = vmax.f32 %v1332_v31, 0.0  ;;  %27468 = vst [vmem:[#allocation67_spill] sm:$0xff] %v24208_v23  ;;  %v1341_v31 = vpop.f32.mrb[63].mxu0 }
 0x4e4   : > { %v1345_v13 = vpop.f32.mrb[64].mxu0 }
 0x4e5   : > { %v24211_v18 = vpack.c.bf16 %v1409_v55, %v1407_v42  ;;  %v1340_v42 = vadd.f32 %v1339_v8, %v23914_v10  ;;  %v18283_v55 = vcombine.low %v4975_v4, %v4978_v7  ;;  %v1346_v6 = vadd.f32 %v1345_v13, %v23914_v10  ;;  %v1347_v1 = vpop.f32.mrb[65].mxu0 }
 0x4e6   : > { %v4982_v4 = vsel %vm22828_vm3, %v18268_v34, %v4981_v45  ;;  %v4985_v7 = vsel %vm22828_vm3, %v4983_v30, %v4984_v40  ;;  %v4988_v8 = vrot.slane %v18244_v14, 5  ;;  %v1348_v29 = vadd.f32 %v1347_v1, %v23923_v38  ;;  %v1349_v28 = vpop.f32.mrb[66].mxu0  ;;  %v18247_v14 = vld [vmem:[%s22657_s9 + $0x3fc] sm:$0xf] }
 0x4e7   : > { %27469 = vst [vmem:[#allocation68_spill] sm:$0xff] %v24211_v18  ;;  %v1412_v27 = vmax.f32 %v1340_v42, 0.0  ;;  %v18245_v42 = vld [vmem:[%s22657_s9 + $0x3e4] sm:$0x1] }
 0x4e8   : > { %v1415_v13 = vmax.f32 %v1348_v29, 0.0  ;;  %v4990_v30 = vrot.slane %v4988_v8, 4  ;;  %v4991_v40 = vrot.slane %v18245_v42, 5  ;;  %v18248_v29 = vld [vmem:[%s22657_s9 + $0x400] sm:$0x1] }
 0x4e9   : > { %18300 = vmatmul.mubr.msk.bf16.gmra.mrb[36].mxu1 %vm653_vm4, %v18282_v53  ;;  %v1342_v53 = vadd.f32 %v1341_v31, %v23923_v38  ;;  %v24225_v17 = vpack.c.bf16 %v1412_v27, %v1410_v9  ;;  %v18243_v9 = vld [vmem:[%s22657_s9 + $0x3dc] sm:$0xe]  ;;  %v1414_v31 = vmax.f32 %v1346_v6, 0.0  ;;  %v18284_v27 = vcombine.low %v4982_v4, %v4985_v7  ;;  %v18246_v7 = vld [vmem:[%s22657_s9 + $0x3f8] sm:$0xe] }
 0x4ea   : > { %5256 = vmatprep.mubr.bf16.mxu1 %v27418_v16  ;;  %v18269_v34 = vrot.slane %v18243_v9, 9  ;;  %v4995_v6 = vrot.slane %v18247_v14, 5  ;;  %v18251_v14 = vld [vmem:[%s22657_s9 + $0x41c] sm:$0x1] }
 0x4eb   : > { %v1413_v61 = vmax.f32 %v1342_v53, 0.0  ;;  %27470 = vst [vmem:[#allocation69_spill] sm:$0xff] %v24225_v17  ;;  %v1351_v53 = vpop.f32.mrb[67].mxu0 }
 0x4ec   : > { %v24252_v4 = vpop.f32.mrb[68].mxu0 }
 0x4ed   : > { %v24228_v57 = vpack.c.bf16 %v1413_v61, %v1411_v39  ;;  %v1350_v39 = vadd.f32 %v1349_v28, %v23914_v10  ;;  %v4989_v10 = vsel %vm22828_vm3, %v18269_v34, %v4988_v8  ;;  %v24256_v28 = vpop.f32.mrb[69].mxu0  ;;  %v4998_v8 = vrot.slane %v18248_v29, 5 }
 0x4ee   : > { %v24258_v9 = vpop.f32.mrb[70].mxu0 }
 0x4ef   : > { %27471 = vst [vmem:[#allocation70_spill] sm:$0xff] %v24228_v57  ;;  %v1416_v45 = vmax.f32 %v1350_v39, 0.0  ;;  %v18270_v39 = vrot.slane %v18246_v7, 9 }
 0x4f1   : > { %18301 = vmatmul.mubr.msk.bf16.gmra.mrb[40].mxu1 %vm653_vm4, %v18283_v55  ;;  %v1352_v55 = vadd.f32 %v1351_v53, %v23923_v38  ;;  %v24242_v1 = vpack.c.bf16 %v1416_v45, %v1414_v31  ;;  %v4992_v38 = vsel %vm22828_vm3, %v4990_v30, %v4991_v40  ;;  %v24260_v31 = vpop.f32.mrb[71].mxu0  ;;  %v4997_v53 = vrot.slane %v4995_v6, 4  ;;  %v21825_v30 = vld [vmem:[#allocation8 + $0x100] ss:$8 sps:$4 sm:$0xff]   ;;  %v21827_v40 = vld [vmem:[#allocation8 + $0x104] ss:$8 sps:$4 sm:$0xff]  }
 0x4f2   : > { %5266 = vmatprep.mubr.bf16.mxu1 %v27418_v16  ;;  %v18285_v42 = vcombine.low %v4989_v10, %v4992_v38  ;;  %v24269_v34 = vpop.f32.mrb[72].mxu0  ;;  %6191 = vmatprep.subr.bf16.mxu0 %v21827_v40  ;;  %v21829_v40 = vld [vmem:[#allocation8 + $0x110] ss:$8 sps:$4 sm:$0xff]  }
 0x4f3   : > { %v1417_v61 = vmax.f32 %v1352_v55, 0.0  ;;  %27472 = vst [vmem:[#allocation71_spill] sm:$0xff] %v24242_v1  ;;  %v4996_v55 = vsel %vm22828_vm3, %v18270_v39, %v4995_v6  ;;  %v24273_v10 = vpop.f32.mrb[73].mxu0  ;;  %6192 = vmatpush1.bf16.msra.mxu0 %v21825_v30  ;;  %v5005_v39 = vrot.slane %v18251_v14, 5  ;;  %v21831_v30 = vld [vmem:[#allocation8 + $0x114] ss:$8 sps:$4 sm:$0xff]  }
 0x4f4   : > { %v24275_v38 = vpop.f32.mrb[74].mxu0  ;;  %6193 = vmatprep.subr.bf16.mxu0 %v21831_v30 }
 0x4f5   : > { %v24244_v50 = vpack.c.bf16 %v1417_v61, %v1415_v13  ;;  %v18250_v13 = vld [vmem:[%s22657_s9 + $0x418] sm:$0xf]  ;;  %v18249_v61 = vld [vmem:[%s22657_s9 + $0x414] sm:$0xe]  ;;  %v24277_v6 = vpop.f32.mrb[75].mxu0 }
 0x4f6   : > { %v5002_v45 = vrot.slane %v18250_v13, 5  ;;  %v18271_v29 = vrot.slane %v18249_v61, 9  ;;  %v18252_v61 = vld [vmem:[%s22657_s9 + $0x430] sm:$0xe] }
 0x4f7   : > { %27473 = vst [vmem:[#allocation72_spill] sm:$0xff] %v24244_v50  ;;  %6194 = vmatpush1.bf16.msra.mxu0 %v21829_v40  ;;  %v18255_v40 = vld [vmem:[%s22657_s9 + $0x44c] sm:$0xe] }
 0x4f8   : > { %6195 = vmatprep.subr.bf16.mxu0 %v21835_v47  ;;  %v21837_v47 = vld [vmem:[#allocation8 + $0x130] ss:$8 sps:$4 sm:$0xff]  }
 0x4f9   : > { %18302 = vmatmul.mubr.msk.bf16.gmra.mrb[44].mxu1 %vm653_vm4, %v18284_v27  ;;  %v4999_v27 = vsel %vm22828_vm3, %v4997_v53, %v4998_v8  ;;  %v18253_v53 = vld [vmem:[%s22657_s9 + $0x434] sm:$0xf]  ;;  %v5003_v8 = vsel %vm22828_vm3, %v18271_v29, %v5002_v45  ;;  %v18272_v29 = vrot.slane %v18252_v61, 9 }
 0x4fa   : > { %5276 = vmatprep.mubr.bf16.mxu1 %v27418_v16  ;;  %v18286_v7 = vcombine.low %v4996_v55, %v4999_v27  ;;  %v5009_v55 = vrot.slane %v18253_v53, 5  ;;  %v18256_v53 = vld [vmem:[%s22657_s9 + $0x450] sm:$0xf]  ;;  %v18257_v61 = vld [vmem:[%s22657_s9 + $0x454] sm:$0x1] }
 0x4fb   : > { %v5016_v54 = vrot.slane %v18256_v53, 5  ;;  %v5019_v17 = vrot.slane %v18257_v61, 5 }
 0x4fc   : > { %v5010_v12 = vsel %vm22828_vm3, %v18272_v29, %v5009_v55 }
 0x4fd   : > { %v5018_v29 = vrot.slane %v5016_v54, 4 }
 0x4ff   : > { %v24286_v27 = vpop.f32.mrb[76].mxu0 }
 0x500   : > { %v24290_v14 = vpop.f32.mrb[77].mxu0 }
 0x501   : > { %18303 = vmatmul.mubr.msk.bf16.gmra.mrb[48].mxu1 %vm653_vm4, %v18285_v42  ;;  %v5004_v42 = vrot.slane %v5002_v45, 4  ;;  %v24292_v62 = vpop.f32.mrb[78].mxu0 }
 0x502   : > { %5286 = vmatprep.mubr.bf16.mxu1 %v27418_v16  ;;  %v24294_v45 = vpop.f32.mrb[79].mxu0 }
 0x503   : > { %v5006_v13 = vsel %vm22828_vm3, %v5004_v42, %v5005_v39  ;;  %v5011_v42 = vrot.slane %v5009_v55, 4  ;;  %v5012_v39 = vrot.slane %v18254_v11, 5  ;;  %v18273_v55 = vrot.slane %v18255_v40, 9 }
 0x505   : > { %v5013_v30 = vsel %vm22828_vm3, %v5011_v42, %v5012_v39  ;;  %v5017_v42 = vsel %vm22828_vm3, %v18273_v55, %v5016_v54  ;;  %v5020_v39 = vsel %vm22828_vm3, %v5018_v29, %v5019_v17  ;;  %v19304_v54 = vld.sshfl [vmem:[#allocation5 + $0x50] sm:$0x33 pattern:$0x76325410]  ;;  %v21843_v29 = vld [vmem:[#allocation8 + $0x144] ss:$8 sps:$4 sm:$0xff]  }
 0x506   : > { %v18289_v40 = vcombine.low %v5017_v42, %v5020_v39  ;;  %v12435_v55 = vcombine.high %v19304_v54, %v19304_v54  ;;  %v21813_v42 = vld [vmem:[%s22657_s9 + $0x2ac] sm:$0xff]  }
 0x508   : > { %19305 = vmatprep.subr.msk.bf16.mxu1 %vm751_vm0, %v12435_v55 }
 0x509   : > { %18304 = vmatmul.mubr.msk.bf16.gmra.mrb[52].mxu1 %vm653_vm4, %v18286_v7  ;;  %v18287_v7 = vcombine.low %v5003_v8, %v5006_v13  ;;  %v24303_v8 = vpop.f32.mrb[80].mxu0  ;;  %v21833_v13 = vld [vmem:[#allocation8 + $0x120] ss:$8 sps:$4 sm:$0xff]  }
 0x50a   : > { %5296 = vmatprep.mubr.bf16.mxu1 %v27418_v16  ;;  %v24307_v1 = vpop.f32.mrb[81].mxu0  ;;  %6196 = vmatpush1.bf16.msra.mxu0 %v21833_v13 }
 0x50b   : > { %v24309_v11 = vpop.f32.mrb[82].mxu0 }
 0x50c   : > { %v24311_v50 = vpop.f32.mrb[83].mxu0 }
 0x50f   : > { %v24319_v53 = vpop.f32.mrb[84].mxu0 }
 0x511   : > { %18305 = vmatmul.mubr.msk.bf16.gmra.mrb[56].mxu1 %vm653_vm4, %v18287_v7  ;;  %v18288_v7 = vcombine.low %v5010_v12, %v5013_v30  ;;  %v21839_v12 = vld [vmem:[#allocation8 + $0x134] ss:$8 sps:$4 sm:$0xff]   ;;  %v24321_v30 = vpop.f32.mrb[85].mxu0 }
 0x512   : > { %5306 = vmatprep.mubr.bf16.mxu1 %v27418_v16  ;;  %v24323_v13 = vpop.f32.mrb[86].mxu0  ;;  %6197 = vmatprep.subr.bf16.mxu0 %v21839_v12  ;;  %v21844_v12 = vld [vmem:[#allocation8 + $0x150] ss:$8 sps:$4 sm:$0xff]  }
 0x513   : > { %v24325_v61 = vpop.f32.mrb[87].mxu0  ;;  %6198 = vmatpush1.bf16.msra.mxu0 %v21837_v47  ;;  %v12485_v47 = vsel %vm751_vm0, %v19304_v54, 0  ;;  %v21847_v54 = vld [vmem:[#allocation8 + $0x160] ss:$8 sps:$4 sm:$0xff]  }
 0x514   : > { %6199 = vmatprep.subr.bf16.mxu0 %v21843_v29  ;;  %v21814_v29 = vld [vmem:[%s22657_s9 + $0x2c8] sm:$0xff]  }
 0x517   : > { %v24329_v17 = vpop.f32.mrb[88].mxu0 }
 0x518   : > { %v24331_v57 = vpop.f32.mrb[89].mxu0 }
 0x519   : > { %18306 = vmatmul.mubr.msk.bf16.gmra.mrb[60].mxu1 %vm653_vm4, %v18288_v7  ;;  %v21841_v7 = vld [vmem:[#allocation8 + $0x140] ss:$8 sps:$4 sm:$0xff]   ;;  %v24333_v23 = vpop.f32.mrb[90].mxu0 }
 0x51a   : > { %5316 = vmatprep.mubr.bf16.mxu1 %v27418_v16  ;;  %v24337_v39 = vpop.f32.mrb[91].mxu0  ;;  %6200 = vmatpush1.bf16.msra.mxu0 %v21841_v7 }
 0x51f   : > { %v24342_v18 = vpop.f32.mrb[92].mxu0 }
 0x520   : > { %v24344_v41 = vpop.f32.mrb[93].mxu0 }
 0x521   : > { %18307 = vmatmul.mubr.msk.bf16.gmra.mrb[64].mxu1 %vm653_vm4, %v18289_v40  ;;  %v21846_v40 = vld [vmem:[#allocation8 + $0x154] ss:$8 sps:$4 sm:$0xff]   ;;  %v24346_v55 = vpop.f32.mrb[94].mxu0 }
 0x522   : > { %5600 = vmatprep.mubr.bf16.mxu1 %v27418_v16  ;;  %6201 = vmatprep.subr.bf16.mxu0 %v21846_v40  ;;  %v24349_v7 = vpop.f32.mrb[95].mxu0  ;;  %v21815_v40 = vld [vmem:[%s22657_s9 + $0x2e4] sm:$0xff]  }
 0x523   : > { %6202 = vmatpush1.bf16.msra.mxu0 %v21844_v12 }
 0x527   : > { %v24353_v24 = vpop.f32.mrb[96].mxu0 }
 0x529   : > { %18358 = vmatmul.mubr.msk.bf16.vlgmr.msra.gmra.mrb[4].mxu1 %vm653_vm4, %v21813_v42  ;;  %v21849_v42 = vld [vmem:[#allocation8 + $0x164] ss:$8 sps:$4 sm:$0xff]  }
 0x52a   : > { %5610 = vmatprep.mubr.bf16.mxu1 %v27418_v16  ;;  %12491 = vmatpush1.bf16.msra.mxu1 %v12485_v47  ;;  %v24355_v47 = vpop.f32.mrb[97].mxu0 }
 0x52b   : > { %6203 = vmatprep.subr.bf16.mxu0 %v21849_v42  ;;  %v24357_v25 = vpop.f32.mrb[98].mxu0  ;;  %v21816_v42 = vld [vmem:[%s22657_s9 + $0x300] sm:$0xff]  }
 0x52c   : > { %6204 = vmatpush1.bf16.msra.mxu0 %v21847_v54  ;;  %v24360_v12 = vpop.f32.mrb[99].mxu0 }
 0x52f   : > { %v24364_v26 = vpop.f32.mrb[100].mxu0 }
 0x530   : > { %v24366_v3 = vpop.f32.mrb[101].mxu0 }
 0x531   : > { %18359 = vmatmul.mubr.msk.bf16.gmra.mrb[8].mxu1 %vm653_vm4, %v21814_v29  ;;  %v21852_v29 = vld [vmem:[#allocation8 + $0x174] ss:$8 sps:$4 sm:$0xff]   ;;  %v24368_v2 = vpop.f32.mrb[102].mxu0 }
 0x532   : > { %5620 = vmatprep.mubr.bf16.mxu1 %v27418_v16  ;;  %6205 = vmatprep.subr.bf16.mxu0 %v21852_v29  ;;  %v24371_v54 = vpop.f32.mrb[103].mxu0  ;;  %v21817_v29 = vld [vmem:[%s22657_s9 + $0x31c] sm:$0xff]  }
 0x533   : > { %6206 = vmatpush1.bf16.msra.mxu0 %v21850_v5 }
 0x537   : > { %v24375_v36 = vpop.f32.mrb[104].mxu0 }
 0x538   : > { %v24377_v21 = vpop.f32.mrb[105].mxu0 }
 0x539   : > { %18360 = vmatmul.mubr.msk.bf16.gmra.mrb[12].mxu1 %vm653_vm4, %v21815_v40  ;;  %v21855_v40 = vld [vmem:[#allocation8 + $0x184] ss:$8 sps:$4 sm:$0xff]   ;;  %v24379_v48 = vpop.f32.mrb[106].mxu0 }
 0x53a   : > { %5630 = vmatprep.mubr.bf16.mxu1 %v27418_v16  ;;  %6207 = vmatprep.subr.bf16.mxu0 %v21855_v40  ;;  %v24382_v5 = vpop.f32.mrb[107].mxu0  ;;  %v21818_v40 = vld [vmem:[%s22657_s9 + $0x338] sm:$0xff]  }
 0x53b   : > { %6208 = vmatpush1.bf16.msra.mxu0 %v21853_v51  ;;  %27474 = vst [vmem:[#allocation73_spill] sm:$0xff] %v24382_v5 }
 0x53f   : > { %v24386_v33 = vpop.f32.mrb[108].mxu0 }
 0x540   : > { %27475 = vst [vmem:[#allocation74_spill] sm:$0xff] %v24386_v33  ;;  %v24388_v15 = vpop.f32.mrb[109].mxu0 }
 0x541   : > { %18361 = vmatmul.mubr.msk.bf16.gmra.mrb[16].mxu1 %vm653_vm4, %v21816_v42  ;;  %v21858_v42 = vld [vmem:[#allocation8 + $0x194] ss:$8 sps:$4 sm:$0xff]   ;;  %27476 = vst [vmem:[#allocation75_spill] sm:$0xff] %v24388_v15  ;;  %v24390_v32 = vpop.f32.mrb[110].mxu0 }
 0x542   : > { %5640 = vmatprep.mubr.bf16.mxu1 %v27418_v16  ;;  %6209 = vmatprep.subr.bf16.mxu0 %v21858_v42  ;;  %27477 = vst [vmem:[#allocation76_spill] sm:$0xff] %v24390_v32  ;;  %v24393_v51 = vpop.f32.mrb[111].mxu0  ;;  %v21819_v42 = vld [vmem:[%s22657_s9 + $0x354] sm:$0xff]  }
 0x543   : > { %6210 = vmatpush1.bf16.msra.mxu0 %v21856_v37  ;;  %27478 = vst [vmem:[#allocation77_spill] sm:$0xff] %v24393_v51  ;;  %v12176_v51 = vld [vmem:[%s22657_s9 + $0x44] sm:$0xf] }
 0x547   : > { %v24397_v63 = vpop.f32.mrb[112].mxu0 }
 0x548   : > { %27479 = vst [vmem:[#allocation78_spill] sm:$0xff] %v24397_v63  ;;  %v24399_v20 = vpop.f32.mrb[113].mxu0 }
 0x549   : > { %18362 = vmatmul.mubr.msk.bf16.gmra.mrb[20].mxu1 %vm653_vm4, %v21817_v29  ;;  %v21861_v29 = vld [vmem:[#allocation8 + $0x1a4] ss:$8 sps:$4 sm:$0xff]   ;;  %27480 = vst [vmem:[#allocation79_spill] sm:$0xff] %v24399_v20  ;;  %v24401_v59 = vpop.f32.mrb[114].mxu0 }
 0x54a   : > { %5650 = vmatprep.mubr.bf16.mxu1 %v27418_v16  ;;  %6211 = vmatprep.subr.bf16.mxu0 %v21861_v29  ;;  %27481 = vst [vmem:[#allocation80_spill] sm:$0xff] %v24401_v59  ;;  %v24404_v37 = vpop.f32.mrb[115].mxu0  ;;  %v21820_v29 = vld [vmem:[%s22657_s9 + $0x370] sm:$0xff]   ;;  %v12174_v59 = vld [vmem:[%s22657_s9 + $0x2c] sm:$0x1] }
 0x54b   : > { %6212 = vmatpush1.bf16.msra.mxu0 %v21859_v58  ;;  %27482 = vst [vmem:[#allocation81_spill] sm:$0xff] %v24404_v37  ;;  %v12172_v37 = vld [vmem:[%s22657_s9 + $0x24] sm:$0xe]  ;;  %v12277_v63 = vrot.slane %v12174_v59, 5 }
 0x54c   : > { %v19273_v20 = vrot.slane %v12172_v37, 9  ;;  %v12175_v37 = vld [vmem:[%s22657_s9 + $0x40] sm:$0xe] }
 0x54f   : > { %v24408_v0 = vpop.f32.mrb[116].mxu0 }
 0x550   : > { %27483 = vst [vmem:[#allocation82_spill] sm:$0xff] %v24408_v0  ;;  %v24410_v60 = vpop.f32.mrb[117].mxu0 }
 0x551   : > { %18363 = vmatmul.mubr.msk.bf16.gmra.mrb[24].mxu1 %vm653_vm4, %v21818_v40  ;;  %v21864_v40 = vld [vmem:[#allocation8 + $0x1b4] ss:$8 sps:$4 sm:$0xff]   ;;  %27484 = vst [vmem:[#allocation83_spill] sm:$0xff] %v24410_v60  ;;  %v24412_v46 = vpop.f32.mrb[118].mxu0 }
 0x552   : > { %5660 = vmatprep.mubr.bf16.mxu1 %v27418_v16  ;;  %6213 = vmatprep.subr.bf16.mxu0 %v21864_v40  ;;  %27485 = vst [vmem:[#allocation84_spill] sm:$0xff] %v24412_v46  ;;  %v24415_v58 = vpop.f32.mrb[119].mxu0  ;;  %v21821_v40 = vld [vmem:[%s22657_s9 + $0x38c] sm:$0xff]  }
 0x553   : > { %6214 = vmatpush1.bf16.msra.mxu0 %v21862_v56  ;;  %27486 = vst [vmem:[#allocation85_spill] sm:$0xff] %v24415_v58  ;;  %v21868_v58 = vld [vmem:[#allocation8 + $0x1d0] ss:$8 sps:$4 sm:$0xff]  }
 0x557   : > { %v24419_v44 = vpop.f32.mrb[120].mxu0 }
 0x558   : > { %27487 = vst [vmem:[#allocation86_spill] sm:$0xff] %v24419_v44  ;;  %v24421_v22 = vpop.f32.mrb[121].mxu0 }
 0x559   : > { %18364 = vmatmul.mubr.msk.bf16.gmra.mrb[28].mxu1 %vm653_vm4, %v21819_v42  ;;  %v21867_v42 = vld [vmem:[#allocation8 + $0x1c4] ss:$8 sps:$4 sm:$0xff]   ;;  %27488 = vst [vmem:[#allocation87_spill] sm:$0xff] %v24421_v22  ;;  %v24423_v49 = vpop.f32.mrb[122].mxu0 }
 0x55a   : > { %5670 = vmatprep.mubr.bf16.mxu1 %v27418_v16  ;;  %6215 = vmatprep.subr.bf16.mxu0 %v21867_v42  ;;  %27489 = vst [vmem:[#allocation88_spill] sm:$0xff] %v24423_v49  ;;  %v24426_v56 = vpop.f32.mrb[123].mxu0 }
 0x55b   : > { %6216 = vmatpush1.bf16.msra.mxu0 %v21865_v19  ;;  %27490 = vst [vmem:[#allocation89_spill] sm:$0xff] %v24426_v56  ;;  %v21822_v19 = vld [vmem:[%s22657_s9 + $0x3a8] sm:$0xff]  }
 0x55c   : > { %v21873_v56 = vld [vmem:[#allocation8 + $0x1e4] ss:$8 sps:$4 sm:$0xff]  }
 0x561   : > { %18365 = vmatmul.mubr.msk.bf16.gmra.mrb[32].mxu1 %vm653_vm4, %v21820_v29  ;;  %v21870_v29 = vld [vmem:[#allocation8 + $0x1d4] ss:$8 sps:$4 sm:$0xff]   ;;  %v24430_v46 = vpop.f32.mrb[124].mxu0 }
 0x562   : > { %5680 = vmatprep.mubr.bf16.mxu1 %v27418_v16  ;;  %27491 = vst [vmem:[#allocation90_spill] sm:$0xff] %v24430_v46  ;;  %v24432_v44 = vpop.f32.mrb[125].mxu0  ;;  %6217 = vmatprep.subr.bf16.mxu0 %v21870_v29 }
 0x563   : > { %27492 = vst [vmem:[#allocation91_spill] sm:$0xff] %v24432_v44  ;;  %v24434_v22 = vpop.f32.mrb[126].mxu0  ;;  %6218 = vmatpush1.bf16.msra.mxu0 %v21868_v58  ;;  %v21823_v58 = vld [vmem:[%s22657_s9 + $0x3c4] sm:$0xff]  }
 0x564   : > { %27493 = vst [vmem:[#allocation92_spill] sm:$0xff] %v24434_v22  ;;  %v24437_v42 = vpop.f32.mrb[127].mxu0  ;;  %6219 = vmatprep.subr.bf16.mxu0 %v21873_v56  ;;  %v21874_v56 = vld [vmem:[#allocation8 + $0x1f0] ss:$8 sps:$4 sm:$0xff]  }
 0x565   : > { %27494 = vst [vmem:[#allocation93_spill] sm:$0xff] %v24437_v42 }
 0x569   : > { %18366 = vmatmul.mubr.msk.bf16.gmra.mrb[36].mxu1 %vm653_vm4, %v21821_v40  ;;  %v21871_v40 = vld [vmem:[#allocation8 + $0x1e0] ss:$8 sps:$4 sm:$0xff]  }
 0x56a   : > { %5690 = vmatprep.mubr.bf16.mxu1 %v27418_v16  ;;  %6220 = vmatpush1.bf16.msra.mxu0 %v21871_v40  ;;  %v21879_v40 = vld [vmem:[#allocation8 + $0x4] ss:$8 sps:$4 sm:$0xff]  }
 0x56e   : > { %v24441_v49 = vpop.f32.mrb[128].mxu0 }
 0x56f   : > { %27495 = vst [vmem:[#allocation94_spill] sm:$0xff] %v24441_v49  ;;  %v24443_v46 = vpop.f32.mrb[129].mxu0  ;;  %v21840_v49 = vld [vmem:[%s22657_s9 + $0x450] sm:$0xff]  }
 0x570   : > { %27496 = vst [vmem:[#allocation95_spill] sm:$0xff] %v24443_v46  ;;  %v24445_v29 = vpop.f32.mrb[130].mxu0  ;;  %v21876_v46 = vld [vmem:[#allocation8 + $0x1f4] ss:$8 sps:$4 sm:$0xff]  }
 0x571   : > { %18367 = vmatmul.mubr.msk.bf16.gmra.mrb[40].mxu1 %vm653_vm4, %v21822_v19  ;;  %27497 = vst [vmem:[#allocation96_spill] sm:$0xff] %v24445_v29  ;;  %v24448_v22 = vpop.f32.mrb[131].mxu0  ;;  %v21824_v19 = vld [vmem:[%s22657_s9 + $0x3e0] sm:$0xff]   ;;  %6221 = vmatprep.subr.bf16.mxu0 %v21876_v46 }
 0x572   : > { %5700 = vmatprep.mubr.bf16.mxu1 %v27418_v16  ;;  %27498 = vst [vmem:[#allocation97_spill] sm:$0xff] %v24448_v22  ;;  %v21828_v29 = vld [vmem:[%s22657_s9 + $0x3fc] sm:$0xff]   ;;  %6222 = vmatpush1.bf16.msra.mxu0 %v21874_v56  ;;  %v12170_v22 = vld [vmem:[%s22657_s9 + $0xc] sm:$0xf]  ;;  %v12171_v56 = vld [vmem:[%s22657_s9 + $0x10] sm:$0x1] }
 0x573   : > { %6544 = vmatprep.subr.bf16.mxu0 %v21879_v40  ;;  %v12267_v46 = vrot.slane %v12170_v22, 5  ;;  %v12270_v60 = vrot.slane %v12171_v56, 5  ;;  %v12173_v40 = vld [vmem:[%s22657_s9 + $0x28] sm:$0xf] }
 0x574   : > { %v12274_v0 = vrot.slane %v12173_v40, 5  ;;  %v19338_v22 = vld.sshfl [vmem:[#allocation5 + $0x4c] sm:$0x33 pattern:$0x76325410] }
 0x575   : > { %v12269_v44 = vrot.slane %v12267_v46, 4  ;;  %v12177_v40 = vld [vmem:[%s22657_s9 + $0x48] sm:$0x1] }
 0x579   : > { %18368 = vmatmul.mubr.msk.bf16.gmra.mrb[44].mxu1 %vm653_vm4, %v21823_v58  ;;  %v21832_v58 = vld [vmem:[%s22657_s9 + $0x418] sm:$0xff]  }
 0x57a   : > { %5710 = vmatprep.mubr.bf16.mxu1 %v27418_v16 }
 0x581   : > { %18369 = vmatmul.mubr.msk.bf16.gmra.mrb[48].mxu1 %vm653_vm4, %v21824_v19  ;;  %v21836_v19 = vld [vmem:[%s22657_s9 + $0x434] sm:$0xff]  }
 0x582   : > { %5720 = vmatprep.mubr.bf16.mxu1 %v27418_v16 }
 0x589   : > { %18370 = vmatmul.mubr.msk.bf16.gmra.mrb[52].mxu1 %vm653_vm4, %v21828_v29  ;;  %v12169_v29 = vld [vmem:[%s22657_s9 + $0x8] sm:$0xe] }
 0x58a   : > { %5730 = vmatprep.mubr.bf16.mxu1 %v27418_v16  ;;  %v19272_v42 = vrot.slane %v12169_v29, 9  ;;  %v12771_v29 = vcombine.high %v19338_v22, %v19338_v22 }
 0x58c   : > { %19339 = vmatprep.subr.msk.bf16.mxu1 %vm751_vm0, %v12771_v29  ;;  %v12179_v29 = vld [vmem:[%s22657_s9 + $0x60] sm:$0xf] }
 0x591   : > { %18371 = vmatmul.mubr.msk.bf16.gmra.mrb[56].mxu1 %vm653_vm4, %v21832_v58  ;;  %v12268_v58 = vsel %vm22828_vm3, %v19272_v42, %v12267_v46  ;;  %v12821_v42 = vsel %vm751_vm0, %v19338_v22, 0  ;;  %v12281_v46 = vrot.slane %v12176_v51, 5  ;;  %v12284_v22 = vrot.slane %v12177_v40, 5  ;;  %v12178_v51 = vld [vmem:[%s22657_s9 + $0x5c] sm:$0xe] }
 0x592   : > { %5740 = vmatprep.mubr.bf16.mxu1 %v27418_v16 }
 0x599   : > { %18372 = vmatmul.mubr.msk.bf16.gmra.mrb[60].mxu1 %vm653_vm4, %v21836_v19  ;;  %v12271_v19 = vsel %vm22828_vm3, %v12269_v44, %v12270_v60  ;;  %v12275_v44 = vsel %vm22828_vm3, %v19273_v20, %v12274_v0 }
 0x59a   : > { %5750 = vmatprep.mubr.bf16.mxu1 %v27418_v16  ;;  %v19288_v56 = vcombine.low %v12268_v58, %v12271_v19  ;;  %v19274_v58 = vrot.slane %v12175_v37, 9  ;;  %v12283_v19 = vrot.slane %v12281_v46, 4  ;;  %v12182_v37 = vld [vmem:[%s22657_s9 + $0x7c] sm:$0xf] }
 0x59c   : > { %v12282_v20 = vsel %vm22828_vm3, %v19274_v58, %v12281_v46  ;;  %v12181_v58 = vld [vmem:[%s22657_s9 + $0x78] sm:$0xe] }
 0x5a1   : > { %18373 = vmatmul.mubr.msk.bf16.gmra.mrb[64].mxu1 %vm653_vm4, %v21840_v49  ;;  %v12276_v49 = vrot.slane %v12274_v0, 4  ;;  %v12285_v0 = vsel %vm22828_vm3, %v12283_v19, %v12284_v22  ;;  %v12183_v19 = vld [vmem:[%s22657_s9 + $0x80] sm:$0x1] }
 0x5a2   : > { %12522 = vmatprep.mubr.bf16.mxu1 %v27418_v16 }
 0x5a3   : > { %v12278_v60 = vsel %vm22828_vm3, %v12276_v49, %v12277_v63  ;;  %v12288_v63 = vrot.slane %v12179_v29, 5  ;;  %v19290_v49 = vcombine.low %v12282_v20, %v12285_v0  ;;  %v19276_v29 = vrot.slane %v12181_v58, 9  ;;  %v12188_v58 = vld [vmem:[%s22657_s9 + $0xb4] sm:$0xf] }
 0x5a4   : > { %v19289_v59 = vcombine.low %v12275_v44, %v12278_v60  ;;  %v12298_v0 = vrot.slane %v12183_v19, 5 }
 0x5a5   : > { %v12290_v44 = vrot.slane %v12288_v63, 4 }
 0x5a9   : > { %19306 = vmatmul.mubr.msk.bf16.vlgmr.msra.gmra.mrb[68].mxu1 %vm653_vm4, %v19288_v56  ;;  %v12180_v56 = vld [vmem:[%s22657_s9 + $0x64] sm:$0x1] }
 0x5aa   : > { %12532 = vmatprep.mubr.bf16.mxu1 %v27418_v16  ;;  %12827 = vmatpush1.bf16.msra.mxu1 %v12821_v42  ;;  %v19275_v42 = vrot.slane %v12178_v51, 9  ;;  %v12291_v60 = vrot.slane %v12180_v56, 5  ;;  %v12185_v51 = vld [vmem:[%s22657_s9 + $0x98] sm:$0xf] }
 0x5ac   : > { %v12289_v46 = vsel %vm22828_vm3, %v19275_v42, %v12288_v63  ;;  %v12292_v40 = vsel %vm22828_vm3, %v12290_v44, %v12291_v60  ;;  %v12184_v42 = vld [vmem:[%s22657_s9 + $0x94] sm:$0xe]  ;;  %v12186_v44 = vld [vmem:[%s22657_s9 + $0x9c] sm:$0x1] }
 0x5ad   : > { %v19291_v22 = vcombine.low %v12289_v46, %v12292_v40  ;;  %v12305_v40 = vrot.slane %v12186_v44, 5 }
 0x5b1   : > { %19307 = vmatmul.mubr.msk.bf16.gmra.mrb[72].mxu1 %vm653_vm4, %v19289_v59  ;;  %v12295_v59 = vrot.slane %v12182_v37, 5  ;;  %v19277_v37 = vrot.slane %v12184_v42, 9  ;;  %v12191_v42 = vld [vmem:[%s22657_s9 + $0xd0] sm:$0xf] }
 0x5b2   : > { %12542 = vmatprep.mubr.bf16.mxu1 %v27418_v16 }
 0x5b3   : > { %v12297_v20 = vrot.slane %v12295_v59, 4  ;;  %v12296_v63 = vsel %vm22828_vm3, %v19276_v29, %v12295_v59  ;;  %v12187_v29 = vld [vmem:[%s22657_s9 + $0xb0] sm:$0xe] }
 0x5b5   : > { %v12299_v56 = vsel %vm22828_vm3, %v12297_v20, %v12298_v0  ;;  %v12189_v20 = vld [vmem:[%s22657_s9 + $0xb8] sm:$0x1] }
 0x5b6   : > { %v19292_v60 = vcombine.low %v12296_v63, %v12299_v56  ;;  %v12312_v56 = vrot.slane %v12189_v20, 5 }
 0x5b9   : > { %19308 = vmatmul.mubr.msk.bf16.gmra.mrb[76].mxu1 %vm653_vm4, %v19290_v49  ;;  %v12302_v49 = vrot.slane %v12185_v51, 5  ;;  %v19278_v51 = vrot.slane %v12187_v29, 9  ;;  %v12194_v29 = vld [vmem:[%s22657_s9 + $0xec] sm:$0xf] }
 0x5ba   : > { %12552 = vmatprep.mubr.bf16.mxu1 %v27418_v16 }
 0x5bb   : > { %v12304_v46 = vrot.slane %v12302_v49, 4  ;;  %v12303_v59 = vsel %vm22828_vm3, %v19277_v37, %v12302_v49  ;;  %v12190_v37 = vld [vmem:[%s22657_s9 + $0xcc] sm:$0xe] }
 0x5bd   : > { %v12306_v19 = vsel %vm22828_vm3, %v12304_v46, %v12305_v40  ;;  %v12192_v46 = vld [vmem:[%s22657_s9 + $0xd4] sm:$0x1] }
 0x5be   : > { %v19293_v0 = vcombine.low %v12303_v59, %v12306_v19  ;;  %v12319_v19 = vrot.slane %v12192_v46, 5 }
 0x5c1   : > { %19309 = vmatmul.mubr.msk.bf16.gmra.mrb[80].mxu1 %vm653_vm4, %v19291_v22  ;;  %v12309_v22 = vrot.slane %v12188_v58, 5  ;;  %v19279_v58 = vrot.slane %v12190_v37, 9  ;;  %v12197_v37 = vld [vmem:[%s22657_s9 + $0x108] sm:$0xf] }
 0x5c2   : > { %12562 = vmatprep.mubr.bf16.mxu1 %v27418_v16 }
 0x5c3   : > { %v12311_v63 = vrot.slane %v12309_v22, 4  ;;  %v12310_v49 = vsel %vm22828_vm3, %v19278_v51, %v12309_v22  ;;  %v12193_v51 = vld [vmem:[%s22657_s9 + $0xe8] sm:$0xe] }
 0x5c5   : > { %v12313_v44 = vsel %vm22828_vm3, %v12311_v63, %v12312_v56  ;;  %v12195_v63 = vld [vmem:[%s22657_s9 + $0xf0] sm:$0x1] }
 0x5c6   : > { %v19294_v40 = vcombine.low %v12310_v49, %v12313_v44  ;;  %v12326_v44 = vrot.slane %v12195_v63, 5 }
 0x5c9   : > { %19310 = vmatmul.mubr.msk.bf16.gmra.mrb[84].mxu1 %vm653_vm4, %v19292_v60  ;;  %v12316_v60 = vrot.slane %v12191_v42, 5  ;;  %v19280_v42 = vrot.slane %v12193_v51, 9  ;;  %v12200_v51 = vld [vmem:[%s22657_s9 + $0x124] sm:$0xf] }
 0x5ca   : > { %12572 = vmatprep.mubr.bf16.mxu1 %v27418_v16 }
 0x5cb   : > { %v12318_v59 = vrot.slane %v12316_v60, 4  ;;  %v12317_v22 = vsel %vm22828_vm3, %v19279_v58, %v12316_v60  ;;  %v12196_v58 = vld [vmem:[%s22657_s9 + $0x104] sm:$0xe] }
 0x5cd   : > { %v12320_v20 = vsel %vm22828_vm3, %v12318_v59, %v12319_v19  ;;  %v12198_v59 = vld [vmem:[%s22657_s9 + $0x10c] sm:$0x1] }
 0x5ce   : > { %v19295_v56 = vcombine.low %v12317_v22, %v12320_v20  ;;  %v12333_v20 = vrot.slane %v12198_v59, 5 }
 0x5d1   : > { %19311 = vmatmul.mubr.msk.bf16.gmra.mrb[88].mxu1 %vm653_vm4, %v19293_v0  ;;  %v12323_v0 = vrot.slane %v12194_v29, 5  ;;  %v19281_v29 = vrot.slane %v12196_v58, 9  ;;  %v12203_v58 = vld [vmem:[%s22657_s9 + $0x140] sm:$0xf] }
 0x5d2   : > { %12582 = vmatprep.mubr.bf16.mxu1 %v27418_v16 }
 0x5d3   : > { %v12325_v49 = vrot.slane %v12323_v0, 4  ;;  %v12324_v60 = vsel %vm22828_vm3, %v19280_v42, %v12323_v0  ;;  %v12199_v42 = vld [vmem:[%s22657_s9 + $0x120] sm:$0xe] }
 0x5d5   : > { %v12327_v46 = vsel %vm22828_vm3, %v12325_v49, %v12326_v44  ;;  %v12201_v49 = vld [vmem:[%s22657_s9 + $0x128] sm:$0x1] }
 0x5d6   : > { %v19296_v19 = vcombine.low %v12324_v60, %v12327_v46  ;;  %v12340_v46 = vrot.slane %v12201_v49, 5  ;;  %v5826_v49 = vld [vmem:[#allocation10 + $0x1] ss:$4 sm:$0x3] }
 0x5d9   : > { %19312 = vmatmul.mubr.msk.bf16.gmra.mrb[92].mxu1 %vm653_vm4, %v19294_v40  ;;  %v12330_v40 = vrot.slane %v12197_v37, 5  ;;  %v19282_v37 = vrot.slane %v12199_v42, 9  ;;  %v12206_v42 = vld [vmem:[%s22657_s9 + $0x15c] sm:$0xf] }
 0x5da   : > { %12592 = vmatprep.mubr.bf16.mxu1 %v27418_v16 }
 0x5db   : > { %v12332_v22 = vrot.slane %v12330_v40, 4  ;;  %v12331_v0 = vsel %vm22828_vm3, %v19281_v29, %v12330_v40  ;;  %v12202_v29 = vld [vmem:[%s22657_s9 + $0x13c] sm:$0xe] }
 0x5dd   : > { %v12334_v63 = vsel %vm22828_vm3, %v12332_v22, %v12333_v20  ;;  %v12204_v22 = vld [vmem:[%s22657_s9 + $0x144] sm:$0x1] }
 0x5de   : > { %v19297_v44 = vcombine.low %v12331_v0, %v12334_v63  ;;  %v12347_v63 = vrot.slane %v12204_v22, 5 }
 0x5e1   : > { %19313 = vmatmul.mubr.msk.bf16.gmra.mrb[96].mxu1 %vm653_vm4, %v19295_v56  ;;  %v12337_v56 = vrot.slane %v12200_v51, 5  ;;  %v19283_v51 = vrot.slane %v12202_v29, 9 }
 0x5e2   : > { %12602 = vmatprep.mubr.bf16.mxu1 %v27418_v16 }
 0x5e3   : > { %v12339_v60 = vrot.slane %v12337_v56, 4  ;;  %v12338_v40 = vsel %vm22828_vm3, %v19282_v37, %v12337_v56  ;;  %v12351_v37 = vrot.slane %v12206_v42, 5 }
 0x5e5   : > { %v12341_v59 = vsel %vm22828_vm3, %v12339_v60, %v12340_v46  ;;  %v24577_v60 = vrot.slane %v5826_v49, %v23120_v52  ;;  %v12205_v46 = vld [vmem:[%s22657_s9 + $0x158] sm:$0xe] }
 0x5e6   : > { %v19298_v20 = vcombine.low %v12338_v40, %v12341_v59  ;;  %v24582_v40 = vrot.slane %v5826_v49, %v23122_v43  ;;  %v12209_v49 = vld [vmem:[%s22657_s9 + $0x178] sm:$0xf] }
 0x5e9   : > { %19314 = vmatmul.mubr.msk.bf16.gmra.mrb[100].mxu1 %vm653_vm4, %v19296_v19  ;;  %v12344_v19 = vrot.slane %v12203_v58, 5  ;;  %v12207_v58 = vld [vmem:[%s22657_s9 + $0x160] sm:$0x1] }
 0x5ea   : > { %12612 = vmatprep.mubr.bf16.mxu1 %v27418_v16  ;;  %v12354_v42 = vrot.slane %v12207_v58, 5  ;;  %v12358_v58 = vrot.slane %v12209_v49, 5 }
 0x5eb   : > { %v12346_v0 = vrot.slane %v12344_v19, 4  ;;  %v12345_v56 = vsel %vm22828_vm3, %v19283_v51, %v12344_v19 }
 0x5f1   : > { %19315 = vmatmul.mubr.msk.bf16.gmra.mrb[104].mxu1 %vm653_vm4, %v19297_v44  ;;  %v12348_v44 = vsel %vm22828_vm3, %v12346_v0, %v12347_v63  ;;  %v19284_v0 = vrot.slane %v12205_v46, 9  ;;  %v12353_v63 = vrot.slane %v12351_v37, 4  ;;  %v12208_v46 = vld [vmem:[%s22657_s9 + $0x174] sm:$0xe] }
 0x5f2   : > { %12622 = vmatprep.mubr.bf16.mxu1 %v27418_v16  ;;  %v19285_v33 = vrot.slane %v12208_v46, 9  ;;  %v21880_v46 = vld [vmem:[#allocation8 + $0x10] ss:$8 sps:$4 sm:$0xff]  }
 0x5f9   : > { %19316 = vmatmul.mubr.msk.bf16.gmra.mrb[108].mxu1 %vm653_vm4, %v19298_v20  ;;  %v19299_v20 = vcombine.low %v12345_v56, %v12348_v44  ;;  %v12352_v44 = vsel %vm22828_vm3, %v19284_v0, %v12351_v37 }
 0x5fa   : > { %12632 = vmatprep.mubr.bf16.mxu1 %v27418_v16 }
 0x5fc   : > { %v5602_v59 = vpop.f32.mrb[4].mxu1 }
 0x5fd   : > { %v19888_v29 = vadd.f32 %v5602_v59, %v24252_v4  ;;  %v5604_v22 = vpop.f32.mrb[5].mxu1 }
 0x5fe   : > { %v19889_v19 = vadd.f32 %v5604_v22, %v24256_v28  ;;  %v5606_v51 = vpop.f32.mrb[6].mxu1  ;;  %v12210_v22 = vld [vmem:[%s22657_s9 + $0x17c] sm:$0x1] }
 0x5ff   : > { %v5838_v52 = vadd.f32 %v19888_v29, %v24577_v60  ;;  %v19890_v32 = vadd.f32 %v5606_v51, %v24258_v9  ;;  %v5608_v15 = vpop.f32.mrb[7].mxu1  ;;  %v12355_v9 = vsel %vm22828_vm3, %v12353_v63, %v12354_v42  ;;  %v21877_v63 = vld [vmem:[#allocation8] ss:$8 sps:$4 sm:$0xff]   ;;  %v12360_v42 = vrot.slane %v12358_v58, 4 }
 0x600   : > { %v5839_v43 = vadd.f32 %v19889_v19, %v24582_v40  ;;  %v19891_v4 = vadd.f32 %v5608_v15, %v24260_v31  ;;  %v12361_v49 = vrot.slane %v12210_v22, 5 }
 0x601   : > { %v5840_v56 = vadd.f32 %v19890_v32, %v24577_v60  ;;  %19317 = vmatmul.mubr.msk.bf16.gmra.mrb[112].mxu1 %vm653_vm4, %v19299_v20  ;;  %v5902_v59 = vmax.f32 %v5838_v52, 0.0 }
 0x602   : > { %v5841_v28 = vadd.f32 %v19891_v4, %v24582_v40  ;;  %12642 = vmatprep.mubr.bf16.mxu1 %v27418_v16  ;;  %v5903_v15 = vmax.f32 %v5839_v43, 0.0  ;;  %v19300_v4 = vcombine.low %v12352_v44, %v12355_v9 }
 0x603   : > { %v5904_v29 = vmax.f32 %v5840_v56, 0.0 }
 0x604   : > { %v5905_v31 = vmax.f32 %v5841_v28, 0.0  ;;  %v5612_v32 = vpop.f32.mrb[8].mxu1  ;;  %v21882_v28 = vld [vmem:[#allocation8 + $0x14] ss:$8 sps:$4 sm:$0xff]  }
 0x605   : > { %v5966_v20 = vpack.c.bf16 %v5904_v29, %v5902_v59  ;;  %v19892_v19 = vadd.f32 %v5612_v32, %v24269_v34  ;;  %v5614_v51 = vpop.f32.mrb[9].mxu1  ;;  %v12212_v59 = vld [vmem:[%s22657_s9 + $0x194] sm:$0xf]  ;;  %v12362_v29 = vsel %vm22828_vm3, %v12360_v42, %v12361_v49  ;;  %v12213_v32 = vld [vmem:[%s22657_s9 + $0x198] sm:$0x1] }
 0x606   : > { %v19893_v37 = vadd.f32 %v5614_v51, %v24273_v10  ;;  %v5616_v0 = vpop.f32.mrb[10].mxu1  ;;  %v5967_v5 = vpack.c.bf16 %v5905_v31, %v5903_v15  ;;  %v21885_v31 = vld [vmem:[#allocation8 + $0x24] ss:$8 sps:$4 sm:$0xff]  }
 0x607   : > { %v5842_v52 = vadd.f32 %v19892_v19, %v24577_v60  ;;  %v19894_v43 = vadd.f32 %v5616_v0, %v24275_v38  ;;  %v5618_v56 = vpop.f32.mrb[11].mxu1  ;;  %v12359_v38 = vsel %vm22828_vm3, %v19285_v33, %v12358_v58 }
 0x608   : > { %v5843_v34 = vadd.f32 %v19893_v37, %v24582_v40  ;;  %v19895_v44 = vadd.f32 %v5618_v56, %v24277_v6  ;;  %6223 = vmatprep.mubr.bf16.mxu0 %v5967_v5  ;;  %v12211_v6 = vld [vmem:[%s22657_s9 + $0x190] sm:$0xe]  ;;  %v12365_v5 = vrot.slane %v12212_v59, 5  ;;  %v12368_v56 = vrot.slane %v12213_v32, 5 }
 0x609   : > { %v5844_v10 = vadd.f32 %v19894_v43, %v24577_v60  ;;  %6224 = vmatmul.mubr.bf16.vlgmr.msra.gmra.mrb[132].mxu0 %v5966_v20  ;;  %19318 = vmatmul.mubr.msk.bf16.gmra.mrb[116].mxu1 %vm653_vm4, %v19300_v4  ;;  %v5906_v22 = vmax.f32 %v5842_v52, 0.0  ;;  %v19286_v33 = vrot.slane %v12211_v6, 9  ;;  %v21883_v52 = vld [vmem:[#allocation8 + $0x20] ss:$8 sps:$4 sm:$0xff]   ;;  %v21891_v32 = vld [vmem:[#allocation8 + $0x44] ss:$8 sps:$4 sm:$0xff]  }
 0x60a   : > { %v5845_v9 = vadd.f32 %v19895_v44, %v24582_v40  ;;  %6545 = vmatpush1.bf16.msra.mxu0 %v21877_v63  ;;  %12652 = vmatprep.mubr.bf16.mxu1 %v27418_v16  ;;  %v5907_v20 = vmax.f32 %v5843_v34, 0.0  ;;  %v19301_v63 = vcombine.low %v12359_v38, %v12362_v29  ;;  %v12367_v43 = vrot.slane %v12365_v5, 4  ;;  %v12215_v44 = vld [vmem:[%s22657_s9 + $0x1b0] sm:$0xf]  ;;  %v21886_v29 = vld [vmem:[#allocation8 + $0x30] ss:$8 sps:$4 sm:$0xff]  }
 0x60b   : > { %v5908_v15 = vmax.f32 %v5844_v10, 0.0  ;;  %6546 = vmatprep.subr.bf16.mxu0 %v21882_v28  ;;  %v12372_v6 = vrot.slane %v12215_v44, 5 }
 0x60c   : > { %v5909_v19 = vmax.f32 %v5845_v9, 0.0  ;;  %v5622_v51 = vpop.f32.mrb[12].mxu1  ;;  %v12369_v38 = vsel %vm22828_vm3, %v12367_v43, %v12368_v56  ;;  %v21889_v43 = vld [vmem:[#allocation8 + $0x40] ss:$8 sps:$4 sm:$0xff]  }
 0x60d   : > { %v19896_v4 = vadd.f32 %v5622_v51, %v24286_v27  ;;  %v5624_v37 = vpop.f32.mrb[13].mxu1  ;;  %v5968_v0 = vpack.c.bf16 %v5908_v15, %v5906_v22  ;;  %v21888_v27 = vld [vmem:[#allocation8 + $0x34] ss:$8 sps:$4 sm:$0xff]  }
 0x60e   : > { %v19897_v58 = vadd.f32 %v5624_v37, %v24290_v14  ;;  %v5626_v42 = vpop.f32.mrb[14].mxu1  ;;  %v5969_v49 = vpack.c.bf16 %v5909_v19, %v5907_v20  ;;  %6547 = vmatpush1.bf16.msra.mxu0 %v21880_v46 }
 0x60f   : > { %v5846_v28 = vadd.f32 %v19896_v4, %v24577_v60  ;;  %v19898_v59 = vadd.f32 %v5626_v42, %v24292_v62  ;;  %v5628_v34 = vpop.f32.mrb[15].mxu1  ;;  %6548 = vmatprep.subr.bf16.mxu0 %v21885_v31  ;;  %v12366_v62 = vsel %vm22828_vm3, %v19286_v33, %v12365_v5  ;;  %v12216_v31 = vld [vmem:[%s22657_s9 + $0x1b4] sm:$0x1] }
 0x610   : > { %v5847_v10 = vadd.f32 %v19897_v58, %v24582_v40  ;;  %v19899_v9 = vadd.f32 %v5628_v34, %v24294_v45  ;;  %6233 = vmatprep.mubr.bf16.mxu0 %v5969_v49  ;;  %v12214_v45 = vld [vmem:[%s22657_s9 + $0x1ac] sm:$0xe]  ;;  %v12374_v49 = vrot.slane %v12372_v6, 4  ;;  %v21895_v34 = vld [vmem:[#allocation8 + $0x54] ss:$8 sps:$4 sm:$0xff]  }
 0x611   : > { %v5848_v14 = vadd.f32 %v19898_v59, %v24577_v60  ;;  %6234 = vmatmul.mubr.bf16.gmra.mrb[136].mxu0 %v5968_v0  ;;  %19319 = vmatmul.mubr.msk.bf16.gmra.mrb[120].mxu1 %vm653_vm4, %v19301_v63  ;;  %v5910_v22 = vmax.f32 %v5846_v28, 0.0  ;;  %v19302_v63 = vcombine.low %v12366_v62, %v12369_v38  ;;  %v19287_v5 = vrot.slane %v12214_v45, 9 }
 0x612   : > { %v5849_v46 = vadd.f32 %v19899_v9, %v24582_v40  ;;  %12662 = vmatprep.mubr.bf16.mxu1 %v27418_v16  ;;  %6549 = vmatpush1.bf16.msra.mxu0 %v21883_v52  ;;  %v5911_v20 = vmax.f32 %v5847_v10, 0.0  ;;  %v12375_v52 = vrot.slane %v12216_v31, 5  ;;  %v21893_v9 = vld [vmem:[#allocation8 + $0x50] ss:$8 sps:$4 sm:$0xff]  }
 0x613   : > { %v5912_v15 = vmax.f32 %v5848_v14, 0.0  ;;  %6550 = vmatprep.subr.bf16.mxu0 %v21888_v27 }
 0x614   : > { %v5913_v19 = vmax.f32 %v5849_v46, 0.0  ;;  %v5632_v51 = vpop.f32.mrb[16].mxu1  ;;  %v12376_v10 = vsel %vm22828_vm3, %v12374_v49, %v12375_v52  ;;  %v21899_v46 = vld [vmem:[#allocation8 + $0x64] ss:$8 sps:$4 sm:$0xff]  }
 0x615   : > { %v19900_v4 = vadd.f32 %v5632_v51, %v24303_v8  ;;  %v5634_v37 = vpop.f32.mrb[17].mxu1  ;;  %v5970_v0 = vpack.c.bf16 %v5912_v15, %v5910_v22  ;;  %v21907_v49 = vld [vmem:[#allocation8 + $0x84] ss:$8 sps:$4 sm:$0xff]  }
 0x616   : > { %v19901_v33 = vadd.f32 %v5634_v37, %v24307_v1  ;;  %v5636_v58 = vpop.f32.mrb[18].mxu1  ;;  %v5971_v42 = vpack.c.bf16 %v5913_v19, %v5911_v20  ;;  %6551 = vmatpush1.bf16.msra.mxu0 %v21886_v29  ;;  %v21897_v19 = vld [vmem:[#allocation8 + $0x60] ss:$8 sps:$4 sm:$0xff]  }
 0x617   : > { %v5850_v56 = vadd.f32 %v19900_v4, %v24577_v60  ;;  %v19902_v28 = vadd.f32 %v5636_v58, %v24309_v11  ;;  %v5638_v59 = vpop.f32.mrb[19].mxu1  ;;  %6552 = vmatprep.subr.bf16.mxu0 %v21891_v32  ;;  %v12373_v11 = vsel %vm22828_vm3, %v19287_v5, %v12372_v6 }
 0x618   : > { %v5851_v8 = vadd.f32 %v19901_v33, %v24582_v40  ;;  %v19903_v27 = vadd.f32 %v5638_v59, %v24311_v50  ;;  %6243 = vmatprep.mubr.bf16.mxu0 %v5971_v42  ;;  %v19303_v31 = vcombine.low %v12373_v11, %v12376_v10  ;;  %v19388_v33 = vld.sshfl [vmem:[#allocation5 + $0x54] sm:$0x33 pattern:$0x76325410] }
 0x619   : > { %v5852_v1 = vadd.f32 %v19902_v28, %v24577_v60  ;;  %6244 = vmatmul.mubr.bf16.gmra.mrb[140].mxu0 %v5970_v0  ;;  %19320 = vmatmul.mubr.msk.bf16.gmra.mrb[124].mxu1 %vm653_vm4, %v19302_v63  ;;  %v5914_v14 = vmax.f32 %v5850_v56, 0.0  ;;  %v21903_v0 = vld [vmem:[#allocation8 + $0x74] ss:$8 sps:$4 sm:$0xff]   ;;  %v13285_v52 = vcombine.high %v19388_v33, %v19388_v33  ;;  %v21905_v11 = vld [vmem:[#allocation8 + $0x80] ss:$8 sps:$4 sm:$0xff]  }
 0x61a   : > { %v5853_v44 = vadd.f32 %v19903_v27, %v24582_v40  ;;  %12672 = vmatprep.mubr.bf16.mxu1 %v27418_v16  ;;  %6553 = vmatpush1.bf16.msra.mxu0 %v21889_v43  ;;  %v5915_v62 = vmax.f32 %v5851_v8, 0.0  ;;  %v21892_v8 = vld [vmem:[%s22657_s9] sm:$0xff]  }
 0x61b   : > { %v5916_v50 = vmax.f32 %v5852_v1, 0.0  ;;  %6554 = vmatprep.subr.bf16.mxu0 %v21895_v34  ;;  %19389 = vmatprep.subr.msk.bf16.mxu1 %vm751_vm0, %v13285_v52 }
 0x61c   : > { %v5917_v38 = vmax.f32 %v5853_v44, 0.0  ;;  %v5642_v29 = vpop.f32.mrb[20].mxu1 }
 0x61d   : > { %v19904_v45 = vadd.f32 %v5642_v29, %v24319_v53  ;;  %v5644_v22 = vpop.f32.mrb[21].mxu1  ;;  %v5972_v15 = vpack.c.bf16 %v5916_v50, %v5914_v14  ;;  %v21911_v50 = vld [vmem:[#allocation8 + $0x94] ss:$8 sps:$4 sm:$0xff]  }
 0x61e   : > { %v19905_v32 = vadd.f32 %v5644_v22, %v24321_v30  ;;  %v5646_v6 = vpop.f32.mrb[22].mxu1  ;;  %v5973_v20 = vpack.c.bf16 %v5917_v38, %v5915_v62  ;;  %6555 = vmatpush1.bf16.msra.mxu0 %v21893_v9  ;;  %v13335_v62 = vsel %vm751_vm0, %v19388_v33, 0  ;;  %v21915_v22 = vld [vmem:[#allocation8 + $0xa4] ss:$8 sps:$4 sm:$0xff]  }
 0x61f   : > { %v5854_v51 = vadd.f32 %v19904_v45, %v24577_v60  ;;  %v19906_v4 = vadd.f32 %v5646_v6, %v24323_v13  ;;  %v5648_v37 = vpop.f32.mrb[23].mxu1  ;;  %6556 = vmatprep.subr.bf16.mxu0 %v21899_v46  ;;  %v21901_v13 = vld [vmem:[#allocation8 + $0x70] ss:$8 sps:$4 sm:$0xff]  }
 0x620   : > { %v5855_v63 = vadd.f32 %v19905_v32, %v24582_v40  ;;  %v19907_v53 = vadd.f32 %v5648_v37, %v24325_v61  ;;  %6253 = vmatprep.mubr.bf16.mxu0 %v5973_v20 }
 0x621   : > { %v5856_v5 = vadd.f32 %v19906_v4, %v24577_v60  ;;  %6254 = vmatmul.mubr.bf16.gmra.mrb[144].mxu0 %v5972_v15  ;;  %19321 = vmatmul.mubr.msk.bf16.gmra.mrb[128].mxu1 %vm653_vm4, %v19303_v31  ;;  %v5918_v58 = vmax.f32 %v5854_v51, 0.0 }
 0x622   : > { %v5857_v30 = vadd.f32 %v19907_v53, %v24582_v40  ;;  %12858 = vmatprep.mubr.bf16.mxu1 %v27418_v16  ;;  %6557 = vmatpush1.bf16.msra.mxu0 %v21897_v19  ;;  %v5919_v61 = vmax.f32 %v5855_v63, 0.0  ;;  %v21896_v19 = vld [vmem:[%s22657_s9 + $0x1c] sm:$0xff]  }
 0x623   : > { %v5920_v42 = vmax.f32 %v5856_v5, 0.0  ;;  %6558 = vmatprep.subr.bf16.mxu0 %v21903_v0  ;;  %v21913_v0 = vld [vmem:[#allocation8 + $0xa0] ss:$8 sps:$4 sm:$0xff]  }
 0x624   : > { %v5921_v43 = vmax.f32 %v5857_v30, 0.0  ;;  %v5652_v56 = vpop.f32.mrb[24].mxu1  ;;  %v21919_v30 = vld [vmem:[#allocation8 + $0xb4] ss:$8 sps:$4 sm:$0xff]  }
 0x625   : > { %v19908_v28 = vadd.f32 %v5652_v56, %v24329_v17  ;;  %v5654_v59 = vpop.f32.mrb[25].mxu1  ;;  %v5974_v34 = vpack.c.bf16 %v5920_v42, %v5918_v58 }
 0x626   : > { %v19909_v27 = vadd.f32 %v5654_v59, %v24331_v57  ;;  %v5656_v1 = vpop.f32.mrb[26].mxu1  ;;  %v5975_v44 = vpack.c.bf16 %v5921_v43, %v5919_v61  ;;  %6559 = vmatpush1.bf16.msra.mxu0 %v21901_v13  ;;  %v21900_v59 = vld [vmem:[%s22657_s9 + $0x38] sm:$0xff]  }
 0x627   : > { %v5858_v10 = vadd.f32 %v19908_v28, %v24577_v60  ;;  %v19910_v9 = vadd.f32 %v5656_v1, %v24333_v23  ;;  %v5658_v14 = vpop.f32.mrb[27].mxu1  ;;  %6560 = vmatprep.subr.bf16.mxu0 %v21907_v49  ;;  %v21909_v23 = vld [vmem:[#allocation8 + $0x90] ss:$8 sps:$4 sm:$0xff]   ;;  %v21923_v49 = vld [vmem:[#allocation8 + $0xc4] ss:$8 sps:$4 sm:$0xff]  }
 0x628   : > { %v5859_v17 = vadd.f32 %v19909_v27, %v24582_v40  ;;  %v19911_v46 = vadd.f32 %v5658_v14, %v24337_v39  ;;  %6263 = vmatprep.mubr.bf16.mxu0 %v5975_v44  ;;  %v21921_v1 = vld [vmem:[#allocation8 + $0xc0] ss:$8 sps:$4 sm:$0xff]  }
 0x629   : > { %v5860_v57 = vadd.f32 %v19910_v9, %v24577_v60  ;;  %6264 = vmatmul.mubr.bf16.gmra.mrb[148].mxu0 %v5974_v34  ;;  %19340 = vmatmul.mubr.msk.bf16.vlgmr.msra.gmra.mrb[68].mxu1 %vm653_vm4, %v21892_v8  ;;  %v5922_v29 = vmax.f32 %v5858_v10, 0.0  ;;  %v21927_v9 = vld [vmem:[#allocation8 + $0xd4] ss:$8 sps:$4 sm:$0xff]  }
 0x62a   : > { %v5861_v38 = vadd.f32 %v19911_v46, %v24582_v40  ;;  %12868 = vmatprep.mubr.bf16.mxu1 %v27418_v16  ;;  %6561 = vmatpush1.bf16.msra.mxu0 %v21905_v11  ;;  %v5923_v39 = vmax.f32 %v5859_v17, 0.0 }
 0x62b   : > { %v5924_v45 = vmax.f32 %v5860_v57, 0.0  ;;  %6562 = vmatprep.subr.bf16.mxu0 %v21911_v50  ;;  %13341 = vmatpush1.bf16.msra.mxu1 %v13335_v62  ;;  %v21931_v62 = vld [vmem:[#allocation8 + $0xe4] ss:$8 sps:$4 sm:$0xff]  }
 0x62c   : > { %v5925_v15 = vmax.f32 %v5861_v38, 0.0  ;;  %v5662_v31 = vpop.f32.mrb[28].mxu1 }
 0x62d   : > { %v19912_v32 = vadd.f32 %v5662_v31, %v24342_v18  ;;  %v5664_v6 = vpop.f32.mrb[29].mxu1  ;;  %v5976_v20 = vpack.c.bf16 %v5924_v45, %v5922_v29 }
 0x62e   : > { %v19913_v51 = vadd.f32 %v5664_v6, %v24344_v41  ;;  %v5666_v4 = vpop.f32.mrb[30].mxu1  ;;  %v5977_v37 = vpack.c.bf16 %v5925_v15, %v5923_v39  ;;  %6563 = vmatpush1.bf16.msra.mxu0 %v21909_v23 }
 0x62f   : > { %v5862_v63 = vadd.f32 %v19912_v32, %v24577_v60  ;;  %v19914_v53 = vadd.f32 %v5666_v4, %v24346_v55  ;;  %v5668_v5 = vpop.f32.mrb[31].mxu1  ;;  %6564 = vmatprep.subr.bf16.mxu0 %v21915_v22  ;;  %v21917_v55 = vld [vmem:[#allocation8 + $0xb0] ss:$8 sps:$4 sm:$0xff]   ;;  %v21929_v32 = vld [vmem:[#allocation8 + $0xe0] ss:$8 sps:$4 sm:$0xff]  }
 0x630   : > { %v5863_v13 = vadd.f32 %v19913_v51, %v24582_v40  ;;  %v19915_v18 = vadd.f32 %v5668_v5, %v24349_v7  ;;  %6273 = vmatprep.mubr.bf16.mxu0 %v5977_v37  ;;  %v21904_v22 = vld [vmem:[%s22657_s9 + $0x54] sm:$0xff]   ;;  %v24701_v37 = vld.sshfl [vmem:[#allocation5 + $0x2c] sm:$0x33 pattern:$0x76325410] }
 0x631   : > { %v5864_v33 = vadd.f32 %v19914_v53, %v24577_v60  ;;  %6274 = vmatmul.mubr.bf16.gmra.mrb[152].mxu0 %v5976_v20  ;;  %19341 = vmatmul.mubr.msk.bf16.gmra.mrb[72].mxu1 %vm653_vm4, %v21896_v19  ;;  %v5926_v58 = vmax.f32 %v5862_v63, 0.0  ;;  %v21935_v51 = vld [vmem:[#allocation8 + $0xf4] ss:$8 sps:$4 sm:$0xff]  }
 0x632   : > { %v5865_v41 = vadd.f32 %v19915_v18, %v24582_v40  ;;  %12878 = vmatprep.mubr.bf16.mxu1 %v27418_v16  ;;  %6565 = vmatpush1.bf16.msra.mxu0 %v21913_v0  ;;  %v5927_v52 = vmax.f32 %v5863_v13, 0.0 }
 0x633   : > { %v5928_v42 = vmax.f32 %v5864_v33, 0.0  ;;  %6566 = vmatprep.subr.bf16.mxu0 %v21919_v30 }
 0x634   : > { %v5929_v61 = vmax.f32 %v5865_v41, 0.0  ;;  %v5672_v7 = vpop.f32.mrb[32].mxu1 }
 0x635   : > { %v19916_v43 = vadd.f32 %v5672_v7, %v24353_v24  ;;  %v5674_v56 = vpop.f32.mrb[33].mxu1  ;;  %v5978_v28 = vpack.c.bf16 %v5928_v42, %v5926_v58 }
 0x636   : > { %v19917_v34 = vadd.f32 %v5674_v56, %v24355_v47  ;;  %v5676_v8 = vpop.f32.mrb[34].mxu1  ;;  %v5979_v27 = vpack.c.bf16 %v5929_v61, %v5927_v52  ;;  %6567 = vmatpush1.bf16.msra.mxu0 %v21917_v55  ;;  %v21908_v55 = vld [vmem:[%s22657_s9 + $0x70] sm:$0xff]   ;;  %v27499_v56 = vld [vmem:[#allocation73_spill] sm:$0xff] }
 0x637   : > { %v5866_v44 = vadd.f32 %v19916_v43, %v24577_v60  ;;  %v19918_v11 = vadd.f32 %v5676_v8, %v24357_v25  ;;  %v5678_v10 = vpop.f32.mrb[35].mxu1  ;;  %6568 = vmatprep.subr.bf16.mxu0 %v21923_v49  ;;  %v21925_v25 = vld [vmem:[#allocation8 + $0xd0] ss:$8 sps:$4 sm:$0xff]  }
 0x638   : > { %v5867_v14 = vadd.f32 %v19917_v34, %v24582_v40  ;;  %v19919_v24 = vadd.f32 %v5678_v10, %v24360_v12  ;;  %6283 = vmatprep.mubr.bf16.mxu0 %v5979_v27 }
 0x639   : > { %v5868_v50 = vadd.f32 %v19918_v11, %v24577_v60  ;;  %6284 = vmatmul.mubr.bf16.gmra.mrb[156].mxu0 %v5978_v28  ;;  %19342 = vmatmul.mubr.msk.bf16.gmra.mrb[76].mxu1 %vm653_vm4, %v21900_v59  ;;  %v5930_v17 = vmax.f32 %v5866_v44, 0.0 }
 0x63a   : > { %v5869_v47 = vadd.f32 %v19919_v24, %v24582_v40  ;;  %12888 = vmatprep.mubr.bf16.mxu1 %v27418_v16  ;;  %6569 = vmatpush1.bf16.msra.mxu0 %v21921_v1  ;;  %v5931_v57 = vmax.f32 %v5867_v14, 0.0  ;;  %v27500_v1 = vld [vmem:[#allocation74_spill] sm:$0xff]  ;;  %v27501_v14 = vld [vmem:[#allocation75_spill] sm:$0xff] }
 0x63b   : > { %v5932_v46 = vmax.f32 %v5868_v50, 0.0  ;;  %6570 = vmatprep.subr.bf16.mxu0 %v21927_v9  ;;  %v21912_v9 = vld [vmem:[%s22657_s9 + $0x8c] sm:$0xff]  }
 0x63c   : > { %v5933_v38 = vmax.f32 %v5869_v47, 0.0  ;;  %v5682_v12 = vpop.f32.mrb[36].mxu1 }
 0x63d   : > { %v19920_v23 = vadd.f32 %v5682_v12, %v24364_v26  ;;  %v5684_v29 = vpop.f32.mrb[37].mxu1  ;;  %v5980_v45 = vpack.c.bf16 %v5932_v46, %v5930_v17  ;;  %v27502_v17 = vld [vmem:[#allocation76_spill] sm:$0xff] }
 0x63e   : > { %v19921_v39 = vadd.f32 %v5684_v29, %v24366_v3  ;;  %v5686_v15 = vpop.f32.mrb[38].mxu1  ;;  %v5981_v31 = vpack.c.bf16 %v5933_v38, %v5931_v57  ;;  %6571 = vmatpush1.bf16.msra.mxu0 %v21925_v25  ;;  %v27503_v38 = vld [vmem:[#allocation77_spill] sm:$0xff] }
 0x63f   : > { %v5870_v6 = vadd.f32 %v19920_v23, %v24577_v60  ;;  %v19922_v20 = vadd.f32 %v5686_v15, %v24368_v2  ;;  %v5688_v19 = vpop.f32.mrb[39].mxu1  ;;  %6572 = vmatprep.subr.bf16.mxu0 %v21931_v62  ;;  %v21933_v2 = vld [vmem:[#allocation8 + $0xf0] ss:$8 sps:$4 sm:$0xff]  }
 0x640   : > { %v5871_v4 = vadd.f32 %v19921_v39, %v24582_v40  ;;  %v19923_v26 = vadd.f32 %v5688_v19, %v24371_v54  ;;  %6293 = vmatprep.mubr.bf16.mxu0 %v5981_v31  ;;  %v7217_v54 = vcombine.high %v24701_v37, %v24701_v37 }
 0x641   : > { %v5872_v3 = vadd.f32 %v19922_v20, %v24577_v60  ;;  %6294 = vmatmul.mubr.bf16.gmra.mrb[160].mxu0 %v5980_v45  ;;  %19343 = vmatmul.mubr.msk.bf16.gmra.mrb[80].mxu1 %vm653_vm4, %v21904_v22  ;;  %v5934_v63 = vmax.f32 %v5870_v6, 0.0 }
 0x642   : > { %v5873_v0 = vadd.f32 %v19923_v26, %v24582_v40  ;;  %12898 = vmatprep.mubr.bf16.mxu1 %v27418_v16  ;;  %6573 = vmatpush1.bf16.msra.mxu0 %v21929_v32  ;;  %v5935_v5 = vmax.f32 %v5871_v4, 0.0  ;;  %v27504_v32 = vld [vmem:[#allocation78_spill] sm:$0xff]  ;;  %v27505_v4 = vld [vmem:[#allocation79_spill] sm:$0xff] }
 0x643   : > { %v5936_v53 = vmax.f32 %v5872_v3, 0.0  ;;  %6574 = vmatprep.subr.bf16.mxu0 %v21935_v51  ;;  %v21916_v51 = vld [vmem:[%s22657_s9 + $0xa8] sm:$0xff]  }
 0x644   : > { %v5937_v30 = vmax.f32 %v5873_v0, 0.0  ;;  %v5692_v13 = vpop.f32.mrb[40].mxu1 }
 0x645   : > { %v19924_v18 = vadd.f32 %v5692_v13, %v24375_v36  ;;  %v5694_v33 = vpop.f32.mrb[41].mxu1  ;;  %v5982_v41 = vpack.c.bf16 %v5936_v53, %v5934_v63  ;;  %v27506_v63 = vld [vmem:[#allocation80_spill] sm:$0xff] }
 0x646   : > { %v19925_v58 = vadd.f32 %v5694_v33, %v24377_v21  ;;  %v5696_v42 = vpop.f32.mrb[42].mxu1  ;;  %v5983_v49 = vpack.c.bf16 %v5937_v30, %v5935_v5  ;;  %6575 = vmatpush1.bf16.msra.mxu0 %v21933_v2  ;;  %v27507_v30 = vld [vmem:[#allocation81_spill] sm:$0xff] }
 0x647   : > { %v5874_v52 = vadd.f32 %v19924_v18, %v24577_v60  ;;  %v19926_v61 = vadd.f32 %v5696_v42, %v24379_v48  ;;  %v5698_v7 = vpop.f32.mrb[43].mxu1  ;;  %18583 = vmatprep.subr.msk.bf16.mxu0 %vm751_vm0, %v7217_v54 }
 0x648   : > { %v5875_v43 = vadd.f32 %v19925_v58, %v24582_v40  ;;  %v19927_v36 = vadd.f32 %v5698_v7, %v27499_v56  ;;  %6303 = vmatprep.mubr.bf16.mxu0 %v5983_v49  ;;  %v21920_v56 = vld [vmem:[%s22657_s9 + $0xc4] sm:$0xff]  }
 0x649   : > { %v5876_v28 = vadd.f32 %v19926_v61, %v24577_v60  ;;  %6304 = vmatmul.mubr.bf16.gmra.mrb[164].mxu0 %v5982_v41  ;;  %19344 = vmatmul.mubr.msk.bf16.gmra.mrb[84].mxu1 %vm653_vm4, %v21908_v55  ;;  %v5938_v59 = vmax.f32 %v5874_v52, 0.0  ;;  %v27508_v52 = vld [vmem:[#allocation82_spill] sm:$0xff] }
 0x64a   : > { %v5877_v21 = vadd.f32 %v19927_v36, %v24582_v40  ;;  %12908 = vmatprep.mubr.bf16.mxu1 %v27418_v16  ;;  %v5939_v34 = vmax.f32 %v5875_v43, 0.0  ;;  %v27509_v36 = vld [vmem:[#allocation83_spill] sm:$0xff] }
 0x64b   : > { %v5940_v48 = vmax.f32 %v5876_v28, 0.0 }
 0x64c   : > { %v5941_v8 = vmax.f32 %v5877_v21, 0.0  ;;  %v5702_v27 = vpop.f32.mrb[44].mxu1 }
 0x64d   : > { %v19928_v44 = vadd.f32 %v5702_v27, %v27500_v1  ;;  %v5704_v11 = vpop.f32.mrb[45].mxu1  ;;  %v5984_v10 = vpack.c.bf16 %v5940_v48, %v5938_v59 }
 0x64e   : > { %v19929_v24 = vadd.f32 %v5704_v11, %v27501_v14  ;;  %v5706_v50 = vpop.f32.mrb[46].mxu1  ;;  %v5985_v47 = vpack.c.bf16 %v5941_v8, %v5939_v34  ;;  %v27510_v34 = vld [vmem:[#allocation84_spill] sm:$0xff] }
 0x64f   : > { %v5878_v25 = vadd.f32 %v19928_v44, %v24577_v60  ;;  %v19930_v46 = vadd.f32 %v5706_v50, %v27502_v17  ;;  %v5708_v62 = vpop.f32.mrb[47].mxu1  ;;  %v27511_v44 = vld [vmem:[#allocation85_spill] sm:$0xff]  ;;  %v27512_v17 = vld [vmem:[#allocation86_spill] sm:$0xff] }
 0x650   : > { %v5879_v57 = vadd.f32 %v19929_v24, %v24582_v40  ;;  %v19931_v12 = vadd.f32 %v5708_v62, %v27503_v38  ;;  %6313 = vmatprep.mubr.bf16.mxu0 %v5985_v47  ;;  %v21924_v38 = vld [vmem:[%s22657_s9 + $0xe0] sm:$0xff]  }
 0x651   : > { %v5880_v23 = vadd.f32 %v19930_v46, %v24577_v60  ;;  %6314 = vmatmul.mubr.bf16.gmra.mrb[168].mxu0 %v5984_v10  ;;  %19345 = vmatmul.mubr.msk.bf16.gmra.mrb[88].mxu1 %vm653_vm4, %v21912_v9  ;;  %v5942_v45 = vmax.f32 %v5878_v25, 0.0 }
 0x652   : > { %v5881_v29 = vadd.f32 %v19931_v12, %v24582_v40  ;;  %12918 = vmatprep.mubr.bf16.mxu1 %v27418_v16  ;;  %v5943_v39 = vmax.f32 %v5879_v57, 0.0  ;;  %v27513_v12 = vld [vmem:[#allocation87_spill] sm:$0xff] }
 0x653   : > { %v5944_v22 = vmax.f32 %v5880_v23, 0.0 }
 0x654   : > { %v5945_v15 = vmax.f32 %v5881_v29, 0.0  ;;  %v5712_v31 = vpop.f32.mrb[48].mxu1 }
 0x655   : > { %v19932_v6 = vadd.f32 %v5712_v31, %v27504_v32  ;;  %v5714_v20 = vpop.f32.mrb[49].mxu1  ;;  %v5986_v19 = vpack.c.bf16 %v5944_v22, %v5942_v45 }
 0x656   : > { %v19933_v26 = vadd.f32 %v5714_v20, %v27505_v4  ;;  %v5716_v3 = vpop.f32.mrb[50].mxu1  ;;  %v5987_v0 = vpack.c.bf16 %v5945_v15, %v5943_v39  ;;  %v27514_v39 = vld [vmem:[#allocation88_spill] sm:$0xff] }
 0x657   : > { %v5882_v2 = vadd.f32 %v19932_v6, %v24577_v60  ;;  %v19934_v53 = vadd.f32 %v5716_v3, %v27506_v63  ;;  %v5718_v54 = vpop.f32.mrb[51].mxu1  ;;  %v27515_v6 = vld [vmem:[#allocation89_spill] sm:$0xff]  ;;  %v27516_v63 = vld [vmem:[#allocation90_spill] sm:$0xff] }
 0x658   : > { %v5883_v5 = vadd.f32 %v19933_v26, %v24582_v40  ;;  %v19935_v13 = vadd.f32 %v5718_v54, %v27507_v30  ;;  %6323 = vmatprep.mubr.bf16.mxu0 %v5987_v0  ;;  %v21928_v30 = vld [vmem:[%s22657_s9 + $0xfc] sm:$0xff]  }
 0x659   : > { %v5884_v18 = vadd.f32 %v19934_v53, %v24577_v60  ;;  %6324 = vmatmul.mubr.bf16.gmra.mrb[172].mxu0 %v5986_v19  ;;  %19346 = vmatmul.mubr.msk.bf16.gmra.mrb[92].mxu1 %vm653_vm4, %v21916_v51  ;;  %v5946_v41 = vmax.f32 %v5882_v2, 0.0 }
 0x65a   : > { %v5885_v33 = vadd.f32 %v19935_v13, %v24582_v40  ;;  %12928 = vmatprep.mubr.bf16.mxu1 %v27418_v16  ;;  %v5947_v58 = vmax.f32 %v5883_v5, 0.0  ;;  %v27517_v13 = vld [vmem:[#allocation91_spill] sm:$0xff] }
 0x65b   : > { %v5948_v55 = vmax.f32 %v5884_v18, 0.0 }
 0x65c   : > { %v5949_v42 = vmax.f32 %v5885_v33, 0.0  ;;  %v5722_v49 = vpop.f32.mrb[52].mxu1 }
 0x65d   : > { %v19936_v61 = vadd.f32 %v5722_v49, %v27508_v52  ;;  %v5724_v7 = vpop.f32.mrb[53].mxu1  ;;  %v5988_v43 = vpack.c.bf16 %v5948_v55, %v5946_v41 }
 0x65e   : > { %v19937_v28 = vadd.f32 %v5724_v7, %v27509_v36  ;;  %v5726_v21 = vpop.f32.mrb[54].mxu1  ;;  %v5989_v59 = vpack.c.bf16 %v5949_v42, %v5947_v58  ;;  %v27518_v58 = vld [vmem:[#allocation92_spill] sm:$0xff] }
 0x65f   : > { %v5886_v48 = vadd.f32 %v19936_v61, %v24577_v60  ;;  %v19938_v8 = vadd.f32 %v5726_v21, %v27510_v34  ;;  %v5728_v27 = vpop.f32.mrb[55].mxu1  ;;  %v27519_v61 = vld [vmem:[#allocation93_spill] sm:$0xff]  ;;  %v27520_v34 = vld [vmem:[#allocation94_spill] sm:$0xff] }
 0x660   : > { %v5887_v1 = vadd.f32 %v19937_v28, %v24582_v40  ;;  %v19939_v11 = vadd.f32 %v5728_v27, %v27511_v44  ;;  %6333 = vmatprep.mubr.bf16.mxu0 %v5989_v59  ;;  %v21932_v44 = vld [vmem:[%s22657_s9 + $0x118] sm:$0xff]  }
 0x661   : > { %v5888_v10 = vadd.f32 %v19938_v8, %v24577_v60  ;;  %6334 = vmatmul.mubr.bf16.gmra.mrb[176].mxu0 %v5988_v43  ;;  %19347 = vmatmul.mubr.msk.bf16.gmra.mrb[96].mxu1 %vm653_vm4, %v21920_v56  ;;  %v5950_v14 = vmax.f32 %v5886_v48, 0.0 }
 0x662   : > { %v5889_v9 = vadd.f32 %v19939_v11, %v24582_v40  ;;  %12938 = vmatprep.mubr.bf16.mxu1 %v27418_v16  ;;  %v5951_v50 = vmax.f32 %v5887_v1, 0.0  ;;  %v27521_v11 = vld [vmem:[#allocation95_spill] sm:$0xff] }
 0x663   : > { %v5952_v24 = vmax.f32 %v5888_v10, 0.0 }
 0x664   : > { %v5953_v47 = vmax.f32 %v5889_v9, 0.0  ;;  %v5732_v25 = vpop.f32.mrb[56].mxu1 }
 0x665   : > { %v19940_v46 = vadd.f32 %v5732_v25, %v27512_v17  ;;  %v5734_v62 = vpop.f32.mrb[57].mxu1  ;;  %v5990_v57 = vpack.c.bf16 %v5952_v24, %v5950_v14 }
 0x666   : > { %v19941_v23 = vadd.f32 %v5734_v62, %v27513_v12  ;;  %v5736_v29 = vpop.f32.mrb[58].mxu1  ;;  %v5991_v45 = vpack.c.bf16 %v5953_v47, %v5951_v50  ;;  %v27522_v50 = vld [vmem:[#allocation96_spill] sm:$0xff] }
 0x667   : > { %v5890_v22 = vadd.f32 %v19940_v46, %v24577_v60  ;;  %v19942_v15 = vadd.f32 %v5736_v29, %v27514_v39  ;;  %v5738_v31 = vpop.f32.mrb[59].mxu1  ;;  %v27523_v46 = vld [vmem:[#allocation97_spill] sm:$0xff] }
 0x668   : > { %v5891_v32 = vadd.f32 %v19941_v23, %v24582_v40  ;;  %v19943_v20 = vadd.f32 %v5738_v31, %v27515_v6  ;;  %6343 = vmatprep.mubr.bf16.mxu0 %v5991_v45  ;;  %v21936_v39 = vld [vmem:[%s22657_s9 + $0x134] sm:$0xff]  }
 0x669   : > { %v5892_v19 = vadd.f32 %v19942_v15, %v24577_v60  ;;  %6344 = vmatmul.mubr.bf16.gmra.mrb[180].mxu0 %v5990_v57  ;;  %19348 = vmatmul.mubr.msk.bf16.gmra.mrb[100].mxu1 %vm653_vm4, %v21924_v38  ;;  %v5954_v4 = vmax.f32 %v5890_v22, 0.0  ;;  %v21937_v31 = vld [vmem:[%s22657_s9 + $0x150] sm:$0xff]  }
 0x66a   : > { %v5893_v51 = vadd.f32 %v19943_v20, %v24582_v40  ;;  %12948 = vmatprep.mubr.bf16.mxu1 %v27418_v16  ;;  %v5955_v3 = vmax.f32 %v5891_v32, 0.0  ;;  %v7267_v32 = vsel %vm751_vm0, %v24701_v37, 0  ;;  %v27525_v20 = vld [vmem:[#allocation41_spill] sm:$0xff]  ;;  %v27528_v37 = vld [vmem:[#allocation46_spill] sm:$0xff] }
 0x66b   : > { %v5956_v26 = vmax.f32 %v5892_v19, 0.0  ;;  %v27526_v19 = vld [vmem:[#allocation44_spill] sm:$0xff] }
 0x66c   : > { %v5957_v0 = vmax.f32 %v5893_v51, 0.0  ;;  %v5742_v2 = vpop.f32.mrb[60].mxu1  ;;  %v21938_v51 = vld [vmem:[%s22657_s9 + $0x16c] sm:$0xff]  }
 0x66d   : > { %v19944_v53 = vadd.f32 %v5742_v2, %v27516_v63  ;;  %v5744_v54 = vpop.f32.mrb[61].mxu1  ;;  %v5992_v5 = vpack.c.bf16 %v5956_v26, %v5954_v4  ;;  %v27527_v4 = vld [vmem:[#allocation43_spill] sm:$0xff]  ;;  %v27530_v2 = vld [vmem:[#allocation48_spill] sm:$0xff] }
 0x66e   : > { %v19945_v18 = vadd.f32 %v5744_v54, %v27517_v13  ;;  %v5746_v33 = vpop.f32.mrb[62].mxu1  ;;  %v5993_v41 = vpack.c.bf16 %v5957_v0, %v5955_v3  ;;  %v21939_v26 = vld [vmem:[%s22657_s9 + $0x188] sm:$0xff]   ;;  %v13020_v3 = vld [vmem:[%s22657_s9 + $0x14] sm:$0xf]  ;;  %v13021_v54 = vld [vmem:[%s22657_s9 + $0x18] sm:$0x3] }
 0x66f   : > { %v5894_v55 = vadd.f32 %v19944_v53, %v24577_v60  ;;  %v19946_v42 = vadd.f32 %v5746_v33, %v27518_v58  ;;  %v5748_v49 = vpop.f32.mrb[63].mxu1  ;;  %v27529_v0 = vld [vmem:[#allocation45_spill] sm:$0xff]  ;;  %v13117_v63 = vrot.slane %v13020_v3, 6  ;;  %v13019_v53 = vld [vmem:[%s22657_s9 + $0x10] sm:$0xc] }
 0x670   : > { %v5895_v52 = vadd.f32 %v19945_v18, %v24582_v40  ;;  %v19947_v7 = vadd.f32 %v5748_v49, %v27519_v61  ;;  %6353 = vmatprep.mubr.bf16.mxu0 %v5993_v41  ;;  %v13120_v18 = vrot.slane %v13021_v54, 6  ;;  %v13023_v33 = vld [vmem:[%s22657_s9 + $0x30] sm:$0xf]  ;;  %v27531_v41 = vld [vmem:[#allocation47_spill] sm:$0xff] }
 0x671   : > { %v5896_v43 = vadd.f32 %v19946_v42, %v24577_v60  ;;  %6354 = vmatmul.mubr.bf16.gmra.mrb[184].mxu0 %v5992_v5  ;;  %19349 = vmatmul.mubr.msk.bf16.gmra.mrb[104].mxu1 %vm653_vm4, %v21928_v30  ;;  %v5958_v36 = vmax.f32 %v5894_v55, 0.0  ;;  %v21940_v5 = vld [vmem:[%s22657_s9 + $0x1a4] sm:$0xff]   ;;  %v19356_v30 = vrot.slane %v13019_v53, 10  ;;  %v13119_v13 = vrot.slane %v13117_v63, 4 }
 0x672   : > { %v5897_v56 = vadd.f32 %v19947_v7, %v24582_v40  ;;  %12958 = vmatprep.mubr.bf16.mxu1 %v27418_v16  ;;  %v5959_v21 = vmax.f32 %v5895_v52, 0.0  ;;  %v19454_v55 = vld.sshfl [vmem:[#allocation5 + $0x58] sm:$0x33 pattern:$0x76325410]  ;;  %v27532_v58 = vld [vmem:[#allocation50_spill] sm:$0xff] }
 0x673   : > { %v5960_v28 = vmax.f32 %v5896_v43, 0.0  ;;  %v13118_v49 = vsel %vm23185_vm6, %v19356_v30, %v13117_v63  ;;  %v13121_v52 = vsel %vm23185_vm6, %v13119_v13, %v13120_v18  ;;  %v13124_v61 = vrot.slane %v13023_v33, 6  ;;  %v13022_v43 = vld [vmem:[%s22657_s9 + $0x2c] sm:$0xc]  ;;  %v27541_v63 = vld [vmem:[#allocation58_spill] sm:$0xff] }
 0x674   : > { %v5961_v59 = vmax.f32 %v5897_v56, 0.0  ;;  %v5752_v48 = vpop.f32.mrb[64].mxu1  ;;  %v13719_v7 = vcombine.high %v19454_v55, %v19454_v55  ;;  %v13024_v56 = vld [vmem:[%s22657_s9 + $0x34] sm:$0x3]  ;;  %v13034_v30 = vld [vmem:[%s22657_s9 + $0x9c] sm:$0xc] }
 0x675   : > { %v19948_v8 = vadd.f32 %v5752_v48, %v27520_v34  ;;  %v5754_v27 = vpop.f32.mrb[65].mxu1  ;;  %v5994_v1 = vpack.c.bf16 %v5960_v28, %v5958_v36  ;;  %v19372_v36 = vcombine.low %v13118_v49, %v13121_v52  ;;  %v19357_v28 = vrot.slane %v13022_v43, 10  ;;  %v13026_v48 = vld [vmem:[%s22657_s9 + $0x4c] sm:$0xf]  ;;  %v13036_v13 = vld [vmem:[%s22657_s9 + $0xa4] sm:$0x3] }
 0x676   : > { %v19949_v10 = vadd.f32 %v5754_v27, %v27521_v11  ;;  %v5756_v9 = vpop.f32.mrb[66].mxu1  ;;  %v5995_v14 = vpack.c.bf16 %v5961_v59, %v5959_v21  ;;  %19455 = vmatprep.subr.msk.bf16.mxu1 %vm751_vm0, %v13719_v7  ;;  %v13126_v21 = vrot.slane %v13124_v61, 4  ;;  %v13127_v59 = vrot.slane %v13024_v56, 6  ;;  %v27535_v27 = vld [vmem:[#allocation52_spill] sm:$0xff]  ;;  %v27542_v49 = vld [vmem:[#allocation57_spill] sm:$0xff] }
 0x677   : > { %v5898_v24 = vadd.f32 %v19948_v8, %v24577_v60  ;;  %v19950_v47 = vadd.f32 %v5756_v9, %v27522_v50  ;;  %v5758_v25 = vpop.f32.mrb[67].mxu1  ;;  %v13769_v34 = vsel %vm751_vm0, %v19454_v55, 0  ;;  %v27534_v8 = vld [vmem:[#allocation49_spill] sm:$0xff]  ;;  %v13131_v11 = vrot.slane %v13026_v48, 6  ;;  %v13027_v9 = vld [vmem:[%s22657_s9 + $0x50] sm:$0x3] }
 0x678   : > { %v5899_v17 = vadd.f32 %v19949_v10, %v24582_v40  ;;  %v19951_v62 = vadd.f32 %v5758_v25, %v27523_v46  ;;  %6363 = vmatprep.mubr.bf16.mxu0 %v5995_v14  ;;  %v13025_v10 = vld [vmem:[%s22657_s9 + $0x48] sm:$0xc]  ;;  %v27537_v46 = vld [vmem:[#allocation54_spill] sm:$0xff]  ;;  %v19361_v33 = vrot.slane %v13034_v30, 10  ;;  %v13155_v55 = vrot.slane %v13036_v13, 6  ;;  %v27543_v52 = vld [vmem:[#allocation60_spill] sm:$0xff] }
 0x679   : > { %v5900_v57 = vadd.f32 %v19950_v47, %v24577_v60  ;;  %6364 = vmatmul.mubr.bf16.gmra.mrb[188].mxu0 %v5994_v1  ;;  %19350 = vmatmul.mubr.msk.bf16.gmra.mrb[108].mxu1 %vm653_vm4, %v21932_v44  ;;  %v5962_v12 = vmax.f32 %v5898_v24, 0.0  ;;  %v27524_v60 = vld [vmem:[#allocation42_spill] sm:$0xff]  ;;  %v13125_v1 = vsel %vm23185_vm6, %v19357_v28, %v13124_v61  ;;  %v13128_v44 = vsel %vm23185_vm6, %v13126_v21, %v13127_v59  ;;  %v13029_v25 = vld [vmem:[%s22657_s9 + $0x68] sm:$0xf]  ;;  %v13037_v56 = vld [vmem:[%s22657_s9 + $0xb8] sm:$0xc] }
 0x67a   : > { %v5901_v38 = vadd.f32 %v19951_v62, %v24582_v40  ;;  %12968 = vmatprep.mubr.bf16.mxu1 %v27418_v16  ;;  %v5963_v29 = vmax.f32 %v5899_v17, 0.0  ;;  %v24791_v40 = vld.sshfl [vmem:[#allocation5 + $0x28] sm:$0x33 pattern:$0x76325410]  ;;  %v19373_v14 = vcombine.low %v13125_v1, %v13128_v44  ;;  %v19358_v24 = vrot.slane %v13025_v10, 10 }
 0x67b   : > { %v5964_v23 = vmax.f32 %v5900_v57, 0.0  ;;  %v7521_v6 = vcombine.high %v24791_v40, %v24791_v40  ;;  %v13133_v50 = vrot.slane %v13131_v11, 4  ;;  %v13134_v47 = vrot.slane %v13027_v9, 6  ;;  %v27536_v17 = vld [vmem:[#allocation51_spill] sm:$0xff]  ;;  %v13040_v10 = vld [vmem:[%s22657_s9 + $0xd4] sm:$0xc] }
 0x67c   : > { %v5965_v45 = vmax.f32 %v5901_v38, 0.0  ;;  %v13132_v62 = vsel %vm23185_vm6, %v19358_v24, %v13131_v11  ;;  %v13138_v38 = vrot.slane %v13029_v25, 6  ;;  %v19362_v21 = vrot.slane %v13037_v56, 10  ;;  %v13042_v9 = vld [vmem:[%s22657_s9 + $0xdc] sm:$0x3] }
 0x67d   : > { %v5996_v22 = vpack.c.bf16 %v5964_v23, %v5962_v12  ;;  %v13135_v57 = vsel %vm23185_vm6, %v13133_v50, %v13134_v47  ;;  %v13028_v12 = vld [vmem:[%s22657_s9 + $0x64] sm:$0xc]  ;;  %v13030_v23 = vld [vmem:[%s22657_s9 + $0x6c] sm:$0x3]  ;;  %v19363_v24 = vrot.slane %v13040_v10, 10  ;;  %v13169_v47 = vrot.slane %v13042_v9, 6 }
 0x67e   : > { %v5997_v15 = vpack.c.bf16 %v5965_v45, %v5963_v29  ;;  %v19374_v29 = vcombine.low %v13132_v62, %v13135_v57  ;;  %v19359_v45 = vrot.slane %v13028_v12, 10  ;;  %v13044_v25 = vld [vmem:[%s22657_s9 + $0xf4] sm:$0xf]  ;;  %v13043_v12 = vld [vmem:[%s22657_s9 + $0xf0] sm:$0xc] }
 0x67f   : > { %v13049_v30 = vld [vmem:[%s22657_s9 + $0x128] sm:$0xc]  ;;  %v13051_v13 = vld [vmem:[%s22657_s9 + $0x130] sm:$0x3]  ;;  %v13052_v56 = vld [vmem:[%s22657_s9 + $0x144] sm:$0xc] }
 0x680   : > { %6373 = vmatprep.mubr.bf16.mxu0 %v5997_v15  ;;  %v13032_v15 = vld [vmem:[%s22657_s9 + $0x84] sm:$0xf]  ;;  %v18502_v9 = vld [vmem:[%s22657_s9 + $0xb0] sm:$0xe] }
 0x681   : > { %6374 = vmatmul.mubr.bf16.gmra.mrb[192].mxu0 %v5996_v22  ;;  %19351 = vmatmul.mubr.msk.bf16.gmra.mrb[112].mxu1 %vm653_vm4, %v21936_v39  ;;  %v13140_v22 = vrot.slane %v13138_v38, 4  ;;  %v13141_v39 = vrot.slane %v13030_v23, 6  ;;  %v13045_v23 = vld [vmem:[%s22657_s9 + $0xf8] sm:$0x3] }
 0x682   : > { %6576 = vmatprep.mubr.bf16.mxu0 %v27524_v60  ;;  %12978 = vmatprep.mubr.bf16.mxu1 %v27418_v16  ;;  %v27538_v60 = vld [vmem:[#allocation53_spill] sm:$0xff] }
 0x689   : > { %6577 = vmatmul.mubr.bf16.vlgmr.msra.gmra.mrb[132].mxu0 %v27525_v20  ;;  %19352 = vmatmul.mubr.msk.bf16.gmra.mrb[116].mxu1 %vm653_vm4, %v21937_v31  ;;  %v27539_v31 = vld [vmem:[#allocation56_spill] sm:$0xff]  ;;  %v13145_v20 = vrot.slane %v13032_v15, 6 }
 0x68a   : > { %7273 = vmatpush1.bf16.msra.mxu0 %v7267_v32  ;;  %6586 = vmatprep.mubr.bf16.mxu0 %v27526_v19  ;;  %v13139_v32 = vsel %vm23185_vm6, %v19359_v45, %v13138_v38  ;;  %v13031_v19 = vld [vmem:[%s22657_s9 + $0x80] sm:$0xc]  ;;  %v13173_v38 = vrot.slane %v13044_v25, 6  ;;  %v19364_v45 = vrot.slane %v13043_v12, 10  ;;  %v13047_v15 = vld [vmem:[%s22657_s9 + $0x110] sm:$0xf] }
 0x68b   : > { %12988 = vmatprep.mubr.bf16.mxu1 %v27418_v16  ;;  %18617 = vmatprep.subr.msk.bf16.mxu0 %vm751_vm0, %v7521_v6  ;;  %v13142_v6 = vsel %vm23185_vm6, %v13140_v22, %v13141_v39  ;;  %v13176_v39 = vrot.slane %v13045_v23, 6  ;;  %v18506_v23 = vld [vmem:[%s22657_s9 + $0xd0] sm:$0xf] }
 0x68c   : > { %v13175_v22 = vrot.slane %v13173_v38, 4 }
 0x691   : > { %6587 = vmatmul.mubr.bf16.gmra.mrb[136].mxu0 %v27527_v4  ;;  %19353 = vmatmul.mubr.msk.bf16.gmra.mrb[120].mxu1 %vm653_vm4, %v21938_v51  ;;  %v13033_v51 = vld [vmem:[%s22657_s9 + $0x88] sm:$0x3]  ;;  %v19375_v4 = vcombine.low %v13139_v32, %v13142_v6  ;;  %v13174_v32 = vsel %vm23185_vm6, %v19364_v45, %v13173_v38  ;;  %v13177_v6 = vsel %vm23185_vm6, %v13175_v22, %v13176_v39 }
 0x692   : > { %6596 = vmatprep.mubr.bf16.mxu0 %v27528_v37  ;;  %12998 = vmatprep.mubr.bf16.mxu1 %v27418_v16  ;;  %v19360_v37 = vrot.slane %v13031_v19, 10  ;;  %v13148_v3 = vrot.slane %v13033_v51, 6  ;;  %v13046_v19 = vld [vmem:[%s22657_s9 + $0x10c] sm:$0xc]  ;;  %v13048_v51 = vld [vmem:[%s22657_s9 + $0x114] sm:$0x3] }
 0x693   : > { %v27556_v45 = vld [vmem:[#allocation71_spill] sm:$0xff] }
 0x694   : > { %v13146_v53 = vsel %vm23185_vm6, %v19360_v37, %v13145_v20  ;;  %v19365_v37 = vrot.slane %v13046_v19, 10  ;;  %v13058_v19 = vld [vmem:[%s22657_s9 + $0x17c] sm:$0xc] }
 0x699   : > { %6597 = vmatmul.mubr.bf16.gmra.mrb[140].mxu0 %v27529_v0  ;;  %19354 = vmatmul.mubr.msk.bf16.gmra.mrb[124].mxu1 %vm653_vm4, %v21939_v26  ;;  %v13147_v26 = vrot.slane %v13145_v20, 4  ;;  %v13035_v0 = vld [vmem:[%s22657_s9 + $0xa0] sm:$0xf]  ;;  %v13180_v20 = vrot.slane %v13047_v15, 6  ;;  %v7056_v15 = vrot.slane %v18506_v23, 5 }
 0x69a   : > { %6606 = vmatprep.mubr.bf16.mxu0 %v27530_v2  ;;  %13008 = vmatprep.mubr.bf16.mxu1 %v27418_v16  ;;  %v27540_v2 = vld [vmem:[#allocation55_spill] sm:$0xff] }
 0x69b   : > { %v13149_v54 = vsel %vm23185_vm6, %v13147_v26, %v13148_v3  ;;  %v13182_v26 = vrot.slane %v13180_v20, 4  ;;  %v13183_v3 = vrot.slane %v13048_v51, 6  ;;  %v13060_v51 = vld [vmem:[%s22657_s9 + $0x184] sm:$0x3] }
 0x69c   : > { %v19376_v18 = vcombine.low %v13146_v53, %v13149_v54  ;;  %v13181_v53 = vsel %vm23185_vm6, %v19365_v37, %v13180_v20  ;;  %v24972_v37 = vld.sshfl [vmem:[#allocation5 + $0x30] sm:$0x33 pattern:$0x76325410] }
 0x69d   : > { %v13184_v54 = vsel %vm23185_vm6, %v13182_v26, %v13183_v3 }
 0x6a1   : > { %6607 = vmatmul.mubr.bf16.gmra.mrb[144].mxu0 %v27531_v41  ;;  %19355 = vmatmul.mubr.msk.bf16.gmra.mrb[128].mxu1 %vm653_vm4, %v21940_v5  ;;  %v13152_v5 = vrot.slane %v13035_v0, 6  ;;  %v13050_v0 = vld [vmem:[%s22657_s9 + $0x12c] sm:$0xf] }
 0x6a2   : > { %6616 = vmatprep.mubr.bf16.mxu0 %v27532_v58  ;;  %13372 = vmatprep.mubr.bf16.mxu1 %v27418_v16  ;;  %v13038_v58 = vld [vmem:[%s22657_s9 + $0xbc] sm:$0xf] }
 0x6a3   : > { %v13154_v41 = vrot.slane %v13152_v5, 4  ;;  %v13153_v61 = vsel %vm23185_vm6, %v19361_v33, %v13152_v5  ;;  %v13159_v43 = vrot.slane %v13038_v58, 6  ;;  %v13187_v5 = vrot.slane %v13050_v0, 6  ;;  %v13053_v58 = vld [vmem:[%s22657_s9 + $0x148] sm:$0xf] }
 0x6a4   : > { %v19366_v33 = vrot.slane %v13049_v30, 10  ;;  %v7058_v0 = vrot.slane %v7056_v15, 4  ;;  %v7571_v30 = vsel %vm751_vm0, %v24791_v40, 0 }
 0x6a5   : > { %v13156_v7 = vsel %vm23185_vm6, %v13154_v41, %v13155_v55  ;;  %v13161_v59 = vrot.slane %v13159_v43, 4  ;;  %v13160_v1 = vsel %vm23185_vm6, %v19362_v21, %v13159_v43  ;;  %v13189_v41 = vrot.slane %v13187_v5, 4 }
 0x6a6   : > { %v19377_v28 = vcombine.low %v13153_v61, %v13156_v7  ;;  %v13190_v55 = vrot.slane %v13051_v13, 6  ;;  %v13188_v61 = vsel %vm23185_vm6, %v19366_v33, %v13187_v5  ;;  %v13194_v43 = vrot.slane %v13053_v58, 6  ;;  %v18509_v5 = vld [vmem:[%s22657_s9 + $0xec] sm:$0xf]  ;;  %v13062_v13 = vld [vmem:[%s22657_s9 + $0x19c] sm:$0xf] }
 0x6a7   : > { %v19367_v21 = vrot.slane %v13052_v56, 10 }
 0x6a8   : > { %v13191_v7 = vsel %vm23185_vm6, %v13189_v41, %v13190_v55  ;;  %v7063_v55 = vrot.slane %v18509_v5, 5 }
 0x6a9   : > { %6617 = vmatmul.mubr.bf16.gmra.mrb[148].mxu0 %v27534_v8  ;;  %19390 = vmatmul.mubr.msk.bf16.vlgmr.msra.gmra.mrb[68].mxu1 %vm653_vm4, %v19372_v36  ;;  %v13039_v36 = vld [vmem:[%s22657_s9 + $0xc0] sm:$0x3]  ;;  %v27544_v8 = vld [vmem:[#allocation59_spill] sm:$0xff] }
 0x6aa   : > { %6626 = vmatprep.mubr.bf16.mxu0 %v27535_v27  ;;  %13382 = vmatprep.mubr.bf16.mxu1 %v27418_v16  ;;  %v13162_v48 = vrot.slane %v13039_v36, 6  ;;  %v27545_v27 = vld [vmem:[#allocation62_spill] sm:$0xff]  ;;  %v13054_v36 = vld [vmem:[%s22657_s9 + $0x14c] sm:$0x3] }
 0x6ab   : > { %13775 = vmatpush1.bf16.msra.mxu1 %v13769_v34  ;;  %v13041_v34 = vld [vmem:[%s22657_s9 + $0xd8] sm:$0xf] }
 0x6ac   : > { %v13163_v44 = vsel %vm23185_vm6, %v13161_v59, %v13162_v48  ;;  %v13166_v11 = vrot.slane %v13041_v34, 6  ;;  %v13196_v59 = vrot.slane %v13194_v43, 4  ;;  %v13197_v48 = vrot.slane %v13054_v36, 6  ;;  %v18503_v34 = vld [vmem:[%s22657_s9 + $0xb4] sm:$0xf] }
 0x6ae   : > { %v13168_v50 = vrot.slane %v13166_v11, 4  ;;  %v13167_v62 = vsel %vm23185_vm6, %v19363_v24, %v13166_v11  ;;  %v13195_v11 = vsel %vm23185_vm6, %v19367_v21, %v13194_v43  ;;  %v13198_v10 = vsel %vm23185_vm6, %v13196_v59, %v13197_v48  ;;  %v13063_v43 = vld [vmem:[%s22657_s9 + $0x1a0] sm:$0x3] }
 0x6af   : > { %v19383_v25 = vcombine.low %v13195_v11, %v13198_v10  ;;  %v7065_v21 = vrot.slane %v7063_v55, 4 }
 0x6b0   : > { %v13170_v57 = vsel %vm23185_vm6, %v13168_v50, %v13169_v47  ;;  %v13055_v50 = vld [vmem:[%s22657_s9 + $0x160] sm:$0xc]  ;;  %v13057_v47 = vld [vmem:[%s22657_s9 + $0x168] sm:$0x3] }
 0x6b1   : > { %6627 = vmatmul.mubr.bf16.gmra.mrb[152].mxu0 %v27536_v17  ;;  %19391 = vmatmul.mubr.msk.bf16.gmra.mrb[72].mxu1 %vm653_vm4, %v19373_v14  ;;  %v19378_v14 = vcombine.low %v13160_v1, %v13163_v44  ;;  %v27546_v17 = vld [vmem:[#allocation61_spill] sm:$0xff]  ;;  %v7049_v1 = vrot.slane %v18503_v34, 5  ;;  %v27555_v44 = vld [vmem:[#allocation72_spill] sm:$0xff]  ;;  %v13204_v12 = vrot.slane %v13057_v47, 6 }
 0x6b2   : > { %6636 = vmatprep.mubr.bf16.mxu0 %v27537_v46  ;;  %13392 = vmatprep.mubr.bf16.mxu1 %v27418_v16  ;;  %v27547_v46 = vld [vmem:[#allocation64_spill] sm:$0xff] }
 0x6b9   : > { %6637 = vmatmul.mubr.bf16.gmra.mrb[156].mxu0 %v27538_v60  ;;  %19392 = vmatmul.mubr.msk.bf16.gmra.mrb[76].mxu1 %vm653_vm4, %v19374_v29  ;;  %v19379_v29 = vcombine.low %v13167_v62, %v13170_v57  ;;  %v27548_v60 = vld [vmem:[#allocation63_spill] sm:$0xff]  ;;  %v19368_v57 = vrot.slane %v13055_v50, 10 }
 0x6ba   : > { %6646 = vmatprep.mubr.bf16.mxu0 %v27539_v31  ;;  %13402 = vmatprep.mubr.bf16.mxu1 %v27418_v16  ;;  %v27549_v31 = vld [vmem:[#allocation66_spill] sm:$0xff] }
 0x6c1   : > { %6647 = vmatmul.mubr.bf16.gmra.mrb[160].mxu0 %v27540_v2  ;;  %19393 = vmatmul.mubr.msk.bf16.gmra.mrb[80].mxu1 %vm653_vm4, %v19375_v4  ;;  %v19380_v4 = vcombine.low %v13174_v32, %v13177_v6  ;;  %v27550_v2 = vld [vmem:[#allocation65_spill] sm:$0xff]  ;;  %v18507_v6 = vld [vmem:[%s22657_s9 + $0xd4] sm:$0x1] }
 0x6c2   : > { %6656 = vmatprep.mubr.bf16.mxu0 %v27541_v63  ;;  %13412 = vmatprep.mubr.bf16.mxu1 %v27418_v16  ;;  %v27551_v63 = vld [vmem:[#allocation68_spill] sm:$0xff]  ;;  %v18505_v32 = vld [vmem:[%s22657_s9 + $0xcc] sm:$0xe] }
 0x6c3   : > { %v18551_v3 = vrot.slane %v18505_v32, 9 }
 0x6c5   : > { %v7057_v33 = vsel %vm22828_vm3, %v18551_v3, %v7056_v15 }
 0x6c9   : > { %6657 = vmatmul.mubr.bf16.gmra.mrb[164].mxu0 %v27542_v49  ;;  %19394 = vmatmul.mubr.msk.bf16.gmra.mrb[84].mxu1 %vm653_vm4, %v19376_v18  ;;  %v19381_v18 = vcombine.low %v13181_v53, %v13184_v54  ;;  %v27552_v49 = vld [vmem:[#allocation67_spill] sm:$0xff]  ;;  %v13211_v54 = vrot.slane %v13060_v51, 6 }
 0x6ca   : > { %6666 = vmatprep.mubr.bf16.mxu0 %v27543_v52  ;;  %13422 = vmatprep.mubr.bf16.mxu1 %v27418_v16  ;;  %v27553_v52 = vld [vmem:[#allocation70_spill] sm:$0xff] }
 0x6d1   : > { %6667 = vmatmul.mubr.bf16.gmra.mrb[168].mxu0 %v27544_v8  ;;  %19395 = vmatmul.mubr.msk.bf16.gmra.mrb[88].mxu1 %vm653_vm4, %v19377_v28  ;;  %v19382_v28 = vcombine.low %v13188_v61, %v13191_v7  ;;  %v13056_v8 = vld [vmem:[%s22657_s9 + $0x164] sm:$0xf]  ;;  %v13215_v61 = vrot.slane %v13062_v13, 6  ;;  %v13061_v7 = vld [vmem:[%s22657_s9 + $0x198] sm:$0xc] }
 0x6d2   : > { %6676 = vmatprep.mubr.bf16.mxu0 %v27545_v27  ;;  %13432 = vmatprep.mubr.bf16.mxu1 %v27418_v16  ;;  %v27554_v27 = vld [vmem:[#allocation69_spill] sm:$0xff]  ;;  %v13201_v24 = vrot.slane %v13056_v8, 6  ;;  %v19370_v48 = vrot.slane %v13061_v7, 10  ;;  %v13218_v8 = vrot.slane %v13063_v43, 6  ;;  %v18519_v13 = vld [vmem:[%s22657_s9 + $0x144] sm:$0x1] }
 0x6d3   : > { %v13217_v34 = vrot.slane %v13215_v61, 4  ;;  %v18520_v43 = vld [vmem:[%s22657_s9 + $0x158] sm:$0xe] }
 0x6d4   : > { %v13203_v38 = vrot.slane %v13201_v24, 4  ;;  %v13216_v10 = vsel %vm23185_vm6, %v19370_v48, %v13215_v61 }
 0x6d9   : > { %6677 = vmatmul.mubr.bf16.gmra.mrb[172].mxu0 %v27546_v17  ;;  %19396 = vmatmul.mubr.msk.bf16.gmra.mrb[92].mxu1 %vm653_vm4, %v19378_v14  ;;  %v18504_v14 = vld [vmem:[%s22657_s9 + $0xb8] sm:$0x1]  ;;  %v18550_v17 = vrot.slane %v18502_v9, 9  ;;  %v13219_v9 = vsel %vm23185_vm6, %v13217_v34, %v13218_v8 }
 0x6da   : > { %6686 = vmatprep.mubr.bf16.mxu0 %v27547_v46  ;;  %13442 = vmatprep.mubr.bf16.mxu1 %v27418_v16  ;;  %v7051_v46 = vrot.slane %v7049_v1, 4  ;;  %v7052_v62 = vrot.slane %v18504_v14, 5  ;;  %v18511_v14 = vld [vmem:[%s22657_s9 + $0x104] sm:$0xe]  ;;  %v18524_v34 = vld [vmem:[%s22657_s9 + $0x178] sm:$0xf] }
 0x6db   : > { %v7050_v22 = vsel %vm22828_vm3, %v18550_v17, %v7049_v1  ;;  %v13065_v1 = vld [vmem:[%s22657_s9 + $0x1b8] sm:$0xf]  ;;  %v13066_v17 = vld [vmem:[%s22657_s9 + $0x1bc] sm:$0x3] }
 0x6dc   : > { %v7053_v39 = vsel %vm22828_vm3, %v7051_v46, %v7052_v62  ;;  %v13222_v47 = vrot.slane %v13065_v1, 6  ;;  %v19386_v62 = vcombine.low %v13216_v10, %v13219_v9  ;;  %v7098_v1 = vrot.slane %v18524_v34, 5  ;;  %v21943_v9 = vld [vmem:[%s22657_s9 + $0x230] sm:$0xff]   ;;  %v18540_v34 = vld [vmem:[%s22657_s9 + $0x208] sm:$0x1] }
 0x6e1   : > { %6687 = vmatmul.mubr.bf16.gmra.mrb[176].mxu0 %v27548_v60  ;;  %19397 = vmatmul.mubr.msk.bf16.gmra.mrb[96].mxu1 %vm653_vm4, %v19379_v29  ;;  %v13059_v29 = vld [vmem:[%s22657_s9 + $0x180] sm:$0xf]  ;;  %v13202_v60 = vsel %vm23185_vm6, %v19368_v57, %v13201_v24  ;;  %v18513_v24 = vld [vmem:[%s22657_s9 + $0x10c] sm:$0x1]  ;;  %v18553_v57 = vrot.slane %v18511_v14, 9 }
 0x6e2   : > { %6696 = vmatprep.mubr.bf16.mxu0 %v27549_v31  ;;  %13452 = vmatprep.mubr.bf16.mxu1 %v27418_v16  ;;  %v13205_v31 = vsel %vm23185_vm6, %v13203_v38, %v13204_v12  ;;  %v13208_v20 = vrot.slane %v13059_v29, 6  ;;  %v7073_v38 = vrot.slane %v18513_v24, 5  ;;  %v13224_v29 = vrot.slane %v13222_v47, 4 }
 0x6e3   : > { %v19384_v26 = vcombine.low %v13202_v60, %v13205_v31  ;;  %v7100_v24 = vrot.slane %v7098_v1, 4 }
 0x6e4   : > { %v13210_v53 = vrot.slane %v13208_v20, 4 }
 0x6e6   : > { %v13212_v58 = vsel %vm23185_vm6, %v13210_v53, %v13211_v54 }
 0x6e9   : > { %6697 = vmatmul.mubr.bf16.gmra.mrb[180].mxu0 %v27550_v2  ;;  %19398 = vmatmul.mubr.msk.bf16.gmra.mrb[100].mxu1 %vm653_vm4, %v19380_v4  ;;  %v18566_v4 = vcombine.low %v7050_v22, %v7053_v39  ;;  %v7059_v2 = vrot.slane %v18507_v6, 5  ;;  %v18515_v22 = vld [vmem:[%s22657_s9 + $0x124] sm:$0xf]  ;;  %v18514_v6 = vld [vmem:[%s22657_s9 + $0x120] sm:$0xe] }
 0x6ea   : > { %6706 = vmatprep.mubr.bf16.mxu0 %v27551_v63  ;;  %13462 = vmatprep.mubr.bf16.mxu1 %v27418_v16  ;;  %v19369_v63 = vrot.slane %v13058_v19, 10  ;;  %v7077_v32 = vrot.slane %v18515_v22, 5  ;;  %v18530_v22 = vld [vmem:[%s22657_s9 + $0x1b0] sm:$0xf] }
 0x6eb   : > { %v7060_v41 = vsel %vm22828_vm3, %v7058_v0, %v7059_v2  ;;  %v18518_v0 = vld [vmem:[%s22657_s9 + $0x140] sm:$0xf]  ;;  %v19472_v2 = vld.sshfl [vmem:[#allocation5 + $0x5c] sm:$0x33 pattern:$0x76325410] }
 0x6ec   : > { %v13209_v40 = vsel %vm23185_vm6, %v19369_v63, %v13208_v20  ;;  %v18567_v56 = vcombine.low %v7057_v33, %v7060_v41  ;;  %v18516_v20 = vld [vmem:[%s22657_s9 + $0x128] sm:$0x1]  ;;  %v7084_v54 = vrot.slane %v18518_v0, 5  ;;  %v14041_v5 = vcombine.high %v19472_v2, %v19472_v2  ;;  %v21941_v33 = vld [vmem:[%s22657_s9 + $0x1f8] sm:$0xff]  }
 0x6ed   : > { %v19385_v36 = vcombine.low %v13209_v40, %v13212_v58  ;;  %v7080_v3 = vrot.slane %v18516_v20, 5  ;;  %v7087_v40 = vrot.slane %v18519_v13, 5  ;;  %v18521_v58 = vld [vmem:[%s22657_s9 + $0x15c] sm:$0xf]  ;;  %v21945_v20 = vld [vmem:[%s22657_s9 + $0x268] sm:$0xff]  }
 0x6ee   : > { %19473 = vmatprep.subr.msk.bf16.mxu1 %vm751_vm0, %v14041_v5  ;;  %v7091_v7 = vrot.slane %v18521_v58, 5  ;;  %v21946_v5 = vld [vmem:[%s22657_s9 + $0x284] sm:$0xff]  }
 0x6ef   : > { %v18535_v58 = vld [vmem:[%s22657_s9 + $0x1e4] sm:$0xe] }
 0x6f1   : > { %6707 = vmatmul.mubr.bf16.gmra.mrb[184].mxu0 %v27552_v49  ;;  %19399 = vmatmul.mubr.msk.bf16.gmra.mrb[104].mxu1 %vm653_vm4, %v19381_v18  ;;  %v8035_v18 = vcombine.high %v24972_v37, %v24972_v37  ;;  %v18508_v49 = vld [vmem:[%s22657_s9 + $0xe8] sm:$0xe] }
 0x6f2   : > { %6716 = vmatprep.mubr.bf16.mxu0 %v27553_v52  ;;  %13472 = vmatprep.mubr.bf16.mxu1 %v27418_v16  ;;  %v18510_v52 = vld [vmem:[%s22657_s9 + $0xf0] sm:$0x1] }
 0x6f3   : > { %v7066_v59 = vrot.slane %v18510_v52, 5 }
 0x6f5   : > { %v7067_v11 = vsel %vm22828_vm3, %v7065_v21, %v7066_v59  ;;  %v18556_v21 = vrot.slane %v18520_v43, 9  ;;  %v7093_v59 = vrot.slane %v7091_v7, 4 }
 0x6f7   : > { %v7092_v8 = vsel %vm22828_vm3, %v18556_v21, %v7091_v7  ;;  %v18561_v7 = vrot.slane %v18535_v58, 9 }
 0x6f9   : > { %6717 = vmatmul.mubr.bf16.gmra.mrb[188].mxu0 %v27554_v27  ;;  %19400 = vmatmul.mubr.msk.bf16.gmra.mrb[108].mxu1 %vm653_vm4, %v19382_v28  ;;  %v18552_v28 = vrot.slane %v18508_v49, 9  ;;  %v18512_v27 = vld [vmem:[%s22657_s9 + $0x108] sm:$0xf]  ;;  %v14043_v49 = vsel %vm751_vm0, %v19472_v2, 0 }
 0x6fa   : > { %6726 = vmatprep.mubr.bf16.mxu0 %v27555_v44  ;;  %13482 = vmatprep.mubr.bf16.mxu1 %v27418_v16  ;;  %v7070_v50 = vrot.slane %v18512_v27, 5 }
 0x6fb   : > { %v7064_v44 = vsel %vm22828_vm3, %v18552_v28, %v7063_v55  ;;  %v7086_v55 = vrot.slane %v7084_v54, 4  ;;  %v21942_v28 = vld [vmem:[%s22657_s9 + $0x214] sm:$0xff]  }
 0x6fc   : > { %v18568_v46 = vcombine.low %v7064_v44, %v7067_v11  ;;  %v7072_v12 = vrot.slane %v7070_v50, 4  ;;  %v7071_v39 = vsel %vm22828_vm3, %v18553_v57, %v7070_v50  ;;  %v18523_v44 = vld [vmem:[%s22657_s9 + $0x174] sm:$0xe]  ;;  %v18525_v11 = vld [vmem:[%s22657_s9 + $0x17c] sm:$0x1] }
 0x6fd   : > { %v7088_v61 = vsel %vm22828_vm3, %v7086_v55, %v7087_v40  ;;  %v18557_v14 = vrot.slane %v18523_v44, 9  ;;  %v7101_v50 = vrot.slane %v18525_v11, 5  ;;  %v18528_v57 = vld [vmem:[%s22657_s9 + $0x198] sm:$0x1]  ;;  %v7136_v11 = vrot.slane %v18540_v34, 5 }
 0x6fe   : > { %v7074_v15 = vsel %vm22828_vm3, %v7072_v12, %v7073_v38  ;;  %v21944_v12 = vld [vmem:[%s22657_s9 + $0x24c] sm:$0xff]  }
 0x6ff   : > { %v18569_v19 = vcombine.low %v7071_v39, %v7074_v15 }
 0x701   : > { %6727 = vmatmul.mubr.bf16.gmra.mrb[192].mxu0 %v27556_v45  ;;  %19401 = vmatmul.mubr.msk.bf16.gmra.mrb[112].mxu1 %vm653_vm4, %v19383_v25  ;;  %v13064_v25 = vld [vmem:[%s22657_s9 + $0x1b4] sm:$0xc]  ;;  %v13225_v45 = vrot.slane %v13066_v17, 6  ;;  %v7102_v17 = vsel %vm22828_vm3, %v7100_v24, %v7101_v50  ;;  %v18541_v50 = vld [vmem:[%s22657_s9 + $0x21c] sm:$0xe] }
 0x702   : > { %7304 = vmatprep.mubr.bf16.mxu0 %v27418_v16  ;;  %13492 = vmatprep.mubr.bf16.mxu1 %v27418_v16  ;;  %v19371_v23 = vrot.slane %v13064_v25, 10  ;;  %v7099_v25 = vsel %vm22828_vm3, %v18557_v14, %v7098_v1 }
 0x703   : > { %v13226_v31 = vsel %vm23185_vm6, %v13224_v29, %v13225_v45  ;;  %v18573_v38 = vcombine.low %v7099_v25, %v7102_v17  ;;  %v7108_v45 = vrot.slane %v18528_v57, 5  ;;  %v21949_v17 = vld [vmem:[%s22657_s9 + $0x2d8] sm:$0xff]  }
 0x704   : > { %v13223_v60 = vsel %vm23185_vm6, %v19371_v23, %v13222_v47  ;;  %v18527_v47 = vld [vmem:[%s22657_s9 + $0x194] sm:$0xf] }
 0x705   : > { %v19387_v51 = vcombine.low %v13223_v60, %v13226_v31  ;;  %v7112_v60 = vrot.slane %v18530_v22, 5  ;;  %v18529_v31 = vld [vmem:[%s22657_s9 + $0x1ac] sm:$0xe]  ;;  %v18546_v22 = vld [vmem:[%s22657_s9 + $0x240] sm:$0x1] }
 0x709   : > { %18584 = vmatmul.mubr.msk.bf16.vlgmr.msra.gmra.mrb[196].mxu0 %vm653_vm4, %v18566_v4  ;;  %19402 = vmatmul.mubr.msk.bf16.gmra.mrb[116].mxu1 %vm653_vm4, %v19384_v26  ;;  %v18554_v4 = vrot.slane %v18514_v6, 9  ;;  %v7079_v26 = vrot.slane %v7077_v32, 4 }
 0x70a   : > { %7577 = vmatpush1.bf16.msra.mxu0 %v7571_v30  ;;  %7314 = vmatprep.mubr.bf16.mxu0 %v27418_v16  ;;  %v18517_v30 = vld [vmem:[%s22657_s9 + $0x13c] sm:$0xe] }
 0x70b   : > { %13502 = vmatprep.mubr.bf16.mxu1 %v27418_v16  ;;  %18715 = vmatprep.subr.msk.bf16.mxu0 %vm751_vm0, %v8035_v18  ;;  %v7078_v63 = vsel %vm22828_vm3, %v18554_v4, %v7077_v32  ;;  %v7081_v53 = vsel %vm22828_vm3, %v7079_v26, %v7080_v3  ;;  %v18555_v41 = vrot.slane %v18517_v30, 9  ;;  %v18531_v32 = vld [vmem:[%s22657_s9 + $0x1b4] sm:$0x1]  ;;  %v18533_v26 = vld [vmem:[%s22657_s9 + $0x1cc] sm:$0xf] }
 0x70c   : > { %v18570_v18 = vcombine.low %v7078_v63, %v7081_v53  ;;  %v7115_v4 = vrot.slane %v18531_v32, 5  ;;  %v7119_v2 = vrot.slane %v18533_v26, 5  ;;  %v18532_v63 = vld [vmem:[%s22657_s9 + $0x1c8] sm:$0xe]  ;;  %v18534_v53 = vld [vmem:[%s22657_s9 + $0x1d0] sm:$0x1] }
 0x70d   : > { %v7085_v52 = vsel %vm22828_vm3, %v18555_v41, %v7084_v54  ;;  %v18560_v30 = vrot.slane %v18532_v63, 9  ;;  %v7150_v32 = vrot.slane %v18546_v22, 5  ;;  %v18549_v26 = vld [vmem:[%s22657_s9 + $0x25c] sm:$0x1]  ;;  %v21955_v22 = vld [vmem:[%s22657_s9 + $0x380] sm:$0xff]  }
 0x70e   : > { %v7121_v13 = vrot.slane %v7119_v2, 4 }
 0x70f   : > { %v7120_v41 = vsel %vm22828_vm3, %v18560_v30, %v7119_v2 }
 0x711   : > { %18585 = vmatmul.mubr.msk.bf16.gmra.mrb[200].mxu0 %vm653_vm4, %v18567_v56  ;;  %19403 = vmatmul.mubr.msk.bf16.gmra.mrb[120].mxu1 %vm653_vm4, %v19385_v36  ;;  %v18522_v56 = vld [vmem:[%s22657_s9 + $0x160] sm:$0x1]  ;;  %v18571_v36 = vcombine.low %v7085_v52, %v7088_v61 }
 0x712   : > { %7324 = vmatprep.mubr.bf16.mxu0 %v27418_v16  ;;  %13512 = vmatprep.mubr.bf16.mxu1 %v27418_v16  ;;  %v7094_v48 = vrot.slane %v18522_v56, 5  ;;  %v21947_v61 = vld [vmem:[%s22657_s9 + $0x2a0] sm:$0xff]  }
 0x714   : > { %v7095_v27 = vsel %vm22828_vm3, %v7093_v59, %v7094_v48  ;;  %v18538_v48 = vld [vmem:[%s22657_s9 + $0x200] sm:$0xe] }
 0x715   : > { %v18572_v10 = vcombine.low %v7092_v8, %v7095_v27  ;;  %v21948_v27 = vld [vmem:[%s22657_s9 + $0x2bc] sm:$0xff]   ;;  %v18562_v1 = vrot.slane %v18538_v48, 9  ;;  %v21953_v48 = vld [vmem:[%s22657_s9 + $0x348] sm:$0xff]  }
 0x719   : > { %18586 = vmatmul.mubr.msk.bf16.gmra.mrb[204].mxu0 %vm653_vm4, %v18568_v46  ;;  %19404 = vmatmul.mubr.msk.bf16.gmra.mrb[124].mxu1 %vm653_vm4, %v19386_v62  ;;  %v7105_v46 = vrot.slane %v18527_v47, 5  ;;  %v18526_v62 = vld [vmem:[%s22657_s9 + $0x190] sm:$0xe]  ;;  %v18543_v47 = vld [vmem:[%s22657_s9 + $0x224] sm:$0x1] }
 0x71a   : > { %7334 = vmatprep.mubr.bf16.mxu0 %v27418_v16  ;;  %13522 = vmatprep.mubr.bf16.mxu1 %v27418_v16  ;;  %v18558_v23 = vrot.slane %v18526_v62, 9  ;;  %v7143_v57 = vrot.slane %v18543_v47, 5  ;;  %v21954_v47 = vld [vmem:[%s22657_s9 + $0x364] sm:$0xff]  }
 0x71b   : > { %v7107_v29 = vrot.slane %v7105_v46, 4 }
 0x71c   : > { %v7106_v39 = vsel %vm22828_vm3, %v18558_v23, %v7105_v46  ;;  %v18563_v46 = vrot.slane %v18541_v50, 9 }
 0x71d   : > { %v7109_v15 = vsel %vm22828_vm3, %v7107_v29, %v7108_v45  ;;  %v18544_v45 = vld [vmem:[%s22657_s9 + $0x238] sm:$0xe] }
 0x71e   : > { %v18574_v6 = vcombine.low %v7106_v39, %v7109_v15  ;;  %v21950_v15 = vld [vmem:[%s22657_s9 + $0x2f4] sm:$0xff]  }
 0x721   : > { %18587 = vmatmul.mubr.msk.bf16.gmra.mrb[208].mxu0 %vm653_vm4, %v18569_v19  ;;  %19405 = vmatmul.mubr.msk.bf16.gmra.mrb[128].mxu1 %vm653_vm4, %v19387_v51  ;;  %v18559_v19 = vrot.slane %v18529_v31, 9  ;;  %v7114_v51 = vrot.slane %v7112_v60, 4 }
 0x722   : > { %7344 = vmatprep.mubr.bf16.mxu0 %v27418_v16  ;;  %13806 = vmatprep.mubr.bf16.mxu1 %v27418_v16 }
 0x723   : > { %v7113_v3 = vsel %vm22828_vm3, %v18559_v19, %v7112_v60  ;;  %v7116_v0 = vsel %vm22828_vm3, %v7114_v51, %v7115_v4  ;;  %v18564_v60 = vrot.slane %v18544_v45, 9  ;;  %v18547_v4 = vld [vmem:[%s22657_s9 + $0x254] sm:$0xe] }
 0x724   : > { %v18575_v54 = vcombine.low %v7113_v3, %v7116_v0  ;;  %v21951_v0 = vld [vmem:[%s22657_s9 + $0x310] sm:$0xff]   ;;  %v18565_v2 = vrot.slane %v18547_v4, 9 }
 0x729   : > { %18588 = vmatmul.mubr.msk.bf16.gmra.mrb[212].mxu0 %vm653_vm4, %v18570_v18  ;;  %19456 = vmatmul.mubr.msk.bf16.vlgmr.msra.gmra.mrb[68].mxu1 %vm653_vm4, %v21941_v33  ;;  %v7122_v18 = vrot.slane %v18534_v53, 5  ;;  %v18536_v33 = vld [vmem:[%s22657_s9 + $0x1e8] sm:$0xf]  ;;  %v7157_v53 = vrot.slane %v18549_v26, 5  ;;  %v21956_v26 = vld [vmem:[%s22657_s9 + $0x39c] sm:$0xff]  }
 0x72a   : > { %7354 = vmatprep.mubr.bf16.mxu0 %v27418_v16  ;;  %13816 = vmatprep.mubr.bf16.mxu1 %v27418_v16  ;;  %v7126_v40 = vrot.slane %v18536_v33, 5  ;;  %v18440_v33 = vld [vmem:[%s22657_s9 + $0xb0] sm:$0x7] }
 0x72b   : > { %14049 = vmatpush1.bf16.msra.mxu1 %v14043_v49  ;;  %v7123_v55 = vsel %vm22828_vm3, %v7121_v13, %v7122_v18  ;;  %v18537_v49 = vld [vmem:[%s22657_s9 + $0x1ec] sm:$0x1]  ;;  %v18438_v18 = vld [vmem:[%s22657_s9 + $0xa8] sm:$0x8] }
 0x72c   : > { %v18576_v52 = vcombine.low %v7120_v41, %v7123_v55  ;;  %v7128_v43 = vrot.slane %v7126_v40, 4  ;;  %v7129_v56 = vrot.slane %v18537_v49, 5  ;;  %v21952_v55 = vld [vmem:[%s22657_s9 + $0x32c] sm:$0xff]   ;;  %v6842_v49 = vrot.slane %v18440_v33, 7  ;;  %v18455_v33 = vld [vmem:[%s22657_s9 + $0x13c] sm:$0x7] }
 0x72e   : > { %v7130_v21 = vsel %vm22828_vm3, %v7128_v43, %v7129_v56 }
 0x731   : > { %18589 = vmatmul.mubr.msk.bf16.gmra.mrb[216].mxu0 %vm653_vm4, %v18571_v36  ;;  %19457 = vmatmul.mubr.msk.bf16.gmra.mrb[72].mxu1 %vm653_vm4, %v21942_v28  ;;  %v18539_v36 = vld [vmem:[%s22657_s9 + $0x204] sm:$0xf]  ;;  %v7127_v28 = vsel %vm22828_vm3, %v18561_v7, %v7126_v40  ;;  %v18486_v40 = vrot.slane %v18438_v18, 11  ;;  %v18453_v18 = vld [vmem:[%s22657_s9 + $0x134] sm:$0x8] }
 0x732   : > { %7364 = vmatprep.mubr.bf16.mxu0 %v27418_v16  ;;  %13826 = vmatprep.mubr.bf16.mxu1 %v27418_v16  ;;  %v7133_v59 = vrot.slane %v18539_v36, 5  ;;  %v18577_v8 = vcombine.low %v7127_v28, %v7130_v21  ;;  %v18441_v36 = vld [vmem:[%s22657_s9 + $0xc4] sm:$0x8]  ;;  %v18443_v28 = vld [vmem:[%s22657_s9 + $0xcc] sm:$0x7] }
 0x733   : > { %v25191_v21 = vld.sshfl [vmem:[#allocation5 + $0x34] sm:$0x33 pattern:$0x76325410]  ;;  %v18487_v34 = vrot.slane %v18441_v36, 11 }
 0x734   : > { %v7135_v44 = vrot.slane %v7133_v59, 4 }
 0x736   : > { %v7137_v14 = vsel %vm22828_vm3, %v7135_v44, %v7136_v11  ;;  %v18445_v44 = vld [vmem:[%s22657_s9 + $0xe4] sm:$0xf]  ;;  %v8613_v11 = vcombine.high %v25191_v21, %v25191_v21 }
 0x739   : > { %18590 = vmatmul.mubr.msk.bf16.gmra.mrb[220].mxu0 %vm653_vm4, %v18572_v10  ;;  %19458 = vmatmul.mubr.msk.bf16.gmra.mrb[76].mxu1 %vm653_vm4, %v21943_v9  ;;  %v18542_v10 = vld [vmem:[%s22657_s9 + $0x220] sm:$0xf]  ;;  %v7134_v9 = vsel %vm22828_vm3, %v18562_v1, %v7133_v59  ;;  %v8085_v1 = vsel %vm751_vm0, %v24972_v37, 0 }
 0x73a   : > { %7374 = vmatprep.mubr.bf16.mxu0 %v27418_v16  ;;  %13836 = vmatprep.mubr.bf16.mxu1 %v27418_v16  ;;  %v7140_v24 = vrot.slane %v18542_v10, 5  ;;  %v18578_v25 = vcombine.low %v7134_v9, %v7137_v14  ;;  %v6853_v14 = vrot.slane %v18445_v44, 7  ;;  %v18444_v37 = vld [vmem:[%s22657_s9 + $0xe0] sm:$0x8] }
 0x73b   : > { %v27560_v44 = vld [vmem:[#allocation26_spill] sm:$0xff] }
 0x73c   : > { %v7142_v62 = vrot.slane %v7140_v24, 4 }
 0x73e   : > { %v7144_v23 = vsel %vm22828_vm3, %v7142_v62, %v7143_v57  ;;  %v18448_v62 = vld [vmem:[%s22657_s9 + $0x100] sm:$0xf] }
 0x741   : > { %18591 = vmatmul.mubr.msk.bf16.gmra.mrb[224].mxu0 %vm653_vm4, %v18573_v38  ;;  %19459 = vmatmul.mubr.msk.bf16.gmra.mrb[80].mxu1 %vm653_vm4, %v21944_v12  ;;  %v18545_v38 = vld [vmem:[%s22657_s9 + $0x23c] sm:$0xf]  ;;  %v7141_v12 = vsel %vm22828_vm3, %v18563_v46, %v7140_v24  ;;  %v18446_v24 = vld [vmem:[%s22657_s9 + $0xe8] sm:$0x7] }
 0x742   : > { %7384 = vmatprep.mubr.bf16.mxu0 %v27418_v16  ;;  %13846 = vmatprep.mubr.bf16.mxu1 %v27418_v16  ;;  %v7147_v29 = vrot.slane %v18545_v38, 5  ;;  %v18579_v39 = vcombine.low %v7141_v12, %v7144_v23  ;;  %v6856_v46 = vrot.slane %v18446_v24, 7  ;;  %v6860_v12 = vrot.slane %v18448_v62, 7  ;;  %v18447_v23 = vld [vmem:[%s22657_s9 + $0xfc] sm:$0x8] }
 0x744   : > { %v7149_v31 = vrot.slane %v7147_v29, 4 }
 0x746   : > { %v7151_v19 = vsel %vm22828_vm3, %v7149_v31, %v7150_v32  ;;  %v18451_v31 = vld [vmem:[%s22657_s9 + $0x11c] sm:$0xf] }
 0x749   : > { %18592 = vmatmul.mubr.msk.bf16.gmra.mrb[228].mxu0 %vm653_vm4, %v18574_v6  ;;  %19460 = vmatmul.mubr.msk.bf16.gmra.mrb[84].mxu1 %vm653_vm4, %v21945_v20  ;;  %v18548_v6 = vld [vmem:[%s22657_s9 + $0x258] sm:$0xf]  ;;  %v7148_v20 = vsel %vm22828_vm3, %v18564_v60, %v7147_v29  ;;  %v18449_v29 = vld [vmem:[%s22657_s9 + $0x104] sm:$0x7] }
 0x74a   : > { %7394 = vmatprep.mubr.bf16.mxu0 %v27418_v16  ;;  %13856 = vmatprep.mubr.bf16.mxu1 %v27418_v16  ;;  %v7154_v51 = vrot.slane %v18548_v6, 5  ;;  %v18580_v3 = vcombine.low %v7148_v20, %v7151_v19  ;;  %v6863_v60 = vrot.slane %v18449_v29, 7  ;;  %v6867_v20 = vrot.slane %v18451_v31, 7  ;;  %v18450_v19 = vld [vmem:[%s22657_s9 + $0x118] sm:$0x8] }
 0x74c   : > { %v7156_v63 = vrot.slane %v7154_v51, 4 }
 0x74e   : > { %v7158_v30 = vsel %vm22828_vm3, %v7156_v63, %v7157_v53  ;;  %v18454_v63 = vld [vmem:[%s22657_s9 + $0x138] sm:$0xf]  ;;  %v19570_v53 = vld.sshfl [vmem:[#allocation5 + $0x60] sm:$0x33 pattern:$0x76325410] }
 0x751   : > { %18593 = vmatmul.mubr.msk.bf16.gmra.mrb[232].mxu0 %vm653_vm4, %v18575_v54  ;;  %19461 = vmatmul.mubr.msk.bf16.gmra.mrb[88].mxu1 %vm653_vm4, %v21946_v5  ;;  %v18439_v54 = vld [vmem:[%s22657_s9 + $0xac] sm:$0xf]  ;;  %v7155_v5 = vsel %vm22828_vm3, %v18565_v2, %v7154_v51  ;;  %v18452_v51 = vld [vmem:[%s22657_s9 + $0x120] sm:$0x7] }
 0x752   : > { %7404 = vmatprep.mubr.bf16.mxu0 %v27418_v16  ;;  %13866 = vmatprep.mubr.bf16.mxu1 %v27418_v16  ;;  %v6839_v13 = vrot.slane %v18439_v54, 7  ;;  %v18581_v41 = vcombine.low %v7155_v5, %v7158_v30  ;;  %v6870_v2 = vrot.slane %v18452_v51, 7  ;;  %v6874_v30 = vrot.slane %v18454_v63, 7 }
 0x754   : > { %v6841_v58 = vrot.slane %v6839_v13, 4  ;;  %v6840_v7 = vsel %vm25176_vm9, %v18486_v40, %v6839_v13  ;;  %v14571_v13 = vcombine.high %v19570_v53, %v19570_v53  ;;  %v6876_v40 = vrot.slane %v6874_v30, 4 }
 0x756   : > { %v6843_v43 = vsel %vm25176_vm9, %v6841_v58, %v6842_v49  ;;  %19571 = vmatprep.subr.msk.bf16.mxu1 %vm751_vm0, %v14571_v13  ;;  %v6877_v58 = vrot.slane %v18455_v33, 7  ;;  %v18457_v49 = vld [vmem:[%s22657_s9 + $0x154] sm:$0xf] }
 0x757   : > { %v18600_v59 = vcombine.low %v6840_v7, %v6843_v43  ;;  %v27559_v7 = vld [vmem:[#allocation25_spill] sm:$0xff]  ;;  %v6881_v36 = vrot.slane %v18457_v49, 7 }
 0x759   : > { %18594 = vmatmul.mubr.msk.bf16.gmra.mrb[236].mxu0 %vm653_vm4, %v18576_v52  ;;  %19462 = vmatmul.mubr.msk.bf16.gmra.mrb[92].mxu1 %vm653_vm4, %v21947_v61  ;;  %v18442_v61 = vld [vmem:[%s22657_s9 + $0xc8] sm:$0xf] }
 0x75a   : > { %7414 = vmatprep.mubr.bf16.mxu0 %v27418_v16  ;;  %13876 = vmatprep.mubr.bf16.mxu1 %v27418_v16  ;;  %v6846_v56 = vrot.slane %v18442_v61, 7  ;;  %v14621_v61 = vsel %vm751_vm0, %v19570_v53, 0 }
 0x75c   : > { %v6847_v10 = vsel %vm25176_vm9, %v18487_v34, %v6846_v56 }
 0x761   : > { %18595 = vmatmul.mubr.msk.bf16.gmra.mrb[240].mxu0 %vm653_vm4, %v18577_v8  ;;  %19463 = vmatmul.mubr.msk.bf16.gmra.mrb[96].mxu1 %vm653_vm4, %v21948_v27  ;;  %v6848_v8 = vrot.slane %v6846_v56, 4  ;;  %v6849_v27 = vrot.slane %v18443_v28, 7  ;;  %v6878_v56 = vsel %vm25176_vm9, %v6876_v40, %v6877_v58  ;;  %v18456_v28 = vld [vmem:[%s22657_s9 + $0x150] sm:$0x8] }
 0x762   : > { %7424 = vmatprep.mubr.bf16.mxu0 %v27418_v16  ;;  %13886 = vmatprep.mubr.bf16.mxu1 %v27418_v16  ;;  %v18492_v34 = vrot.slane %v18456_v28, 11  ;;  %v27564_v40 = vld [vmem:[#allocation30_spill] sm:$0xff] }
 0x763   : > { %v6850_v9 = vsel %vm25176_vm9, %v6848_v8, %v6849_v27  ;;  %v6883_v8 = vrot.slane %v6881_v36, 4 }
 0x764   : > { %v18601_v50 = vcombine.low %v6847_v10, %v6850_v9 }
 0x769   : > { %18596 = vmatmul.mubr.msk.bf16.gmra.mrb[244].mxu0 %vm653_vm4, %v18578_v25  ;;  %19464 = vmatmul.mubr.msk.bf16.gmra.mrb[100].mxu1 %vm653_vm4, %v21949_v17  ;;  %v18488_v25 = vrot.slane %v18444_v37, 11  ;;  %v6855_v17 = vrot.slane %v6853_v14, 4  ;;  %v18461_v37 = vld [vmem:[%s22657_s9 + $0x174] sm:$0x7] }
 0x76a   : > { %7434 = vmatprep.mubr.bf16.mxu0 %v27418_v16  ;;  %13896 = vmatprep.mubr.bf16.mxu1 %v27418_v16 }
 0x76b   : > { %v6854_v57 = vsel %vm25176_vm9, %v18488_v25, %v6853_v14  ;;  %v6857_v38 = vsel %vm25176_vm9, %v6855_v17, %v6856_v46  ;;  %v18459_v14 = vld [vmem:[%s22657_s9 + $0x16c] sm:$0x8]  ;;  %v6891_v25 = vrot.slane %v18461_v37, 7 }
 0x76c   : > { %v18602_v45 = vcombine.low %v6854_v57, %v6857_v38  ;;  %v18463_v17 = vld [vmem:[%s22657_s9 + $0x18c] sm:$0xf] }
 0x76d   : > { %v27561_v46 = vld [vmem:[#allocation27_spill] sm:$0xff]  ;;  %v6895_v38 = vrot.slane %v18463_v17, 7 }
 0x771   : > { %18597 = vmatmul.mubr.msk.bf16.gmra.mrb[248].mxu0 %vm653_vm4, %v18579_v39  ;;  %19465 = vmatmul.mubr.msk.bf16.gmra.mrb[104].mxu1 %vm653_vm4, %v21950_v15  ;;  %v18489_v39 = vrot.slane %v18447_v23, 11  ;;  %v6862_v15 = vrot.slane %v6860_v12, 4  ;;  %v18464_v23 = vld [vmem:[%s22657_s9 + $0x190] sm:$0x7] }
 0x772   : > { %7444 = vmatprep.mubr.bf16.mxu0 %v27418_v16  ;;  %13906 = vmatprep.mubr.bf16.mxu1 %v27418_v16 }
 0x773   : > { %v6861_v32 = vsel %vm25176_vm9, %v18489_v39, %v6860_v12  ;;  %v6864_v6 = vsel %vm25176_vm9, %v6862_v15, %v6863_v60  ;;  %v18462_v12 = vld [vmem:[%s22657_s9 + $0x188] sm:$0x8]  ;;  %v6898_v39 = vrot.slane %v18464_v23, 7  ;;  %v27562_v60 = vld [vmem:[#allocation28_spill] sm:$0xff] }
 0x774   : > { %v18603_v4 = vcombine.low %v6861_v32, %v6864_v6  ;;  %v18466_v15 = vld [vmem:[%s22657_s9 + $0x1a8] sm:$0xf] }
 0x775   : > { %v6902_v6 = vrot.slane %v18466_v15, 7  ;;  %v27567_v15 = vld [vmem:[#allocation33_spill] sm:$0xff] }
 0x779   : > { %18598 = vmatmul.mubr.msk.bf16.gmra.mrb[252].mxu0 %vm653_vm4, %v18580_v3  ;;  %19466 = vmatmul.mubr.msk.bf16.gmra.mrb[108].mxu1 %vm653_vm4, %v21951_v0  ;;  %v18490_v3 = vrot.slane %v18450_v19, 11  ;;  %v6869_v0 = vrot.slane %v6867_v20, 4  ;;  %v18467_v19 = vld [vmem:[%s22657_s9 + $0x1ac] sm:$0x7] }
 0x77a   : > { %7454 = vmatprep.mubr.bf16.mxu0 %v27418_v16  ;;  %13916 = vmatprep.mubr.bf16.mxu1 %v27418_v16 }
 0x77b   : > { %v6868_v54 = vsel %vm25176_vm9, %v18490_v3, %v6867_v20  ;;  %v6871_v5 = vsel %vm25176_vm9, %v6869_v0, %v6870_v2  ;;  %v18465_v20 = vld [vmem:[%s22657_s9 + $0x1a4] sm:$0x8]  ;;  %v6905_v3 = vrot.slane %v18467_v19, 7  ;;  %v27563_v2 = vld [vmem:[#allocation29_spill] sm:$0xff] }
 0x77c   : > { %v18469_v0 = vld [vmem:[%s22657_s9 + $0x1c4] sm:$0xf]  ;;  %v18482_v19 = vld [vmem:[%s22657_s9 + $0x238] sm:$0x7] }
 0x781   : > { %18599 = vmatmul.mubr.msk.bf16.gmra.mrb[0].mxu0 %vm653_vm4, %v18581_v41  ;;  %19467 = vmatmul.mubr.msk.bf16.gmra.mrb[112].mxu1 %vm653_vm4, %v21952_v55  ;;  %v18604_v41 = vcombine.low %v6868_v54, %v6871_v5  ;;  %v18491_v55 = vrot.slane %v18453_v18, 11  ;;  %v6909_v54 = vrot.slane %v18469_v0, 7  ;;  %v18468_v5 = vld [vmem:[%s22657_s9 + $0x1c0] sm:$0x8]  ;;  %v18484_v0 = vld [vmem:[%s22657_s9 + $0x250] sm:$0xf] }
 0x782   : > { %7608 = vmatprep.mubr.bf16.mxu0 %v27418_v16  ;;  %13926 = vmatprep.mubr.bf16.mxu1 %v27418_v16  ;;  %v18496_v18 = vrot.slane %v18468_v5, 11  ;;  %v6944_v5 = vrot.slane %v18484_v0, 7 }
 0x783   : > { %v6875_v43 = vsel %vm25176_vm9, %v18491_v55, %v6874_v30  ;;  %v18470_v30 = vld [vmem:[%s22657_s9 + $0x1c8] sm:$0x7]  ;;  %v6911_v33 = vrot.slane %v6909_v54, 4  ;;  %v18472_v55 = vld [vmem:[%s22657_s9 + $0x1e0] sm:$0xf] }
 0x784   : > { %v6910_v58 = vsel %vm25176_vm9, %v18496_v18, %v6909_v54 }
 0x789   : > { %18618 = vmatmul.mubr.msk.bf16.vlgmr.msra.gmra.mrb[196].mxu0 %vm653_vm4, %v18600_v59  ;;  %19468 = vmatmul.mubr.msk.bf16.gmra.mrb[116].mxu1 %vm653_vm4, %v21953_v48  ;;  %v18458_v59 = vld [vmem:[%s22657_s9 + $0x158] sm:$0x7]  ;;  %v18605_v48 = vcombine.low %v6875_v43, %v6878_v56  ;;  %v18471_v43 = vld [vmem:[%s22657_s9 + $0x1dc] sm:$0x8]  ;;  %v18473_v56 = vld [vmem:[%s22657_s9 + $0x1e4] sm:$0x7] }
 0x78a   : > { %8091 = vmatpush1.bf16.msra.mxu0 %v8085_v1  ;;  %7618 = vmatprep.mubr.bf16.mxu0 %v27418_v16  ;;  %v6884_v27 = vrot.slane %v18458_v59, 7  ;;  %v18460_v1 = vld [vmem:[%s22657_s9 + $0x170] sm:$0xf]  ;;  %v18497_v28 = vrot.slane %v18471_v43, 11 }
 0x78b   : > { %13936 = vmatprep.mubr.bf16.mxu1 %v27418_v16  ;;  %18813 = vmatprep.subr.msk.bf16.mxu0 %vm751_vm0, %v8613_v11  ;;  %v6882_v11 = vsel %vm25176_vm9, %v18492_v34, %v6881_v36  ;;  %v6888_v9 = vrot.slane %v18460_v1, 7  ;;  %v18475_v34 = vld [vmem:[%s22657_s9 + $0x1fc] sm:$0xf] }
 0x78c   : > { %v6885_v10 = vsel %vm25176_vm9, %v6883_v8, %v6884_v27  ;;  %v27565_v8 = vld [vmem:[#allocation31_spill] sm:$0xff] }
 0x78d   : > { %v18606_v24 = vcombine.low %v6882_v11, %v6885_v10  ;;  %v6923_v11 = vrot.slane %v18475_v34, 7  ;;  %v18474_v10 = vld [vmem:[%s22657_s9 + $0x1f8] sm:$0x8] }
 0x78e   : > { %v18498_v37 = vrot.slane %v18474_v10, 11 }
 0x790   : > { %v6924_v17 = vsel %vm25176_vm9, %v18498_v37, %v6923_v11  ;;  %v18637_v37 = vld [vmem:[%s22657_s9 + $0xd0] sm:$0x8] }
 0x791   : > { %18619 = vmatmul.mubr.msk.bf16.gmra.mrb[200].mxu0 %vm653_vm4, %v18601_v50  ;;  %19469 = vmatmul.mubr.msk.bf16.gmra.mrb[120].mxu1 %vm653_vm4, %v21954_v47  ;;  %v18493_v50 = vrot.slane %v18459_v14, 11  ;;  %v6890_v47 = vrot.slane %v6888_v9, 4 }
 0x792   : > { %7628 = vmatprep.mubr.bf16.mxu0 %v27418_v16  ;;  %13946 = vmatprep.mubr.bf16.mxu1 %v27418_v16 }
 0x793   : > { %v6889_v62 = vsel %vm25176_vm9, %v18493_v50, %v6888_v9  ;;  %v6892_v57 = vsel %vm25176_vm9, %v6890_v47, %v6891_v25  ;;  %v18476_v9 = vld [vmem:[%s22657_s9 + $0x200] sm:$0x7]  ;;  %v18478_v47 = vld [vmem:[%s22657_s9 + $0x218] sm:$0xf] }
 0x794   : > { %v18607_v29 = vcombine.low %v6889_v62, %v6892_v57  ;;  %v6926_v50 = vrot.slane %v18476_v9, 7  ;;  %v27566_v25 = vld [vmem:[#allocation32_spill] sm:$0xff]  ;;  %v6930_v57 = vrot.slane %v18478_v47, 7 }
 0x799   : > { %18620 = vmatmul.mubr.msk.bf16.gmra.mrb[204].mxu0 %vm653_vm4, %v18602_v45  ;;  %19470 = vmatmul.mubr.msk.bf16.gmra.mrb[124].mxu1 %vm653_vm4, %v21955_v22  ;;  %v18494_v45 = vrot.slane %v18462_v12, 11  ;;  %v6897_v22 = vrot.slane %v6895_v38, 4  ;;  %v18479_v12 = vld [vmem:[%s22657_s9 + $0x21c] sm:$0x7] }
 0x79a   : > { %7638 = vmatprep.mubr.bf16.mxu0 %v27418_v16  ;;  %13956 = vmatprep.mubr.bf16.mxu1 %v27418_v16 }
 0x79b   : > { %v6896_v31 = vsel %vm25176_vm9, %v18494_v45, %v6895_v38  ;;  %v6899_v32 = vsel %vm25176_vm9, %v6897_v22, %v6898_v39  ;;  %v18477_v38 = vld [vmem:[%s22657_s9 + $0x214] sm:$0x8]  ;;  %v6932_v45 = vrot.slane %v6930_v57, 4  ;;  %v6933_v22 = vrot.slane %v18479_v12, 7  ;;  %v18641_v12 = vld [vmem:[%s22657_s9 + $0xf0] sm:$0xf] }
 0x79c   : > { %v18608_v51 = vcombine.low %v6896_v31, %v6899_v32  ;;  %v18481_v39 = vld [vmem:[%s22657_s9 + $0x234] sm:$0xf] }
 0x79d   : > { %v6934_v32 = vsel %vm25176_vm9, %v6932_v45, %v6933_v22 }
 0x7a1   : > { %18621 = vmatmul.mubr.msk.bf16.gmra.mrb[208].mxu0 %vm653_vm4, %v18603_v4  ;;  %19471 = vmatmul.mubr.msk.bf16.gmra.mrb[128].mxu1 %vm653_vm4, %v21956_v26  ;;  %v18495_v4 = vrot.slane %v18465_v20, 11  ;;  %v6904_v26 = vrot.slane %v6902_v6, 4  ;;  %v18480_v20 = vld [vmem:[%s22657_s9 + $0x230] sm:$0x8] }
 0x7a2   : > { %7648 = vmatprep.mubr.bf16.mxu0 %v27418_v16  ;;  %14080 = vmatprep.mubr.bf16.mxu1 %v27418_v16 }
 0x7a3   : > { %v6903_v63 = vsel %vm25176_vm9, %v18495_v4, %v6902_v6  ;;  %v6906_v53 = vsel %vm25176_vm9, %v6904_v26, %v6905_v3  ;;  %v6937_v6 = vrot.slane %v18481_v39, 7  ;;  %v18500_v4 = vrot.slane %v18480_v20, 11  ;;  %v18640_v39 = vld [vmem:[%s22657_s9 + $0xec] sm:$0x8] }
 0x7a4   : > { %v18609_v13 = vcombine.low %v6903_v63, %v6906_v53  ;;  %v6940_v3 = vrot.slane %v18482_v19, 7  ;;  %v27568_v63 = vld [vmem:[#allocation34_spill] sm:$0xff] }
 0x7a5   : > { %v6939_v26 = vrot.slane %v6937_v6, 4  ;;  %v6938_v53 = vsel %vm25176_vm9, %v18500_v4, %v6937_v6  ;;  %v18684_v6 = vrot.slane %v18640_v39, 11  ;;  %v27572_v4 = vld [vmem:[#allocation38_spill] sm:$0xff] }
 0x7a7   : > { %v6941_v54 = vsel %vm25176_vm9, %v6939_v26, %v6940_v3 }
 0x7a8   : > { %v18614_v18 = vcombine.low %v6938_v53, %v6941_v54  ;;  %v18643_v53 = vld [vmem:[%s22657_s9 + $0x108] sm:$0x8]  ;;  %v18645_v54 = vld [vmem:[%s22657_s9 + $0x110] sm:$0x7] }
 0x7a9   : > { %18622 = vmatmul.mubr.msk.bf16.gmra.mrb[212].mxu0 %vm653_vm4, %v18604_v41  ;;  %19474 = vmatmul.mubr.msk.bf16.vlgmr.msra.gmra.mrb[68].mxu1 %vm653_vm4, %v27559_v7  ;;  %v6912_v41 = vrot.slane %v18470_v30, 7  ;;  %v18483_v30 = vld [vmem:[%s22657_s9 + $0x24c] sm:$0x8] }
 0x7aa   : > { %7658 = vmatprep.mubr.bf16.mxu0 %v27418_v16  ;;  %14090 = vmatprep.mubr.bf16.mxu1 %v27418_v16 }
 0x7ab   : > { %14627 = vmatpush1.bf16.msra.mxu1 %v14621_v61  ;;  %v6913_v49 = vsel %vm25176_vm9, %v6911_v33, %v6912_v41  ;;  %v6916_v61 = vrot.slane %v18472_v55, 7  ;;  %v18501_v33 = vrot.slane %v18483_v30, 11  ;;  %v6946_v41 = vrot.slane %v6944_v5, 4 }
 0x7ac   : > { %v18610_v36 = vcombine.low %v6910_v58, %v6913_v49  ;;  %v18635_v58 = vld [vmem:[%s22657_s9 + $0xb8] sm:$0xf]  ;;  %v18685_v30 = vrot.slane %v18643_v53, 11 }
 0x7ad   : > { %v6918_v59 = vrot.slane %v6916_v61, 4  ;;  %v6917_v27 = vsel %vm25176_vm9, %v18497_v28, %v6916_v61  ;;  %v27569_v49 = vld [vmem:[#allocation35_spill] sm:$0xff]  ;;  %v6945_v61 = vsel %vm25176_vm9, %v18501_v33, %v6944_v5 }
 0x7ae   : > { %v18636_v28 = vld [vmem:[%s22657_s9 + $0xbc] sm:$0x7]  ;;  %v18647_v33 = vld [vmem:[%s22657_s9 + $0x128] sm:$0xf] }
 0x7b1   : > { %18623 = vmatmul.mubr.msk.bf16.gmra.mrb[216].mxu0 %vm653_vm4, %v18605_v48  ;;  %19475 = vmatmul.mubr.msk.bf16.gmra.mrb[72].mxu1 %vm653_vm4, %v27560_v44  ;;  %v6919_v48 = vrot.slane %v18473_v56, 7  ;;  %v7867_v56 = vrot.slane %v18635_v58, 7  ;;  %v7895_v58 = vrot.slane %v18647_v33, 7 }
 0x7b2   : > { %7668 = vmatprep.mubr.bf16.mxu0 %v27418_v16  ;;  %14100 = vmatprep.mubr.bf16.mxu1 %v27418_v16 }
 0x7b3   : > { %v6920_v1 = vsel %vm25176_vm9, %v6918_v59, %v6919_v48  ;;  %v7869_v34 = vrot.slane %v7867_v56, 4 }
 0x7b4   : > { %v18611_v14 = vcombine.low %v6917_v27, %v6920_v1  ;;  %v7870_v27 = vrot.slane %v18636_v28, 7  ;;  %v18638_v1 = vld [vmem:[%s22657_s9 + $0xd4] sm:$0xf] }
 0x7b6   : > { %v7871_v9 = vsel %vm25176_vm9, %v7869_v34, %v7870_v27 }
 0x7b9   : > { %18624 = vmatmul.mubr.msk.bf16.gmra.mrb[220].mxu0 %vm653_vm4, %v18606_v24  ;;  %19476 = vmatmul.mubr.msk.bf16.gmra.mrb[76].mxu1 %vm653_vm4, %v27561_v46  ;;  %v6925_v24 = vrot.slane %v6923_v11, 4  ;;  %v27570_v11 = vld [vmem:[#allocation36_spill] sm:$0xff] }
 0x7ba   : > { %7678 = vmatprep.mubr.bf16.mxu0 %v27418_v16  ;;  %14110 = vmatprep.mubr.bf16.mxu1 %v27418_v16 }
 0x7bb   : > { %v6927_v62 = vsel %vm25176_vm9, %v6925_v24, %v6926_v50  ;;  %v18639_v24 = vld [vmem:[%s22657_s9 + $0xd8] sm:$0x7] }
 0x7bc   : > { %v18612_v23 = vcombine.low %v6924_v17, %v6927_v62  ;;  %v25392_v50 = vld.sshfl [vmem:[#allocation5 + $0x38] sm:$0x33 pattern:$0x76325410]  ;;  %v18683_v17 = vrot.slane %v18637_v37, 11 }
 0x7c1   : > { %18625 = vmatmul.mubr.msk.bf16.gmra.mrb[224].mxu0 %vm653_vm4, %v18607_v29  ;;  %19477 = vmatmul.mubr.msk.bf16.gmra.mrb[80].mxu1 %vm653_vm4, %v27562_v60  ;;  %v18499_v29 = vrot.slane %v18477_v38, 11  ;;  %v8663_v38 = vsel %vm751_vm0, %v25191_v21, 0  ;;  %v7881_v21 = vrot.slane %v18641_v12, 7 }
 0x7c2   : > { %7688 = vmatprep.mubr.bf16.mxu0 %v27418_v16  ;;  %14120 = vmatprep.mubr.bf16.mxu1 %v27418_v16  ;;  %v19636_v12 = vld.sshfl [vmem:[#allocation5 + $0x64] sm:$0x33 pattern:$0x76325410] }
 0x7c3   : > { %v6931_v31 = vsel %vm25176_vm9, %v18499_v29, %v6930_v57  ;;  %v7877_v57 = vrot.slane %v18639_v24, 7  ;;  %v27571_v29 = vld [vmem:[#allocation37_spill] sm:$0xff]  ;;  %v7883_v20 = vrot.slane %v7881_v21, 4  ;;  %v7882_v26 = vsel %vm25176_vm9, %v18684_v6, %v7881_v21  ;;  %v18650_v24 = vld [vmem:[%s22657_s9 + $0x144] sm:$0xf] }
 0x7c4   : > { %v18651_v21 = vld [vmem:[%s22657_s9 + $0x148] sm:$0x7]  ;;  %v19495_v6 = vld [vmem:[%s22657_s9 + $0x22c] sm:$0x3] }
 0x7c9   : > { %18626 = vmatmul.mubr.msk.bf16.gmra.mrb[228].mxu0 %vm653_vm4, %v18608_v51  ;;  %19478 = vmatmul.mubr.msk.bf16.gmra.mrb[84].mxu1 %vm653_vm4, %v27563_v2  ;;  %v18613_v51 = vcombine.low %v6931_v31, %v6934_v32  ;;  %v18642_v31 = vld [vmem:[%s22657_s9 + $0xf4] sm:$0x7] }
 0x7ca   : > { %7698 = vmatprep.mubr.bf16.mxu0 %v27418_v16  ;;  %14130 = vmatprep.mubr.bf16.mxu1 %v27418_v16  ;;  %v7884_v19 = vrot.slane %v18642_v31, 7  ;;  %v15006_v31 = vcombine.high %v19636_v12, %v19636_v12 }
 0x7cc   : > { %v7885_v3 = vsel %vm25176_vm9, %v7883_v20, %v7884_v19  ;;  %19637 = vmatprep.subr.msk.bf16.mxu1 %vm751_vm0, %v15006_v31  ;;  %v19501_v31 = vld [vmem:[%s22657_s9 + $0x264] sm:$0x3] }
 0x7cd   : > { %v18700_v5 = vcombine.low %v7882_v26, %v7885_v3  ;;  %v7905_v3 = vrot.slane %v18651_v21, 7 }
 0x7d1   : > { %18627 = vmatmul.mubr.msk.bf16.gmra.mrb[232].mxu0 %vm653_vm4, %v18609_v13  ;;  %19479 = vmatmul.mubr.msk.bf16.gmra.mrb[88].mxu1 %vm653_vm4, %v27564_v40  ;;  %v18485_v13 = vld [vmem:[%s22657_s9 + $0x254] sm:$0x7] }
 0x7d2   : > { %7708 = vmatprep.mubr.bf16.mxu0 %v27418_v16  ;;  %14140 = vmatprep.mubr.bf16.mxu1 %v27418_v16  ;;  %v6947_v55 = vrot.slane %v18485_v13, 7 }
 0x7d4   : > { %v6948_v43 = vsel %vm25176_vm9, %v6946_v41, %v6947_v55  ;;  %v19491_v41 = vld [vmem:[%s22657_s9 + $0x20c] sm:$0xf] }
 0x7d5   : > { %v18615_v59 = vcombine.low %v6945_v61, %v6948_v43  ;;  %v27573_v55 = vld [vmem:[#allocation39_spill] sm:$0xff]  ;;  %v14403_v28 = vrot.slane %v19491_v41, 6 }
 0x7d9   : > { %18628 = vmatmul.mubr.msk.bf16.gmra.mrb[236].mxu0 %vm653_vm4, %v18610_v36  ;;  %19480 = vmatmul.mubr.msk.bf16.gmra.mrb[92].mxu1 %vm653_vm4, %v27565_v8  ;;  %v18634_v36 = vld [vmem:[%s22657_s9 + $0xb4] sm:$0x8] }
 0x7da   : > { %7718 = vmatprep.mubr.bf16.mxu0 %v27418_v16  ;;  %14150 = vmatprep.mubr.bf16.mxu1 %v27418_v16  ;;  %v18682_v48 = vrot.slane %v18634_v36, 11  ;;  %v18648_v36 = vld [vmem:[%s22657_s9 + $0x12c] sm:$0x7] }
 0x7dc   : > { %v7868_v10 = vsel %vm25176_vm9, %v18682_v48, %v7867_v56  ;;  %v18646_v56 = vld [vmem:[%s22657_s9 + $0x124] sm:$0x8]  ;;  %v19492_v48 = vld [vmem:[%s22657_s9 + $0x210] sm:$0x3] }
 0x7dd   : > { %v18698_v47 = vcombine.low %v7868_v10, %v7871_v9  ;;  %v18686_v27 = vrot.slane %v18646_v56, 11  ;;  %v7898_v10 = vrot.slane %v18648_v36, 7  ;;  %v14406_v37 = vrot.slane %v19492_v48, 6  ;;  %v18654_v56 = vld [vmem:[%s22657_s9 + $0x164] sm:$0x7] }
 0x7e1   : > { %18629 = vmatmul.mubr.msk.bf16.gmra.mrb[240].mxu0 %vm653_vm4, %v18611_v14  ;;  %19481 = vmatmul.mubr.msk.bf16.gmra.mrb[96].mxu1 %vm653_vm4, %v27566_v25  ;;  %v7874_v14 = vrot.slane %v18638_v1, 7  ;;  %v7897_v1 = vrot.slane %v7895_v58, 4 }
 0x7e2   : > { %7728 = vmatprep.mubr.bf16.mxu0 %v27418_v16  ;;  %14160 = vmatprep.mubr.bf16.mxu1 %v27418_v16 }
 0x7e3   : > { %v7876_v62 = vrot.slane %v7874_v14, 4  ;;  %v7875_v45 = vsel %vm25176_vm9, %v18683_v17, %v7874_v14  ;;  %v14405_v14 = vrot.slane %v14403_v28, 4  ;;  %v27574_v17 = vld [vmem:[#allocation40_spill] sm:$0xff] }
 0x7e5   : > { %v7878_v22 = vsel %vm25176_vm9, %v7876_v62, %v7877_v57  ;;  %v7896_v62 = vsel %vm25176_vm9, %v18686_v27, %v7895_v58  ;;  %v7899_v57 = vsel %vm25176_vm9, %v7897_v1, %v7898_v10  ;;  %v7912_v10 = vrot.slane %v18654_v56, 7  ;;  %v19504_v56 = vld [vmem:[%s22657_s9 + $0x280] sm:$0x3] }
 0x7e6   : > { %v18699_v32 = vcombine.low %v7875_v45, %v7878_v22  ;;  %v14407_v45 = vsel %vm23185_vm6, %v14405_v14, %v14406_v37  ;;  %v18649_v22 = vld [vmem:[%s22657_s9 + $0x140] sm:$0x8]  ;;  %v18702_v20 = vcombine.low %v7896_v62, %v7899_v57 }
 0x7e9   : > { %18630 = vmatmul.mubr.msk.bf16.gmra.mrb[244].mxu0 %vm653_vm4, %v18612_v23  ;;  %19482 = vmatmul.mubr.msk.bf16.gmra.mrb[100].mxu1 %vm653_vm4, %v27567_v15  ;;  %v8935_v23 = vcombine.high %v25392_v50, %v25392_v50 }
 0x7ea   : > { %7738 = vmatprep.mubr.bf16.mxu0 %v27418_v16  ;;  %14170 = vmatprep.mubr.bf16.mxu1 %v27418_v16 }
 0x7f1   : > { %18631 = vmatmul.mubr.msk.bf16.gmra.mrb[248].mxu0 %vm653_vm4, %v18613_v51  ;;  %19483 = vmatmul.mubr.msk.bf16.gmra.mrb[104].mxu1 %vm653_vm4, %v27568_v63  ;;  %v18644_v51 = vld [vmem:[%s22657_s9 + $0x10c] sm:$0xf] }
 0x7f2   : > { %7748 = vmatprep.mubr.bf16.mxu0 %v27418_v16  ;;  %14180 = vmatprep.mubr.bf16.mxu1 %v27418_v16  ;;  %v7888_v0 = vrot.slane %v18644_v51, 7  ;;  %v18687_v51 = vrot.slane %v18649_v22, 11  ;;  %v18657_v22 = vld [vmem:[%s22657_s9 + $0x180] sm:$0x7] }
 0x7f4   : > { %v7890_v13 = vrot.slane %v7888_v0, 4  ;;  %v7889_v61 = vsel %vm25176_vm9, %v18685_v30, %v7888_v0  ;;  %v19497_v30 = vld [vmem:[%s22657_s9 + $0x244] sm:$0xf] }
 0x7f5   : > { %v14417_v36 = vrot.slane %v19497_v30, 6 }
 0x7f7   : > { %v14419_v14 = vrot.slane %v14417_v36, 4 }
 0x7f9   : > { %18632 = vmatmul.mubr.msk.bf16.gmra.mrb[252].mxu0 %vm653_vm4, %v18614_v18  ;;  %19484 = vmatmul.mubr.msk.bf16.gmra.mrb[108].mxu1 %vm653_vm4, %v27569_v49  ;;  %v7891_v18 = vrot.slane %v18645_v54, 7  ;;  %v14413_v54 = vrot.slane %v19495_v6, 6 }
 0x7fa   : > { %7758 = vmatprep.mubr.bf16.mxu0 %v27418_v16  ;;  %14190 = vmatprep.mubr.bf16.mxu1 %v27418_v16 }
 0x7fb   : > { %v7892_v43 = vsel %vm25176_vm9, %v7890_v13, %v7891_v18  ;;  %v15056_v13 = vsel %vm751_vm0, %v19636_v12, 0 }
 0x7fc   : > { %v18701_v34 = vcombine.low %v7889_v61, %v7892_v43  ;;  %v18652_v43 = vld [vmem:[%s22657_s9 + $0x15c] sm:$0x8] }
 0x7fd   : > { %v18688_v27 = vrot.slane %v18652_v43, 11  ;;  %v19502_v43 = vld [vmem:[%s22657_s9 + $0x278] sm:$0xc] }
 0x801   : > { %18633 = vmatmul.mubr.msk.bf16.gmra.mrb[0].mxu0 %vm653_vm4, %v18615_v59  ;;  %19485 = vmatmul.mubr.msk.bf16.gmra.mrb[112].mxu1 %vm653_vm4, %v27570_v11  ;;  %v19490_v59 = vld [vmem:[%s22657_s9 + $0x208] sm:$0xc] }
 0x802   : > { %8122 = vmatprep.mubr.bf16.mxu0 %v27418_v16  ;;  %14200 = vmatprep.mubr.bf16.mxu1 %v27418_v16  ;;  %v19538_v9 = vrot.slane %v19490_v59, 10  ;;  %v19498_v59 = vld [vmem:[%s22657_s9 + $0x248] sm:$0x3] }
 0x803   : > { %v14420_v37 = vrot.slane %v19498_v59, 6 }
 0x809   : > { %18716 = vmatmul.mubr.msk.bf16.vlgmr.msra.gmra.mrb[196].mxu0 %vm653_vm4, %v18698_v47  ;;  %19486 = vmatmul.mubr.msk.bf16.gmra.mrb[116].mxu1 %vm653_vm4, %v27571_v29  ;;  %v19494_v47 = vld [vmem:[%s22657_s9 + $0x228] sm:$0xf] }
 0x80a   : > { %8669 = vmatpush1.bf16.msra.mxu0 %v8663_v38  ;;  %8132 = vmatprep.mubr.bf16.mxu0 %v27418_v16  ;;  %v7902_v38 = vrot.slane %v18650_v24, 7  ;;  %v14410_v39 = vrot.slane %v19494_v47, 6  ;;  %v18656_v24 = vld [vmem:[%s22657_s9 + $0x17c] sm:$0xf]  ;;  %v19500_v47 = vld [vmem:[%s22657_s9 + $0x260] sm:$0xf] }
 0x80b   : > { %14210 = vmatprep.mubr.bf16.mxu1 %v27418_v16  ;;  %18831 = vmatprep.subr.msk.bf16.mxu0 %vm751_vm0, %v8935_v23  ;;  %v14404_v23 = vsel %vm23185_vm6, %v19538_v9, %v14403_v28  ;;  %v19496_v28 = vld [vmem:[%s22657_s9 + $0x240] sm:$0xc]  ;;  %v14424_v21 = vrot.slane %v19500_v47, 6 }
 0x80c   : > { %v19554_v19 = vcombine.low %v14404_v23, %v14407_v45  ;;  %v7904_v26 = vrot.slane %v7902_v38, 4  ;;  %v14412_v53 = vrot.slane %v14410_v39, 4  ;;  %v7903_v18 = vsel %vm25176_vm9, %v18687_v51, %v7902_v38  ;;  %v18655_v45 = vld [vmem:[%s22657_s9 + $0x178] sm:$0x8] }
 0x80d   : > { %v19540_v9 = vrot.slane %v19496_v28, 10  ;;  %v7916_v38 = vrot.slane %v18656_v24, 7  ;;  %v14421_v23 = vsel %vm23185_vm6, %v14419_v14, %v14420_v37  ;;  %v7919_v51 = vrot.slane %v18657_v22, 7  ;;  %v19506_v14 = vld [vmem:[%s22657_s9 + $0x298] sm:$0xf] }
 0x80e   : > { %v7906_v33 = vsel %vm25176_vm9, %v7904_v26, %v7905_v3  ;;  %v14414_v61 = vsel %vm23185_vm6, %v14412_v53, %v14413_v54  ;;  %v14426_v3 = vrot.slane %v14424_v21, 4  ;;  %v18659_v53 = vld [vmem:[%s22657_s9 + $0x198] sm:$0xf]  ;;  %v19503_v54 = vld [vmem:[%s22657_s9 + $0x27c] sm:$0xf] }
 0x80f   : > { %v18703_v48 = vcombine.low %v7903_v18, %v7906_v33  ;;  %v14418_v12 = vsel %vm23185_vm6, %v19540_v9, %v14417_v36  ;;  %v18662_v9 = vld [vmem:[%s22657_s9 + $0x1b4] sm:$0xf]  ;;  %v19507_v22 = vld [vmem:[%s22657_s9 + $0x29c] sm:$0x3] }
 0x810   : > { %v19556_v6 = vcombine.low %v14418_v12, %v14421_v23  ;;  %v7930_v47 = vrot.slane %v18662_v9, 7  ;;  %v18663_v12 = vld [vmem:[%s22657_s9 + $0x1b8] sm:$0x7]  ;;  %v14438_v23 = vrot.slane %v19506_v14, 6 }
 0x811   : > { %18717 = vmatmul.mubr.msk.bf16.gmra.mrb[200].mxu0 %vm653_vm4, %v18699_v32  ;;  %19487 = vmatmul.mubr.msk.bf16.gmra.mrb[120].mxu1 %vm653_vm4, %v27572_v4  ;;  %v19493_v32 = vld [vmem:[%s22657_s9 + $0x224] sm:$0xc] }
 0x812   : > { %8142 = vmatprep.mubr.bf16.mxu0 %v27418_v16  ;;  %14220 = vmatprep.mubr.bf16.mxu1 %v27418_v16  ;;  %v19539_v0 = vrot.slane %v19493_v32, 10 }
 0x814   : > { %v14411_v58 = vsel %vm23185_vm6, %v19539_v0, %v14410_v39  ;;  %v19499_v39 = vld [vmem:[%s22657_s9 + $0x25c] sm:$0xc]  ;;  %v14427_v0 = vrot.slane %v19501_v31, 6 }
 0x815   : > { %v19541_v26 = vrot.slane %v19499_v39, 10 }
 0x816   : > { %v14428_v33 = vsel %vm23185_vm6, %v14426_v3, %v14427_v0  ;;  %v19509_v3 = vld [vmem:[%s22657_s9 + $0x2b4] sm:$0xf] }
 0x817   : > { %v14425_v18 = vsel %vm23185_vm6, %v19541_v26, %v14424_v21  ;;  %v18665_v26 = vld [vmem:[%s22657_s9 + $0x1d0] sm:$0xf] }
 0x818   : > { %v19557_v28 = vcombine.low %v14425_v18, %v14428_v33  ;;  %v18666_v18 = vld [vmem:[%s22657_s9 + $0x1d4] sm:$0x7]  ;;  %v14445_v33 = vrot.slane %v19509_v3, 6 }
 0x819   : > { %18718 = vmatmul.mubr.msk.bf16.gmra.mrb[204].mxu0 %vm653_vm4, %v18700_v5  ;;  %19488 = vmatmul.mubr.msk.bf16.gmra.mrb[124].mxu1 %vm653_vm4, %v27573_v55  ;;  %v18653_v5 = vld [vmem:[%s22657_s9 + $0x160] sm:$0xf] }
 0x81a   : > { %8152 = vmatprep.mubr.bf16.mxu0 %v27418_v16  ;;  %14230 = vmatprep.mubr.bf16.mxu1 %v27418_v16  ;;  %v7909_v41 = vrot.slane %v18653_v5, 7 }
 0x81c   : > { %v7911_v1 = vrot.slane %v7909_v41, 4  ;;  %v7910_v62 = vsel %vm25176_vm9, %v18688_v27, %v7909_v41  ;;  %v18658_v41 = vld [vmem:[%s22657_s9 + $0x194] sm:$0x8]  ;;  %v19542_v27 = vrot.slane %v19502_v43, 10 }
 0x81d   : > { %v18690_v59 = vrot.slane %v18658_v41, 11  ;;  %v19508_v41 = vld [vmem:[%s22657_s9 + $0x2b0] sm:$0xc] }
 0x81e   : > { %v7913_v57 = vsel %vm25176_vm9, %v7911_v1, %v7912_v10  ;;  %v14434_v10 = vrot.slane %v19504_v56, 6 }
 0x81f   : > { %v18704_v32 = vcombine.low %v7910_v62, %v7913_v57 }
 0x821   : > { %18719 = vmatmul.mubr.msk.bf16.gmra.mrb[208].mxu0 %vm653_vm4, %v18701_v34  ;;  %19489 = vmatmul.mubr.msk.bf16.gmra.mrb[128].mxu1 %vm653_vm4, %v27574_v17  ;;  %v19555_v34 = vcombine.low %v14411_v58, %v14414_v61  ;;  %v18660_v58 = vld [vmem:[%s22657_s9 + $0x19c] sm:$0x7]  ;;  %v14431_v61 = vrot.slane %v19503_v54, 6  ;;  %v7937_v54 = vrot.slane %v18665_v26, 7 }
 0x822   : > { %8162 = vmatprep.mubr.bf16.mxu0 %v27418_v16  ;;  %14658 = vmatprep.mubr.bf16.mxu1 %v27418_v16 }
 0x823   : > { %v14433_v1 = vrot.slane %v14431_v61, 4  ;;  %v14432_v62 = vsel %vm23185_vm6, %v19542_v27, %v14431_v61  ;;  %v18668_v27 = vld [vmem:[%s22657_s9 + $0x1ec] sm:$0xf] }
 0x824   : > { %v7944_v14 = vrot.slane %v18668_v27, 7 }
 0x825   : > { %v14435_v57 = vsel %vm23185_vm6, %v14433_v1, %v14434_v10  ;;  %v19512_v1 = vld [vmem:[%s22657_s9 + $0x2d0] sm:$0xf] }
 0x826   : > { %v19558_v39 = vcombine.low %v14432_v62, %v14435_v57  ;;  %v18669_v62 = vld [vmem:[%s22657_s9 + $0x1f0] sm:$0x7]  ;;  %v14452_v57 = vrot.slane %v19512_v1, 6 }
 0x829   : > { %18720 = vmatmul.mubr.msk.bf16.gmra.mrb[212].mxu0 %vm653_vm4, %v18702_v20  ;;  %19572 = vmatmul.mubr.msk.bf16.vlgmr.msra.gmra.mrb[68].mxu1 %vm653_vm4, %v19554_v19  ;;  %v18689_v20 = vrot.slane %v18655_v45, 11  ;;  %v7918_v19 = vrot.slane %v7916_v38, 4  ;;  %v19505_v45 = vld [vmem:[%s22657_s9 + $0x294] sm:$0xc] }
 0x82a   : > { %8172 = vmatprep.mubr.bf16.mxu0 %v27418_v16  ;;  %14668 = vmatprep.mubr.bf16.mxu1 %v27418_v16 }
 0x82b   : > { %15062 = vmatpush1.bf16.msra.mxu1 %v15056_v13  ;;  %v7917_v5 = vsel %vm25176_vm9, %v18689_v20, %v7916_v38  ;;  %v7920_v30 = vsel %vm25176_vm9, %v7918_v19, %v7919_v51  ;;  %v7923_v13 = vrot.slane %v18659_v53, 7  ;;  %v18661_v38 = vld [vmem:[%s22657_s9 + $0x1b0] sm:$0x8]  ;;  %v19543_v20 = vrot.slane %v19505_v45, 10 }
 0x82c   : > { %v18705_v36 = vcombine.low %v7917_v5, %v7920_v30  ;;  %v18691_v31 = vrot.slane %v18661_v38, 11  ;;  %v14440_v19 = vrot.slane %v14438_v23, 4  ;;  %v14441_v51 = vrot.slane %v19507_v22, 6  ;;  %v19511_v38 = vld [vmem:[%s22657_s9 + $0x2cc] sm:$0xc] }
 0x82d   : > { %v7924_v37 = vsel %vm25176_vm9, %v18690_v59, %v7923_v13  ;;  %v14439_v5 = vsel %vm23185_vm6, %v19543_v20, %v14438_v23  ;;  %v19544_v59 = vrot.slane %v19508_v41, 10  ;;  %v18671_v20 = vld [vmem:[%s22657_s9 + $0x208] sm:$0xf] }
 0x82e   : > { %v7931_v0 = vsel %vm25176_vm9, %v18691_v31, %v7930_v47  ;;  %v14442_v30 = vsel %vm23185_vm6, %v14440_v19, %v14441_v51  ;;  %v19545_v31 = vrot.slane %v19511_v38, 10  ;;  %v19515_v19 = vld [vmem:[%s22657_s9 + $0x2ec] sm:$0xf]  ;;  %v7951_v3 = vrot.slane %v18671_v20, 7 }
 0x82f   : > { %v19559_v43 = vcombine.low %v14439_v5, %v14442_v30  ;;  %v18672_v5 = vld [vmem:[%s22657_s9 + $0x20c] sm:$0x7]  ;;  %v14459_v30 = vrot.slane %v19515_v19, 6 }
 0x831   : > { %18721 = vmatmul.mubr.msk.bf16.gmra.mrb[216].mxu0 %vm653_vm4, %v18703_v48  ;;  %19573 = vmatmul.mubr.msk.bf16.gmra.mrb[72].mxu1 %vm653_vm4, %v19555_v34  ;;  %v7925_v48 = vrot.slane %v7923_v13, 4  ;;  %v7926_v34 = vrot.slane %v18660_v58, 7  ;;  %v18664_v13 = vld [vmem:[%s22657_s9 + $0x1cc] sm:$0x8]  ;;  %v19510_v58 = vld [vmem:[%s22657_s9 + $0x2b8] sm:$0x3] }
 0x832   : > { %8182 = vmatprep.mubr.bf16.mxu0 %v27418_v16  ;;  %14678 = vmatprep.mubr.bf16.mxu1 %v27418_v16  ;;  %v18692_v56 = vrot.slane %v18664_v13, 11  ;;  %v19514_v13 = vld [vmem:[%s22657_s9 + $0x2e8] sm:$0xc] }
 0x833   : > { %v7927_v24 = vsel %vm25176_vm9, %v7925_v48, %v7926_v34  ;;  %v14447_v48 = vrot.slane %v14445_v33, 4  ;;  %v14448_v34 = vrot.slane %v19510_v58, 6 }
 0x834   : > { %v18706_v21 = vcombine.low %v7924_v37, %v7927_v24  ;;  %v7938_v10 = vsel %vm25176_vm9, %v18692_v56, %v7937_v54  ;;  %v14446_v37 = vsel %vm23185_vm6, %v19544_v59, %v14445_v33  ;;  %v19546_v56 = vrot.slane %v19514_v13, 10  ;;  %v18674_v59 = vld [vmem:[%s22657_s9 + $0x224] sm:$0xf] }
 0x835   : > { %v14449_v24 = vsel %vm23185_vm6, %v14447_v48, %v14448_v34  ;;  %v19518_v48 = vld [vmem:[%s22657_s9 + $0x308] sm:$0xf]  ;;  %v7958_v1 = vrot.slane %v18674_v59, 7 }
 0x836   : > { %v19560_v45 = vcombine.low %v14446_v37, %v14449_v24  ;;  %v18675_v37 = vld [vmem:[%s22657_s9 + $0x228] sm:$0x7]  ;;  %v14466_v24 = vrot.slane %v19518_v48, 6 }
 0x839   : > { %18722 = vmatmul.mubr.msk.bf16.gmra.mrb[220].mxu0 %vm653_vm4, %v18704_v32  ;;  %19574 = vmatmul.mubr.msk.bf16.gmra.mrb[76].mxu1 %vm653_vm4, %v19556_v6  ;;  %v7932_v32 = vrot.slane %v7930_v47, 4  ;;  %v7933_v6 = vrot.slane %v18663_v12, 7  ;;  %v18667_v47 = vld [vmem:[%s22657_s9 + $0x1e8] sm:$0x8]  ;;  %v19513_v12 = vld [vmem:[%s22657_s9 + $0x2d4] sm:$0x3] }
 0x83a   : > { %8192 = vmatprep.mubr.bf16.mxu0 %v27418_v16  ;;  %14688 = vmatprep.mubr.bf16.mxu1 %v27418_v16  ;;  %v18693_v22 = vrot.slane %v18667_v47, 11  ;;  %v19517_v47 = vld [vmem:[%s22657_s9 + $0x304] sm:$0xc] }
 0x83b   : > { %v7934_v53 = vsel %vm25176_vm9, %v7932_v32, %v7933_v6  ;;  %v14454_v32 = vrot.slane %v14452_v57, 4  ;;  %v14455_v6 = vrot.slane %v19513_v12, 6 }
 0x83c   : > { %v18707_v61 = vcombine.low %v7931_v0, %v7934_v53  ;;  %v7945_v51 = vsel %vm25176_vm9, %v18693_v22, %v7944_v14  ;;  %v14453_v0 = vsel %vm23185_vm6, %v19545_v31, %v14452_v57  ;;  %v19547_v22 = vrot.slane %v19517_v47, 10  ;;  %v18677_v31 = vld [vmem:[%s22657_s9 + $0x240] sm:$0xf] }
 0x83d   : > { %v14456_v53 = vsel %vm23185_vm6, %v14454_v32, %v14455_v6  ;;  %v19521_v32 = vld [vmem:[%s22657_s9 + $0x324] sm:$0xf]  ;;  %v7965_v19 = vrot.slane %v18677_v31, 7 }
 0x83e   : > { %v19561_v41 = vcombine.low %v14453_v0, %v14456_v53  ;;  %v18678_v0 = vld [vmem:[%s22657_s9 + $0x244] sm:$0x7]  ;;  %v14473_v53 = vrot.slane %v19521_v32, 6 }
 0x841   : > { %18723 = vmatmul.mubr.msk.bf16.gmra.mrb[224].mxu0 %vm653_vm4, %v18705_v36  ;;  %19575 = vmatmul.mubr.msk.bf16.gmra.mrb[80].mxu1 %vm653_vm4, %v19557_v28  ;;  %v7939_v36 = vrot.slane %v7937_v54, 4  ;;  %v7940_v28 = vrot.slane %v18666_v18, 7  ;;  %v18670_v54 = vld [vmem:[%s22657_s9 + $0x204] sm:$0x8]  ;;  %v19516_v18 = vld [vmem:[%s22657_s9 + $0x2f0] sm:$0x3] }
 0x842   : > { %8202 = vmatprep.mubr.bf16.mxu0 %v27418_v16  ;;  %14698 = vmatprep.mubr.bf16.mxu1 %v27418_v16  ;;  %v18694_v58 = vrot.slane %v18670_v54, 11  ;;  %v19520_v54 = vld [vmem:[%s22657_s9 + $0x320] sm:$0xc] }
 0x843   : > { %v7941_v9 = vsel %vm25176_vm9, %v7939_v36, %v7940_v28  ;;  %v14461_v36 = vrot.slane %v14459_v30, 4  ;;  %v14462_v28 = vrot.slane %v19516_v18, 6 }
 0x844   : > { %v18708_v23 = vcombine.low %v7938_v10, %v7941_v9  ;;  %v7952_v34 = vsel %vm25176_vm9, %v18694_v58, %v7951_v3  ;;  %v14460_v10 = vsel %vm23185_vm6, %v19546_v56, %v14459_v30  ;;  %v19548_v58 = vrot.slane %v19520_v54, 10  ;;  %v18680_v56 = vld [vmem:[%s22657_s9 + $0x25c] sm:$0xf] }
 0x845   : > { %v14463_v9 = vsel %vm23185_vm6, %v14461_v36, %v14462_v28  ;;  %v19524_v36 = vld [vmem:[%s22657_s9 + $0x340] sm:$0xf]  ;;  %v7972_v48 = vrot.slane %v18680_v56, 7 }
 0x846   : > { %v19562_v38 = vcombine.low %v14460_v10, %v14463_v9  ;;  %v18681_v10 = vld [vmem:[%s22657_s9 + $0x260] sm:$0x7]  ;;  %v14480_v9 = vrot.slane %v19524_v36, 6 }
 0x849   : > { %18724 = vmatmul.mubr.msk.bf16.gmra.mrb[228].mxu0 %vm653_vm4, %v18706_v21  ;;  %19576 = vmatmul.mubr.msk.bf16.gmra.mrb[84].mxu1 %vm653_vm4, %v19558_v39  ;;  %v7946_v21 = vrot.slane %v7944_v14, 4  ;;  %v7947_v39 = vrot.slane %v18669_v62, 7  ;;  %v18673_v14 = vld [vmem:[%s22657_s9 + $0x220] sm:$0x8]  ;;  %v19519_v62 = vld [vmem:[%s22657_s9 + $0x30c] sm:$0x3] }
 0x84a   : > { %8212 = vmatprep.mubr.bf16.mxu0 %v27418_v16  ;;  %14708 = vmatprep.mubr.bf16.mxu1 %v27418_v16  ;;  %v18695_v12 = vrot.slane %v18673_v14, 11  ;;  %v19523_v14 = vld [vmem:[%s22657_s9 + $0x33c] sm:$0xc] }
 0x84b   : > { %v7948_v26 = vsel %vm25176_vm9, %v7946_v21, %v7947_v39  ;;  %v14468_v21 = vrot.slane %v14466_v24, 4  ;;  %v14469_v39 = vrot.slane %v19519_v62, 6 }
 0x84c   : > { %v18709_v33 = vcombine.low %v7945_v51, %v7948_v26  ;;  %v7959_v6 = vsel %vm25176_vm9, %v18695_v12, %v7958_v1  ;;  %v14467_v51 = vsel %vm23185_vm6, %v19547_v22, %v14466_v24  ;;  %v19549_v12 = vrot.slane %v19523_v14, 10  ;;  %v18733_v22 = vld [vmem:[%s22657_s9 + $0x1fc] sm:$0xf] }
 0x84d   : > { %v14470_v26 = vsel %vm23185_vm6, %v14468_v21, %v14469_v39  ;;  %v19527_v21 = vld [vmem:[%s22657_s9 + $0x35c] sm:$0xf]  ;;  %v8445_v32 = vrot.slane %v18733_v22, 7  ;;  %v19533_v22 = vld [vmem:[%s22657_s9 + $0x394] sm:$0xf] }
 0x84e   : > { %v19563_v13 = vcombine.low %v14467_v51, %v14470_v26  ;;  %v18734_v51 = vld [vmem:[%s22657_s9 + $0x200] sm:$0x7]  ;;  %v14487_v26 = vrot.slane %v19527_v21, 6 }
 0x84f   : > { %v25675_v14 = vld.sshfl [vmem:[#allocation5 + $0x3c] sm:$0x33 pattern:$0x76325410] }
 0x850   : > { %v9465_v21 = vcombine.high %v25675_v14, %v25675_v14 }
 0x851   : > { %18725 = vmatmul.mubr.msk.bf16.gmra.mrb[232].mxu0 %vm653_vm4, %v18707_v61  ;;  %19577 = vmatmul.mubr.msk.bf16.gmra.mrb[88].mxu1 %vm653_vm4, %v19559_v43  ;;  %v7953_v61 = vrot.slane %v7951_v3, 4  ;;  %v7954_v43 = vrot.slane %v18672_v5, 7  ;;  %v18676_v3 = vld [vmem:[%s22657_s9 + $0x23c] sm:$0x8]  ;;  %v19522_v5 = vld [vmem:[%s22657_s9 + $0x328] sm:$0x3] }
 0x852   : > { %8222 = vmatprep.mubr.bf16.mxu0 %v27418_v16  ;;  %14718 = vmatprep.mubr.bf16.mxu1 %v27418_v16  ;;  %v18696_v18 = vrot.slane %v18676_v3, 11  ;;  %v19526_v3 = vld [vmem:[%s22657_s9 + $0x358] sm:$0xc] }
 0x853   : > { %v7955_v27 = vsel %vm25176_vm9, %v7953_v61, %v7954_v43  ;;  %v14475_v61 = vrot.slane %v14473_v53, 4  ;;  %v14476_v43 = vrot.slane %v19522_v5, 6 }
 0x854   : > { %v18710_v57 = vcombine.low %v7952_v34, %v7955_v27  ;;  %v7966_v28 = vsel %vm25176_vm9, %v18696_v18, %v7965_v19  ;;  %v14474_v34 = vsel %vm23185_vm6, %v19548_v58, %v14473_v53  ;;  %v19550_v18 = vrot.slane %v19526_v3, 10  ;;  %v18736_v58 = vld [vmem:[%s22657_s9 + $0x218] sm:$0xf] }
 0x855   : > { %v14477_v27 = vsel %vm23185_vm6, %v14475_v61, %v14476_v43  ;;  %v19530_v61 = vld [vmem:[%s22657_s9 + $0x378] sm:$0xf]  ;;  %v8452_v36 = vrot.slane %v18736_v58, 7  ;;  %v19536_v58 = vld [vmem:[%s22657_s9 + $0x3b0] sm:$0xf] }
 0x856   : > { %v19564_v47 = vcombine.low %v14474_v34, %v14477_v27  ;;  %v18737_v34 = vld [vmem:[%s22657_s9 + $0x21c] sm:$0x7]  ;;  %v14494_v27 = vrot.slane %v19530_v61, 6  ;;  %v19534_v3 = vld [vmem:[%s22657_s9 + $0x398] sm:$0x3] }
 0x859   : > { %18726 = vmatmul.mubr.msk.bf16.gmra.mrb[236].mxu0 %vm653_vm4, %v18708_v23  ;;  %19578 = vmatmul.mubr.msk.bf16.gmra.mrb[92].mxu1 %vm653_vm4, %v19560_v45  ;;  %v7960_v23 = vrot.slane %v7958_v1, 4  ;;  %v7961_v45 = vrot.slane %v18675_v37, 7  ;;  %v18679_v1 = vld [vmem:[%s22657_s9 + $0x258] sm:$0x8]  ;;  %v19525_v37 = vld [vmem:[%s22657_s9 + $0x344] sm:$0x3] }
 0x85a   : > { %8232 = vmatprep.mubr.bf16.mxu0 %v27418_v16  ;;  %14728 = vmatprep.mubr.bf16.mxu1 %v27418_v16  ;;  %v18697_v62 = vrot.slane %v18679_v1, 11  ;;  %v19529_v1 = vld [vmem:[%s22657_s9 + $0x374] sm:$0xc] }
 0x85b   : > { %v7962_v20 = vsel %vm25176_vm9, %v7960_v23, %v7961_v45  ;;  %v14482_v23 = vrot.slane %v14480_v9, 4  ;;  %v14483_v45 = vrot.slane %v19525_v37, 6 }
 0x85c   : > { %v18711_v30 = vcombine.low %v7959_v6, %v7962_v20  ;;  %v7973_v39 = vsel %vm25176_vm9, %v18697_v62, %v7972_v48  ;;  %v14481_v6 = vsel %vm23185_vm6, %v19549_v12, %v14480_v9  ;;  %v8455_v62 = vrot.slane %v18737_v34, 7 }
 0x85d   : > { %v14484_v20 = vsel %vm23185_vm6, %v14482_v23, %v14483_v45  ;;  %v18739_v23 = vld [vmem:[%s22657_s9 + $0x234] sm:$0xf]  ;;  %v8937_v45 = vsel %vm751_vm0, %v25392_v50, 0  ;;  %v14508_v34 = vrot.slane %v19536_v58, 6 }
 0x85e   : > { %v19565_v54 = vcombine.low %v14481_v6, %v14484_v20  ;;  %v18738_v20 = vld [vmem:[%s22657_s9 + $0x230] sm:$0x8] }
 0x861   : > { %18727 = vmatmul.mubr.msk.bf16.gmra.mrb[240].mxu0 %vm653_vm4, %v18709_v33  ;;  %19579 = vmatmul.mubr.msk.bf16.gmra.mrb[96].mxu1 %vm653_vm4, %v19561_v41  ;;  %v7967_v33 = vrot.slane %v7965_v19, 4  ;;  %v7968_v41 = vrot.slane %v18678_v0, 7  ;;  %v18732_v19 = vld [vmem:[%s22657_s9 + $0x1f8] sm:$0x8]  ;;  %v19528_v0 = vld [vmem:[%s22657_s9 + $0x360] sm:$0x3] }
 0x862   : > { %8242 = vmatprep.mubr.bf16.mxu0 %v27418_v16  ;;  %14738 = vmatprep.mubr.bf16.mxu1 %v27418_v16  ;;  %v18780_v5 = vrot.slane %v18732_v19, 11  ;;  %v18740_v19 = vld [vmem:[%s22657_s9 + $0x238] sm:$0x7] }
 0x863   : > { %v7969_v59 = vsel %vm25176_vm9, %v7967_v33, %v7968_v41  ;;  %v14489_v33 = vrot.slane %v14487_v26, 4  ;;  %v14490_v41 = vrot.slane %v19528_v0, 6 }
 0x864   : > { %v18712_v24 = vcombine.low %v7966_v28, %v7969_v59  ;;  %v8446_v43 = vsel %vm25176_vm9, %v18780_v5, %v8445_v32  ;;  %v14488_v28 = vsel %vm23185_vm6, %v19550_v18, %v14487_v26  ;;  %v19532_v26 = vld [vmem:[%s22657_s9 + $0x390] sm:$0xc] }
 0x865   : > { %v14491_v59 = vsel %vm23185_vm6, %v14489_v33, %v14490_v41  ;;  %v14504_v33 = vrot.slane %v19534_v3, 6  ;;  %v18742_v41 = vld [vmem:[%s22657_s9 + $0x250] sm:$0xf] }
 0x866   : > { %v19566_v37 = vcombine.low %v14488_v28, %v14491_v59  ;;  %v18741_v28 = vld [vmem:[%s22657_s9 + $0x24c] sm:$0x8]  ;;  %v18743_v59 = vld [vmem:[%s22657_s9 + $0x254] sm:$0x7] }
 0x867   : > { %v19734_v3 = vld.sshfl [vmem:[#allocation5 + $0x68] sm:$0x33 pattern:$0x76325410] }
 0x869   : > { %18728 = vmatmul.mubr.msk.bf16.gmra.mrb[244].mxu0 %vm653_vm4, %v18710_v57  ;;  %19580 = vmatmul.mubr.msk.bf16.gmra.mrb[100].mxu1 %vm653_vm4, %v19562_v38  ;;  %v7974_v57 = vrot.slane %v7972_v48, 4  ;;  %v7975_v38 = vrot.slane %v18681_v10, 7  ;;  %v18735_v48 = vld [vmem:[%s22657_s9 + $0x214] sm:$0x8]  ;;  %v19531_v10 = vld [vmem:[%s22657_s9 + $0x37c] sm:$0x3] }
 0x86a   : > { %8252 = vmatprep.mubr.bf16.mxu0 %v27418_v16  ;;  %14748 = vmatprep.mubr.bf16.mxu1 %v27418_v16  ;;  %v14497_v12 = vrot.slane %v19531_v10, 6 }
 0x86b   : > { %v7976_v31 = vsel %vm25176_vm9, %v7974_v57, %v7975_v38  ;;  %v19551_v57 = vrot.slane %v19529_v1, 10  ;;  %v14496_v38 = vrot.slane %v14494_v27, 4  ;;  %v19537_v1 = vld [vmem:[%s22657_s9 + $0x3b4] sm:$0x3] }
 0x86c   : > { %v18713_v53 = vcombine.low %v7973_v39, %v7976_v31 }
 0x86d   : > { %v14495_v50 = vsel %vm23185_vm6, %v19551_v57, %v14494_v27  ;;  %v14498_v6 = vsel %vm23185_vm6, %v14496_v38, %v14497_v12  ;;  %v19535_v27 = vld [vmem:[%s22657_s9 + $0x3ac] sm:$0xc]  ;;  %v14510_v57 = vrot.slane %v14508_v34, 4  ;;  %v14511_v38 = vrot.slane %v19537_v1, 6 }
 0x86e   : > { %v18745_v12 = vld [vmem:[%s22657_s9 + $0x26c] sm:$0xf] }
 0x86f   : > { %v21958_v1 = vld [vmem:[%s22657_s9 + $0x40c] sm:$0xff]  }
 0x871   : > { %18729 = vmatmul.mubr.msk.bf16.gmra.mrb[248].mxu0 %vm653_vm4, %v18711_v30  ;;  %19581 = vmatmul.mubr.msk.bf16.gmra.mrb[104].mxu1 %vm653_vm4, %v19563_v13  ;;  %v8447_v30 = vrot.slane %v8445_v32, 4  ;;  %v8448_v13 = vrot.slane %v18734_v51, 7  ;;  %v8459_v32 = vrot.slane %v18739_v23, 7  ;;  %v14501_v51 = vrot.slane %v19533_v22, 6 }
 0x872   : > { %8262 = vmatprep.mubr.bf16.mxu0 %v27418_v16  ;;  %14758 = vmatprep.mubr.bf16.mxu1 %v27418_v16 }
 0x873   : > { %v8449_v56 = vsel %vm25176_vm9, %v8447_v30, %v8448_v13  ;;  %v8461_v5 = vrot.slane %v8459_v32, 4  ;;  %v8462_v30 = vrot.slane %v18740_v19, 7  ;;  %v19552_v13 = vrot.slane %v19532_v26, 10  ;;  %v18748_v26 = vld [vmem:[%s22657_s9 + $0x288] sm:$0xf] }
 0x874   : > { %v18796_v9 = vcombine.low %v8446_v43, %v8449_v56  ;;  %v14503_v18 = vrot.slane %v14501_v51, 4 }
 0x875   : > { %v8463_v43 = vsel %vm25176_vm9, %v8461_v5, %v8462_v30  ;;  %v14502_v56 = vsel %vm23185_vm6, %v19552_v13, %v14501_v51  ;;  %v15584_v5 = vcombine.high %v19734_v3, %v19734_v3  ;;  %v18747_v30 = vld [vmem:[%s22657_s9 + $0x284] sm:$0x8]  ;;  %v18749_v13 = vld [vmem:[%s22657_s9 + $0x28c] sm:$0x7] }
 0x877   : > { %19735 = vmatprep.subr.msk.bf16.mxu1 %vm751_vm0, %v15584_v5 }
 0x879   : > { %18730 = vmatmul.mubr.msk.bf16.gmra.mrb[252].mxu0 %vm653_vm4, %v18712_v24  ;;  %19582 = vmatmul.mubr.msk.bf16.gmra.mrb[108].mxu1 %vm653_vm4, %v19564_v47  ;;  %v18781_v24 = vrot.slane %v18735_v48, 11  ;;  %v8454_v47 = vrot.slane %v8452_v36, 4  ;;  %v8466_v48 = vrot.slane %v18742_v41, 7  ;;  %v18785_v41 = vrot.slane %v18747_v30, 11 }
 0x87a   : > { %8272 = vmatprep.mubr.bf16.mxu0 %v27418_v16  ;;  %14768 = vmatprep.mubr.bf16.mxu1 %v27418_v16 }
 0x87b   : > { %v8453_v39 = vsel %vm25176_vm9, %v18781_v24, %v8452_v36  ;;  %v8456_v31 = vsel %vm25176_vm9, %v8454_v47, %v8455_v62  ;;  %v14505_v36 = vsel %vm23185_vm6, %v14503_v18, %v14504_v33  ;;  %v8469_v24 = vrot.slane %v18743_v59, 7  ;;  %v21957_v33 = vld [vmem:[%s22657_s9 + $0x3f0] sm:$0xff]  }
 0x87c   : > { %v18797_v0 = vcombine.low %v8453_v39, %v8456_v31  ;;  %v8468_v47 = vrot.slane %v8466_v48, 4  ;;  %v19553_v62 = vrot.slane %v19535_v27, 10  ;;  %v8473_v39 = vrot.slane %v18745_v12, 7  ;;  %v18744_v31 = vld [vmem:[%s22657_s9 + $0x268] sm:$0x8] }
 0x87d   : > { %v18755_v12 = vld [vmem:[%s22657_s9 + $0x2c4] sm:$0x7] }
 0x87e   : > { %v14509_v22 = vsel %vm23185_vm6, %v19553_v62, %v14508_v34  ;;  %v8475_v19 = vrot.slane %v8473_v39, 4  ;;  %v18752_v34 = vld [vmem:[%s22657_s9 + $0x2a8] sm:$0x7] }
 0x881   : > { %18731 = vmatmul.mubr.msk.bf16.gmra.mrb[0].mxu0 %vm653_vm4, %v18713_v53  ;;  %19583 = vmatmul.mubr.msk.bf16.gmra.mrb[112].mxu1 %vm653_vm4, %v19565_v54  ;;  %v19567_v53 = vcombine.low %v14495_v50, %v14498_v6  ;;  %v18782_v54 = vrot.slane %v18738_v20, 11  ;;  %v18784_v20 = vrot.slane %v18744_v31, 11  ;;  %v18757_v31 = vld [vmem:[%s22657_s9 + $0x2dc] sm:$0xf] }
 0x882   : > { %8700 = vmatprep.mubr.bf16.mxu0 %v27418_v16  ;;  %14778 = vmatprep.mubr.bf16.mxu1 %v27418_v16 }
 0x883   : > { %v8460_v61 = vsel %vm25176_vm9, %v18782_v54, %v8459_v32  ;;  %v18746_v32 = vld [vmem:[%s22657_s9 + $0x270] sm:$0x7]  ;;  %v8480_v54 = vrot.slane %v18748_v26, 7  ;;  %v21960_v26 = vld [vmem:[%s22657_s9 + $0x444] sm:$0xff]  }
 0x884   : > { %v18798_v10 = vcombine.low %v8460_v61, %v8463_v43  ;;  %v8476_v51 = vrot.slane %v18746_v32, 7  ;;  %v8483_v61 = vrot.slane %v18749_v13, 7  ;;  %v18751_v43 = vld [vmem:[%s22657_s9 + $0x2a4] sm:$0xf] }
 0x885   : > { %v8482_v58 = vrot.slane %v8480_v54, 4  ;;  %v8487_v59 = vrot.slane %v18751_v43, 7 }
 0x889   : > { %18814 = vmatmul.mubr.msk.bf16.vlgmr.msra.gmra.mrb[196].mxu0 %vm653_vm4, %v18796_v9  ;;  %19584 = vmatmul.mubr.msk.bf16.gmra.mrb[116].mxu1 %vm653_vm4, %v19566_v37  ;;  %v19568_v9 = vcombine.low %v14502_v56, %v14505_v36  ;;  %v18783_v37 = vrot.slane %v18741_v28, 11  ;;  %v15634_v56 = vsel %vm751_vm0, %v19734_v3, 0  ;;  %v8481_v36 = vsel %vm25176_vm9, %v18785_v41, %v8480_v54  ;;  %v18760_v54 = vld [vmem:[%s22657_s9 + $0x2f8] sm:$0xf] }
 0x88a   : > { %8943 = vmatpush1.bf16.msra.mxu0 %v8937_v45  ;;  %8710 = vmatprep.mubr.bf16.mxu0 %v27418_v16  ;;  %v8470_v45 = vsel %vm25176_vm9, %v8468_v47, %v8469_v24  ;;  %v8484_v28 = vsel %vm25176_vm9, %v8482_v58, %v8483_v61  ;;  %v18754_v24 = vld [vmem:[%s22657_s9 + $0x2c0] sm:$0xf]  ;;  %v8508_v13 = vrot.slane %v18760_v54, 7 }
 0x88b   : > { %14788 = vmatprep.mubr.bf16.mxu1 %v27418_v16  ;;  %18929 = vmatprep.subr.msk.bf16.mxu0 %vm751_vm0, %v9465_v21  ;;  %v8467_v23 = vsel %vm25176_vm9, %v18783_v37, %v8466_v48  ;;  %v14512_v21 = vsel %vm23185_vm6, %v14510_v57, %v14511_v38  ;;  %v18750_v48 = vld [vmem:[%s22657_s9 + $0x2a0] sm:$0x8]  ;;  %v18801_v27 = vcombine.low %v8481_v36, %v8484_v28  ;;  %v8490_v37 = vrot.slane %v18752_v34, 7  ;;  %v18753_v38 = vld [vmem:[%s22657_s9 + $0x2bc] sm:$0x8] }
 0x88c   : > { %v18799_v50 = vcombine.low %v8467_v23, %v8470_v45  ;;  %v19569_v6 = vcombine.low %v14509_v22, %v14512_v21  ;;  %v8494_v57 = vrot.slane %v18754_v24, 7  ;;  %v21959_v45 = vld [vmem:[%s22657_s9 + $0x428] sm:$0xff]   ;;  %v18787_v22 = vrot.slane %v18753_v38, 11  ;;  %v21961_v58 = vld [vmem:[%s22657_s9 + $0x460] sm:$0xff]   ;;  %v18763_v36 = vld [vmem:[%s22657_s9 + $0x314] sm:$0xf] }
 0x88d   : > { %v8510_v43 = vrot.slane %v8508_v13, 4  ;;  %v18762_v34 = vld [vmem:[%s22657_s9 + $0x310] sm:$0x8] }
 0x88e   : > { %v8496_v21 = vrot.slane %v8494_v57, 4  ;;  %v8495_v32 = vsel %vm25176_vm9, %v18787_v22, %v8494_v57  ;;  %v21963_v22 = vld [vmem:[%s22657_s9 + $0x498] sm:$0xff]  }
 0x891   : > { %18815 = vmatmul.mubr.msk.bf16.gmra.mrb[200].mxu0 %vm653_vm4, %v18797_v0  ;;  %19585 = vmatmul.mubr.msk.bf16.gmra.mrb[120].mxu1 %vm653_vm4, %v19567_v53  ;;  %v8474_v0 = vsel %vm25176_vm9, %v18784_v20, %v8473_v39  ;;  %v8477_v53 = vsel %vm25176_vm9, %v8475_v19, %v8476_v51  ;;  %v8497_v39 = vrot.slane %v18755_v12, 7  ;;  %v18756_v20 = vld [vmem:[%s22657_s9 + $0x2d8] sm:$0x8]  ;;  %v18758_v19 = vld [vmem:[%s22657_s9 + $0x2e0] sm:$0x7] }
 0x892   : > { %8720 = vmatprep.mubr.bf16.mxu0 %v27418_v16  ;;  %14798 = vmatprep.mubr.bf16.mxu1 %v27418_v16  ;;  %v18800_v18 = vcombine.low %v8474_v0, %v8477_v53  ;;  %v18788_v3 = vrot.slane %v18756_v20, 11  ;;  %v8504_v53 = vrot.slane %v18758_v19, 7  ;;  %v18765_v12 = vld [vmem:[%s22657_s9 + $0x32c] sm:$0x8]  ;;  %v18768_v19 = vld [vmem:[%s22657_s9 + $0x348] sm:$0x8] }
 0x899   : > { %18816 = vmatmul.mubr.msk.bf16.gmra.mrb[204].mxu0 %vm653_vm4, %v18798_v10  ;;  %19586 = vmatmul.mubr.msk.bf16.gmra.mrb[124].mxu1 %vm653_vm4, %v19568_v9  ;;  %v18786_v10 = vrot.slane %v18750_v48, 11  ;;  %v8489_v9 = vrot.slane %v8487_v59, 4  ;;  %v8515_v48 = vrot.slane %v18763_v36, 7 }
 0x89a   : > { %8730 = vmatprep.mubr.bf16.mxu0 %v27418_v16  ;;  %14808 = vmatprep.mubr.bf16.mxu1 %v27418_v16 }
 0x89b   : > { %v8488_v47 = vsel %vm25176_vm9, %v18786_v10, %v8487_v59  ;;  %v8491_v62 = vsel %vm25176_vm9, %v8489_v9, %v8490_v37  ;;  %v21962_v10 = vld [vmem:[%s22657_s9 + $0x47c] sm:$0xff]   ;;  %v18790_v9 = vrot.slane %v18762_v34, 11  ;;  %v8517_v37 = vrot.slane %v8515_v48, 4 }
 0x89c   : > { %v18802_v23 = vcombine.low %v8488_v47, %v8491_v62  ;;  %v18766_v47 = vld [vmem:[%s22657_s9 + $0x330] sm:$0xf] }
 0x89d   : > { %v8516_v62 = vsel %vm25176_vm9, %v18790_v9, %v8515_v48  ;;  %v8522_v38 = vrot.slane %v18766_v47, 7  ;;  %v21966_v9 = vld [vmem:[%s22657_s9 + $0x4ec] sm:$0xff]  }
 0x8a1   : > { %18817 = vmatmul.mubr.msk.bf16.gmra.mrb[208].mxu0 %vm653_vm4, %v18799_v50  ;;  %19587 = vmatmul.mubr.msk.bf16.gmra.mrb[128].mxu1 %vm653_vm4, %v19569_v6  ;;  %v8498_v50 = vsel %vm25176_vm9, %v8496_v21, %v8497_v39  ;;  %v8501_v6 = vrot.slane %v18757_v31, 7  ;;  %v18791_v21 = vrot.slane %v18765_v12, 11  ;;  %v8524_v39 = vrot.slane %v8522_v38, 4 }
 0x8a2   : > { %8740 = vmatprep.mubr.bf16.mxu0 %v27418_v16  ;;  %15093 = vmatprep.mubr.bf16.mxu1 %v27418_v16  ;;  %v18803_v51 = vcombine.low %v8495_v32, %v8498_v50  ;;  %v18769_v32 = vld [vmem:[%s22657_s9 + $0x34c] sm:$0xf] }
 0x8a3   : > { %v8503_v0 = vrot.slane %v8501_v6, 4  ;;  %v8502_v5 = vsel %vm25176_vm9, %v18788_v3, %v8501_v6  ;;  %v8523_v50 = vsel %vm25176_vm9, %v18791_v21, %v8522_v38  ;;  %v8529_v20 = vrot.slane %v18769_v32, 7  ;;  %v21964_v3 = vld [vmem:[%s22657_s9 + $0x4b4] sm:$0xff]   ;;  %v21967_v21 = vld [vmem:[%s22657_s9 + $0x508] sm:$0xff]  }
 0x8a5   : > { %v8505_v30 = vsel %vm25176_vm9, %v8503_v0, %v8504_v53  ;;  %v18792_v0 = vrot.slane %v18768_v19, 11  ;;  %v8531_v53 = vrot.slane %v8529_v20, 4  ;;  %v21968_v19 = vld [vmem:[%s22657_s9 + $0x524] sm:$0xff]  }
 0x8a6   : > { %v18804_v41 = vcombine.low %v8502_v5, %v8505_v30  ;;  %v18772_v5 = vld [vmem:[%s22657_s9 + $0x368] sm:$0xf] }
 0x8a7   : > { %v8530_v30 = vsel %vm25176_vm9, %v18792_v0, %v8529_v20 }
 0x8a9   : > { %18818 = vmatmul.mubr.msk.bf16.gmra.mrb[212].mxu0 %vm653_vm4, %v18800_v18  ;;  %19638 = vmatmul.mubr.msk.bf16.vlgmr.msra.gmra.mrb[68].mxu1 %vm653_vm4, %v21957_v33  ;;  %v18759_v18 = vld [vmem:[%s22657_s9 + $0x2f4] sm:$0x8]  ;;  %v18761_v33 = vld [vmem:[%s22657_s9 + $0x2fc] sm:$0x7] }
 0x8aa   : > { %8750 = vmatprep.mubr.bf16.mxu0 %v27418_v16  ;;  %15103 = vmatprep.mubr.bf16.mxu1 %v27418_v16  ;;  %v18789_v61 = vrot.slane %v18759_v18, 11  ;;  %v8536_v18 = vrot.slane %v18772_v5, 7  ;;  %v19656_v5 = vld [vmem:[%s22657_s9 + $0x400] sm:$0x1] }
 0x8ab   : > { %15640 = vmatpush1.bf16.msra.mxu1 %v15634_v56  ;;  %v8511_v56 = vrot.slane %v18761_v33, 7  ;;  %v18771_v33 = vld [vmem:[%s22657_s9 + $0x364] sm:$0x8] }
 0x8ac   : > { %v8509_v28 = vsel %vm25176_vm9, %v18789_v61, %v8508_v13  ;;  %v21965_v61 = vld [vmem:[%s22657_s9 + $0x4d0] sm:$0xff]  }
 0x8ad   : > { %v8512_v59 = vsel %vm25176_vm9, %v8510_v43, %v8511_v56  ;;  %v18793_v43 = vrot.slane %v18771_v33, 11  ;;  %v8538_v56 = vrot.slane %v8536_v18, 4  ;;  %v15419_v33 = vrot.slane %v19656_v5, 5 }
 0x8b1   : > { %18819 = vmatmul.mubr.msk.bf16.gmra.mrb[216].mxu0 %vm653_vm4, %v18801_v27  ;;  %19639 = vmatmul.mubr.msk.bf16.gmra.mrb[72].mxu1 %vm653_vm4, %v21958_v1  ;;  %v18764_v27 = vld [vmem:[%s22657_s9 + $0x318] sm:$0x7]  ;;  %v18805_v1 = vcombine.low %v8509_v28, %v8512_v59  ;;  %v18775_v28 = vld [vmem:[%s22657_s9 + $0x384] sm:$0xf]  ;;  %v8537_v59 = vsel %vm25176_vm9, %v18793_v43, %v8536_v18 }
 0x8b2   : > { %8760 = vmatprep.mubr.bf16.mxu0 %v27418_v16  ;;  %15113 = vmatprep.mubr.bf16.mxu1 %v27418_v16  ;;  %v8518_v24 = vrot.slane %v18764_v27, 7  ;;  %v8543_v34 = vrot.slane %v18775_v28, 7  ;;  %v18774_v27 = vld [vmem:[%s22657_s9 + $0x380] sm:$0x8]  ;;  %v19659_v28 = vld [vmem:[%s22657_s9 + $0x41c] sm:$0x1] }
 0x8b4   : > { %v8519_v57 = vsel %vm25176_vm9, %v8517_v37, %v8518_v24  ;;  %v18794_v37 = vrot.slane %v18774_v27, 11  ;;  %v8545_v24 = vrot.slane %v8543_v34, 4  ;;  %v19661_v27 = vld [vmem:[%s22657_s9 + $0x434] sm:$0xf] }
 0x8b9   : > { %18820 = vmatmul.mubr.msk.bf16.gmra.mrb[220].mxu0 %vm653_vm4, %v18802_v23  ;;  %19640 = vmatmul.mubr.msk.bf16.gmra.mrb[76].mxu1 %vm653_vm4, %v21959_v45  ;;  %v18767_v23 = vld [vmem:[%s22657_s9 + $0x334] sm:$0x7]  ;;  %v18806_v45 = vcombine.low %v8516_v62, %v8519_v57  ;;  %v18778_v62 = vld [vmem:[%s22657_s9 + $0x3a0] sm:$0xf]  ;;  %v8544_v57 = vsel %vm25176_vm9, %v18794_v37, %v8543_v34  ;;  %v15426_v34 = vrot.slane %v19659_v28, 5  ;;  %v15430_v37 = vrot.slane %v19661_v27, 5 }
 0x8ba   : > { %8770 = vmatprep.mubr.bf16.mxu0 %v27418_v16  ;;  %15123 = vmatprep.mubr.bf16.mxu1 %v27418_v16  ;;  %v8525_v31 = vrot.slane %v18767_v23, 7  ;;  %v8550_v12 = vrot.slane %v18778_v62, 7  ;;  %v18777_v23 = vld [vmem:[%s22657_s9 + $0x39c] sm:$0x8]  ;;  %v19674_v28 = vld [vmem:[%s22657_s9 + $0x4a8] sm:$0x1] }
 0x8bc   : > { %v8526_v6 = vsel %vm25176_vm9, %v8524_v39, %v8525_v31  ;;  %v18795_v39 = vrot.slane %v18777_v23, 11  ;;  %v8552_v31 = vrot.slane %v8550_v12, 4 }
 0x8c1   : > { %18821 = vmatmul.mubr.msk.bf16.gmra.mrb[224].mxu0 %vm653_vm4, %v18803_v51  ;;  %19641 = vmatmul.mubr.msk.bf16.gmra.mrb[80].mxu1 %vm653_vm4, %v21960_v26  ;;  %v18770_v51 = vld [vmem:[%s22657_s9 + $0x350] sm:$0x7]  ;;  %v18807_v26 = vcombine.low %v8523_v50, %v8526_v6  ;;  %v8551_v50 = vsel %vm25176_vm9, %v18795_v39, %v8550_v12  ;;  %v19665_v39 = vld [vmem:[%s22657_s9 + $0x454] sm:$0x1] }
 0x8c2   : > { %8780 = vmatprep.mubr.bf16.mxu0 %v27418_v16  ;;  %15133 = vmatprep.mubr.bf16.mxu1 %v27418_v16  ;;  %v8532_v54 = vrot.slane %v18770_v51, 7  ;;  %v25880_v51 = vld.sshfl [vmem:[#allocation5 + $0x40] sm:$0x33 pattern:$0x76325410] }
 0x8c3   : > { %v10044_v0 = vcombine.high %v25880_v51, %v25880_v51  ;;  %v19664_v12 = vld [vmem:[%s22657_s9 + $0x450] sm:$0xf] }
 0x8c4   : > { %v8533_v13 = vsel %vm25176_vm9, %v8531_v53, %v8532_v54  ;;  %v21970_v53 = vld [vmem:[%s22657_s9 + $0x55c] sm:$0xff]  }
 0x8c9   : > { %18822 = vmatmul.mubr.msk.bf16.gmra.mrb[228].mxu0 %vm653_vm4, %v18804_v41  ;;  %19642 = vmatmul.mubr.msk.bf16.gmra.mrb[84].mxu1 %vm653_vm4, %v21961_v58  ;;  %v18773_v41 = vld [vmem:[%s22657_s9 + $0x36c] sm:$0x7]  ;;  %v18808_v58 = vcombine.low %v8530_v30, %v8533_v13  ;;  %v21972_v30 = vld [vmem:[%s22657_s9 + $0x594] sm:$0xff]  }
 0x8ca   : > { %8790 = vmatprep.mubr.bf16.mxu0 %v27418_v16  ;;  %15143 = vmatprep.mubr.bf16.mxu1 %v27418_v16  ;;  %v8539_v36 = vrot.slane %v18773_v41, 7  ;;  %v19658_v41 = vld [vmem:[%s22657_s9 + $0x418] sm:$0xf] }
 0x8cb   : > { %v15423_v43 = vrot.slane %v19658_v41, 5 }
 0x8cc   : > { %v8540_v48 = vsel %vm25176_vm9, %v8538_v56, %v8539_v36  ;;  %v19657_v36 = vld [vmem:[%s22657_s9 + $0x414] sm:$0xe] }
 0x8d1   : > { %18823 = vmatmul.mubr.msk.bf16.gmra.mrb[232].mxu0 %vm653_vm4, %v18805_v1  ;;  %19643 = vmatmul.mubr.msk.bf16.gmra.mrb[88].mxu1 %vm653_vm4, %v21962_v10  ;;  %v18776_v1 = vld [vmem:[%s22657_s9 + $0x388] sm:$0x7]  ;;  %v18809_v10 = vcombine.low %v8537_v59, %v8540_v48  ;;  %v19703_v59 = vrot.slane %v19657_v36, 9  ;;  %v15425_v48 = vrot.slane %v15423_v43, 4  ;;  %v19672_v36 = vld [vmem:[%s22657_s9 + $0x4a0] sm:$0xe] }
 0x8d2   : > { %8800 = vmatprep.mubr.bf16.mxu0 %v27418_v16  ;;  %15153 = vmatprep.mubr.bf16.mxu1 %v27418_v16  ;;  %v8546_v47 = vrot.slane %v18776_v1, 7 }
 0x8d4   : > { %v8547_v38 = vsel %vm25176_vm9, %v8545_v24, %v8546_v47  ;;  %v19660_v24 = vld [vmem:[%s22657_s9 + $0x430] sm:$0xe]  ;;  %v19662_v47 = vld [vmem:[%s22657_s9 + $0x438] sm:$0x1] }
 0x8d9   : > { %18824 = vmatmul.mubr.msk.bf16.gmra.mrb[236].mxu0 %vm653_vm4, %v18806_v45  ;;  %19644 = vmatmul.mubr.msk.bf16.gmra.mrb[92].mxu1 %vm653_vm4, %v21963_v22  ;;  %v18779_v45 = vld [vmem:[%s22657_s9 + $0x3a4] sm:$0x7]  ;;  %v18810_v22 = vcombine.low %v8544_v57, %v8547_v38  ;;  %v15432_v57 = vrot.slane %v15430_v37, 4  ;;  %v15433_v38 = vrot.slane %v19662_v47, 5 }
 0x8da   : > { %8810 = vmatprep.mubr.bf16.mxu0 %v27418_v16  ;;  %15163 = vmatprep.mubr.bf16.mxu1 %v27418_v16  ;;  %v8553_v32 = vrot.slane %v18779_v45, 7 }
 0x8db   : > { %v15434_v45 = vsel %vm22828_vm3, %v15432_v57, %v15433_v38 }
 0x8dc   : > { %v8554_v6 = vsel %vm25176_vm9, %v8552_v31, %v8553_v32 }
 0x8dd   : > { %v18811_v20 = vcombine.low %v8551_v50, %v8554_v6  ;;  %v15440_v50 = vrot.slane %v19665_v39, 5  ;;  %v19667_v6 = vld [vmem:[%s22657_s9 + $0x46c] sm:$0xf] }
 0x8e1   : > { %18825 = vmatmul.mubr.msk.bf16.gmra.mrb[240].mxu0 %vm653_vm4, %v18807_v26  ;;  %19645 = vmatmul.mubr.msk.bf16.gmra.mrb[96].mxu1 %vm653_vm4, %v21964_v3  ;;  %v21969_v26 = vld [vmem:[%s22657_s9 + $0x540] sm:$0xff]   ;;  %v9515_v3 = vsel %vm751_vm0, %v25675_v14, 0  ;;  %v19655_v14 = vld [vmem:[%s22657_s9 + $0x3fc] sm:$0xf] }
 0x8e2   : > { %8820 = vmatprep.mubr.bf16.mxu0 %v27418_v16  ;;  %15173 = vmatprep.mubr.bf16.mxu1 %v27418_v16  ;;  %v15416_v54 = vrot.slane %v19655_v14, 5 }
 0x8e4   : > { %v15418_v18 = vrot.slane %v15416_v54, 4 }
 0x8e9   : > { %18826 = vmatmul.mubr.msk.bf16.gmra.mrb[244].mxu0 %vm653_vm4, %v18808_v58  ;;  %19646 = vmatmul.mubr.msk.bf16.gmra.mrb[100].mxu1 %vm653_vm4, %v21965_v61  ;;  %v15420_v61 = vsel %vm22828_vm3, %v15418_v18, %v15419_v33  ;;  %v19671_v18 = vld [vmem:[%s22657_s9 + $0x48c] sm:$0x1] }
 0x8ea   : > { %8830 = vmatprep.mubr.bf16.mxu0 %v27418_v16  ;;  %15183 = vmatprep.mubr.bf16.mxu1 %v27418_v16 }
 0x8f1   : > { %18827 = vmatmul.mubr.msk.bf16.gmra.mrb[248].mxu0 %vm653_vm4, %v18809_v10  ;;  %19647 = vmatmul.mubr.msk.bf16.gmra.mrb[104].mxu1 %vm653_vm4, %v21966_v9  ;;  %v15424_v10 = vsel %vm22828_vm3, %v19703_v59, %v15423_v43  ;;  %v15427_v9 = vsel %vm22828_vm3, %v15425_v48, %v15426_v34  ;;  %v19708_v59 = vrot.slane %v19672_v36, 9  ;;  %v15461_v48 = vrot.slane %v19674_v28, 5  ;;  %v19676_v34 = vld [vmem:[%s22657_s9 + $0x4c0] sm:$0xf]  ;;  %v19691_v36 = vld [vmem:[%s22657_s9 + $0x54c] sm:$0xf] }
 0x8f2   : > { %8840 = vmatprep.mubr.bf16.mxu0 %v27418_v16  ;;  %15193 = vmatprep.mubr.bf16.mxu1 %v27418_v16  ;;  %v19719_v62 = vcombine.low %v15424_v10, %v15427_v9  ;;  %v15465_v10 = vrot.slane %v19676_v34, 5  ;;  %v19675_v9 = vld [vmem:[%s22657_s9 + $0x4bc] sm:$0xe]  ;;  %v15500_v34 = vrot.slane %v19691_v36, 5  ;;  %v19700_v36 = vld [vmem:[%s22657_s9 + $0x5a0] sm:$0xf] }
 0x8f3   : > { %v19709_v47 = vrot.slane %v19675_v9, 9 }
 0x8f5   : > { %v15466_v57 = vsel %vm22828_vm3, %v19709_v47, %v15465_v10  ;;  %v15502_v47 = vrot.slane %v15500_v34, 4 }
 0x8f9   : > { %18828 = vmatmul.mubr.msk.bf16.gmra.mrb[252].mxu0 %vm653_vm4, %v18810_v22  ;;  %19648 = vmatmul.mubr.msk.bf16.gmra.mrb[108].mxu1 %vm653_vm4, %v21967_v21  ;;  %v15437_v22 = vrot.slane %v19664_v12, 5  ;;  %v19663_v21 = vld [vmem:[%s22657_s9 + $0x44c] sm:$0xe] }
 0x8fa   : > { %8850 = vmatprep.mubr.bf16.mxu0 %v27418_v16  ;;  %15203 = vmatprep.mubr.bf16.mxu1 %v27418_v16  ;;  %v19705_v32 = vrot.slane %v19663_v21, 9 }
 0x901   : > { %18829 = vmatmul.mubr.msk.bf16.gmra.mrb[0].mxu0 %vm653_vm4, %v18811_v20  ;;  %19649 = vmatmul.mubr.msk.bf16.gmra.mrb[112].mxu1 %vm653_vm4, %v21968_v19  ;;  %v15438_v20 = vsel %vm22828_vm3, %v19705_v32, %v15437_v22 }
 0x902   : > { %8974 = vmatprep.mubr.bf16.mxu0 %v27418_v16  ;;  %15213 = vmatprep.mubr.bf16.mxu1 %v27418_v16 }
 0x909   : > { %18832 = vmatmul.mubr.msk.bf16.vlgmr.msra.gmra.mrb[196].mxu0 %vm653_vm4, %v27559_v7  ;;  %19650 = vmatmul.mubr.msk.bf16.gmra.mrb[116].mxu1 %vm653_vm4, %v21969_v26  ;;  %v21971_v7 = vld [vmem:[%s22657_s9 + $0x578] sm:$0xff]   ;;  %v15444_v26 = vrot.slane %v19667_v6, 5  ;;  %v19681_v6 = vld [vmem:[%s22657_s9 + $0x4f4] sm:$0xe] }
 0x90a   : > { %9521 = vmatpush1.bf16.msra.mxu0 %v9515_v3  ;;  %8984 = vmatprep.mubr.bf16.mxu0 %v27418_v16  ;;  %v19666_v3 = vld [vmem:[%s22657_s9 + $0x468] sm:$0xe] }
 0x90b   : > { %15223 = vmatprep.mubr.bf16.mxu1 %v27418_v16  ;;  %19027 = vmatprep.subr.msk.bf16.mxu0 %vm751_vm0, %v10044_v0  ;;  %v19668_v0 = vld [vmem:[%s22657_s9 + $0x470] sm:$0x1] }
 0x90c   : > { %v15447_v14 = vrot.slane %v19668_v0, 5  ;;  %v19685_v0 = vld [vmem:[%s22657_s9 + $0x514] sm:$0xf] }
 0x911   : > { %18833 = vmatmul.mubr.msk.bf16.gmra.mrb[200].mxu0 %vm653_vm4, %v27560_v44  ;;  %19651 = vmatmul.mubr.msk.bf16.gmra.mrb[120].mxu1 %vm653_vm4, %v21970_v53  ;;  %v19654_v44 = vld [vmem:[%s22657_s9 + $0x3f8] sm:$0xe] }
 0x912   : > { %8994 = vmatprep.mubr.bf16.mxu0 %v27418_v16  ;;  %15233 = vmatprep.mubr.bf16.mxu1 %v27418_v16  ;;  %v19702_v13 = vrot.slane %v19654_v44, 9 }
 0x914   : > { %v15417_v58 = vsel %vm22828_vm3, %v19702_v13, %v15416_v54  ;;  %v19670_v54 = vld [vmem:[%s22657_s9 + $0x488] sm:$0xf]  ;;  %v19669_v13 = vld [vmem:[%s22657_s9 + $0x484] sm:$0xe] }
 0x915   : > { %v19707_v41 = vrot.slane %v19669_v13, 9  ;;  %v19688_v13 = vld [vmem:[%s22657_s9 + $0x530] sm:$0xf] }
 0x919   : > { %18834 = vmatmul.mubr.msk.bf16.gmra.mrb[204].mxu0 %vm653_vm4, %v27561_v46  ;;  %19652 = vmatmul.mubr.msk.bf16.gmra.mrb[124].mxu1 %vm653_vm4, %v21971_v7  ;;  %v19832_v46 = vld.sshfl [vmem:[#allocation5 + $0x6c] sm:$0x33 pattern:$0x76325410]  ;;  %v19706_v7 = vrot.slane %v19666_v3, 9 }
 0x91a   : > { %9004 = vmatprep.mubr.bf16.mxu0 %v27418_v16  ;;  %15243 = vmatprep.mubr.bf16.mxu1 %v27418_v16  ;;  %v16162_v56 = vcombine.high %v19832_v46, %v19832_v46  ;;  %v16212_v1 = vsel %vm751_vm0, %v19832_v46, 0  ;;  %v15454_v46 = vrot.slane %v19671_v18, 5 }
 0x91b   : > { %v15445_v44 = vsel %vm22828_vm3, %v19706_v7, %v15444_v26 }
 0x91c   : > { %19833 = vmatprep.subr.msk.bf16.mxu1 %vm751_vm0, %v16162_v56 }
 0x921   : > { %18835 = vmatmul.mubr.msk.bf16.gmra.mrb[208].mxu0 %vm653_vm4, %v27562_v60  ;;  %19653 = vmatmul.mubr.msk.bf16.gmra.mrb[128].mxu1 %vm653_vm4, %v21972_v30  ;;  %v19718_v60 = vcombine.low %v15417_v58, %v15420_v61  ;;  %v15451_v30 = vrot.slane %v19670_v54, 5  ;;  %v19673_v58 = vld [vmem:[%s22657_s9 + $0x4a4] sm:$0xf]  ;;  %v19686_v54 = vld [vmem:[%s22657_s9 + $0x518] sm:$0x1] }
 0x922   : > { %9014 = vmatprep.mubr.bf16.mxu0 %v27418_v16  ;;  %15671 = vmatprep.mubr.bf16.mxu1 %v27418_v16  ;;  %v15458_v56 = vrot.slane %v19673_v58, 5 }
 0x923   : > { %v15452_v61 = vsel %vm22828_vm3, %v19707_v41, %v15451_v30  ;;  %v15493_v41 = vrot.slane %v19688_v13, 5  ;;  %v19696_v13 = vld [vmem:[%s22657_s9 + $0x580] sm:$0xe] }
 0x924   : > { %v15459_v27 = vsel %vm22828_vm3, %v19708_v59, %v15458_v56 }
 0x929   : > { %18836 = vmatmul.mubr.msk.bf16.gmra.mrb[212].mxu0 %vm653_vm4, %v27563_v2  ;;  %19736 = vmatmul.mubr.msk.bf16.vlgmr.msra.gmra.mrb[68].mxu1 %vm653_vm4, %v19718_v60  ;;  %v19704_v2 = vrot.slane %v19660_v24, 9 }
 0x92a   : > { %9024 = vmatprep.mubr.bf16.mxu0 %v27418_v16  ;;  %15681 = vmatprep.mubr.bf16.mxu1 %v27418_v16 }
 0x92b   : > { %16218 = vmatpush1.bf16.msra.mxu1 %v16212_v1  ;;  %v15431_v23 = vsel %vm22828_vm3, %v19704_v2, %v15430_v37  ;;  %v19677_v37 = vld [vmem:[%s22657_s9 + $0x4c4] sm:$0x1]  ;;  %v19679_v2 = vld [vmem:[%s22657_s9 + $0x4dc] sm:$0xf] }
 0x92c   : > { %v19720_v31 = vcombine.low %v15431_v23, %v15434_v45  ;;  %v15472_v12 = vrot.slane %v19679_v2, 5  ;;  %v19678_v23 = vld [vmem:[%s22657_s9 + $0x4d8] sm:$0xe]  ;;  %v19680_v45 = vld [vmem:[%s22657_s9 + $0x4e0] sm:$0x1] }
 0x92d   : > { %v19710_v21 = vrot.slane %v19678_v23, 9  ;;  %v15475_v39 = vrot.slane %v19680_v45, 5  ;;  %v19694_v2 = vld [vmem:[%s22657_s9 + $0x568] sm:$0xf]  ;;  %v18851_v45 = vld [vmem:[%s22657_s9 + $0x220] sm:$0x8] }
 0x92f   : > { %v15473_v32 = vsel %vm22828_vm3, %v19710_v21, %v15472_v12  ;;  %v15507_v21 = vrot.slane %v19694_v2, 5 }
 0x931   : > { %18837 = vmatmul.mubr.msk.bf16.gmra.mrb[216].mxu0 %vm653_vm4, %v27564_v40  ;;  %19737 = vmatmul.mubr.msk.bf16.gmra.mrb[72].mxu1 %vm653_vm4, %v19719_v62  ;;  %v15439_v40 = vrot.slane %v15437_v22, 4  ;;  %v15468_v62 = vrot.slane %v19677_v37, 5 }
 0x932   : > { %9034 = vmatprep.mubr.bf16.mxu0 %v27418_v16  ;;  %15691 = vmatprep.mubr.bf16.mxu1 %v27418_v16 }
 0x933   : > { %v15441_v19 = vsel %vm22828_vm3, %v15439_v40, %v15440_v50 }
 0x934   : > { %v19721_v53 = vcombine.low %v15438_v20, %v15441_v19  ;;  %v19683_v20 = vld [vmem:[%s22657_s9 + $0x4fc] sm:$0x1] }
 0x935   : > { %v15482_v3 = vrot.slane %v19683_v20, 5 }
 0x939   : > { %18838 = vmatmul.mubr.msk.bf16.gmra.mrb[220].mxu0 %vm653_vm4, %v27565_v8  ;;  %19738 = vmatmul.mubr.msk.bf16.gmra.mrb[76].mxu1 %vm653_vm4, %v19720_v31  ;;  %v15446_v8 = vrot.slane %v15444_v26, 4  ;;  %v19682_v31 = vld [vmem:[%s22657_s9 + $0x4f8] sm:$0xf]  ;;  %v19711_v26 = vrot.slane %v19681_v6, 9 }
 0x93a   : > { %9044 = vmatprep.mubr.bf16.mxu0 %v27418_v16  ;;  %15701 = vmatprep.mubr.bf16.mxu1 %v27418_v16  ;;  %v15479_v50 = vrot.slane %v19682_v31, 5 }
 0x93b   : > { %v15448_v5 = vsel %vm22828_vm3, %v15446_v8, %v15447_v14  ;;  %v15486_v8 = vrot.slane %v19685_v0, 5  ;;  %v19684_v14 = vld [vmem:[%s22657_s9 + $0x510] sm:$0xe]  ;;  %v10094_v0 = vsel %vm751_vm0, %v25880_v51, 0 }
 0x93c   : > { %v19722_v33 = vcombine.low %v15445_v44, %v15448_v5  ;;  %v19712_v5 = vrot.slane %v19684_v14, 9 }
 0x93e   : > { %v15487_v18 = vsel %vm22828_vm3, %v19712_v5, %v15486_v8  ;;  %v18854_v5 = vld [vmem:[%s22657_s9 + $0x23c] sm:$0x8] }
 0x941   : > { %18839 = vmatmul.mubr.msk.bf16.gmra.mrb[224].mxu0 %vm653_vm4, %v27566_v25  ;;  %19739 = vmatmul.mubr.msk.bf16.gmra.mrb[80].mxu1 %vm653_vm4, %v19721_v53  ;;  %v15453_v25 = vrot.slane %v15451_v30, 4  ;;  %v15480_v53 = vsel %vm22828_vm3, %v19711_v26, %v15479_v50  ;;  %v15489_v30 = vrot.slane %v19686_v54, 5  ;;  %v15509_v26 = vrot.slane %v15507_v21, 4 }
 0x942   : > { %9054 = vmatprep.mubr.bf16.mxu0 %v27418_v16  ;;  %15711 = vmatprep.mubr.bf16.mxu1 %v27418_v16 }
 0x943   : > { %v15455_v43 = vsel %vm22828_vm3, %v15453_v25, %v15454_v46  ;;  %v19687_v25 = vld [vmem:[%s22657_s9 + $0x52c] sm:$0xe]  ;;  %v19689_v46 = vld [vmem:[%s22657_s9 + $0x534] sm:$0x1] }
 0x944   : > { %v19723_v60 = vcombine.low %v15452_v61, %v15455_v43  ;;  %v15495_v61 = vrot.slane %v15493_v41, 4  ;;  %v15496_v43 = vrot.slane %v19689_v46, 5 }
 0x946   : > { %v15497_v59 = vsel %vm22828_vm3, %v15495_v61, %v15496_v43 }
 0x949   : > { %18840 = vmatmul.mubr.msk.bf16.gmra.mrb[228].mxu0 %vm653_vm4, %v27567_v15  ;;  %19740 = vmatmul.mubr.msk.bf16.gmra.mrb[84].mxu1 %vm653_vm4, %v19722_v33  ;;  %v15460_v15 = vrot.slane %v15458_v56, 4  ;;  %v18849_v56 = vld [vmem:[%s22657_s9 + $0x208] sm:$0xf] }
 0x94a   : > { %9064 = vmatprep.mubr.bf16.mxu0 %v27418_v16  ;;  %15721 = vmatprep.mubr.bf16.mxu1 %v27418_v16  ;;  %v9297_v28 = vrot.slane %v18849_v56, 7  ;;  %v18858_v56 = vld [vmem:[%s22657_s9 + $0x25c] sm:$0xf] }
 0x94b   : > { %v15462_v1 = vsel %vm22828_vm3, %v15460_v15, %v15461_v48  ;;  %v18848_v15 = vld [vmem:[%s22657_s9 + $0x204] sm:$0x8]  ;;  %v18850_v48 = vld [vmem:[%s22657_s9 + $0x20c] sm:$0x7] }
 0x94c   : > { %v19724_v24 = vcombine.low %v15459_v27, %v15462_v1  ;;  %v19690_v27 = vld [vmem:[%s22657_s9 + $0x548] sm:$0xe]  ;;  %v9299_v9 = vrot.slane %v9297_v28, 4  ;;  %v9300_v37 = vrot.slane %v18850_v48, 7 }
 0x951   : > { %18841 = vmatmul.mubr.msk.bf16.gmra.mrb[232].mxu0 %vm653_vm4, %v27568_v63  ;;  %19741 = vmatmul.mubr.msk.bf16.gmra.mrb[88].mxu1 %vm653_vm4, %v19723_v60  ;;  %v15467_v63 = vrot.slane %v15465_v10, 4  ;;  %v18896_v10 = vrot.slane %v18848_v15, 11 }
 0x952   : > { %9074 = vmatprep.mubr.bf16.mxu0 %v27418_v16  ;;  %15731 = vmatprep.mubr.bf16.mxu1 %v27418_v16 }
 0x953   : > { %v15469_v38 = vsel %vm22828_vm3, %v15467_v63, %v15468_v62  ;;  %v18852_v62 = vld [vmem:[%s22657_s9 + $0x224] sm:$0xf] }
 0x954   : > { %v19725_v22 = vcombine.low %v15466_v57, %v15469_v38  ;;  %v9298_v57 = vsel %vm25176_vm9, %v18896_v10, %v9297_v28  ;;  %v9301_v38 = vsel %vm25176_vm9, %v9299_v9, %v9300_v37  ;;  %v19701_v10 = vld [vmem:[%s22657_s9 + $0x5a4] sm:$0x1] }
 0x955   : > { %v18912_v31 = vcombine.low %v9298_v57, %v9301_v38  ;;  %v15524_v57 = vrot.slane %v19701_v10, 5  ;;  %v18861_v38 = vld [vmem:[%s22657_s9 + $0x278] sm:$0xf] }
 0x956   : > { %v19758_v10 = vld [vmem:[%s22657_s9 + $0x438] sm:$0xc] }
 0x959   : > { %18842 = vmatmul.mubr.msk.bf16.gmra.mrb[236].mxu0 %vm653_vm4, %v27569_v49  ;;  %19742 = vmatmul.mubr.msk.bf16.gmra.mrb[92].mxu1 %vm653_vm4, %v19724_v24  ;;  %v15474_v49 = vrot.slane %v15472_v12, 4  ;;  %v19714_v24 = vrot.slane %v19690_v27, 9  ;;  %v9304_v12 = vrot.slane %v18852_v62, 7  ;;  %v18859_v27 = vld [vmem:[%s22657_s9 + $0x260] sm:$0x7] }
 0x95a   : > { %9084 = vmatprep.mubr.bf16.mxu0 %v27418_v16  ;;  %15741 = vmatprep.mubr.bf16.mxu1 %v27418_v16 }
 0x95b   : > { %v15476_v40 = vsel %vm22828_vm3, %v15474_v49, %v15475_v39  ;;  %v15501_v23 = vsel %vm22828_vm3, %v19714_v24, %v15500_v34  ;;  %v19693_v49 = vld [vmem:[%s22657_s9 + $0x564] sm:$0xe]  ;;  %v19695_v39 = vld [vmem:[%s22657_s9 + $0x56c] sm:$0x1]  ;;  %v9306_v6 = vrot.slane %v9304_v12, 4 }
 0x95c   : > { %v19726_v19 = vcombine.low %v15473_v32, %v15476_v40  ;;  %v26077_v32 = vld.sshfl [vmem:[#allocation5 + $0x44] sm:$0x33 pattern:$0x76325410]  ;;  %v18857_v34 = vld [vmem:[%s22657_s9 + $0x258] sm:$0x8] }
 0x95d   : > { %v18899_v24 = vrot.slane %v18857_v34, 11 }
 0x961   : > { %18843 = vmatmul.mubr.msk.bf16.gmra.mrb[240].mxu0 %vm653_vm4, %v27570_v11  ;;  %19743 = vmatmul.mubr.msk.bf16.gmra.mrb[96].mxu1 %vm653_vm4, %v19725_v22  ;;  %v15481_v11 = vrot.slane %v15479_v50, 4  ;;  %v18853_v22 = vld [vmem:[%s22657_s9 + $0x228] sm:$0x7]  ;;  %v18897_v50 = vrot.slane %v18851_v45, 11  ;;  %v9325_v45 = vrot.slane %v18861_v38, 7 }
 0x962   : > { %9094 = vmatprep.mubr.bf16.mxu0 %v27418_v16  ;;  %15751 = vmatprep.mubr.bf16.mxu1 %v27418_v16  ;;  %v9307_v20 = vrot.slane %v18853_v22, 7 }
 0x963   : > { %v15483_v7 = vsel %vm22828_vm3, %v15481_v11, %v15482_v3  ;;  %v15510_v11 = vrot.slane %v19695_v39, 5  ;;  %v18855_v3 = vld [vmem:[%s22657_s9 + $0x240] sm:$0xf]  ;;  %v18862_v39 = vld [vmem:[%s22657_s9 + $0x27c] sm:$0x7] }
 0x964   : > { %v19727_v44 = vcombine.low %v15480_v53, %v15483_v7  ;;  %v19697_v53 = vld [vmem:[%s22657_s9 + $0x584] sm:$0xf]  ;;  %v10622_v7 = vcombine.high %v26077_v32, %v26077_v32  ;;  %v9308_v14 = vsel %vm25176_vm9, %v9306_v6, %v9307_v20  ;;  %v9311_v54 = vrot.slane %v18855_v3, 7 }
 0x966   : > { %v9313_v46 = vrot.slane %v9311_v54, 4 }
 0x969   : > { %18844 = vmatmul.mubr.msk.bf16.gmra.mrb[244].mxu0 %vm653_vm4, %v27571_v29  ;;  %19744 = vmatmul.mubr.msk.bf16.gmra.mrb[100].mxu1 %vm653_vm4, %v19726_v19  ;;  %v15488_v29 = vrot.slane %v15486_v8, 4  ;;  %v19715_v19 = vrot.slane %v19693_v49, 9  ;;  %v9305_v8 = vsel %vm25176_vm9, %v18897_v50, %v9304_v12  ;;  %v19753_v12 = vld [vmem:[%s22657_s9 + $0x404] sm:$0xf]  ;;  %v18860_v49 = vld [vmem:[%s22657_s9 + $0x274] sm:$0x8] }
 0x96a   : > { %9104 = vmatprep.mubr.bf16.mxu0 %v27418_v16  ;;  %15761 = vmatprep.mubr.bf16.mxu1 %v27418_v16  ;;  %v19754_v50 = vld [vmem:[%s22657_s9 + $0x408] sm:$0x3] }
 0x96b   : > { %v15490_v33 = vsel %vm22828_vm3, %v15488_v29, %v15489_v30  ;;  %v15508_v51 = vsel %vm22828_vm3, %v19715_v19, %v15507_v21  ;;  %v18856_v29 = vld [vmem:[%s22657_s9 + $0x244] sm:$0x7]  ;;  %v15514_v30 = vrot.slane %v19697_v53, 5  ;;  %v18900_v19 = vrot.slane %v18860_v49, 11 }
 0x96c   : > { %v19728_v58 = vcombine.low %v15487_v18, %v15490_v33  ;;  %v19698_v18 = vld [vmem:[%s22657_s9 + $0x588] sm:$0x1]  ;;  %v18913_v33 = vcombine.low %v9305_v8, %v9308_v14  ;;  %v15997_v53 = vrot.slane %v19754_v50, 6  ;;  %v19756_v8 = vld [vmem:[%s22657_s9 + $0x420] sm:$0xf] }
 0x96d   : > { %v15516_v61 = vrot.slane %v15514_v30, 4  ;;  %v15517_v43 = vrot.slane %v19698_v18, 5  ;;  %v9326_v14 = vsel %vm25176_vm9, %v18900_v19, %v9325_v45  ;;  %v19755_v18 = vld [vmem:[%s22657_s9 + $0x41c] sm:$0xc]  ;;  %v19761_v50 = vld [vmem:[%s22657_s9 + $0x454] sm:$0xc] }
 0x96f   : > { %v15518_v48 = vsel %vm22828_vm3, %v15516_v61, %v15517_v43  ;;  %v19801_v61 = vrot.slane %v19755_v18, 10 }
 0x971   : > { %18845 = vmatmul.mubr.msk.bf16.gmra.mrb[248].mxu0 %vm653_vm4, %v27572_v4  ;;  %19745 = vmatmul.mubr.msk.bf16.gmra.mrb[104].mxu1 %vm653_vm4, %v19727_v44  ;;  %v19713_v4 = vrot.slane %v19687_v25, 9  ;;  %v15511_v44 = vsel %vm22828_vm3, %v15509_v26, %v15510_v11  ;;  %v18898_v25 = vrot.slane %v18854_v5, 11  ;;  %v9327_v26 = vrot.slane %v9325_v45, 4 }
 0x972   : > { %9114 = vmatprep.mubr.bf16.mxu0 %v27418_v16  ;;  %15771 = vmatprep.mubr.bf16.mxu1 %v27418_v16  ;;  %v9328_v11 = vrot.slane %v18862_v39, 7  ;;  %v18869_v39 = vld [vmem:[%s22657_s9 + $0x2c8] sm:$0x8] }
 0x973   : > { %v15494_v60 = vsel %vm22828_vm3, %v19713_v4, %v15493_v41  ;;  %v19731_v41 = vcombine.low %v15508_v51, %v15511_v44  ;;  %v19716_v4 = vrot.slane %v19696_v13, 9  ;;  %v9312_v28 = vsel %vm25176_vm9, %v18898_v25, %v9311_v54 }
 0x974   : > { %v19729_v1 = vcombine.low %v15494_v60, %v15497_v59  ;;  %v9318_v59 = vrot.slane %v18858_v56, 7  ;;  %v9329_v54 = vsel %vm25176_vm9, %v9327_v26, %v9328_v11  ;;  %v16001_v13 = vrot.slane %v19756_v8, 6  ;;  %v18873_v8 = vld [vmem:[%s22657_s9 + $0x2e8] sm:$0xf] }
 0x975   : > { %v15515_v15 = vsel %vm22828_vm3, %v19716_v4, %v15514_v30  ;;  %v18865_v30 = vld [vmem:[%s22657_s9 + $0x298] sm:$0x7]  ;;  %v18903_v26 = vrot.slane %v18869_v39, 11 }
 0x976   : > { %v19732_v37 = vcombine.low %v15515_v15, %v15518_v48  ;;  %v9335_v4 = vrot.slane %v18865_v30, 7  ;;  %v16003_v43 = vrot.slane %v16001_v13, 4  ;;  %v16002_v48 = vsel %vm23185_vm6, %v19801_v61, %v16001_v13  ;;  %v18872_v30 = vld [vmem:[%s22657_s9 + $0x2e4] sm:$0x8]  ;;  %v18874_v13 = vld [vmem:[%s22657_s9 + $0x2ec] sm:$0x7] }
 0x977   : > { %v9356_v61 = vrot.slane %v18874_v13, 7  ;;  %v18881_v13 = vld [vmem:[%s22657_s9 + $0x338] sm:$0x8] }
 0x979   : > { %18846 = vmatmul.mubr.msk.bf16.gmra.mrb[252].mxu0 %vm653_vm4, %v27573_v55  ;;  %19746 = vmatmul.mubr.msk.bf16.gmra.mrb[108].mxu1 %vm653_vm4, %v19728_v58  ;;  %v19692_v55 = vld [vmem:[%s22657_s9 + $0x550] sm:$0x1]  ;;  %v9314_v58 = vrot.slane %v18856_v29, 7  ;;  %v18863_v29 = vld [vmem:[%s22657_s9 + $0x290] sm:$0x8] }
 0x97a   : > { %9124 = vmatprep.mubr.bf16.mxu0 %v27418_v16  ;;  %15781 = vmatprep.mubr.bf16.mxu1 %v27418_v16  ;;  %v15503_v63 = vrot.slane %v19692_v55, 5  ;;  %v15521_v55 = vrot.slane %v19700_v36, 5  ;;  %v18867_v36 = vld [vmem:[%s22657_s9 + $0x2b0] sm:$0xf] }
 0x97b   : > { %v9315_v60 = vsel %vm25176_vm9, %v9313_v46, %v9314_v58  ;;  %v18901_v46 = vrot.slane %v18863_v29, 11  ;;  %v9339_v15 = vrot.slane %v18867_v36, 7 }
 0x97c   : > { %v18914_v9 = vcombine.low %v9312_v28, %v9315_v60  ;;  %v15523_v2 = vrot.slane %v15521_v55, 4  ;;  %v19759_v28 = vld [vmem:[%s22657_s9 + $0x43c] sm:$0xf] }
 0x97e   : > { %v15525_v21 = vsel %vm22828_vm3, %v15523_v2, %v15524_v57  ;;  %v19802_v2 = vrot.slane %v19758_v10, 10 }
 0x981   : > { %18847 = vmatmul.mubr.msk.bf16.gmra.mrb[0].mxu0 %vm653_vm4, %v27574_v17  ;;  %19747 = vmatmul.mubr.msk.bf16.gmra.mrb[112].mxu1 %vm653_vm4, %v19729_v1  ;;  %v15504_v17 = vsel %vm22828_vm3, %v15502_v47, %v15503_v63  ;;  %v19699_v1 = vld [vmem:[%s22657_s9 + $0x59c] sm:$0xe]  ;;  %v9320_v47 = vrot.slane %v9318_v59, 4  ;;  %v9321_v63 = vrot.slane %v18859_v27, 7  ;;  %v18866_v27 = vld [vmem:[%s22657_s9 + $0x2ac] sm:$0x8] }
 0x982   : > { %9552 = vmatprep.mubr.bf16.mxu0 %v27418_v16  ;;  %15791 = vmatprep.mubr.bf16.mxu1 %v27418_v16  ;;  %v19730_v40 = vcombine.low %v15501_v23, %v15504_v17  ;;  %v19717_v62 = vrot.slane %v19699_v1, 9  ;;  %v9319_v23 = vsel %vm25176_vm9, %v18899_v24, %v9318_v59  ;;  %v16008_v1 = vrot.slane %v19759_v28, 6  ;;  %v18876_v28 = vld [vmem:[%s22657_s9 + $0x304] sm:$0xf] }
 0x983   : > { %v9322_v17 = vsel %vm25176_vm9, %v9320_v47, %v9321_v63  ;;  %v18902_v47 = vrot.slane %v18866_v27, 11  ;;  %v9341_v63 = vrot.slane %v9339_v15, 4 }
 0x984   : > { %v15522_v22 = vsel %vm22828_vm3, %v19717_v62, %v15521_v55  ;;  %v18915_v6 = vcombine.low %v9319_v23, %v9322_v17  ;;  %v18868_v55 = vld [vmem:[%s22657_s9 + $0x2b4] sm:$0x7]  ;;  %v16010_v57 = vrot.slane %v16008_v1, 4  ;;  %v19762_v23 = vld [vmem:[%s22657_s9 + $0x458] sm:$0xf] }
 0x985   : > { %v19733_v20 = vcombine.low %v15522_v22, %v15525_v21  ;;  %v9342_v62 = vrot.slane %v18868_v55, 7  ;;  %v9340_v17 = vsel %vm25176_vm9, %v18902_v47, %v9339_v15  ;;  %v16009_v21 = vsel %vm23185_vm6, %v19802_v2, %v16008_v1  ;;  %v18875_v55 = vld [vmem:[%s22657_s9 + $0x300] sm:$0x8]  ;;  %v18877_v1 = vld [vmem:[%s22657_s9 + $0x308] sm:$0x7] }
 0x986   : > { %v9363_v2 = vrot.slane %v18877_v1, 7  ;;  %v18884_v1 = vld [vmem:[%s22657_s9 + $0x354] sm:$0x8] }
 0x987   : > { %v9343_v45 = vsel %vm25176_vm9, %v9341_v63, %v9342_v62  ;;  %v18905_v63 = vrot.slane %v18875_v55, 11 }
 0x989   : > { %18930 = vmatmul.mubr.msk.bf16.vlgmr.msra.gmra.mrb[196].mxu0 %vm653_vm4, %v18912_v31  ;;  %19748 = vmatmul.mubr.msk.bf16.gmra.mrb[116].mxu1 %vm653_vm4, %v19730_v40  ;;  %v15994_v31 = vrot.slane %v19753_v12, 6  ;;  %v19752_v40 = vld [vmem:[%s22657_s9 + $0x400] sm:$0xc]  ;;  %v18870_v12 = vld [vmem:[%s22657_s9 + $0x2cc] sm:$0xf] }
 0x98a   : > { %10100 = vmatpush1.bf16.msra.mxu0 %v10094_v0  ;;  %9562 = vmatprep.mubr.bf16.mxu0 %v27418_v16  ;;  %v19800_v3 = vrot.slane %v19752_v40, 10  ;;  %v9346_v22 = vrot.slane %v18870_v12, 7  ;;  %v16015_v40 = vrot.slane %v19762_v23, 6  ;;  %v18879_v23 = vld [vmem:[%s22657_s9 + $0x320] sm:$0xf] }
 0x98b   : > { %15801 = vmatprep.mubr.bf16.mxu1 %v27418_v16  ;;  %19125 = vmatprep.subr.msk.bf16.mxu0 %vm751_vm0, %v10622_v7  ;;  %v15996_v0 = vrot.slane %v15994_v31, 4  ;;  %v18864_v7 = vld [vmem:[%s22657_s9 + $0x294] sm:$0xf] }
 0x98c   : > { %v9332_v51 = vrot.slane %v18864_v7, 7  ;;  %v15995_v44 = vsel %vm23185_vm6, %v19800_v3, %v15994_v31  ;;  %v18871_v31 = vld [vmem:[%s22657_s9 + $0x2d0] sm:$0x7]  ;;  %v9348_v11 = vrot.slane %v9346_v22, 4 }
 0x98d   : > { %v15998_v5 = vsel %vm23185_vm6, %v15996_v0, %v15997_v53  ;;  %v9349_v3 = vrot.slane %v18871_v31, 7  ;;  %v19803_v0 = vrot.slane %v19761_v50, 10  ;;  %v16017_v53 = vrot.slane %v16015_v40, 4  ;;  %v18878_v31 = vld [vmem:[%s22657_s9 + $0x31c] sm:$0x8] }
 0x98e   : > { %v19816_v25 = vcombine.low %v15995_v44, %v15998_v5  ;;  %v9334_v58 = vrot.slane %v9332_v51, 4  ;;  %v9333_v60 = vsel %vm25176_vm9, %v18901_v46, %v9332_v51  ;;  %v9353_v44 = vrot.slane %v18873_v8, 7 }
 0x98f   : > { %v9350_v51 = vsel %vm25176_vm9, %v9348_v11, %v9349_v3  ;;  %v16016_v5 = vsel %vm23185_vm6, %v19803_v0, %v16015_v40  ;;  %v18880_v40 = vld [vmem:[%s22657_s9 + $0x324] sm:$0x7]  ;;  %v18906_v11 = vrot.slane %v18878_v31, 11 }
 0x990   : > { %v9336_v59 = vsel %vm25176_vm9, %v9334_v58, %v9335_v4  ;;  %v18904_v58 = vrot.slane %v18872_v30, 11  ;;  %v9355_v4 = vrot.slane %v9353_v44, 4  ;;  %v9370_v0 = vrot.slane %v18880_v40, 7  ;;  %v18887_v40 = vld [vmem:[%s22657_s9 + $0x370] sm:$0x8] }
 0x991   : > { %18931 = vmatmul.mubr.msk.bf16.gmra.mrb[200].mxu0 %vm653_vm4, %v18913_v33  ;;  %19749 = vmatmul.mubr.msk.bf16.gmra.mrb[120].mxu1 %vm653_vm4, %v19731_v41  ;;  %v19757_v33 = vld [vmem:[%s22657_s9 + $0x424] sm:$0x3]  ;;  %v18916_v41 = vcombine.low %v9326_v14, %v9329_v54  ;;  %v19765_v14 = vld [vmem:[%s22657_s9 + $0x474] sm:$0xf]  ;;  %v9347_v54 = vsel %vm25176_vm9, %v18903_v26, %v9346_v22 }
 0x992   : > { %9572 = vmatprep.mubr.bf16.mxu0 %v27418_v16  ;;  %15811 = vmatprep.mubr.bf16.mxu1 %v27418_v16  ;;  %v16004_v56 = vrot.slane %v19757_v33, 6  ;;  %v16022_v18 = vrot.slane %v19765_v14, 6  ;;  %v19764_v33 = vld [vmem:[%s22657_s9 + $0x470] sm:$0xc]  ;;  %v9357_v15 = vsel %vm25176_vm9, %v9355_v4, %v9356_v61  ;;  %v18882_v14 = vld [vmem:[%s22657_s9 + $0x33c] sm:$0xf] }
 0x993   : > { %v18907_v4 = vrot.slane %v18881_v13, 11 }
 0x994   : > { %v16005_v34 = vsel %vm23185_vm6, %v16003_v43, %v16004_v56  ;;  %v19804_v43 = vrot.slane %v19764_v33, 10  ;;  %v16024_v56 = vrot.slane %v16022_v18, 4 }
 0x995   : > { %v19817_v24 = vcombine.low %v16002_v48, %v16005_v34  ;;  %v9360_v48 = vrot.slane %v18876_v28, 7 }
 0x996   : > { %v16023_v34 = vsel %vm23185_vm6, %v19804_v43, %v16022_v18  ;;  %v18883_v18 = vld [vmem:[%s22657_s9 + $0x340] sm:$0x7] }
 0x997   : > { %v9362_v62 = vrot.slane %v9360_v48, 4  ;;  %v9377_v43 = vrot.slane %v18883_v18, 7  ;;  %v18890_v18 = vld [vmem:[%s22657_s9 + $0x38c] sm:$0x8] }
 0x999   : > { %18932 = vmatmul.mubr.msk.bf16.gmra.mrb[204].mxu0 %vm653_vm4, %v18914_v9  ;;  %19750 = vmatmul.mubr.msk.bf16.gmra.mrb[124].mxu1 %vm653_vm4, %v19732_v37  ;;  %v19760_v9 = vld [vmem:[%s22657_s9 + $0x440] sm:$0x3]  ;;  %v18917_v37 = vcombine.low %v9333_v60, %v9336_v59  ;;  %v19768_v60 = vld [vmem:[%s22657_s9 + $0x490] sm:$0xf]  ;;  %v9354_v59 = vsel %vm25176_vm9, %v18904_v58, %v9353_v44  ;;  %v9364_v22 = vsel %vm25176_vm9, %v9362_v62, %v9363_v2  ;;  %v18908_v62 = vrot.slane %v18884_v1, 11 }
 0x99a   : > { %9582 = vmatprep.mubr.bf16.mxu0 %v27418_v16  ;;  %15821 = vmatprep.mubr.bf16.mxu1 %v27418_v16  ;;  %v16011_v38 = vrot.slane %v19760_v9, 6  ;;  %v16029_v10 = vrot.slane %v19768_v60, 6  ;;  %v19767_v9 = vld [vmem:[%s22657_s9 + $0x48c] sm:$0xc]  ;;  %v18885_v60 = vld [vmem:[%s22657_s9 + $0x358] sm:$0xf] }
 0x99b   : > { %v18895_v1 = vld [vmem:[%s22657_s9 + $0x3b0] sm:$0x7] }
 0x99c   : > { %v16012_v49 = vsel %vm23185_vm6, %v16010_v57, %v16011_v38  ;;  %v19805_v57 = vrot.slane %v19767_v9, 10  ;;  %v16031_v38 = vrot.slane %v16029_v10, 4 }
 0x99d   : > { %v19818_v19 = vcombine.low %v16009_v21, %v16012_v49  ;;  %v9367_v21 = vrot.slane %v18879_v23, 7 }
 0x99e   : > { %v16030_v49 = vsel %vm23185_vm6, %v19805_v57, %v16029_v10  ;;  %v18886_v10 = vld [vmem:[%s22657_s9 + $0x35c] sm:$0x7] }
 0x99f   : > { %v9369_v3 = vrot.slane %v9367_v21, 4  ;;  %v9384_v57 = vrot.slane %v18886_v10, 7 }
 0x9a1   : > { %18933 = vmatmul.mubr.msk.bf16.gmra.mrb[208].mxu0 %vm653_vm4, %v18915_v6  ;;  %19751 = vmatmul.mubr.msk.bf16.gmra.mrb[128].mxu1 %vm653_vm4, %v19733_v20  ;;  %v19763_v6 = vld [vmem:[%s22657_s9 + $0x45c] sm:$0x3]  ;;  %v18918_v20 = vcombine.low %v9340_v17, %v9343_v45  ;;  %v19771_v17 = vld [vmem:[%s22657_s9 + $0x4ac] sm:$0xf]  ;;  %v9361_v45 = vsel %vm25176_vm9, %v18905_v63, %v9360_v48  ;;  %v9371_v44 = vsel %vm25176_vm9, %v9369_v3, %v9370_v0  ;;  %v18909_v3 = vrot.slane %v18887_v40, 11 }
 0x9a2   : > { %9592 = vmatprep.mubr.bf16.mxu0 %v27418_v16  ;;  %16249 = vmatprep.mubr.bf16.mxu1 %v27418_v16  ;;  %v16018_v7 = vrot.slane %v19763_v6, 6  ;;  %v16036_v50 = vrot.slane %v19771_v17, 6  ;;  %v19770_v6 = vld [vmem:[%s22657_s9 + $0x4a8] sm:$0xc]  ;;  %v18888_v17 = vld [vmem:[%s22657_s9 + $0x374] sm:$0xf] }
 0x9a3   : > { %v18946_v40 = vld [vmem:[%s22657_s9 + $0x348] sm:$0x8] }
 0x9a4   : > { %v16019_v29 = vsel %vm23185_vm6, %v16017_v53, %v16018_v7  ;;  %v19806_v53 = vrot.slane %v19770_v6, 10  ;;  %v16038_v7 = vrot.slane %v16036_v50, 4 }
 0x9a5   : > { %v19819_v46 = vcombine.low %v16016_v5, %v16019_v29  ;;  %v9374_v5 = vrot.slane %v18882_v14, 7 }
 0x9a6   : > { %v16037_v29 = vsel %vm23185_vm6, %v19806_v53, %v16036_v50  ;;  %v18889_v50 = vld [vmem:[%s22657_s9 + $0x378] sm:$0x7] }
 0x9a7   : > { %v9376_v61 = vrot.slane %v9374_v5, 4  ;;  %v9391_v53 = vrot.slane %v18889_v50, 7  ;;  %v18948_v50 = vld [vmem:[%s22657_s9 + $0x350] sm:$0x7] }
 0x9a9   : > { %18934 = vmatmul.mubr.msk.bf16.gmra.mrb[212].mxu0 %vm653_vm4, %v18916_v41  ;;  %19834 = vmatmul.mubr.msk.bf16.vlgmr.msra.gmra.mrb[68].mxu1 %vm653_vm4, %v19816_v25  ;;  %v19766_v41 = vld [vmem:[%s22657_s9 + $0x478] sm:$0x3]  ;;  %v18919_v25 = vcombine.low %v9347_v54, %v9350_v51  ;;  %v19774_v54 = vld [vmem:[%s22657_s9 + $0x4c8] sm:$0xf]  ;;  %v9368_v51 = vsel %vm25176_vm9, %v18906_v11, %v9367_v21  ;;  %v9378_v48 = vsel %vm25176_vm9, %v9376_v61, %v9377_v43  ;;  %v18910_v61 = vrot.slane %v18890_v18, 11 }
 0x9aa   : > { %9602 = vmatprep.mubr.bf16.mxu0 %v27418_v16  ;;  %16259 = vmatprep.mubr.bf16.mxu1 %v27418_v16  ;;  %v16025_v36 = vrot.slane %v19766_v41, 6  ;;  %v16043_v33 = vrot.slane %v19774_v54, 6  ;;  %v19773_v41 = vld [vmem:[%s22657_s9 + $0x4c4] sm:$0xc]  ;;  %v18891_v54 = vld [vmem:[%s22657_s9 + $0x390] sm:$0xf] }
 0x9ac   : > { %v16026_v27 = vsel %vm23185_vm6, %v16024_v56, %v16025_v36  ;;  %v19807_v56 = vrot.slane %v19773_v41, 10  ;;  %v16045_v36 = vrot.slane %v16043_v33, 4 }
 0x9ad   : > { %v19820_v47 = vcombine.low %v16023_v34, %v16026_v27  ;;  %v9381_v34 = vrot.slane %v18885_v60, 7 }
 0x9ae   : > { %v16044_v27 = vsel %vm23185_vm6, %v19807_v56, %v16043_v33  ;;  %v18892_v33 = vld [vmem:[%s22657_s9 + $0x394] sm:$0x7] }
 0x9af   : > { %v9383_v2 = vrot.slane %v9381_v34, 4  ;;  %v9398_v56 = vrot.slane %v18892_v33, 7  ;;  %v18949_v33 = vld [vmem:[%s22657_s9 + $0x364] sm:$0x8] }
 0x9b1   : > { %18935 = vmatmul.mubr.msk.bf16.gmra.mrb[216].mxu0 %vm653_vm4, %v18917_v37  ;;  %19835 = vmatmul.mubr.msk.bf16.gmra.mrb[72].mxu1 %vm653_vm4, %v19817_v24  ;;  %v19769_v37 = vld [vmem:[%s22657_s9 + $0x494] sm:$0x3]  ;;  %v18920_v24 = vcombine.low %v9354_v59, %v9357_v15  ;;  %v19777_v59 = vld [vmem:[%s22657_s9 + $0x4e4] sm:$0xf]  ;;  %v9375_v15 = vsel %vm25176_vm9, %v18907_v4, %v9374_v5  ;;  %v9385_v21 = vsel %vm25176_vm9, %v9383_v2, %v9384_v57  ;;  %v9405_v57 = vrot.slane %v18895_v1, 7 }
 0x9b2   : > { %9612 = vmatprep.mubr.bf16.mxu0 %v27418_v16  ;;  %16269 = vmatprep.mubr.bf16.mxu1 %v27418_v16  ;;  %v16032_v12 = vrot.slane %v19769_v37, 6  ;;  %v16050_v9 = vrot.slane %v19777_v59, 6  ;;  %v19776_v37 = vld [vmem:[%s22657_s9 + $0x4e0] sm:$0xc] }
 0x9b4   : > { %v16033_v39 = vsel %vm23185_vm6, %v16031_v38, %v16032_v12  ;;  %v19808_v38 = vrot.slane %v19776_v37, 10  ;;  %v16052_v12 = vrot.slane %v16050_v9, 4 }
 0x9b5   : > { %v19821_v26 = vcombine.low %v16030_v49, %v16033_v39  ;;  %v9388_v49 = vrot.slane %v18888_v17, 7 }
 0x9b6   : > { %v16051_v39 = vsel %vm23185_vm6, %v19808_v38, %v16050_v9 }
 0x9b7   : > { %v9390_v0 = vrot.slane %v9388_v49, 4 }
 0x9b9   : > { %18936 = vmatmul.mubr.msk.bf16.gmra.mrb[220].mxu0 %vm653_vm4, %v18918_v20  ;;  %19836 = vmatmul.mubr.msk.bf16.gmra.mrb[76].mxu1 %vm653_vm4, %v19818_v19  ;;  %v19772_v20 = vld [vmem:[%s22657_s9 + $0x4b0] sm:$0x3]  ;;  %v18921_v19 = vcombine.low %v9361_v45, %v9364_v22  ;;  %v19780_v45 = vld [vmem:[%s22657_s9 + $0x500] sm:$0xf]  ;;  %v9382_v22 = vsel %vm25176_vm9, %v18908_v62, %v9381_v34  ;;  %v9392_v5 = vsel %vm25176_vm9, %v9390_v0, %v9391_v53  ;;  %v18994_v0 = vrot.slane %v18946_v40, 11 }
 0x9ba   : > { %9622 = vmatprep.mubr.bf16.mxu0 %v27418_v16  ;;  %16279 = vmatprep.mubr.bf16.mxu1 %v27418_v16  ;;  %v16039_v8 = vrot.slane %v19772_v20, 6  ;;  %v16057_v6 = vrot.slane %v19780_v45, 6  ;;  %v19779_v20 = vld [vmem:[%s22657_s9 + $0x4fc] sm:$0xc]  ;;  %v18947_v45 = vld [vmem:[%s22657_s9 + $0x34c] sm:$0xf] }
 0x9bb   : > { %v9879_v53 = vrot.slane %v18948_v50, 7 }
 0x9bc   : > { %v16040_v30 = vsel %vm23185_vm6, %v16038_v7, %v16039_v8  ;;  %v19809_v7 = vrot.slane %v19779_v20, 10  ;;  %v16059_v8 = vrot.slane %v16057_v6, 4 }
 0x9bd   : > { %v19822_v58 = vcombine.low %v16037_v29, %v16040_v30  ;;  %v9395_v29 = vrot.slane %v18891_v54, 7 }
 0x9be   : > { %v16058_v30 = vsel %vm23185_vm6, %v19809_v7, %v16057_v6  ;;  %v9876_v6 = vrot.slane %v18947_v45, 7 }
 0x9bf   : > { %v9397_v43 = vrot.slane %v9395_v29, 4  ;;  %v9396_v34 = vsel %vm25176_vm9, %v18910_v61, %v9395_v29 }
 0x9c0   : > { %v9878_v7 = vrot.slane %v9876_v6, 4 }
 0x9c1   : > { %18937 = vmatmul.mubr.msk.bf16.gmra.mrb[224].mxu0 %vm653_vm4, %v18919_v25  ;;  %19837 = vmatmul.mubr.msk.bf16.gmra.mrb[80].mxu1 %vm653_vm4, %v19819_v46  ;;  %v19775_v25 = vld [vmem:[%s22657_s9 + $0x4cc] sm:$0x3]  ;;  %v18922_v46 = vcombine.low %v9368_v51, %v9371_v44  ;;  %v19783_v51 = vld [vmem:[%s22657_s9 + $0x51c] sm:$0xf]  ;;  %v9389_v44 = vsel %vm25176_vm9, %v18909_v3, %v9388_v49 }
 0x9c2   : > { %9632 = vmatprep.mubr.bf16.mxu0 %v27418_v16  ;;  %16289 = vmatprep.mubr.bf16.mxu1 %v27418_v16  ;;  %v16046_v28 = vrot.slane %v19775_v25, 6  ;;  %v16064_v41 = vrot.slane %v19783_v51, 6  ;;  %v19782_v25 = vld [vmem:[%s22657_s9 + $0x518] sm:$0xc]  ;;  %v18950_v51 = vld [vmem:[%s22657_s9 + $0x368] sm:$0xf] }
 0x9c3   : > { %v9883_v29 = vrot.slane %v18950_v51, 7 }
 0x9c4   : > { %v16047_v55 = vsel %vm23185_vm6, %v16045_v36, %v16046_v28  ;;  %v18894_v36 = vld [vmem:[%s22657_s9 + $0x3ac] sm:$0xf]  ;;  %v19810_v28 = vrot.slane %v19782_v25, 10  ;;  %v16066_v60 = vrot.slane %v16064_v41, 4 }
 0x9c5   : > { %v19823_v63 = vcombine.low %v16044_v27, %v16047_v55  ;;  %v9399_v27 = vsel %vm25176_vm9, %v9397_v43, %v9398_v56  ;;  %v18893_v55 = vld [vmem:[%s22657_s9 + $0x3a8] sm:$0x8]  ;;  %v18951_v25 = vld [vmem:[%s22657_s9 + $0x36c] sm:$0x7]  ;;  %v18995_v43 = vrot.slane %v18949_v33, 11  ;;  %v9885_v56 = vrot.slane %v9883_v29, 4 }
 0x9c6   : > { %v16065_v9 = vsel %vm23185_vm6, %v19810_v28, %v16064_v41  ;;  %v18911_v62 = vrot.slane %v18893_v55, 11 }
 0x9c9   : > { %18938 = vmatmul.mubr.msk.bf16.gmra.mrb[228].mxu0 %vm653_vm4, %v18920_v24  ;;  %19838 = vmatmul.mubr.msk.bf16.gmra.mrb[84].mxu1 %vm653_vm4, %v19820_v47  ;;  %v19778_v24 = vld [vmem:[%s22657_s9 + $0x4e8] sm:$0x3]  ;;  %v18923_v47 = vcombine.low %v9375_v15, %v9378_v48  ;;  %v19786_v15 = vld [vmem:[%s22657_s9 + $0x538] sm:$0xf]  ;;  %v9402_v48 = vrot.slane %v18894_v36, 7  ;;  %v9886_v36 = vrot.slane %v18951_v25, 7 }
 0x9ca   : > { %9642 = vmatprep.mubr.bf16.mxu0 %v27418_v16  ;;  %16299 = vmatprep.mubr.bf16.mxu1 %v27418_v16  ;;  %v16053_v23 = vrot.slane %v19778_v24, 6  ;;  %v16071_v10 = vrot.slane %v19786_v15, 6  ;;  %v19785_v24 = vld [vmem:[%s22657_s9 + $0x534] sm:$0xc]  ;;  %v18953_v15 = vld [vmem:[%s22657_s9 + $0x384] sm:$0xf] }
 0x9cb   : > { %v9404_v2 = vrot.slane %v9402_v48, 4  ;;  %v9887_v55 = vsel %vm25176_vm9, %v9885_v56, %v9886_v36  ;;  %v18958_v25 = vld [vmem:[%s22657_s9 + $0x3b8] sm:$0x8] }
 0x9cc   : > { %v16054_v31 = vsel %vm23185_vm6, %v16052_v12, %v16053_v23  ;;  %v19811_v12 = vrot.slane %v19785_v24, 10  ;;  %v16073_v23 = vrot.slane %v16071_v10, 4  ;;  %v18962_v36 = vld [vmem:[%s22657_s9 + $0x3d8] sm:$0xf] }
 0x9cd   : > { %v19824_v11 = vcombine.low %v16051_v39, %v16054_v31  ;;  %v9406_v49 = vsel %vm25176_vm9, %v9404_v2, %v9405_v57  ;;  %v26392_v57 = vld.sshfl [vmem:[#allocation5 + $0x48] sm:$0x33 pattern:$0x76325410] }
 0x9ce   : > { %v16072_v39 = vsel %vm23185_vm6, %v19811_v12, %v16071_v10 }
 0x9d1   : > { %18939 = vmatmul.mubr.msk.bf16.gmra.mrb[232].mxu0 %vm653_vm4, %v18921_v19  ;;  %19839 = vmatmul.mubr.msk.bf16.gmra.mrb[88].mxu1 %vm653_vm4, %v19821_v26  ;;  %v19781_v19 = vld [vmem:[%s22657_s9 + $0x504] sm:$0x3]  ;;  %v18924_v26 = vcombine.low %v9382_v22, %v9385_v21  ;;  %v19789_v22 = vld [vmem:[%s22657_s9 + $0x554] sm:$0xf]  ;;  %v9403_v21 = vsel %vm25176_vm9, %v18911_v62, %v9402_v48  ;;  %v10672_v48 = vsel %vm751_vm0, %v26077_v32, 0 }
 0x9d2   : > { %9652 = vmatprep.mubr.bf16.mxu0 %v27418_v16  ;;  %16309 = vmatprep.mubr.bf16.mxu1 %v27418_v16  ;;  %v16060_v14 = vrot.slane %v19781_v19, 6  ;;  %v16078_v20 = vrot.slane %v19789_v22, 6  ;;  %v19788_v19 = vld [vmem:[%s22657_s9 + $0x550] sm:$0xc]  ;;  %v18952_v32 = vld [vmem:[%s22657_s9 + $0x380] sm:$0x8] }
 0x9d4   : > { %v16061_v13 = vsel %vm23185_vm6, %v16059_v8, %v16060_v14  ;;  %v19812_v8 = vrot.slane %v19788_v19, 10  ;;  %v16080_v14 = vrot.slane %v16078_v20, 4  ;;  %v18957_v19 = vld [vmem:[%s22657_s9 + $0x3a4] sm:$0x7] }
 0x9d5   : > { %v19825_v4 = vcombine.low %v16058_v30, %v16061_v13  ;;  %v9880_v30 = vsel %vm25176_vm9, %v9878_v7, %v9879_v53 }
 0x9d6   : > { %v16079_v13 = vsel %vm23185_vm6, %v19812_v8, %v16078_v20  ;;  %v18955_v20 = vld [vmem:[%s22657_s9 + $0x39c] sm:$0x8] }
 0x9d7   : > { %v18997_v8 = vrot.slane %v18955_v20, 11 }
 0x9d9   : > { %18940 = vmatmul.mubr.msk.bf16.gmra.mrb[236].mxu0 %vm653_vm4, %v18922_v46  ;;  %19840 = vmatmul.mubr.msk.bf16.gmra.mrb[92].mxu1 %vm653_vm4, %v19822_v58  ;;  %v19784_v46 = vld [vmem:[%s22657_s9 + $0x520] sm:$0x3]  ;;  %v18925_v58 = vcombine.low %v9389_v44, %v9392_v5  ;;  %v19792_v44 = vld [vmem:[%s22657_s9 + $0x570] sm:$0xf]  ;;  %v9877_v5 = vsel %vm25176_vm9, %v18994_v0, %v9876_v6  ;;  %v19799_v0 = vld [vmem:[%s22657_s9 + $0x5ac] sm:$0x3] }
 0x9da   : > { %9662 = vmatprep.mubr.bf16.mxu0 %v27418_v16  ;;  %16319 = vmatprep.mubr.bf16.mxu1 %v27418_v16  ;;  %v16067_v59 = vrot.slane %v19784_v46, 6  ;;  %v16085_v41 = vrot.slane %v19792_v44, 6  ;;  %v19791_v46 = vld [vmem:[%s22657_s9 + $0x56c] sm:$0xc] }
 0x9db   : > { %v19813_v28 = vrot.slane %v19791_v46, 10  ;;  %v18960_v46 = vld [vmem:[%s22657_s9 + $0x3c0] sm:$0x7] }
 0x9dc   : > { %v16068_v37 = vsel %vm23185_vm6, %v16066_v60, %v16067_v59  ;;  %v16087_v60 = vrot.slane %v16085_v41, 4  ;;  %v9907_v56 = vrot.slane %v18960_v46, 7  ;;  %v18976_v46 = vld [vmem:[%s22657_s9 + $0x460] sm:$0x8] }
 0x9dd   : > { %v19826_v38 = vcombine.low %v16065_v9, %v16068_v37  ;;  %v16086_v1 = vsel %vm23185_vm6, %v19813_v28, %v16085_v41  ;;  %v9890_v9 = vrot.slane %v18953_v15, 7  ;;  %v18954_v37 = vld [vmem:[%s22657_s9 + $0x388] sm:$0x7]  ;;  %v18963_v15 = vld [vmem:[%s22657_s9 + $0x3dc] sm:$0x7] }
 0x9df   : > { %v9892_v12 = vrot.slane %v9890_v9, 4 }
 0x9e1   : > { %18941 = vmatmul.mubr.msk.bf16.gmra.mrb[240].mxu0 %vm653_vm4, %v18923_v47  ;;  %19841 = vmatmul.mubr.msk.bf16.gmra.mrb[96].mxu1 %vm653_vm4, %v19823_v63  ;;  %v19787_v47 = vld [vmem:[%s22657_s9 + $0x53c] sm:$0x3]  ;;  %v18926_v63 = vcombine.low %v9396_v34, %v9399_v27  ;;  %v19795_v34 = vld [vmem:[%s22657_s9 + $0x58c] sm:$0xf]  ;;  %v9884_v27 = vsel %vm25176_vm9, %v18995_v43, %v9883_v29 }
 0x9e2   : > { %9672 = vmatprep.mubr.bf16.mxu0 %v27418_v16  ;;  %16329 = vmatprep.mubr.bf16.mxu1 %v27418_v16  ;;  %v16074_v17 = vrot.slane %v19787_v47, 6  ;;  %v16092_v24 = vrot.slane %v19795_v34, 6  ;;  %v19794_v47 = vld [vmem:[%s22657_s9 + $0x588] sm:$0xc]  ;;  %v19011_v62 = vcombine.low %v9884_v27, %v9887_v55  ;;  %v18959_v29 = vld [vmem:[%s22657_s9 + $0x3bc] sm:$0xf] }
 0x9e3   : > { %v19814_v45 = vrot.slane %v19794_v47, 10  ;;  %v9904_v41 = vrot.slane %v18959_v29, 7  ;;  %v9914_v55 = vrot.slane %v18963_v15, 7  ;;  %v18981_v15 = vld [vmem:[%s22657_s9 + $0x484] sm:$0x7] }
 0x9e4   : > { %v16075_v31 = vsel %vm23185_vm6, %v16073_v23, %v16074_v17  ;;  %v9893_v23 = vrot.slane %v18954_v37, 7  ;;  %v11200_v17 = vcombine.high %v26392_v57, %v26392_v57  ;;  %v16094_v22 = vrot.slane %v16092_v24, 4  ;;  %v18964_v37 = vld [vmem:[%s22657_s9 + $0x3f0] sm:$0x8] }
 0x9e5   : > { %v19827_v3 = vcombine.low %v16072_v39, %v16075_v31  ;;  %v19798_v39 = vld [vmem:[%s22657_s9 + $0x5a8] sm:$0xf]  ;;  %v16093_v50 = vsel %vm23185_vm6, %v19814_v45, %v16092_v24  ;;  %v9906_v43 = vrot.slane %v9904_v41, 4  ;;  %v18966_v24 = vld [vmem:[%s22657_s9 + $0x3f8] sm:$0x7] }
 0x9e6   : > { %v9894_v40 = vsel %vm25176_vm9, %v9892_v12, %v9893_v23  ;;  %v18967_v45 = vld [vmem:[%s22657_s9 + $0x40c] sm:$0x8] }
 0x9e7   : > { %v9908_v28 = vsel %vm25176_vm9, %v9906_v43, %v9907_v56 }
 0x9e9   : > { %18942 = vmatmul.mubr.msk.bf16.gmra.mrb[244].mxu0 %vm653_vm4, %v18924_v26  ;;  %19842 = vmatmul.mubr.msk.bf16.gmra.mrb[100].mxu1 %vm653_vm4, %v19824_v11  ;;  %v19790_v26 = vld [vmem:[%s22657_s9 + $0x558] sm:$0x3]  ;;  %v18927_v11 = vcombine.low %v9403_v21, %v9406_v49  ;;  %v18956_v49 = vld [vmem:[%s22657_s9 + $0x3a0] sm:$0xf] }
 0x9ea   : > { %9682 = vmatprep.mubr.bf16.mxu0 %v27418_v16  ;;  %16339 = vmatprep.mubr.bf16.mxu1 %v27418_v16  ;;  %v16081_v54 = vrot.slane %v19790_v26, 6  ;;  %v9897_v26 = vrot.slane %v18956_v49, 7  ;;  %v19001_v49 = vrot.slane %v18967_v45, 11  ;;  %v18985_v45 = vld [vmem:[%s22657_s9 + $0x4b4] sm:$0x8] }
 0x9ec   : > { %v16082_v18 = vsel %vm23185_vm6, %v16080_v14, %v16081_v54  ;;  %v9900_v14 = vrot.slane %v18957_v19, 7  ;;  %v9899_v54 = vrot.slane %v9897_v26, 4  ;;  %v18970_v19 = vld [vmem:[%s22657_s9 + $0x428] sm:$0x8] }
 0x9ed   : > { %v19828_v61 = vcombine.low %v16079_v13, %v16082_v18 }
 0x9ee   : > { %v9901_v13 = vsel %vm25176_vm9, %v9899_v54, %v9900_v14 }
 0x9f1   : > { %18943 = vmatmul.mubr.msk.bf16.gmra.mrb[248].mxu0 %vm653_vm4, %v18925_v58  ;;  %19843 = vmatmul.mubr.msk.bf16.gmra.mrb[104].mxu1 %vm653_vm4, %v19825_v4  ;;  %v19793_v58 = vld [vmem:[%s22657_s9 + $0x574] sm:$0x3]  ;;  %v19010_v4 = vcombine.low %v9877_v5, %v9880_v30  ;;  %v16102_v5 = vrot.slane %v19799_v0, 6  ;;  %v9898_v30 = vsel %vm25176_vm9, %v18997_v8, %v9897_v26  ;;  %v18972_v26 = vld [vmem:[%s22657_s9 + $0x430] sm:$0x7] }
 0x9f2   : > { %9692 = vmatprep.mubr.bf16.mxu0 %v27418_v16  ;;  %16349 = vmatprep.mubr.bf16.mxu1 %v27418_v16  ;;  %v16088_v59 = vrot.slane %v19793_v58, 6  ;;  %v19013_v58 = vcombine.low %v9898_v30, %v9901_v13 }
 0x9f4   : > { %v16089_v10 = vsel %vm23185_vm6, %v16087_v60, %v16088_v59  ;;  %v9911_v60 = vrot.slane %v18962_v36, 7  ;;  %v18961_v59 = vld [vmem:[%s22657_s9 + $0x3d4] sm:$0x8]  ;;  %v18980_v36 = vld [vmem:[%s22657_s9 + $0x480] sm:$0xf] }
 0x9f5   : > { %v19829_v2 = vcombine.low %v16086_v1, %v16089_v10  ;;  %v18999_v34 = vrot.slane %v18961_v59, 11  ;;  %v18965_v1 = vld [vmem:[%s22657_s9 + $0x3f4] sm:$0xf]  ;;  %v18979_v59 = vld [vmem:[%s22657_s9 + $0x47c] sm:$0x8] }
 0x9f6   : > { %v9913_v27 = vrot.slane %v9911_v60, 4 }
 0x9f7   : > { %v9912_v10 = vsel %vm25176_vm9, %v18999_v34, %v9911_v60  ;;  %v9953_v60 = vrot.slane %v18980_v36, 7  ;;  %v19005_v34 = vrot.slane %v18979_v59, 11  ;;  %v19046_v36 = vld [vmem:[%s22657_s9 + $0x358] sm:$0x1] }
 0x9f9   : > { %18944 = vmatmul.mubr.msk.bf16.gmra.mrb[252].mxu0 %vm653_vm4, %v18926_v63  ;;  %19844 = vmatmul.mubr.msk.bf16.gmra.mrb[108].mxu1 %vm653_vm4, %v19826_v38  ;;  %v19796_v63 = vld [vmem:[%s22657_s9 + $0x590] sm:$0x3]  ;;  %v18996_v38 = vrot.slane %v18952_v32, 11  ;;  %v9918_v32 = vrot.slane %v18965_v1, 7  ;;  %v18983_v1 = vld [vmem:[%s22657_s9 + $0x49c] sm:$0xf] }
 0x9fa   : > { %9702 = vmatprep.mubr.bf16.mxu0 %v27418_v16  ;;  %16359 = vmatprep.mubr.bf16.mxu1 %v27418_v16  ;;  %v16095_v21 = vrot.slane %v19796_v63, 6  ;;  %v19000_v63 = vrot.slane %v18964_v37, 11  ;;  %v18982_v37 = vld [vmem:[%s22657_s9 + $0x498] sm:$0x8] }
 0x9fb   : > { %v9891_v31 = vsel %vm25176_vm9, %v18996_v38, %v9890_v9  ;;  %v9915_v9 = vsel %vm25176_vm9, %v9913_v27, %v9914_v55  ;;  %v18968_v38 = vld [vmem:[%s22657_s9 + $0x410] sm:$0xf]  ;;  %v9955_v27 = vrot.slane %v9953_v60, 4  ;;  %v9956_v55 = vrot.slane %v18981_v15, 7 }
 0x9fc   : > { %v16096_v6 = vsel %vm23185_vm6, %v16094_v22, %v16095_v21  ;;  %v19012_v53 = vcombine.low %v9891_v31, %v9894_v40  ;;  %v19015_v47 = vcombine.low %v9912_v10, %v9915_v9  ;;  %v9919_v12 = vsel %vm25176_vm9, %v19000_v63, %v9918_v32  ;;  %v18969_v22 = vld [vmem:[%s22657_s9 + $0x414] sm:$0x7]  ;;  %v18971_v40 = vld [vmem:[%s22657_s9 + $0x42c] sm:$0xf] }
 0x9fd   : > { %v19830_v7 = vcombine.low %v16093_v50, %v16096_v6  ;;  %v9928_v31 = vrot.slane %v18969_v22, 7  ;;  %v9932_v20 = vrot.slane %v18971_v40, 7  ;;  %v9954_v10 = vsel %vm25176_vm9, %v19005_v34, %v9953_v60  ;;  %v18987_v22 = vld [vmem:[%s22657_s9 + $0x4bc] sm:$0x7]  ;;  %v18989_v40 = vld [vmem:[%s22657_s9 + $0x4d4] sm:$0xf] }
 0x9fe   : > { %v9957_v9 = vsel %vm25176_vm9, %v9955_v27, %v9956_v55  ;;  %v19006_v63 = vrot.slane %v18982_v37, 11  ;;  %v10457_v55 = vrot.slane %v19046_v36, 5 }
 0x9ff   : > { %v9934_v0 = vrot.slane %v9932_v20, 4 }
 0xa01   : > { %18945 = vmatmul.mubr.msk.bf16.gmra.mrb[0].mxu0 %vm653_vm4, %v18927_v11  ;;  %19845 = vmatmul.mubr.msk.bf16.gmra.mrb[112].mxu1 %vm653_vm4, %v19827_v3  ;;  %v16099_v11 = vrot.slane %v19798_v39, 6  ;;  %v19797_v3 = vld [vmem:[%s22657_s9 + $0x5a4] sm:$0xc] }
 0xa02   : > { %10131 = vmatprep.mubr.bf16.mxu0 %v27418_v16  ;;  %16369 = vmatprep.mubr.bf16.mxu1 %v27418_v16  ;;  %v19815_v51 = vrot.slane %v19797_v3, 10  ;;  %v19002_v3 = vrot.slane %v18970_v19, 11  ;;  %v18988_v19 = vld [vmem:[%s22657_s9 + $0x4d0] sm:$0x8] }
 0xa03   : > { %v16101_v44 = vrot.slane %v16099_v11, 4 }
 0xa04   : > { %v16100_v18 = vsel %vm23185_vm6, %v19815_v51, %v16099_v11  ;;  %v9933_v8 = vsel %vm25176_vm9, %v19002_v3, %v9932_v20  ;;  %v18973_v51 = vld [vmem:[%s22657_s9 + $0x444] sm:$0x8]  ;;  %v9974_v20 = vrot.slane %v18989_v40, 7  ;;  %v19008_v3 = vrot.slane %v18988_v19, 11 }
 0xa05   : > { %v16103_v33 = vsel %vm23185_vm6, %v16101_v44, %v16102_v5  ;;  %v18975_v44 = vld [vmem:[%s22657_s9 + $0x44c] sm:$0x7]  ;;  %v19003_v29 = vrot.slane %v18973_v51, 11  ;;  %v18991_v51 = vld [vmem:[%s22657_s9 + $0x4ec] sm:$0x8] }
 0xa06   : > { %v9942_v13 = vrot.slane %v18975_v44, 7  ;;  %v18993_v44 = vld [vmem:[%s22657_s9 + $0x4f4] sm:$0x7] }
 0xa09   : > { %19028 = vmatmul.mubr.msk.bf16.vlgmr.msra.gmra.mrb[196].mxu0 %vm653_vm4, %v19010_v4  ;;  %19846 = vmatmul.mubr.msk.bf16.gmra.mrb[116].mxu1 %vm653_vm4, %v19828_v61  ;;  %v19831_v4 = vcombine.low %v16100_v18, %v16103_v33  ;;  %v18998_v61 = vrot.slane %v18958_v25, 11  ;;  %v18977_v18 = vld [vmem:[%s22657_s9 + $0x464] sm:$0xf] }
 0xa0a   : > { %10678 = vmatpush1.bf16.msra.mxu0 %v10672_v48  ;;  %10141 = vmatprep.mubr.bf16.mxu0 %v27418_v16  ;;  %v9946_v25 = vrot.slane %v18977_v18, 7  ;;  %v9984_v18 = vrot.slane %v18993_v44, 7  ;;  %v19050_v44 = vld [vmem:[%s22657_s9 + $0x388] sm:$0xe] }
 0xa0b   : > { %16379 = vmatprep.mubr.bf16.mxu1 %v27418_v16  ;;  %19223 = vmatprep.subr.msk.bf16.mxu0 %vm751_vm0, %v11200_v17  ;;  %v9905_v42 = vsel %vm25176_vm9, %v18998_v61, %v9904_v41  ;;  %v9925_v17 = vrot.slane %v18968_v38, 7  ;;  %v19004_v61 = vrot.slane %v18976_v46, 11  ;;  %v18986_v38 = vld [vmem:[%s22657_s9 + $0x4b8] sm:$0xf] }
 0xa0c   : > { %v19014_v48 = vcombine.low %v9905_v42, %v9908_v28  ;;  %v9948_v43 = vrot.slane %v9946_v25, 4  ;;  %v27576_v46 = vld [vmem:[#allocation21_spill] sm:$0xff] }
 0xa0d   : > { %v9927_v39 = vrot.slane %v9925_v17, 4  ;;  %v9926_v50 = vsel %vm25176_vm9, %v19001_v49, %v9925_v17  ;;  %v9947_v42 = vsel %vm25176_vm9, %v19004_v61, %v9946_v25  ;;  %v9967_v17 = vrot.slane %v18986_v38, 7  ;;  %v19047_v38 = vld [vmem:[%s22657_s9 + $0x36c] sm:$0xe] }
 0xa0e   : > { %v19007_v49 = vrot.slane %v18985_v45, 11 }
 0xa0f   : > { %v9929_v6 = vsel %vm25176_vm9, %v9927_v39, %v9928_v31  ;;  %v9969_v39 = vrot.slane %v9967_v17, 4  ;;  %v9970_v31 = vrot.slane %v18987_v22, 7 }
 0xa10   : > { %v19017_v11 = vcombine.low %v9926_v50, %v9929_v6  ;;  %v9968_v50 = vsel %vm25176_vm9, %v19007_v49, %v9967_v17  ;;  %v19049_v17 = vld [vmem:[%s22657_s9 + $0x374] sm:$0x1] }
 0xa11   : > { %19029 = vmatmul.mubr.msk.bf16.gmra.mrb[200].mxu0 %vm653_vm4, %v19011_v62  ;;  %19847 = vmatmul.mubr.msk.bf16.gmra.mrb[120].mxu1 %vm653_vm4, %v19829_v2  ;;  %v9920_v62 = vrot.slane %v9918_v32, 4  ;;  %v9921_v2 = vrot.slane %v18966_v24, 7  ;;  %v9960_v32 = vrot.slane %v18983_v1, 7  ;;  %v18984_v24 = vld [vmem:[%s22657_s9 + $0x4a0] sm:$0x7]  ;;  %v9971_v6 = vsel %vm25176_vm9, %v9969_v39, %v9970_v31 }
 0xa12   : > { %10151 = vmatprep.mubr.bf16.mxu0 %v27418_v16  ;;  %16389 = vmatprep.mubr.bf16.mxu1 %v27418_v16  ;;  %v19093_v31 = vrot.slane %v19047_v38, 9 }
 0xa13   : > { %v9922_v23 = vsel %vm25176_vm9, %v9920_v62, %v9921_v2  ;;  %v9962_v62 = vrot.slane %v9960_v32, 4  ;;  %v9963_v2 = vrot.slane %v18984_v24, 7 }
 0xa14   : > { %v19016_v21 = vcombine.low %v9919_v12, %v9922_v23  ;;  %v9961_v12 = vsel %vm25176_vm9, %v19006_v63, %v9960_v32 }
 0xa15   : > { %v9964_v23 = vsel %vm25176_vm9, %v9962_v62, %v9963_v2 }
 0xa19   : > { %19030 = vmatmul.mubr.msk.bf16.gmra.mrb[204].mxu0 %vm653_vm4, %v19012_v53  ;;  %19848 = vmatmul.mubr.msk.bf16.gmra.mrb[124].mxu1 %vm653_vm4, %v19830_v7  ;;  %v9935_v53 = vrot.slane %v18972_v26, 7  ;;  %v18974_v7 = vld [vmem:[%s22657_s9 + $0x448] sm:$0xf]  ;;  %v18990_v26 = vld [vmem:[%s22657_s9 + $0x4d8] sm:$0x7] }
 0xa1a   : > { %10161 = vmatprep.mubr.bf16.mxu0 %v27418_v16  ;;  %16399 = vmatprep.mubr.bf16.mxu1 %v27418_v16  ;;  %v9939_v54 = vrot.slane %v18974_v7, 7  ;;  %v18992_v7 = vld [vmem:[%s22657_s9 + $0x4f0] sm:$0xf] }
 0xa1b   : > { %v9936_v14 = vsel %vm25176_vm9, %v9934_v0, %v9935_v53  ;;  %v9976_v0 = vrot.slane %v9974_v20, 4  ;;  %v9977_v53 = vrot.slane %v18990_v26, 7 }
 0xa1c   : > { %v19018_v5 = vcombine.low %v9933_v8, %v9936_v14  ;;  %v9941_v30 = vrot.slane %v9939_v54, 4  ;;  %v9940_v33 = vsel %vm25176_vm9, %v19003_v29, %v9939_v54  ;;  %v9975_v8 = vsel %vm25176_vm9, %v19008_v3, %v9974_v20  ;;  %v16475_v29 = vld [vmem:[#allocation10 + $0x3] ss:$4 sm:$0x3]  ;;  %v19051_v3 = vld [vmem:[%s22657_s9 + $0x38c] sm:$0xf] }
 0xa1d   : > { %v9978_v14 = vsel %vm25176_vm9, %v9976_v0, %v9977_v53  ;;  %v9981_v54 = vrot.slane %v18992_v7, 7  ;;  %v10464_v20 = vrot.slane %v19049_v17, 5 }
 0xa1e   : > { %v9943_v41 = vsel %vm25176_vm9, %v9941_v30, %v9942_v13  ;;  %v19009_v30 = vrot.slane %v18991_v51, 11 }
 0xa1f   : > { %v9983_v13 = vrot.slane %v9981_v54, 4 }
 0xa21   : > { %19031 = vmatmul.mubr.msk.bf16.gmra.mrb[208].mxu0 %vm653_vm4, %v19013_v58  ;;  %19849 = vmatmul.mubr.msk.bf16.gmra.mrb[128].mxu1 %vm653_vm4, %v19831_v4  ;;  %v18978_v58 = vld [vmem:[%s22657_s9 + $0x468] sm:$0x7]  ;;  %v19019_v4 = vcombine.low %v9940_v33, %v9943_v41  ;;  %v19045_v33 = vld [vmem:[%s22657_s9 + $0x354] sm:$0xf]  ;;  %v9985_v61 = vsel %vm25176_vm9, %v9983_v13, %v9984_v18 }
 0xa22   : > { %10171 = vmatprep.mubr.bf16.mxu0 %v27418_v16  ;;  %v9949_v56 = vrot.slane %v18978_v58, 7  ;;  %v27575_v41 = vld [vmem:[#allocation20_spill] sm:$0xff]  ;;  %v26536_v58 = vrot.slane %v16475_v29, %v27576_v46 }
 0xa23   : > { %v26532_v25 = vrot.slane %v16475_v29, %v27575_v41  ;;  %v19052_v29 = vld [vmem:[%s22657_s9 + $0x390] sm:$0x1] }
 0xa24   : > { %v9950_v28 = vsel %vm25176_vm9, %v9948_v43, %v9949_v56  ;;  %v19044_v43 = vld [vmem:[%s22657_s9 + $0x350] sm:$0xe]  ;;  %v10454_v56 = vrot.slane %v19045_v33, 5 }
 0xa25   : > { %v19092_v15 = vrot.slane %v19044_v43, 9 }
 0xa26   : > { %v10456_v27 = vrot.slane %v10454_v56, 4 }
 0xa28   : > { %v10458_v2 = vsel %vm22828_vm3, %v10456_v27, %v10457_v55 }
 0xa29   : > { %19032 = vmatmul.mubr.msk.bf16.gmra.mrb[212].mxu0 %vm653_vm4, %v19014_v48  ;;  %v19020_v48 = vcombine.low %v9947_v42, %v9950_v28 }
 0xa2a   : > { %10181 = vmatprep.mubr.bf16.mxu0 %v27418_v16 }
 0xa31   : > { %19033 = vmatmul.mubr.msk.bf16.gmra.mrb[216].mxu0 %vm653_vm4, %v19015_v47  ;;  %v19021_v47 = vcombine.low %v9954_v10, %v9957_v9  ;;  %v19048_v9 = vld [vmem:[%s22657_s9 + $0x370] sm:$0xf] }
 0xa32   : > { %10191 = vmatprep.mubr.bf16.mxu0 %v27418_v16 }
 0xa39   : > { %19034 = vmatmul.mubr.msk.bf16.gmra.mrb[220].mxu0 %vm653_vm4, %v19016_v21  ;;  %v19022_v21 = vcombine.low %v9961_v12, %v9964_v23  ;;  %v10461_v12 = vrot.slane %v19048_v9, 5  ;;  %v19053_v9 = vld [vmem:[%s22657_s9 + $0x3a4] sm:$0xe] }
 0xa3a   : > { %10201 = vmatprep.mubr.bf16.mxu0 %v27418_v16 }
 0xa41   : > { %19035 = vmatmul.mubr.msk.bf16.gmra.mrb[224].mxu0 %vm653_vm4, %v19017_v11  ;;  %v19023_v11 = vcombine.low %v9968_v50, %v9971_v6  ;;  %v10463_v6 = vrot.slane %v10461_v12, 4 }
 0xa42   : > { %10211 = vmatprep.mubr.bf16.mxu0 %v27418_v16 }
 0xa43   : > { %v10465_v51 = vsel %vm22828_vm3, %v10463_v6, %v10464_v20 }
 0xa49   : > { %19036 = vmatmul.mubr.msk.bf16.gmra.mrb[228].mxu0 %vm653_vm4, %v19018_v5  ;;  %v19024_v5 = vcombine.low %v9975_v8, %v9978_v14  ;;  %v10462_v8 = vsel %vm22828_vm3, %v19093_v31, %v10461_v12  ;;  %v19095_v12 = vrot.slane %v19053_v9, 9 }
 0xa4a   : > { %10221 = vmatprep.mubr.bf16.mxu0 %v27418_v16 }
 0xa51   : > { %19037 = vmatmul.mubr.msk.bf16.gmra.mrb[232].mxu0 %vm653_vm4, %v19019_v4  ;;  %v9982_v4 = vsel %vm25176_vm9, %v19009_v30, %v9981_v54 }
 0xa52   : > { %10231 = vmatprep.mubr.bf16.mxu0 %v27418_v16  ;;  %v19025_v59 = vcombine.low %v9982_v4, %v9985_v61  ;;  %v19109_v4 = vcombine.low %v10462_v8, %v10465_v51  ;;  %v19094_v61 = vrot.slane %v19050_v44, 9  ;;  %v19058_v8 = vld [vmem:[%s22657_s9 + $0x3c8] sm:$0x1] }
 0xa59   : > { %19038 = vmatmul.mubr.msk.bf16.gmra.mrb[236].mxu0 %vm653_vm4, %v19020_v48 }
 0xa5a   : > { %10241 = vmatprep.mubr.bf16.mxu0 %v27418_v16 }
 0xa61   : > { %19039 = vmatmul.mubr.msk.bf16.gmra.mrb[240].mxu0 %vm653_vm4, %v19021_v47  ;;  %v10455_v47 = vsel %vm22828_vm3, %v19092_v15, %v10454_v56 }
 0xa62   : > { %10251 = vmatprep.mubr.bf16.mxu0 %v27418_v16  ;;  %v19108_v39 = vcombine.low %v10455_v47, %v10458_v2 }
 0xa69   : > { %19040 = vmatmul.mubr.msk.bf16.gmra.mrb[244].mxu0 %vm653_vm4, %v19022_v21 }
 0xa6a   : > { %10261 = vmatprep.mubr.bf16.mxu0 %v27418_v16 }
 0xa71   : > { %19041 = vmatmul.mubr.msk.bf16.gmra.mrb[248].mxu0 %vm653_vm4, %v19023_v11  ;;  %v11250_v11 = vsel %vm751_vm0, %v26392_v57, 0  ;;  %v10468_v57 = vrot.slane %v19051_v3, 5 }
 0xa72   : > { %10271 = vmatprep.mubr.bf16.mxu0 %v27418_v16 }
 0xa73   : > { %v10470_v36 = vrot.slane %v10468_v57, 4  ;;  %v10469_v27 = vsel %vm22828_vm3, %v19094_v61, %v10468_v57 }
 0xa79   : > { %19042 = vmatmul.mubr.msk.bf16.gmra.mrb[252].mxu0 %vm653_vm4, %v19024_v5 }
 0xa7a   : > { %10281 = vmatprep.mubr.bf16.mxu0 %v27418_v16 }
 0xa7c   : > { %v16251_v42 = vpop.f32.mrb[68].mxu1 }
 0xa7d   : > { %v16487_v28 = vadd.f32 %v26532_v25, %v16251_v42  ;;  %v16253_v60 = vpop.f32.mrb[69].mxu1  ;;  %v10471_v42 = vrot.slane %v19052_v29, 5 }
 0xa7e   : > { %v16488_v48 = vadd.f32 %v26536_v58, %v16253_v60  ;;  %v16255_v34 = vpop.f32.mrb[70].mxu1 }
 0xa7f   : > { %v16489_v1 = vadd.f32 %v26532_v25, %v16255_v34  ;;  %v16257_v10 = vpop.f32.mrb[71].mxu1  ;;  %v16551_v37 = vmax.f32 %v16487_v28, 0.0 }
 0xa80   : > { %v16490_v32 = vadd.f32 %v26536_v58, %v16257_v10  ;;  %v16552_v63 = vmax.f32 %v16488_v48, 0.0  ;;  %v10472_v10 = vsel %vm22828_vm3, %v10470_v36, %v10471_v42 }
 0xa81   : > { %v16553_v24 = vmax.f32 %v16489_v1, 0.0  ;;  %19043 = vmatmul.mubr.msk.bf16.gmra.mrb[0].mxu0 %vm653_vm4, %v19025_v59  ;;  %v19054_v59 = vld [vmem:[%s22657_s9 + $0x3a8] sm:$0xf]  ;;  %v19110_v38 = vcombine.low %v10469_v27, %v10472_v10 }
 0xa82   : > { %v16554_v62 = vmax.f32 %v16490_v32, 0.0  ;;  %10709 = vmatprep.mubr.bf16.mxu0 %v27418_v16  ;;  %v10475_v32 = vrot.slane %v19054_v59, 5 }
 0xa83   : > { %v26557_v23 = vpack.c.bf16 %v16553_v24, %v16551_v37  ;;  %v19055_v24 = vld [vmem:[%s22657_s9 + $0x3ac] sm:$0x1] }
 0xa84   : > { %v26560_v45 = vpack.c.bf16 %v16554_v62, %v16552_v63  ;;  %v16261_v22 = vpop.f32.mrb[72].mxu1 }
 0xa85   : > { %v16491_v21 = vadd.f32 %v26532_v25, %v16261_v22  ;;  %v16263_v49 = vpop.f32.mrb[73].mxu1 }
 0xa86   : > { %v16492_v40 = vadd.f32 %v26536_v58, %v16263_v49  ;;  %v16265_v50 = vpop.f32.mrb[74].mxu1  ;;  %v10478_v49 = vrot.slane %v19055_v24, 5 }
 0xa87   : > { %v16493_v19 = vadd.f32 %v26532_v25, %v16265_v50  ;;  %v16267_v26 = vpop.f32.mrb[75].mxu1  ;;  %v16555_v53 = vmax.f32 %v16491_v21, 0.0  ;;  %v10477_v21 = vrot.slane %v10475_v32, 4 }
 0xa88   : > { %v16494_v0 = vadd.f32 %v26536_v58, %v16267_v26  ;;  %v16556_v14 = vmax.f32 %v16492_v40, 0.0  ;;  %v19057_v40 = vld [vmem:[%s22657_s9 + $0x3c4] sm:$0xf] }
 0xa89   : > { %v16557_v7 = vmax.f32 %v16493_v19, 0.0  ;;  %19126 = vmatmul.mubr.msk.bf16.vlgmr.msra.gmra.mrb[196].mxu0 %vm653_vm4, %v19108_v39  ;;  %v10476_v19 = vsel %vm22828_vm3, %v19095_v12, %v10475_v32  ;;  %v10479_v3 = vsel %vm22828_vm3, %v10477_v21, %v10478_v49  ;;  %v19063_v49 = vld [vmem:[%s22657_s9 + $0x3fc] sm:$0xf] }
 0xa8a   : > { %v16558_v54 = vmax.f32 %v16494_v0, 0.0  ;;  %11256 = vmatpush1.bf16.msra.mxu0 %v11250_v11  ;;  %10719 = vmatprep.mubr.bf16.mxu0 %v27418_v16  ;;  %v19056_v0 = vld [vmem:[%s22657_s9 + $0x3c0] sm:$0xe]  ;;  %v19111_v57 = vcombine.low %v10476_v19, %v10479_v3 }
 0xa8b   : > { %v26576_v5 = vpack.c.bf16 %v16557_v7, %v16555_v53  ;;  %v10482_v53 = vrot.slane %v19057_v40, 5  ;;  %v19096_v29 = vrot.slane %v19056_v0, 9  ;;  %v19064_v0 = vld [vmem:[%s22657_s9 + $0x400] sm:$0x1] }
 0xa8c   : > { %v26579_v30 = vpack.c.bf16 %v16558_v54, %v16556_v14  ;;  %v16271_v13 = vpop.f32.mrb[76].mxu1 }
 0xa8d   : > { %v16495_v18 = vadd.f32 %v26532_v25, %v16271_v13  ;;  %v16273_v33 = vpop.f32.mrb[77].mxu1 }
 0xa8e   : > { %v16496_v43 = vadd.f32 %v26536_v58, %v16273_v33  ;;  %v16275_v56 = vpop.f32.mrb[78].mxu1  ;;  %v10484_v33 = vrot.slane %v10482_v53, 4 }
 0xa8f   : > { %v16497_v28 = vadd.f32 %v26532_v25, %v16275_v56  ;;  %v16277_v60 = vpop.f32.mrb[79].mxu1  ;;  %v16559_v48 = vmax.f32 %v16495_v18, 0.0  ;;  %v19060_v56 = vld [vmem:[%s22657_s9 + $0x3e0] sm:$0xf] }
 0xa90   : > { %v16498_v15 = vadd.f32 %v26536_v58, %v16277_v60  ;;  %v16560_v55 = vmax.f32 %v16496_v43, 0.0  ;;  %v10483_v60 = vsel %vm22828_vm3, %v19096_v29, %v10482_v53  ;;  %v10489_v27 = vrot.slane %v19060_v56, 5 }
 0xa91   : > { %v16561_v34 = vmax.f32 %v16497_v28, 0.0  ;;  %19127 = vmatmul.mubr.msk.bf16.gmra.mrb[200].mxu0 %vm653_vm4, %v19109_v4  ;;  %v10485_v4 = vrot.slane %v19058_v8, 5 }
 0xa92   : > { %v16562_v1 = vmax.f32 %v16498_v15, 0.0  ;;  %10729 = vmatprep.mubr.bf16.mxu0 %v27418_v16  ;;  %v10491_v12 = vrot.slane %v10489_v27, 4 }
 0xa93   : > { %v26593_v37 = vpack.c.bf16 %v16561_v34, %v16559_v48  ;;  %v10486_v48 = vsel %vm22828_vm3, %v10484_v33, %v10485_v4  ;;  %v19059_v34 = vld [vmem:[%s22657_s9 + $0x3dc] sm:$0xe]  ;;  %v10499_v33 = vrot.slane %v19064_v0, 5 }
 0xa94   : > { %v26596_v47 = vpack.c.bf16 %v16562_v1, %v16560_v55  ;;  %v16281_v63 = vpop.f32.mrb[80].mxu1  ;;  %v19061_v1 = vld [vmem:[%s22657_s9 + $0x3e4] sm:$0x1] }
 0xa95   : > { %v16499_v62 = vadd.f32 %v26532_v25, %v16281_v63  ;;  %v16283_v2 = vpop.f32.mrb[81].mxu1  ;;  %v19112_v63 = vcombine.low %v10483_v60, %v10486_v48  ;;  %v19065_v48 = vld [vmem:[%s22657_s9 + $0x414] sm:$0xe] }
 0xa96   : > { %v16500_v17 = vadd.f32 %v26536_v58, %v16283_v2  ;;  %v16285_v22 = vpop.f32.mrb[82].mxu1 }
 0xa97   : > { %v16501_v39 = vadd.f32 %v26532_v25, %v16285_v22  ;;  %v16287_v31 = vpop.f32.mrb[83].mxu1  ;;  %v16563_v6 = vmax.f32 %v16499_v62, 0.0  ;;  %v19097_v62 = vrot.slane %v19059_v34, 9 }
 0xa98   : > { %v16502_v50 = vadd.f32 %v26536_v58, %v16287_v31  ;;  %v16564_v26 = vmax.f32 %v16500_v17, 0.0  ;;  %v10492_v17 = vrot.slane %v19061_v1, 5  ;;  %v19067_v1 = vld [vmem:[%s22657_s9 + $0x41c] sm:$0x1] }
 0xa99   : > { %v16565_v20 = vmax.f32 %v16501_v39, 0.0  ;;  %19128 = vmatmul.mubr.msk.bf16.gmra.mrb[204].mxu0 %vm653_vm4, %v19110_v38 }
 0xa9a   : > { %v16566_v11 = vmax.f32 %v16502_v50, 0.0  ;;  %10739 = vmatprep.mubr.bf16.mxu0 %v27418_v16  ;;  %v10490_v50 = vsel %vm22828_vm3, %v19097_v62, %v10489_v27  ;;  %v10493_v19 = vsel %vm22828_vm3, %v10491_v12, %v10492_v17 }
 0xa9b   : > { %v26610_v7 = vpack.c.bf16 %v16565_v20, %v16563_v6 }
 0xa9c   : > { %v26613_v14 = vpack.c.bf16 %v16566_v11, %v16564_v26  ;;  %v16291_v54 = vpop.f32.mrb[84].mxu1  ;;  %v19062_v26 = vld [vmem:[%s22657_s9 + $0x3f8] sm:$0xe]  ;;  %v10496_v11 = vrot.slane %v19063_v49, 5 }
 0xa9d   : > { %v16503_v51 = vadd.f32 %v26532_v25, %v16291_v54  ;;  %v16293_v44 = vpop.f32.mrb[85].mxu1 }
 0xa9e   : > { %v16504_v13 = vadd.f32 %v26536_v58, %v16293_v44  ;;  %v16295_v18 = vpop.f32.mrb[86].mxu1  ;;  %v19113_v44 = vcombine.low %v10490_v50, %v10493_v19 }
 0xa9f   : > { %v16505_v61 = vadd.f32 %v26532_v25, %v16295_v18  ;;  %v16297_v43 = vpop.f32.mrb[87].mxu1  ;;  %v16567_v42 = vmax.f32 %v16503_v51, 0.0  ;;  %v10498_v18 = vrot.slane %v10496_v11, 4 }
 0xaa0   : > { %v16506_v36 = vadd.f32 %v26536_v58, %v16297_v43  ;;  %v16568_v59 = vmax.f32 %v16504_v13, 0.0  ;;  %v19066_v43 = vld [vmem:[%s22657_s9 + $0x418] sm:$0xf] }
 0xaa1   : > { %v16569_v28 = vmax.f32 %v16505_v61, 0.0  ;;  %19129 = vmatmul.mubr.msk.bf16.gmra.mrb[208].mxu0 %vm653_vm4, %v19111_v57  ;;  %v19098_v57 = vrot.slane %v19062_v26, 9  ;;  %v10503_v34 = vrot.slane %v19066_v43, 5 }
 0xaa2   : > { %v16570_v15 = vmax.f32 %v16506_v36, 0.0  ;;  %10749 = vmatprep.mubr.bf16.mxu0 %v27418_v16 }
 0xaa3   : > { %v26627_v55 = vpack.c.bf16 %v16569_v28, %v16567_v42  ;;  %v10497_v28 = vsel %vm22828_vm3, %v19098_v57, %v10496_v11  ;;  %v10505_v17 = vrot.slane %v10503_v34, 4  ;;  %v19068_v11 = vld [vmem:[%s22657_s9 + $0x430] sm:$0xe] }
 0xaa4   : > { %v26630_v10 = vpack.c.bf16 %v16570_v15, %v16568_v59  ;;  %v16301_v9 = vpop.f32.mrb[88].mxu1  ;;  %v10500_v15 = vsel %vm22828_vm3, %v10498_v18, %v10499_v33  ;;  %v19100_v18 = vrot.slane %v19068_v11, 9 }
 0xaa5   : > { %v16507_v32 = vadd.f32 %v26532_v25, %v16301_v9  ;;  %v16303_v24 = vpop.f32.mrb[89].mxu1  ;;  %v19114_v62 = vcombine.low %v10497_v28, %v10500_v15 }
 0xaa6   : > { %v16508_v2 = vadd.f32 %v26536_v58, %v16303_v24  ;;  %v16305_v38 = vpop.f32.mrb[90].mxu1 }
 0xaa7   : > { %v16509_v22 = vadd.f32 %v26532_v25, %v16305_v38  ;;  %v16307_v21 = vpop.f32.mrb[91].mxu1  ;;  %v16571_v31 = vmax.f32 %v16507_v32, 0.0 }
 0xaa8   : > { %v16510_v39 = vadd.f32 %v26536_v58, %v16307_v21  ;;  %v16572_v6 = vmax.f32 %v16508_v2, 0.0  ;;  %v19099_v2 = vrot.slane %v19065_v48, 9 }
 0xaa9   : > { %v16573_v40 = vmax.f32 %v16509_v22, 0.0  ;;  %19130 = vmatmul.mubr.msk.bf16.gmra.mrb[212].mxu0 %vm653_vm4, %v19112_v63  ;;  %v10506_v22 = vrot.slane %v19067_v1, 5 }
 0xaaa   : > { %v16574_v20 = vmax.f32 %v16510_v39, 0.0  ;;  %10759 = vmatprep.mubr.bf16.mxu0 %v27418_v16  ;;  %v19069_v39 = vld [vmem:[%s22657_s9 + $0x434] sm:$0xf] }
 0xaab   : > { %v26644_v3 = vpack.c.bf16 %v16573_v40, %v16571_v31  ;;  %v10507_v26 = vsel %vm22828_vm3, %v10505_v17, %v10506_v22  ;;  %v10510_v0 = vrot.slane %v19069_v39, 5 }
 0xaac   : > { %v26647_v53 = vpack.c.bf16 %v16574_v20, %v16572_v6  ;;  %v16311_v8 = vpop.f32.mrb[92].mxu1  ;;  %v10504_v6 = vsel %vm22828_vm3, %v19099_v2, %v10503_v34 }
 0xaad   : > { %v16511_v54 = vadd.f32 %v26532_v25, %v16311_v8  ;;  %v16313_v51 = vpop.f32.mrb[93].mxu1  ;;  %v10511_v15 = vsel %vm22828_vm3, %v19100_v18, %v10510_v0 }
 0xaae   : > { %v16512_v29 = vadd.f32 %v26536_v58, %v16313_v51  ;;  %v16315_v13 = vpop.f32.mrb[94].mxu1 }
 0xaaf   : > { %v16513_v4 = vadd.f32 %v26532_v25, %v16315_v13  ;;  %v16317_v61 = vpop.f32.mrb[95].mxu1  ;;  %v16575_v36 = vmax.f32 %v16511_v54, 0.0  ;;  %v19070_v54 = vld [vmem:[%s22657_s9 + $0x438] sm:$0x1]  ;;  %v19115_v13 = vcombine.low %v10504_v6, %v10507_v26 }
 0xab0   : > { %v16514_v56 = vadd.f32 %v26536_v58, %v16317_v61  ;;  %v16576_v60 = vmax.f32 %v16512_v29, 0.0  ;;  %v10512_v61 = vrot.slane %v10510_v0, 4  ;;  %v10513_v43 = vrot.slane %v19070_v54, 5 }
 0xab1   : > { %v16577_v42 = vmax.f32 %v16513_v4, 0.0  ;;  %19131 = vmatmul.mubr.msk.bf16.gmra.mrb[216].mxu0 %vm653_vm4, %v19113_v44 }
 0xab2   : > { %v16578_v59 = vmax.f32 %v16514_v56, 0.0  ;;  %10769 = vmatprep.mubr.bf16.mxu0 %v27418_v16  ;;  %v10514_v1 = vsel %vm22828_vm3, %v10512_v61, %v10513_v43 }
 0xab3   : > { %v26661_v27 = vpack.c.bf16 %v16577_v42, %v16575_v36  ;;  %v19072_v42 = vld [vmem:[%s22657_s9 + $0x450] sm:$0xf]  ;;  %v19116_v22 = vcombine.low %v10511_v15, %v10514_v1  ;;  %v19078_v1 = vld [vmem:[%s22657_s9 + $0x488] sm:$0xf] }
 0xab4   : > { %v26664_v9 = vpack.c.bf16 %v16578_v59, %v16576_v60  ;;  %v16321_v32 = vpop.f32.mrb[96].mxu1 }
 0xab5   : > { %v16515_v24 = vadd.f32 %v26532_v25, %v16321_v32  ;;  %v16323_v63 = vpop.f32.mrb[97].mxu1  ;;  %v19071_v32 = vld [vmem:[%s22657_s9 + $0x44c] sm:$0xe] }
 0xab6   : > { %v16516_v38 = vadd.f32 %v26536_v58, %v16323_v63  ;;  %v16325_v12 = vpop.f32.mrb[98].mxu1 }
 0xab7   : > { %v16517_v21 = vadd.f32 %v26532_v25, %v16325_v12  ;;  %v16327_v49 = vpop.f32.mrb[99].mxu1  ;;  %v16579_v40 = vmax.f32 %v16515_v24, 0.0  ;;  %v10517_v24 = vrot.slane %v19072_v42, 5 }
 0xab8   : > { %v16518_v31 = vadd.f32 %v26536_v58, %v16327_v49  ;;  %v16580_v20 = vmax.f32 %v16516_v38, 0.0 }
 0xab9   : > { %v16581_v50 = vmax.f32 %v16517_v21, 0.0  ;;  %19132 = vmatmul.mubr.msk.bf16.gmra.mrb[220].mxu0 %vm653_vm4, %v19114_v62  ;;  %v19073_v62 = vld [vmem:[%s22657_s9 + $0x454] sm:$0x1]  ;;  %v19101_v21 = vrot.slane %v19071_v32, 9 }
 0xaba   : > { %v16582_v19 = vmax.f32 %v16518_v31, 0.0  ;;  %10779 = vmatprep.mubr.bf16.mxu0 %v27418_v16  ;;  %v10519_v31 = vrot.slane %v10517_v24, 4 }
 0xabb   : > { %v26678_v8 = vpack.c.bf16 %v16581_v50, %v16579_v40  ;;  %v10520_v40 = vrot.slane %v19073_v62, 5  ;;  %v10518_v0 = vsel %vm22828_vm3, %v19101_v21, %v10517_v24  ;;  %v19077_v21 = vld [vmem:[%s22657_s9 + $0x484] sm:$0xe] }
 0xabc   : > { %v26681_v51 = vpack.c.bf16 %v16582_v19, %v16580_v20  ;;  %v16331_v44 = vpop.f32.mrb[100].mxu1  ;;  %v19075_v20 = vld [vmem:[%s22657_s9 + $0x46c] sm:$0xf] }
 0xabd   : > { %v16519_v57 = vadd.f32 %v26532_v25, %v16331_v44  ;;  %v16333_v29 = vpop.f32.mrb[101].mxu1 }
 0xabe   : > { %v16520_v33 = vadd.f32 %v26536_v58, %v16333_v29  ;;  %v16335_v4 = vpop.f32.mrb[102].mxu1  ;;  %v19074_v29 = vld [vmem:[%s22657_s9 + $0x468] sm:$0xe] }
 0xabf   : > { %v16521_v56 = vadd.f32 %v26532_v25, %v16335_v4  ;;  %v16337_v36 = vpop.f32.mrb[103].mxu1  ;;  %v16583_v60 = vmax.f32 %v16519_v57, 0.0  ;;  %v10521_v57 = vsel %vm22828_vm3, %v10519_v31, %v10520_v40  ;;  %v19102_v42 = vrot.slane %v19074_v29, 9  ;;  %v19079_v31 = vld [vmem:[%s22657_s9 + $0x48c] sm:$0x1] }
 0xac0   : > { %v16522_v28 = vadd.f32 %v26536_v58, %v16337_v36  ;;  %v16584_v48 = vmax.f32 %v16520_v33, 0.0  ;;  %v19076_v33 = vld [vmem:[%s22657_s9 + $0x470] sm:$0x1]  ;;  %v19117_v36 = vcombine.low %v10518_v0, %v10521_v57 }
 0xac1   : > { %v16585_v59 = vmax.f32 %v16521_v56, 0.0  ;;  %19133 = vmatmul.mubr.msk.bf16.gmra.mrb[224].mxu0 %vm653_vm4, %v19115_v13  ;;  %v10524_v13 = vrot.slane %v19075_v20, 5  ;;  %v10527_v15 = vrot.slane %v19076_v33, 5 }
 0xac2   : > { %v16586_v34 = vmax.f32 %v16522_v28, 0.0  ;;  %10789 = vmatprep.mubr.bf16.mxu0 %v27418_v16 }
 0xac3   : > { %v26695_v63 = vpack.c.bf16 %v16585_v59, %v16583_v60  ;;  %v10526_v59 = vrot.slane %v10524_v13, 4 }
 0xac4   : > { %v26698_v2 = vpack.c.bf16 %v16586_v34, %v16584_v48  ;;  %v16341_v38 = vpop.f32.mrb[104].mxu1 }
 0xac5   : > { %v16523_v12 = vadd.f32 %v26532_v25, %v16341_v38  ;;  %v16343_v17 = vpop.f32.mrb[105].mxu1  ;;  %v10525_v38 = vsel %vm22828_vm3, %v19102_v42, %v10524_v13  ;;  %v19081_v13 = vld [vmem:[%s22657_s9 + $0x4a4] sm:$0xf] }
 0xac6   : > { %v16524_v49 = vadd.f32 %v26536_v58, %v16343_v17  ;;  %v16345_v39 = vpop.f32.mrb[106].mxu1 }
 0xac7   : > { %v16525_v50 = vadd.f32 %v26532_v25, %v16345_v39  ;;  %v16347_v6 = vpop.f32.mrb[107].mxu1  ;;  %v16587_v26 = vmax.f32 %v16523_v12, 0.0 }
 0xac8   : > { %v16526_v19 = vadd.f32 %v26536_v58, %v16347_v6  ;;  %v16588_v54 = vmax.f32 %v16524_v49, 0.0  ;;  %v10531_v49 = vrot.slane %v19078_v1, 5 }
 0xac9   : > { %v16589_v11 = vmax.f32 %v16525_v50, 0.0  ;;  %19134 = vmatmul.mubr.msk.bf16.gmra.mrb[228].mxu0 %vm653_vm4, %v19116_v22  ;;  %v10528_v22 = vsel %vm22828_vm3, %v10526_v59, %v10527_v15  ;;  %v10538_v59 = vrot.slane %v19081_v13, 5 }
 0xaca   : > { %v16590_v44 = vmax.f32 %v16526_v19, 0.0  ;;  %10799 = vmatprep.mubr.bf16.mxu0 %v27418_v16  ;;  %v19118_v19 = vcombine.low %v10525_v38, %v10528_v22 }
 0xacb   : > { %v26712_v18 = vpack.c.bf16 %v16589_v11, %v16587_v26  ;;  %v19103_v26 = vrot.slane %v19077_v21, 9  ;;  %v10540_v22 = vrot.slane %v10538_v59, 4 }
 0xacc   : > { %v26715_v4 = vpack.c.bf16 %v16590_v44, %v16588_v54  ;;  %v16351_v61 = vpop.f32.mrb[108].mxu1  ;;  %v10533_v54 = vrot.slane %v10531_v49, 4  ;;  %v10534_v44 = vrot.slane %v19079_v31, 5 }
 0xacd   : > { %v16527_v43 = vadd.f32 %v26532_v25, %v16351_v61  ;;  %v16353_v56 = vpop.f32.mrb[109].mxu1 }
 0xace   : > { %v16528_v28 = vadd.f32 %v26536_v58, %v16353_v56  ;;  %v16355_v60 = vpop.f32.mrb[110].mxu1  ;;  %v10532_v56 = vsel %vm22828_vm3, %v19103_v26, %v10531_v49 }
 0xacf   : > { %v16529_v48 = vadd.f32 %v26532_v25, %v16355_v60  ;;  %v16357_v34 = vpop.f32.mrb[111].mxu1  ;;  %v16591_v24 = vmax.f32 %v16527_v43, 0.0  ;;  %v19080_v60 = vld [vmem:[%s22657_s9 + $0x4a0] sm:$0xe] }
 0xad0   : > { %v16530_v32 = vadd.f32 %v26536_v58, %v16357_v34  ;;  %v16592_v12 = vmax.f32 %v16528_v28, 0.0  ;;  %v10535_v28 = vsel %vm22828_vm3, %v10533_v54, %v10534_v44  ;;  %v19104_v38 = vrot.slane %v19080_v60, 9 }
 0xad1   : > { %v16593_v62 = vmax.f32 %v16529_v48, 0.0  ;;  %19135 = vmatmul.mubr.msk.bf16.gmra.mrb[232].mxu0 %vm653_vm4, %v19117_v36  ;;  %v19082_v48 = vld [vmem:[%s22657_s9 + $0x4a8] sm:$0x1] }
 0xad2   : > { %v16594_v17 = vmax.f32 %v16530_v32, 0.0  ;;  %10809 = vmatprep.mubr.bf16.mxu0 %v27418_v16  ;;  %v10541_v21 = vrot.slane %v19082_v48, 5  ;;  %v10539_v26 = vsel %vm22828_vm3, %v19104_v38, %v10538_v59 }
 0xad3   : > { %v26729_v39 = vpack.c.bf16 %v16593_v62, %v16591_v24  ;;  %v19119_v62 = vcombine.low %v10532_v56, %v10535_v28 }
 0xad4   : > { %v26732_v40 = vpack.c.bf16 %v16594_v17, %v16592_v12  ;;  %v16361_v50 = vpop.f32.mrb[112].mxu1  ;;  %v10542_v44 = vsel %vm22828_vm3, %v10540_v22, %v10541_v21 }
 0xad5   : > { %v16531_v6 = vadd.f32 %v26532_v25, %v16361_v50  ;;  %v16363_v20 = vpop.f32.mrb[113].mxu1  ;;  %v19084_v50 = vld [vmem:[%s22657_s9 + $0x4c0] sm:$0xf] }
 0xad6   : > { %v16532_v11 = vadd.f32 %v26536_v58, %v16363_v20  ;;  %v16365_v0 = vpop.f32.mrb[114].mxu1 }
 0xad7   : > { %v16533_v57 = vadd.f32 %v26532_v25, %v16365_v0  ;;  %v16367_v29 = vpop.f32.mrb[115].mxu1  ;;  %v16595_v61 = vmax.f32 %v16531_v6, 0.0 }
 0xad8   : > { %v16534_v33 = vadd.f32 %v26536_v58, %v16367_v29  ;;  %v16596_v36 = vmax.f32 %v16532_v11, 0.0  ;;  %v21975_v11 = vld [vmem:[#allocation8 + $0x204] ss:$8 sps:$4 sm:$0xff]   ;;  %v10545_v29 = vrot.slane %v19084_v50, 5 }
 0xad9   : > { %v16597_v43 = vmax.f32 %v16533_v57, 0.0  ;;  %19136 = vmatmul.mubr.msk.bf16.gmra.mrb[236].mxu0 %vm653_vm4, %v19118_v19  ;;  %v19083_v57 = vld [vmem:[%s22657_s9 + $0x4bc] sm:$0xe]  ;;  %11878 = vmatprep.subr.bf16.mxu0 %v21975_v11  ;;  %v19086_v50 = vld [vmem:[%s22657_s9 + $0x4d8] sm:$0xe] }
 0xada   : > { %v16598_v42 = vmax.f32 %v16534_v33, 0.0  ;;  %10819 = vmatprep.mubr.bf16.mxu0 %v27418_v16  ;;  %v19085_v33 = vld [vmem:[%s22657_s9 + $0x4c4] sm:$0x1]  ;;  %v19105_v28 = vrot.slane %v19083_v57, 9  ;;  %v10547_v48 = vrot.slane %v10545_v29, 4  ;;  %v19106_v57 = vrot.slane %v19086_v50, 9 }
 0xadb   : > { %v26746_v15 = vpack.c.bf16 %v16597_v43, %v16595_v61 }
 0xadc   : > { %v26749_v34 = vpack.c.bf16 %v16598_v42, %v16596_v36  ;;  %v16371_v1 = vpop.f32.mrb[116].mxu1  ;;  %v19120_v42 = vcombine.low %v10539_v26, %v10542_v44  ;;  %v10546_v22 = vsel %vm22828_vm3, %v19105_v28, %v10545_v29  ;;  %v19090_v28 = vld [vmem:[%s22657_s9 + $0x4f8] sm:$0xf] }
 0xadd   : > { %v16535_v32 = vadd.f32 %v26532_v25, %v16371_v1  ;;  %v16373_v24 = vpop.f32.mrb[117].mxu1  ;;  %v10548_v1 = vrot.slane %v19085_v33, 5 }
 0xade   : > { %v16536_v12 = vadd.f32 %v26536_v58, %v16373_v24  ;;  %v16375_v17 = vpop.f32.mrb[118].mxu1 }
 0xadf   : > { %v16537_v49 = vadd.f32 %v26532_v25, %v16375_v17  ;;  %v16377_v31 = vpop.f32.mrb[119].mxu1  ;;  %v16599_v20 = vmax.f32 %v16535_v32, 0.0 }
 0xae0   : > { %v16538_v6 = vadd.f32 %v26536_v58, %v16377_v31  ;;  %v16600_v0 = vmax.f32 %v16536_v12, 0.0  ;;  %v10549_v31 = vsel %vm22828_vm3, %v10547_v48, %v10548_v1 }
 0xae1   : > { %v16601_v19 = vmax.f32 %v16537_v49, 0.0  ;;  %19137 = vmatmul.mubr.msk.bf16.gmra.mrb[240].mxu0 %vm653_vm4, %v19119_v62  ;;  %v19087_v62 = vld [vmem:[%s22657_s9 + $0x4dc] sm:$0xf]  ;;  %v19121_v44 = vcombine.low %v10546_v22, %v10549_v31 }
 0xae2   : > { %v16602_v54 = vmax.f32 %v16538_v6, 0.0  ;;  %10829 = vmatprep.mubr.bf16.mxu0 %v27418_v16  ;;  %v10552_v6 = vrot.slane %v19087_v62, 5  ;;  %v19091_v22 = vld [vmem:[%s22657_s9 + $0x4fc] sm:$0x1] }
 0xae3   : > { %v26763_v13 = vpack.c.bf16 %v16601_v19, %v16599_v20  ;;  %v19088_v19 = vld [vmem:[%s22657_s9 + $0x4e0] sm:$0x1] }
 0xae4   : > { %v26766_v61 = vpack.c.bf16 %v16602_v54, %v16600_v0  ;;  %v16381_v43 = vpop.f32.mrb[120].mxu1  ;;  %v10553_v1 = vsel %vm22828_vm3, %v19106_v57, %v10552_v6 }
 0xae5   : > { %v16539_v56 = vadd.f32 %v26532_v25, %v16381_v43  ;;  %v16383_v36 = vpop.f32.mrb[121].mxu1  ;;  %v10554_v43 = vrot.slane %v10552_v6, 4 }
 0xae6   : > { %v16540_v60 = vadd.f32 %v26536_v58, %v16383_v36  ;;  %v16385_v59 = vpop.f32.mrb[122].mxu1 }
 0xae7   : > { %v16541_v32 = vadd.f32 %v26532_v25, %v16385_v59  ;;  %v16387_v24 = vpop.f32.mrb[123].mxu1  ;;  %v16603_v12 = vmax.f32 %v16539_v56, 0.0  ;;  %v10555_v56 = vrot.slane %v19088_v19, 5 }
 0xae8   : > { %v16542_v38 = vadd.f32 %v26536_v58, %v16387_v24  ;;  %v16604_v21 = vmax.f32 %v16540_v60, 0.0 }
 0xae9   : > { %v16605_v17 = vmax.f32 %v16541_v32, 0.0  ;;  %19138 = vmatmul.mubr.msk.bf16.gmra.mrb[244].mxu0 %vm653_vm4, %v19120_v42  ;;  %v10556_v62 = vsel %vm22828_vm3, %v10554_v43, %v10555_v56 }
 0xaea   : > { %v16606_v49 = vmax.f32 %v16542_v38, 0.0  ;;  %10839 = vmatprep.mubr.bf16.mxu0 %v27418_v16  ;;  %v19089_v38 = vld [vmem:[%s22657_s9 + $0x4f4] sm:$0xe]  ;;  %v19122_v6 = vcombine.low %v10553_v1, %v10556_v62  ;;  %v19144_v1 = vld [vmem:[%s22657_s9 + $0x35c] sm:$0x7] }
 0xaeb   : > { %v26780_v20 = vpack.c.bf16 %v16605_v17, %v16603_v12  ;;  %v10559_v12 = vrot.slane %v19090_v28, 5  ;;  %v19107_v19 = vrot.slane %v19089_v38, 9 }
 0xaec   : > { %v26783_v26 = vpack.c.bf16 %v16606_v49, %v16604_v21  ;;  %v16391_v11 = vpop.f32.mrb[124].mxu1 }
 0xaed   : > { %v16543_v0 = vadd.f32 %v26532_v25, %v16391_v11  ;;  %v16393_v54 = vpop.f32.mrb[125].mxu1 }
 0xaee   : > { %v16544_v29 = vadd.f32 %v26536_v58, %v16393_v54  ;;  %v16395_v33 = vpop.f32.mrb[126].mxu1  ;;  %v10561_v54 = vrot.slane %v10559_v12, 4 }
 0xaef   : > { %v16545_v36 = vadd.f32 %v26532_v25, %v16395_v33  ;;  %v16397_v42 = vpop.f32.mrb[127].mxu1  ;;  %v16607_v59 = vmax.f32 %v16543_v0, 0.0  ;;  %v19143_v33 = vld [vmem:[%s22657_s9 + $0x358] sm:$0xf] }
 0xaf0   : > { %v16546_v60 = vadd.f32 %v26536_v58, %v16397_v42  ;;  %v16608_v32 = vmax.f32 %v16544_v29, 0.0  ;;  %v10560_v42 = vsel %vm22828_vm3, %v19107_v19, %v10559_v12  ;;  %v11035_v12 = vrot.slane %v19144_v1, 7 }
 0xaf1   : > { %v16609_v48 = vmax.f32 %v16545_v36, 0.0  ;;  %19139 = vmatmul.mubr.msk.bf16.gmra.mrb[248].mxu0 %vm653_vm4, %v19121_v44  ;;  %v10562_v44 = vrot.slane %v19091_v22, 5  ;;  %v19146_v22 = vld [vmem:[%s22657_s9 + $0x374] sm:$0xf] }
 0xaf2   : > { %v16610_v24 = vmax.f32 %v16546_v60, 0.0  ;;  %10849 = vmatprep.mubr.bf16.mxu0 %v27418_v16 }
 0xaf3   : > { %v26797_v17 = vpack.c.bf16 %v16609_v48, %v16607_v59  ;;  %v10563_v59 = vsel %vm22828_vm3, %v10561_v54, %v10562_v44  ;;  %v21973_v44 = vld [vmem:[#allocation8 + $0x200] ss:$8 sps:$4 sm:$0xff]  }
 0xaf4   : > { %v26800_v21 = vpack.c.bf16 %v16610_v24, %v16608_v32  ;;  %v16401_v49 = vpop.f32.mrb[128].mxu1  ;;  %v19123_v24 = vcombine.low %v10560_v42, %v10563_v59  ;;  %v19148_v42 = vld [vmem:[%s22657_s9 + $0x38c] sm:$0x8] }
 0xaf5   : > { %v16547_v31 = vadd.f32 %v26532_v25, %v16401_v49  ;;  %v16403_v50 = vpop.f32.mrb[129].mxu1 }
 0xaf6   : > { %v16548_v11 = vadd.f32 %v26536_v58, %v16403_v50  ;;  %v16405_v0 = vpop.f32.mrb[130].mxu1  ;;  %v19145_v50 = vld [vmem:[%s22657_s9 + $0x370] sm:$0x8] }
 0xaf7   : > { %v16549_v57 = vadd.f32 %v26532_v25, %v16405_v0  ;;  %v16407_v29 = vpop.f32.mrb[131].mxu1  ;;  %v16611_v56 = vmax.f32 %v16547_v31, 0.0  ;;  %v11032_v25 = vrot.slane %v19143_v33, 7  ;;  %v11039_v31 = vrot.slane %v19146_v22, 7 }
 0xaf8   : > { %v16550_v43 = vadd.f32 %v26536_v58, %v16407_v29  ;;  %v16612_v28 = vmax.f32 %v16548_v11, 0.0  ;;  %v19142_v58 = vld [vmem:[%s22657_s9 + $0x354] sm:$0x8]  ;;  %v19191_v11 = vrot.slane %v19145_v50, 11  ;;  %v21978_v29 = vld [vmem:[#allocation8 + $0x214] ss:$8 sps:$4 sm:$0xff]  }
 0xaf9   : > { %v16613_v36 = vmax.f32 %v16549_v57, 0.0  ;;  %19140 = vmatmul.mubr.msk.bf16.gmra.mrb[252].mxu0 %vm653_vm4, %v19122_v6  ;;  %v19190_v62 = vrot.slane %v19142_v58, 11  ;;  %v11034_v38 = vrot.slane %v11032_v25, 4  ;;  %v19147_v6 = vld [vmem:[%s22657_s9 + $0x378] sm:$0x7]  ;;  %v11041_v0 = vrot.slane %v11039_v31, 4 }
 0xafa   : > { %v16614_v60 = vmax.f32 %v16550_v43, 0.0  ;;  %10859 = vmatprep.mubr.bf16.mxu0 %v27418_v16  ;;  %v11042_v54 = vrot.slane %v19147_v6, 7  ;;  %v19149_v57 = vld [vmem:[%s22657_s9 + $0x390] sm:$0xf]  ;;  %v11040_v33 = vsel %vm25176_vm9, %v19191_v11, %v11039_v31  ;;  %v19151_v31 = vld [vmem:[%s22657_s9 + $0x3a8] sm:$0x8] }
 0xafb   : > { %v26813_v48 = vpack.c.bf16 %v16613_v36, %v16611_v56  ;;  %v11033_v35 = vsel %vm25176_vm9, %v19190_v62, %v11032_v25  ;;  %v11036_v49 = vsel %vm25176_vm9, %v11034_v38, %v11035_v12  ;;  %v11046_v56 = vrot.slane %v19149_v57, 7  ;;  %v21976_v36 = vld [vmem:[#allocation8 + $0x210] ss:$8 sps:$4 sm:$0xff]   ;;  %v21984_v38 = vld [vmem:[#allocation8 + $0x234] ss:$8 sps:$4 sm:$0xff]  }
 0xafc   : > { %v26817_v32 = vpack.c.bf16 %v16614_v60, %v16612_v28  ;;  %v19206_v19 = vcombine.low %v11033_v35, %v11036_v49  ;;  %v11043_v43 = vsel %vm25176_vm9, %v11041_v0, %v11042_v54  ;;  %v19150_v28 = vld [vmem:[%s22657_s9 + $0x394] sm:$0x7]  ;;  %v21981_v60 = vld [vmem:[#allocation8 + $0x224] ss:$8 sps:$4 sm:$0xff]   ;;  %v19192_v25 = vrot.slane %v19148_v42, 11 }
 0xafd   : > { %v19207_v59 = vcombine.low %v11040_v33, %v11043_v43  ;;  %v11048_v58 = vrot.slane %v11046_v56, 4  ;;  %v11049_v1 = vrot.slane %v19150_v28, 7  ;;  %v19152_v62 = vld [vmem:[%s22657_s9 + $0x3ac] sm:$0xf]  ;;  %v19153_v50 = vld [vmem:[%s22657_s9 + $0x3b0] sm:$0x7] }
 0xafe   : > { %v11047_v12 = vsel %vm25176_vm9, %v19192_v25, %v11046_v56  ;;  %v11053_v35 = vrot.slane %v19152_v62, 7  ;;  %v21982_v49 = vld [vmem:[#allocation8 + $0x230] ss:$8 sps:$4 sm:$0xff]   ;;  %v21987_v6 = vld [vmem:[#allocation8 + $0x244] ss:$8 sps:$4 sm:$0xff]   ;;  %v19193_v11 = vrot.slane %v19151_v31, 11 }
 0xaff   : > { %v11050_v22 = vsel %vm25176_vm9, %v11048_v58, %v11049_v1  ;;  %v11056_v54 = vrot.slane %v19153_v50, 7  ;;  %v19155_v57 = vld [vmem:[%s22657_s9 + $0x3c8] sm:$0xf]  ;;  %v19154_v42 = vld [vmem:[%s22657_s9 + $0x3c4] sm:$0x8] }
 0xb00   : > { %v11055_v0 = vrot.slane %v11053_v35, 4  ;;  %v11054_v33 = vsel %vm25176_vm9, %v19193_v11, %v11053_v35  ;;  %v11060_v56 = vrot.slane %v19155_v57, 7  ;;  %v19156_v28 = vld [vmem:[%s22657_s9 + $0x3cc] sm:$0x7]  ;;  %v19194_v25 = vrot.slane %v19154_v42, 11 }
 0xb01   : > { %19141 = vmatmul.mubr.msk.bf16.gmra.mrb[0].mxu0 %vm653_vm4, %v19123_v24  ;;  %v21979_v24 = vld [vmem:[#allocation8 + $0x220] ss:$8 sps:$4 sm:$0xff]   ;;  %v11063_v1 = vrot.slane %v19156_v28, 7  ;;  %v19157_v31 = vld [vmem:[%s22657_s9 + $0x3e0] sm:$0x8] }
 0xb02   : > { %11287 = vmatprep.mubr.bf16.mxu0 %v27418_v16  ;;  %v11057_v43 = vsel %vm25176_vm9, %v11055_v0, %v11056_v54  ;;  %v11062_v58 = vrot.slane %v11060_v56, 4  ;;  %v19158_v62 = vld [vmem:[%s22657_s9 + $0x3e4] sm:$0xf]  ;;  %v19159_v50 = vld [vmem:[%s22657_s9 + $0x3e8] sm:$0x7]  ;;  %v19195_v11 = vrot.slane %v19157_v31, 11 }
 0xb03   : > { %v11067_v35 = vrot.slane %v19158_v62, 7  ;;  %v11070_v54 = vrot.slane %v19159_v50, 7  ;;  %v19161_v57 = vld [vmem:[%s22657_s9 + $0x400] sm:$0xf]  ;;  %v19160_v42 = vld [vmem:[%s22657_s9 + $0x3fc] sm:$0x8] }
 0xb04   : > { %v19162_v28 = vld [vmem:[%s22657_s9 + $0x404] sm:$0x7]  ;;  %v19164_v62 = vld [vmem:[%s22657_s9 + $0x41c] sm:$0xf]  ;;  %v19163_v31 = vld [vmem:[%s22657_s9 + $0x418] sm:$0x8] }
 0xb05   : > { %v11069_v0 = vrot.slane %v11067_v35, 4  ;;  %v19165_v50 = vld [vmem:[%s22657_s9 + $0x420] sm:$0x7] }
 0xb09   : > { %19224 = vmatmul.mubr.msk.bf16.vlgmr.msra.gmra.mrb[196].mxu0 %vm653_vm4, %v19206_v19  ;;  %v19208_v19 = vcombine.low %v11047_v12, %v11050_v22  ;;  %v11061_v12 = vsel %vm25176_vm9, %v19194_v25, %v11060_v56  ;;  %v11064_v22 = vsel %vm25176_vm9, %v11062_v58, %v11063_v1  ;;  %v11074_v56 = vrot.slane %v19161_v57, 7  ;;  %v19167_v57 = vld [vmem:[%s22657_s9 + $0x438] sm:$0xf] }
 0xb0a   : > { %11297 = vmatprep.mubr.bf16.mxu0 %v27418_v16  ;;  %11879 = vmatpush1.bf16.msra.mxu0 %v21973_v44  ;;  %v21985_v44 = vld [vmem:[#allocation8 + $0x240] ss:$8 sps:$4 sm:$0xff]   ;;  %v19196_v25 = vrot.slane %v19160_v42, 11  ;;  %v11077_v1 = vrot.slane %v19162_v28, 7 }
 0xb0b   : > { %11880 = vmatprep.subr.bf16.mxu0 %v21978_v29  ;;  %v21990_v29 = vld [vmem:[#allocation8 + $0x254] ss:$8 sps:$4 sm:$0xff]   ;;  %v11076_v58 = vrot.slane %v11074_v56, 4  ;;  %v19166_v42 = vld [vmem:[%s22657_s9 + $0x434] sm:$0x8] }
 0xb0c   : > { %v19168_v28 = vld [vmem:[%s22657_s9 + $0x43c] sm:$0x7] }
 0xb0e   : > { %11881 = vmatpush1.bf16.msra.mxu0 %v21976_v36  ;;  %v21988_v36 = vld [vmem:[#allocation8 + $0x250] ss:$8 sps:$4 sm:$0xff]  }
 0xb0f   : > { %11882 = vmatprep.subr.bf16.mxu0 %v21981_v60  ;;  %v21993_v60 = vld [vmem:[#allocation8 + $0x264] ss:$8 sps:$4 sm:$0xff]  }
 0xb11   : > { %19225 = vmatmul.mubr.msk.bf16.gmra.mrb[200].mxu0 %vm653_vm4, %v19207_v59  ;;  %v19209_v59 = vcombine.low %v11054_v33, %v11057_v43  ;;  %v11068_v33 = vsel %vm25176_vm9, %v19195_v11, %v11067_v35  ;;  %v11071_v43 = vsel %vm25176_vm9, %v11069_v0, %v11070_v54  ;;  %v11081_v35 = vrot.slane %v19164_v62, 7  ;;  %v19170_v62 = vld [vmem:[%s22657_s9 + $0x454] sm:$0xf] }
 0xb12   : > { %11307 = vmatprep.mubr.bf16.mxu0 %v27418_v16  ;;  %11883 = vmatpush1.bf16.msra.mxu0 %v21979_v24  ;;  %v21991_v24 = vld [vmem:[#allocation8 + $0x260] ss:$8 sps:$4 sm:$0xff]   ;;  %v19197_v11 = vrot.slane %v19163_v31, 11  ;;  %v11084_v54 = vrot.slane %v19165_v50, 7 }
 0xb13   : > { %11884 = vmatprep.subr.bf16.mxu0 %v21984_v38  ;;  %v21996_v38 = vld [vmem:[#allocation8 + $0x274] ss:$8 sps:$4 sm:$0xff]   ;;  %v11083_v0 = vrot.slane %v11081_v35, 4 }
 0xb16   : > { %11885 = vmatpush1.bf16.msra.mxu0 %v21982_v49  ;;  %v21994_v49 = vld [vmem:[#allocation8 + $0x270] ss:$8 sps:$4 sm:$0xff]  }
 0xb17   : > { %11886 = vmatprep.subr.bf16.mxu0 %v21987_v6  ;;  %v21999_v6 = vld [vmem:[#allocation8 + $0x284] ss:$8 sps:$4 sm:$0xff]  }
 0xb19   : > { %19226 = vmatmul.mubr.msk.bf16.gmra.mrb[204].mxu0 %vm653_vm4, %v19208_v19  ;;  %v19210_v19 = vcombine.low %v11061_v12, %v11064_v22  ;;  %v11075_v12 = vsel %vm25176_vm9, %v19196_v25, %v11074_v56  ;;  %v11078_v22 = vsel %vm25176_vm9, %v11076_v58, %v11077_v1  ;;  %v11088_v56 = vrot.slane %v19167_v57, 7  ;;  %v19172_v57 = vld [vmem:[%s22657_s9 + $0x46c] sm:$0x8] }
 0xb1a   : > { %11317 = vmatprep.mubr.bf16.mxu0 %v27418_v16  ;;  %11887 = vmatpush1.bf16.msra.mxu0 %v21985_v44  ;;  %v21997_v44 = vld [vmem:[#allocation8 + $0x280] ss:$8 sps:$4 sm:$0xff]   ;;  %v19198_v25 = vrot.slane %v19166_v42, 11  ;;  %v11091_v1 = vrot.slane %v19168_v28, 7 }
 0xb1b   : > { %11888 = vmatprep.subr.bf16.mxu0 %v21990_v29  ;;  %v22002_v29 = vld [vmem:[#allocation8 + $0x294] ss:$8 sps:$4 sm:$0xff]   ;;  %v11090_v58 = vrot.slane %v11088_v56, 4  ;;  %v19176_v42 = vld [vmem:[%s22657_s9 + $0x48c] sm:$0xf] }
 0xb1e   : > { %11889 = vmatpush1.bf16.msra.mxu0 %v21988_v36  ;;  %v22000_v36 = vld [vmem:[#allocation8 + $0x290] ss:$8 sps:$4 sm:$0xff]  }
 0xb1f   : > { %11890 = vmatprep.subr.bf16.mxu0 %v21993_v60  ;;  %v22005_v60 = vld [vmem:[#allocation8 + $0x2a4] ss:$8 sps:$4 sm:$0xff]  }
 0xb21   : > { %19227 = vmatmul.mubr.msk.bf16.gmra.mrb[208].mxu0 %vm653_vm4, %v19209_v59  ;;  %v19211_v59 = vcombine.low %v11068_v33, %v11071_v43  ;;  %v11082_v33 = vsel %vm25176_vm9, %v19197_v11, %v11081_v35  ;;  %v11085_v43 = vsel %vm25176_vm9, %v11083_v0, %v11084_v54  ;;  %v19169_v35 = vld [vmem:[%s22657_s9 + $0x450] sm:$0x8] }
 0xb22   : > { %11327 = vmatprep.mubr.bf16.mxu0 %v27418_v16  ;;  %11891 = vmatpush1.bf16.msra.mxu0 %v21991_v24  ;;  %v22003_v24 = vld [vmem:[#allocation8 + $0x2a0] ss:$8 sps:$4 sm:$0xff]   ;;  %v19199_v50 = vrot.slane %v19169_v35, 11  ;;  %v19173_v11 = vld [vmem:[%s22657_s9 + $0x470] sm:$0xf] }
 0xb23   : > { %11892 = vmatprep.subr.bf16.mxu0 %v21996_v38  ;;  %v22008_v38 = vld [vmem:[#allocation8 + $0x2b4] ss:$8 sps:$4 sm:$0xff]  }
 0xb26   : > { %11893 = vmatpush1.bf16.msra.mxu0 %v21994_v49  ;;  %v22006_v49 = vld [vmem:[#allocation8 + $0x2b0] ss:$8 sps:$4 sm:$0xff]  }
 0xb27   : > { %11894 = vmatprep.subr.bf16.mxu0 %v21999_v6  ;;  %v22011_v6 = vld [vmem:[#allocation8 + $0x2c4] ss:$8 sps:$4 sm:$0xff]  }
 0xb29   : > { %19228 = vmatmul.mubr.msk.bf16.gmra.mrb[212].mxu0 %vm653_vm4, %v19210_v19  ;;  %v19212_v19 = vcombine.low %v11075_v12, %v11078_v22  ;;  %v11092_v12 = vsel %vm25176_vm9, %v11090_v58, %v11091_v1  ;;  %v11095_v22 = vrot.slane %v19170_v62, 7  ;;  %v19177_v58 = vld [vmem:[%s22657_s9 + $0x490] sm:$0x7] }
 0xb2a   : > { %11337 = vmatprep.mubr.bf16.mxu0 %v27418_v16  ;;  %11895 = vmatpush1.bf16.msra.mxu0 %v21997_v44  ;;  %v22009_v44 = vld [vmem:[#allocation8 + $0x2c0] ss:$8 sps:$4 sm:$0xff]  }
 0xb2b   : > { %11896 = vmatprep.subr.bf16.mxu0 %v22002_v29  ;;  %v22014_v29 = vld [vmem:[#allocation8 + $0x2d4] ss:$8 sps:$4 sm:$0xff]   ;;  %v11096_v0 = vsel %vm25176_vm9, %v19199_v50, %v11095_v22  ;;  %v19180_v50 = vld [vmem:[%s22657_s9 + $0x4ac] sm:$0x7] }
 0xb2e   : > { %11897 = vmatpush1.bf16.msra.mxu0 %v22000_v36  ;;  %v22012_v36 = vld [vmem:[#allocation8 + $0x2d0] ss:$8 sps:$4 sm:$0xff]  }
 0xb2f   : > { %11898 = vmatprep.subr.bf16.mxu0 %v22005_v60  ;;  %v22017_v60 = vld [vmem:[#allocation8 + $0x2e4] ss:$8 sps:$4 sm:$0xff]  }
 0xb31   : > { %19229 = vmatmul.mubr.msk.bf16.gmra.mrb[216].mxu0 %vm653_vm4, %v19211_v59  ;;  %v19213_v59 = vcombine.low %v11082_v33, %v11085_v43  ;;  %v19200_v43 = vrot.slane %v19172_v57, 11 }
 0xb32   : > { %11347 = vmatprep.mubr.bf16.mxu0 %v27418_v16  ;;  %11899 = vmatpush1.bf16.msra.mxu0 %v22003_v24  ;;  %v22015_v24 = vld [vmem:[#allocation8 + $0x2e0] ss:$8 sps:$4 sm:$0xff]  }
 0xb33   : > { %11900 = vmatprep.subr.bf16.mxu0 %v22008_v38  ;;  %v11089_v38 = vsel %vm25176_vm9, %v19198_v25, %v11088_v56  ;;  %v19175_v25 = vld [vmem:[%s22657_s9 + $0x488] sm:$0x8] }
 0xb34   : > { %v19214_v31 = vcombine.low %v11089_v38, %v11092_v12  ;;  %v11112_v38 = vrot.slane %v19177_v58, 7  ;;  %v19179_v12 = vld [vmem:[%s22657_s9 + $0x4a8] sm:$0xf] }
 0xb36   : > { %11901 = vmatpush1.bf16.msra.mxu0 %v22006_v49  ;;  %v19171_v49 = vld [vmem:[%s22657_s9 + $0x458] sm:$0x7] }
 0xb37   : > { %11902 = vmatprep.subr.bf16.mxu0 %v22011_v6  ;;  %v11097_v6 = vrot.slane %v11095_v22, 4 }
 0xb39   : > { %19230 = vmatmul.mubr.msk.bf16.gmra.mrb[220].mxu0 %vm653_vm4, %v19212_v19  ;;  %v11098_v19 = vrot.slane %v19171_v49, 7  ;;  %v11116_v49 = vrot.slane %v19179_v12, 7  ;;  %v22023_v12 = vld [vmem:[#allocation8 + $0x304] ss:$8 sps:$4 sm:$0xff]  }
 0xb3a   : > { %11357 = vmatprep.mubr.bf16.mxu0 %v27418_v16  ;;  %11903 = vmatpush1.bf16.msra.mxu0 %v22009_v44  ;;  %v11102_v44 = vrot.slane %v19173_v11, 7 }
 0xb3b   : > { %11904 = vmatprep.subr.bf16.mxu0 %v22014_v29  ;;  %v11099_v54 = vsel %vm25176_vm9, %v11097_v6, %v11098_v19  ;;  %v19174_v29 = vld [vmem:[%s22657_s9 + $0x474] sm:$0x7]  ;;  %v11118_v11 = vrot.slane %v11116_v49, 4 }
 0xb3c   : > { %v19215_v33 = vcombine.low %v11096_v0, %v11099_v54  ;;  %v11104_v56 = vrot.slane %v11102_v44, 4  ;;  %v11103_v28 = vsel %vm25176_vm9, %v19200_v43, %v11102_v44  ;;  %v11119_v0 = vrot.slane %v19180_v50, 7  ;;  %v19182_v54 = vld [vmem:[%s22657_s9 + $0x4c4] sm:$0xf]  ;;  %v22020_v44 = vld [vmem:[#allocation8 + $0x2f4] ss:$8 sps:$4 sm:$0xff]  }
 0xb3d   : > { %v22018_v43 = vld [vmem:[#allocation8 + $0x2f0] ss:$8 sps:$4 sm:$0xff]  }
 0xb3e   : > { %11905 = vmatpush1.bf16.msra.mxu0 %v22012_v36  ;;  %v11105_v36 = vrot.slane %v19174_v29, 7  ;;  %v11120_v29 = vsel %vm25176_vm9, %v11118_v11, %v11119_v0  ;;  %v19188_v50 = vld [vmem:[%s22657_s9 + $0x4fc] sm:$0xf]  ;;  %v19187_v0 = vld [vmem:[%s22657_s9 + $0x4f8] sm:$0x8] }
 0xb3f   : > { %11906 = vmatprep.subr.bf16.mxu0 %v22017_v60  ;;  %v11137_v11 = vrot.slane %v19188_v50, 7 }
 0xb40   : > { %v11106_v60 = vsel %vm25176_vm9, %v11104_v56, %v11105_v36  ;;  %v19181_v56 = vld [vmem:[%s22657_s9 + $0x4c0] sm:$0x8]  ;;  %v19183_v36 = vld [vmem:[%s22657_s9 + $0x4c8] sm:$0x7] }
 0xb41   : > { %19231 = vmatmul.mubr.msk.bf16.gmra.mrb[224].mxu0 %vm653_vm4, %v19213_v59  ;;  %v11109_v59 = vrot.slane %v19176_v42, 7  ;;  %v19216_v1 = vcombine.low %v11103_v28, %v11106_v60  ;;  %v19203_v28 = vrot.slane %v19181_v56, 11 }
 0xb42   : > { %11367 = vmatprep.mubr.bf16.mxu0 %v27418_v16  ;;  %11907 = vmatpush1.bf16.msra.mxu0 %v22015_v24  ;;  %v19201_v24 = vrot.slane %v19175_v25, 11  ;;  %v19185_v25 = vld [vmem:[%s22657_s9 + $0x4e0] sm:$0xf] }
 0xb43   : > { %v11111_v62 = vrot.slane %v11109_v59, 4  ;;  %11908 = vmatprep.subr.bf16.mxu0 %v22020_v44 }
 0xb44   : > { %v11110_v22 = vsel %vm25176_vm9, %v19201_v24, %v11109_v59  ;;  %v11126_v59 = vrot.slane %v19183_v36, 7  ;;  %v11130_v24 = vrot.slane %v19185_v25, 7 }
 0xb45   : > { %v11113_v35 = vsel %vm25176_vm9, %v11111_v62, %v11112_v38  ;;  %v19184_v62 = vld [vmem:[%s22657_s9 + $0x4dc] sm:$0x8]  ;;  %v19186_v38 = vld [vmem:[%s22657_s9 + $0x4e4] sm:$0x7] }
 0xb46   : > { %v19217_v6 = vcombine.low %v11110_v22, %v11113_v35  ;;  %11909 = vmatpush1.bf16.msra.mxu0 %v22018_v43  ;;  %v19204_v35 = vrot.slane %v19184_v62, 11 }
 0xb47   : > { %16840 = vmatprep.subr.bf16.mxu0 %v22023_v12 }
 0xb49   : > { %19232 = vmatmul.mubr.msk.bf16.gmra.mrb[228].mxu0 %vm653_vm4, %v19214_v31  ;;  %v19178_v31 = vld [vmem:[%s22657_s9 + $0x4a4] sm:$0x8] }
 0xb4a   : > { %11377 = vmatprep.mubr.bf16.mxu0 %v27418_v16  ;;  %v19202_v19 = vrot.slane %v19178_v31, 11  ;;  %v11133_v31 = vrot.slane %v19186_v38, 7 }
 0xb4c   : > { %v11117_v57 = vsel %vm25176_vm9, %v19202_v19, %v11116_v49  ;;  %v11132_v49 = vrot.slane %v11130_v24, 4 }
 0xb4d   : > { %v19218_v42 = vcombine.low %v11117_v57, %v11120_v29  ;;  %v19205_v57 = vrot.slane %v19187_v0, 11  ;;  %v11139_v29 = vrot.slane %v11137_v11, 4  ;;  %v22026_v0 = vld [vmem:[#allocation8 + $0x314] ss:$8 sps:$4 sm:$0xff]  }
 0xb4e   : > { %v11134_v19 = vsel %vm25176_vm9, %v11132_v49, %v11133_v31 }
 0xb4f   : > { %v11138_v43 = vsel %vm25176_vm9, %v19205_v57, %v11137_v11 }
 0xb51   : > { %19233 = vmatmul.mubr.msk.bf16.gmra.mrb[232].mxu0 %vm653_vm4, %v19215_v33  ;;  %v11123_v33 = vrot.slane %v19182_v54, 7  ;;  %v19189_v54 = vld [vmem:[%s22657_s9 + $0x500] sm:$0x7] }
 0xb52   : > { %11387 = vmatprep.mubr.bf16.mxu0 %v27418_v16 }
 0xb53   : > { %v11125_v60 = vrot.slane %v11123_v33, 4  ;;  %v11124_v58 = vsel %vm25176_vm9, %v19203_v28, %v11123_v33  ;;  %v11140_v33 = vrot.slane %v19189_v54, 7 }
 0xb55   : > { %v11141_v56 = vsel %vm25176_vm9, %v11139_v29, %v11140_v33 }
 0xb56   : > { %v19221_v36 = vcombine.low %v11138_v43, %v11141_v56  ;;  %v22024_v43 = vld [vmem:[#allocation8 + $0x310] ss:$8 sps:$4 sm:$0xff]  }
 0xb59   : > { %19234 = vmatmul.mubr.msk.bf16.gmra.mrb[236].mxu0 %vm653_vm4, %v19216_v1  ;;  %v11127_v1 = vsel %vm25176_vm9, %v11125_v60, %v11126_v59 }
 0xb5a   : > { %11397 = vmatprep.mubr.bf16.mxu0 %v27418_v16  ;;  %v19219_v22 = vcombine.low %v11124_v58, %v11127_v1 }
 0xb61   : > { %19235 = vmatmul.mubr.msk.bf16.gmra.mrb[240].mxu0 %vm653_vm4, %v19217_v6  ;;  %v11131_v6 = vsel %vm25176_vm9, %v19204_v35, %v11130_v24 }
 0xb62   : > { %11407 = vmatprep.mubr.bf16.mxu0 %v27418_v16  ;;  %v19220_v44 = vcombine.low %v11131_v6, %v11134_v19  ;;  %v22021_v6 = vld [vmem:[#allocation8 + $0x300] ss:$8 sps:$4 sm:$0xff]  }
 0xb69   : > { %19236 = vmatmul.mubr.msk.bf16.gmra.mrb[244].mxu0 %vm653_vm4, %v19218_v42  ;;  %v11513_v42 = vld [vmem:[#allocation10 + $0x2] ss:$4 sm:$0x3] }
 0xb6a   : > { %11417 = vmatprep.mubr.bf16.mxu0 %v27418_v16  ;;  %v26962_v28 = vrot.slane %v11513_v42, %v27575_v41  ;;  %v26965_v60 = vrot.slane %v11513_v42, %v27576_v46  ;;  %v22029_v42 = vld [vmem:[#allocation8 + $0x324] ss:$8 sps:$4 sm:$0xff]  }
 0xb71   : > { %19237 = vmatmul.mubr.msk.bf16.gmra.mrb[248].mxu0 %vm653_vm4, %v19219_v22 }
 0xb72   : > { %11427 = vmatprep.mubr.bf16.mxu0 %v27418_v16 }
 0xb79   : > { %19238 = vmatmul.mubr.msk.bf16.gmra.mrb[252].mxu0 %vm653_vm4, %v19220_v44 }
 0xb7a   : > { %11437 = vmatprep.mubr.bf16.mxu0 %v27418_v16 }
 0xb81   : > { %19239 = vmatmul.mubr.msk.bf16.gmra.mrb[0].mxu0 %vm653_vm4, %v19221_v36 }
 0xbdc   : > { %v11289_v59 = vpop.f32.mrb[196].mxu0 }
 0xbdd   : > { %v11525_v25 = vadd.f32 %v26962_v28, %v11289_v59  ;;  %v11291_v16 = vpop.f32.mrb[197].mxu0 }
 0xbde   : > { %v11526_v58 = vadd.f32 %v26965_v60, %v11291_v16  ;;  %v11293_v1 = vpop.f32.mrb[198].mxu0 }
 0xbdf   : > { %v11527_v52 = vadd.f32 %v26962_v28, %v11293_v1  ;;  %v11295_v24 = vpop.f32.mrb[199].mxu0  ;;  %v11589_v38 = vmax.f32 %v11525_v25, 0.0 }
 0xbe0   : > { %v11528_v62 = vadd.f32 %v26965_v60, %v11295_v24  ;;  %v11590_v22 = vmax.f32 %v11526_v58, 0.0 }
 0xbe1   : > { %v11591_v12 = vmax.f32 %v11527_v52, 0.0  ;;  %v22027_v52 = vld [vmem:[#allocation8 + $0x320] ss:$8 sps:$4 sm:$0xff]  }
 0xbe2   : > { %v11592_v35 = vmax.f32 %v11528_v62, 0.0 }
 0xbe3   : > { %v11653_v49 = vpack.c.bf16 %v11591_v12, %v11589_v38  ;;  %v22032_v38 = vld [vmem:[#allocation8 + $0x334] ss:$8 sps:$4 sm:$0xff]  }
 0xbe4   : > { %v11654_v31 = vpack.c.bf16 %v11592_v35, %v11590_v22  ;;  %v11299_v50 = vpop.f32.mrb[200].mxu0 }
 0xbe5   : > { %v11529_v19 = vadd.f32 %v26962_v28, %v11299_v50  ;;  %v11301_v11 = vpop.f32.mrb[201].mxu0  ;;  %v22030_v50 = vld [vmem:[#allocation8 + $0x330] ss:$8 sps:$4 sm:$0xff]  }
 0xbe6   : > { %v11530_v54 = vadd.f32 %v26965_v60, %v11301_v11  ;;  %v11303_v44 = vpop.f32.mrb[202].mxu0  ;;  %11910 = vmatprep.mubr.bf16.mxu0 %v11654_v31  ;;  %v22035_v11 = vld [vmem:[#allocation8 + $0x344] ss:$8 sps:$4 sm:$0xff]  }
 0xbe7   : > { %v11531_v57 = vadd.f32 %v26962_v28, %v11303_v44  ;;  %v11305_v29 = vpop.f32.mrb[203].mxu0  ;;  %11911 = vmatmul.mubr.bf16.vlgmr.msra.gmra.mrb[132].mxu0 %v11653_v49  ;;  %v11593_v56 = vmax.f32 %v11529_v19, 0.0 }
 0xbe8   : > { %v11532_v33 = vadd.f32 %v26965_v60, %v11305_v29  ;;  %16841 = vmatpush1.bf16.msra.mxu0 %v22021_v6  ;;  %v11594_v59 = vmax.f32 %v11530_v54, 0.0 }
 0xbe9   : > { %v11595_v36 = vmax.f32 %v11531_v57, 0.0  ;;  %16842 = vmatprep.subr.bf16.mxu0 %v22026_v0 }
 0xbea   : > { %v11596_v25 = vmax.f32 %v11532_v33, 0.0  ;;  %v22033_v33 = vld [vmem:[#allocation8 + $0x340] ss:$8 sps:$4 sm:$0xff]  }
 0xbeb   : > { %v11655_v16 = vpack.c.bf16 %v11595_v36, %v11593_v56  ;;  %v22038_v36 = vld [vmem:[#allocation8 + $0x354] ss:$8 sps:$4 sm:$0xff]  }
 0xbec   : > { %v11656_v58 = vpack.c.bf16 %v11596_v25, %v11594_v59  ;;  %v11309_v1 = vpop.f32.mrb[204].mxu0  ;;  %16843 = vmatpush1.bf16.msra.mxu0 %v22024_v43 }
 0xbed   : > { %v11533_v24 = vadd.f32 %v26962_v28, %v11309_v1  ;;  %v11311_v62 = vpop.f32.mrb[205].mxu0  ;;  %16844 = vmatprep.subr.bf16.mxu0 %v22029_v42  ;;  %v22036_v1 = vld [vmem:[#allocation8 + $0x350] ss:$8 sps:$4 sm:$0xff]  }
 0xbee   : > { %v11534_v12 = vadd.f32 %v26965_v60, %v11311_v62  ;;  %v11313_v22 = vpop.f32.mrb[206].mxu0  ;;  %11920 = vmatprep.mubr.bf16.mxu0 %v11656_v58  ;;  %v22041_v62 = vld [vmem:[#allocation8 + $0x364] ss:$8 sps:$4 sm:$0xff]  }
 0xbef   : > { %v11535_v35 = vadd.f32 %v26962_v28, %v11313_v22  ;;  %v11315_v49 = vpop.f32.mrb[207].mxu0  ;;  %11921 = vmatmul.mubr.bf16.gmra.mrb[136].mxu0 %v11655_v16  ;;  %v11597_v6 = vmax.f32 %v11533_v24, 0.0 }
 0xbf0   : > { %v11536_v31 = vadd.f32 %v26965_v60, %v11315_v49  ;;  %16845 = vmatpush1.bf16.msra.mxu0 %v22027_v52  ;;  %v11598_v0 = vmax.f32 %v11534_v12, 0.0 }
 0xbf1   : > { %v11599_v19 = vmax.f32 %v11535_v35, 0.0  ;;  %16846 = vmatprep.subr.bf16.mxu0 %v22032_v38 }
 0xbf2   : > { %v11600_v54 = vmax.f32 %v11536_v31, 0.0  ;;  %v22039_v31 = vld [vmem:[#allocation8 + $0x360] ss:$8 sps:$4 sm:$0xff]  }
 0xbf3   : > { %v11657_v44 = vpack.c.bf16 %v11599_v19, %v11597_v6  ;;  %v22044_v19 = vld [vmem:[#allocation8 + $0x374] ss:$8 sps:$4 sm:$0xff]  }
 0xbf4   : > { %v11658_v57 = vpack.c.bf16 %v11600_v54, %v11598_v0  ;;  %v11319_v29 = vpop.f32.mrb[208].mxu0  ;;  %16847 = vmatpush1.bf16.msra.mxu0 %v22030_v50 }
 0xbf5   : > { %v11537_v43 = vadd.f32 %v26962_v28, %v11319_v29  ;;  %v11321_v56 = vpop.f32.mrb[209].mxu0  ;;  %16848 = vmatprep.subr.bf16.mxu0 %v22035_v11  ;;  %v22042_v29 = vld [vmem:[#allocation8 + $0x370] ss:$8 sps:$4 sm:$0xff]  }
 0xbf6   : > { %v11538_v42 = vadd.f32 %v26965_v60, %v11321_v56  ;;  %v11323_v59 = vpop.f32.mrb[210].mxu0  ;;  %11930 = vmatprep.mubr.bf16.mxu0 %v11658_v57  ;;  %v22047_v56 = vld [vmem:[#allocation8 + $0x384] ss:$8 sps:$4 sm:$0xff]  }
 0xbf7   : > { %v11539_v25 = vadd.f32 %v26962_v28, %v11323_v59  ;;  %v11325_v16 = vpop.f32.mrb[211].mxu0  ;;  %11931 = vmatmul.mubr.bf16.gmra.mrb[140].mxu0 %v11657_v44  ;;  %v11601_v52 = vmax.f32 %v11537_v43, 0.0 }
 0xbf8   : > { %v11540_v58 = vadd.f32 %v26965_v60, %v11325_v16  ;;  %16849 = vmatpush1.bf16.msra.mxu0 %v22033_v33  ;;  %v11602_v38 = vmax.f32 %v11538_v42, 0.0 }
 0xbf9   : > { %v11603_v24 = vmax.f32 %v11539_v25, 0.0  ;;  %16850 = vmatprep.subr.bf16.mxu0 %v22038_v36 }
 0xbfa   : > { %v11604_v12 = vmax.f32 %v11540_v58, 0.0  ;;  %v22045_v58 = vld [vmem:[#allocation8 + $0x380] ss:$8 sps:$4 sm:$0xff]  }
 0xbfb   : > { %v11659_v22 = vpack.c.bf16 %v11603_v24, %v11601_v52  ;;  %v22050_v24 = vld [vmem:[#allocation8 + $0x394] ss:$8 sps:$4 sm:$0xff]  }
 0xbfc   : > { %v11660_v35 = vpack.c.bf16 %v11604_v12, %v11602_v38  ;;  %v11329_v49 = vpop.f32.mrb[212].mxu0  ;;  %16851 = vmatpush1.bf16.msra.mxu0 %v22036_v1 }
 0xbfd   : > { %v11541_v50 = vadd.f32 %v26962_v28, %v11329_v49  ;;  %v11331_v6 = vpop.f32.mrb[213].mxu0  ;;  %16852 = vmatprep.subr.bf16.mxu0 %v22041_v62  ;;  %v22048_v49 = vld [vmem:[#allocation8 + $0x390] ss:$8 sps:$4 sm:$0xff]  }
 0xbfe   : > { %v11542_v11 = vadd.f32 %v26965_v60, %v11331_v6  ;;  %v11333_v0 = vpop.f32.mrb[214].mxu0  ;;  %11940 = vmatprep.mubr.bf16.mxu0 %v11660_v35  ;;  %v22053_v6 = vld [vmem:[#allocation8 + $0x3a4] ss:$8 sps:$4 sm:$0xff]  }
 0xbff   : > { %v11543_v54 = vadd.f32 %v26962_v28, %v11333_v0  ;;  %v11335_v44 = vpop.f32.mrb[215].mxu0  ;;  %11941 = vmatmul.mubr.bf16.gmra.mrb[144].mxu0 %v11659_v22  ;;  %v11605_v33 = vmax.f32 %v11541_v50, 0.0 }
 0xc00   : > { %v11544_v57 = vadd.f32 %v26965_v60, %v11335_v44  ;;  %16853 = vmatpush1.bf16.msra.mxu0 %v22039_v31  ;;  %v11606_v36 = vmax.f32 %v11542_v11, 0.0 }
 0xc01   : > { %v11607_v43 = vmax.f32 %v11543_v54, 0.0  ;;  %16854 = vmatprep.subr.bf16.mxu0 %v22044_v19 }
 0xc02   : > { %v11608_v42 = vmax.f32 %v11544_v57, 0.0  ;;  %v22051_v57 = vld [vmem:[#allocation8 + $0x3a0] ss:$8 sps:$4 sm:$0xff]  }
 0xc03   : > { %v11661_v59 = vpack.c.bf16 %v11607_v43, %v11605_v33  ;;  %v22056_v43 = vld [vmem:[#allocation8 + $0x3b4] ss:$8 sps:$4 sm:$0xff]  }
 0xc04   : > { %v11662_v25 = vpack.c.bf16 %v11608_v42, %v11606_v36  ;;  %v11339_v16 = vpop.f32.mrb[216].mxu0  ;;  %16855 = vmatpush1.bf16.msra.mxu0 %v22042_v29 }
 0xc05   : > { %v11545_v1 = vadd.f32 %v26962_v28, %v11339_v16  ;;  %v11341_v52 = vpop.f32.mrb[217].mxu0  ;;  %16856 = vmatprep.subr.bf16.mxu0 %v22047_v56  ;;  %v22054_v16 = vld [vmem:[#allocation8 + $0x3b0] ss:$8 sps:$4 sm:$0xff]  }
 0xc06   : > { %v11546_v62 = vadd.f32 %v26965_v60, %v11341_v52  ;;  %v11343_v38 = vpop.f32.mrb[218].mxu0  ;;  %11950 = vmatprep.mubr.bf16.mxu0 %v11662_v25  ;;  %v22059_v52 = vld [vmem:[#allocation8 + $0x3c4] ss:$8 sps:$4 sm:$0xff]  }
 0xc07   : > { %v11547_v12 = vadd.f32 %v26962_v28, %v11343_v38  ;;  %v11345_v22 = vpop.f32.mrb[219].mxu0  ;;  %11951 = vmatmul.mubr.bf16.gmra.mrb[148].mxu0 %v11661_v59  ;;  %v11609_v31 = vmax.f32 %v11545_v1, 0.0 }
 0xc08   : > { %v11548_v35 = vadd.f32 %v26965_v60, %v11345_v22  ;;  %16857 = vmatpush1.bf16.msra.mxu0 %v22045_v58  ;;  %v11610_v19 = vmax.f32 %v11546_v62, 0.0 }
 0xc09   : > { %v11611_v50 = vmax.f32 %v11547_v12, 0.0  ;;  %16858 = vmatprep.subr.bf16.mxu0 %v22050_v24 }
 0xc0a   : > { %v11612_v11 = vmax.f32 %v11548_v35, 0.0  ;;  %v22057_v35 = vld [vmem:[#allocation8 + $0x3c0] ss:$8 sps:$4 sm:$0xff]  }
 0xc0b   : > { %v11663_v0 = vpack.c.bf16 %v11611_v50, %v11609_v31  ;;  %v22062_v50 = vld [vmem:[#allocation8 + $0x3d4] ss:$8 sps:$4 sm:$0xff]  }
 0xc0c   : > { %v11664_v54 = vpack.c.bf16 %v11612_v11, %v11610_v19  ;;  %v11349_v44 = vpop.f32.mrb[220].mxu0  ;;  %16859 = vmatpush1.bf16.msra.mxu0 %v22048_v49 }
 0xc0d   : > { %v11549_v29 = vadd.f32 %v26962_v28, %v11349_v44  ;;  %v11351_v33 = vpop.f32.mrb[221].mxu0  ;;  %16860 = vmatprep.subr.bf16.mxu0 %v22053_v6  ;;  %v22060_v44 = vld [vmem:[#allocation8 + $0x3d0] ss:$8 sps:$4 sm:$0xff]  }
 0xc0e   : > { %v11550_v56 = vadd.f32 %v26965_v60, %v11351_v33  ;;  %v11353_v36 = vpop.f32.mrb[222].mxu0  ;;  %11960 = vmatprep.mubr.bf16.mxu0 %v11664_v54  ;;  %v22065_v33 = vld [vmem:[#allocation8 + $0x3e4] ss:$8 sps:$4 sm:$0xff]  }
 0xc0f   : > { %v11551_v42 = vadd.f32 %v26962_v28, %v11353_v36  ;;  %v11355_v59 = vpop.f32.mrb[223].mxu0  ;;  %11961 = vmatmul.mubr.bf16.gmra.mrb[152].mxu0 %v11663_v0  ;;  %v11613_v58 = vmax.f32 %v11549_v29, 0.0 }
 0xc10   : > { %v11552_v25 = vadd.f32 %v26965_v60, %v11355_v59  ;;  %16861 = vmatpush1.bf16.msra.mxu0 %v22051_v57  ;;  %v11614_v24 = vmax.f32 %v11550_v56, 0.0 }
 0xc11   : > { %v11615_v1 = vmax.f32 %v11551_v42, 0.0  ;;  %16862 = vmatprep.subr.bf16.mxu0 %v22056_v43 }
 0xc12   : > { %v11616_v62 = vmax.f32 %v11552_v25, 0.0  ;;  %v22063_v25 = vld [vmem:[#allocation8 + $0x3e0] ss:$8 sps:$4 sm:$0xff]  }
 0xc13   : > { %v11665_v38 = vpack.c.bf16 %v11615_v1, %v11613_v58  ;;  %v22068_v1 = vld [vmem:[#allocation8 + $0x3f4] ss:$8 sps:$4 sm:$0xff]  }
 0xc14   : > { %v11666_v12 = vpack.c.bf16 %v11616_v62, %v11614_v24  ;;  %v11359_v22 = vpop.f32.mrb[224].mxu0  ;;  %16863 = vmatpush1.bf16.msra.mxu0 %v22054_v16 }
 0xc15   : > { %v11553_v49 = vadd.f32 %v26962_v28, %v11359_v22  ;;  %v11361_v31 = vpop.f32.mrb[225].mxu0  ;;  %16864 = vmatprep.subr.bf16.mxu0 %v22059_v52  ;;  %v22066_v22 = vld [vmem:[#allocation8 + $0x3f0] ss:$8 sps:$4 sm:$0xff]  }
 0xc16   : > { %v11554_v6 = vadd.f32 %v26965_v60, %v11361_v31  ;;  %v11363_v19 = vpop.f32.mrb[226].mxu0  ;;  %11970 = vmatprep.mubr.bf16.mxu0 %v11666_v12 }
 0xc17   : > { %v11555_v11 = vadd.f32 %v26962_v28, %v11363_v19  ;;  %v11365_v0 = vpop.f32.mrb[227].mxu0  ;;  %11971 = vmatmul.mubr.bf16.gmra.mrb[156].mxu0 %v11665_v38  ;;  %v11617_v57 = vmax.f32 %v11553_v49, 0.0 }
 0xc18   : > { %v11556_v54 = vadd.f32 %v26965_v60, %v11365_v0  ;;  %16865 = vmatpush1.bf16.msra.mxu0 %v22057_v35  ;;  %v11618_v43 = vmax.f32 %v11554_v6, 0.0 }
 0xc19   : > { %v11619_v29 = vmax.f32 %v11555_v11, 0.0  ;;  %16866 = vmatprep.subr.bf16.mxu0 %v22062_v50 }
 0xc1a   : > { %v11620_v56 = vmax.f32 %v11556_v54, 0.0 }
 0xc1b   : > { %v11667_v36 = vpack.c.bf16 %v11619_v29, %v11617_v57 }
 0xc1c   : > { %v11668_v42 = vpack.c.bf16 %v11620_v56, %v11618_v43  ;;  %v11369_v59 = vpop.f32.mrb[228].mxu0  ;;  %16867 = vmatpush1.bf16.msra.mxu0 %v22060_v44 }
 0xc1d   : > { %v11557_v16 = vadd.f32 %v26962_v28, %v11369_v59  ;;  %v11371_v58 = vpop.f32.mrb[229].mxu0  ;;  %16868 = vmatprep.subr.bf16.mxu0 %v22065_v33 }
 0xc1e   : > { %v11558_v52 = vadd.f32 %v26965_v60, %v11371_v58  ;;  %v11373_v24 = vpop.f32.mrb[230].mxu0  ;;  %11980 = vmatprep.mubr.bf16.mxu0 %v11668_v42 }
 0xc1f   : > { %v11559_v62 = vadd.f32 %v26962_v28, %v11373_v24  ;;  %v11375_v38 = vpop.f32.mrb[231].mxu0  ;;  %11981 = vmatmul.mubr.bf16.gmra.mrb[160].mxu0 %v11667_v36  ;;  %v11621_v35 = vmax.f32 %v11557_v16, 0.0 }
 0xc20   : > { %v11560_v12 = vadd.f32 %v26965_v60, %v11375_v38  ;;  %16869 = vmatpush1.bf16.msra.mxu0 %v22063_v25  ;;  %v11622_v31 = vmax.f32 %v11558_v52, 0.0 }
 0xc21   : > { %v11623_v49 = vmax.f32 %v11559_v62, 0.0  ;;  %16870 = vmatprep.subr.bf16.mxu0 %v22068_v1 }
 0xc22   : > { %v11624_v50 = vmax.f32 %v11560_v12, 0.0 }
 0xc23   : > { %v11669_v6 = vpack.c.bf16 %v11623_v49, %v11621_v35 }
 0xc24   : > { %v11670_v19 = vpack.c.bf16 %v11624_v50, %v11622_v31  ;;  %v11379_v11 = vpop.f32.mrb[232].mxu0  ;;  %16871 = vmatpush1.bf16.msra.mxu0 %v22066_v22 }
 0xc25   : > { %v11561_v0 = vadd.f32 %v26962_v28, %v11379_v11  ;;  %v11381_v54 = vpop.f32.mrb[233].mxu0 }
 0xc26   : > { %v11562_v44 = vadd.f32 %v26965_v60, %v11381_v54  ;;  %v11383_v57 = vpop.f32.mrb[234].mxu0  ;;  %11990 = vmatprep.mubr.bf16.mxu0 %v11670_v19 }
 0xc27   : > { %v11563_v29 = vadd.f32 %v26962_v28, %v11383_v57  ;;  %v11385_v33 = vpop.f32.mrb[235].mxu0  ;;  %11991 = vmatmul.mubr.bf16.gmra.mrb[164].mxu0 %v11669_v6  ;;  %v11625_v56 = vmax.f32 %v11561_v0, 0.0 }
 0xc28   : > { %v11564_v43 = vadd.f32 %v26965_v60, %v11385_v33  ;;  %v11626_v42 = vmax.f32 %v11562_v44, 0.0 }
 0xc29   : > { %v11627_v36 = vmax.f32 %v11563_v29, 0.0 }
 0xc2a   : > { %v11628_v59 = vmax.f32 %v11564_v43, 0.0 }
 0xc2b   : > { %v11671_v25 = vpack.c.bf16 %v11627_v36, %v11625_v56 }
 0xc2c   : > { %v11672_v16 = vpack.c.bf16 %v11628_v59, %v11626_v42  ;;  %v11389_v58 = vpop.f32.mrb[236].mxu0 }
 0xc2d   : > { %v11565_v1 = vadd.f32 %v26962_v28, %v11389_v58  ;;  %v11391_v52 = vpop.f32.mrb[237].mxu0 }
 0xc2e   : > { %v11566_v24 = vadd.f32 %v26965_v60, %v11391_v52  ;;  %v11393_v62 = vpop.f32.mrb[238].mxu0  ;;  %12000 = vmatprep.mubr.bf16.mxu0 %v11672_v16 }
 0xc2f   : > { %v11567_v38 = vadd.f32 %v26962_v28, %v11393_v62  ;;  %v11395_v12 = vpop.f32.mrb[239].mxu0  ;;  %12001 = vmatmul.mubr.bf16.gmra.mrb[168].mxu0 %v11671_v25  ;;  %v11629_v35 = vmax.f32 %v11565_v1, 0.0 }
 0xc30   : > { %v11568_v22 = vadd.f32 %v26965_v60, %v11395_v12  ;;  %v11630_v31 = vmax.f32 %v11566_v24, 0.0 }
 0xc31   : > { %v11631_v49 = vmax.f32 %v11567_v38, 0.0 }
 0xc32   : > { %v11632_v50 = vmax.f32 %v11568_v22, 0.0 }
 0xc33   : > { %v11673_v6 = vpack.c.bf16 %v11631_v49, %v11629_v35 }
 0xc34   : > { %v11674_v19 = vpack.c.bf16 %v11632_v50, %v11630_v31  ;;  %v11399_v11 = vpop.f32.mrb[240].mxu0 }
 0xc35   : > { %v11569_v0 = vadd.f32 %v26962_v28, %v11399_v11  ;;  %v11401_v54 = vpop.f32.mrb[241].mxu0 }
 0xc36   : > { %v11570_v44 = vadd.f32 %v26965_v60, %v11401_v54  ;;  %v11403_v57 = vpop.f32.mrb[242].mxu0  ;;  %12010 = vmatprep.mubr.bf16.mxu0 %v11674_v19 }
 0xc37   : > { %v11571_v29 = vadd.f32 %v26962_v28, %v11403_v57  ;;  %v11405_v33 = vpop.f32.mrb[243].mxu0  ;;  %12011 = vmatmul.mubr.bf16.gmra.mrb[172].mxu0 %v11673_v6  ;;  %v11633_v56 = vmax.f32 %v11569_v0, 0.0 }
 0xc38   : > { %v11572_v43 = vadd.f32 %v26965_v60, %v11405_v33  ;;  %v11634_v42 = vmax.f32 %v11570_v44, 0.0 }
 0xc39   : > { %v11635_v36 = vmax.f32 %v11571_v29, 0.0 }
 0xc3a   : > { %v11636_v59 = vmax.f32 %v11572_v43, 0.0 }
 0xc3b   : > { %v11675_v25 = vpack.c.bf16 %v11635_v36, %v11633_v56 }
 0xc3c   : > { %v11676_v16 = vpack.c.bf16 %v11636_v59, %v11634_v42  ;;  %v11409_v58 = vpop.f32.mrb[244].mxu0 }
 0xc3d   : > { %v11573_v1 = vadd.f32 %v26962_v28, %v11409_v58  ;;  %v11411_v52 = vpop.f32.mrb[245].mxu0 }
 0xc3e   : > { %v11574_v24 = vadd.f32 %v26965_v60, %v11411_v52  ;;  %v11413_v62 = vpop.f32.mrb[246].mxu0  ;;  %12020 = vmatprep.mubr.bf16.mxu0 %v11676_v16 }
 0xc3f   : > { %v11575_v38 = vadd.f32 %v26962_v28, %v11413_v62  ;;  %v11415_v12 = vpop.f32.mrb[247].mxu0  ;;  %12021 = vmatmul.mubr.bf16.gmra.mrb[176].mxu0 %v11675_v25  ;;  %v11637_v35 = vmax.f32 %v11573_v1, 0.0 }
 0xc40   : > { %v11576_v22 = vadd.f32 %v26965_v60, %v11415_v12  ;;  %v11638_v31 = vmax.f32 %v11574_v24, 0.0 }
 0xc41   : > { %v11639_v49 = vmax.f32 %v11575_v38, 0.0 }
 0xc42   : > { %v11640_v50 = vmax.f32 %v11576_v22, 0.0 }
 0xc43   : > { %v11677_v6 = vpack.c.bf16 %v11639_v49, %v11637_v35 }
 0xc44   : > { %v11678_v19 = vpack.c.bf16 %v11640_v50, %v11638_v31  ;;  %v11419_v11 = vpop.f32.mrb[248].mxu0 }
 0xc45   : > { %v11577_v0 = vadd.f32 %v26962_v28, %v11419_v11  ;;  %v11421_v54 = vpop.f32.mrb[249].mxu0 }
 0xc46   : > { %v11578_v44 = vadd.f32 %v26965_v60, %v11421_v54  ;;  %v11423_v57 = vpop.f32.mrb[250].mxu0  ;;  %12030 = vmatprep.mubr.bf16.mxu0 %v11678_v19 }
 0xc47   : > { %v11579_v29 = vadd.f32 %v26962_v28, %v11423_v57  ;;  %v11425_v33 = vpop.f32.mrb[251].mxu0  ;;  %12031 = vmatmul.mubr.bf16.gmra.mrb[180].mxu0 %v11677_v6  ;;  %v11641_v56 = vmax.f32 %v11577_v0, 0.0 }
 0xc48   : > { %v11580_v43 = vadd.f32 %v26965_v60, %v11425_v33  ;;  %v11642_v42 = vmax.f32 %v11578_v44, 0.0 }
 0xc49   : > { %v11643_v36 = vmax.f32 %v11579_v29, 0.0 }
 0xc4a   : > { %v11644_v59 = vmax.f32 %v11580_v43, 0.0 }
 0xc4b   : > { %v11679_v25 = vpack.c.bf16 %v11643_v36, %v11641_v56 }
 0xc4c   : > { %v11680_v16 = vpack.c.bf16 %v11644_v59, %v11642_v42  ;;  %v11429_v58 = vpop.f32.mrb[252].mxu0 }
 0xc4d   : > { %v11581_v1 = vadd.f32 %v26962_v28, %v11429_v58  ;;  %v11431_v52 = vpop.f32.mrb[253].mxu0 }
 0xc4e   : > { %v11582_v24 = vadd.f32 %v26965_v60, %v11431_v52  ;;  %v11433_v62 = vpop.f32.mrb[254].mxu0  ;;  %12040 = vmatprep.mubr.bf16.mxu0 %v11680_v16 }
 0xc4f   : > { %v11583_v38 = vadd.f32 %v26962_v28, %v11433_v62  ;;  %v11435_v12 = vpop.f32.mrb[255].mxu0  ;;  %12041 = vmatmul.mubr.bf16.gmra.mrb[184].mxu0 %v11679_v25  ;;  %v11645_v35 = vmax.f32 %v11581_v1, 0.0 }
 0xc50   : > { %v11584_v22 = vadd.f32 %v26965_v60, %v11435_v12  ;;  %v11646_v31 = vmax.f32 %v11582_v24, 0.0 }
 0xc51   : > { %v11647_v49 = vmax.f32 %v11583_v38, 0.0 }
 0xc52   : > { %v11648_v50 = vmax.f32 %v11584_v22, 0.0 }
 0xc53   : > { %v11681_v6 = vpack.c.bf16 %v11647_v49, %v11645_v35 }
 0xc54   : > { %v11682_v19 = vpack.c.bf16 %v11648_v50, %v11646_v31  ;;  %v11439_v11 = vpop.f32.mrb[0].mxu0 }
 0xc55   : > { %v11585_v0 = vadd.f32 %v26962_v28, %v11439_v11  ;;  %v11441_v54 = vpop.f32.mrb[1].mxu0 }
 0xc56   : > { %v11586_v44 = vadd.f32 %v26965_v60, %v11441_v54  ;;  %v11443_v57 = vpop.f32.mrb[2].mxu0  ;;  %12050 = vmatprep.mubr.bf16.mxu0 %v11682_v19 }
 0xc57   : > { %v11587_v29 = vadd.f32 %v26962_v28, %v11443_v57  ;;  %v11445_v33 = vpop.f32.mrb[3].mxu0  ;;  %12051 = vmatmul.mubr.bf16.gmra.mrb[188].mxu0 %v11681_v6  ;;  %v11649_v56 = vmax.f32 %v11585_v0, 0.0 }
 0xc58   : > { %v11588_v43 = vadd.f32 %v26965_v60, %v11445_v33  ;;  %v11650_v42 = vmax.f32 %v11586_v44, 0.0 }
 0xc59   : > { %v11651_v36 = vmax.f32 %v11587_v29, 0.0 }
 0xc5a   : > { %v11652_v59 = vmax.f32 %v11588_v43, 0.0 }
 0xc5b   : > { %v11683_v25 = vpack.c.bf16 %v11651_v36, %v11649_v56 }
 0xc5c   : > { %v11684_v16 = vpack.c.bf16 %v11652_v59, %v11650_v42 }
 0xc5e   : > { %12060 = vmatprep.mubr.bf16.mxu0 %v11684_v16 }
 0xc5f   : > { %12061 = vmatmul.mubr.bf16.gmra.mrb[192].mxu0 %v11683_v25 }
 0xc60   : > { %16872 = vmatprep.mubr.bf16.mxu0 %v26560_v45 }
 0xc67   : > { %16873 = vmatmul.mubr.bf16.vlgmr.msra.gmra.mrb[132].mxu0 %v26557_v23  ;;  %v17169_v23 = vld [vmem:[#allocation13] sm:$0x3] }
 0xc68   : > { %16882 = vmatprep.mubr.bf16.mxu0 %v26579_v30  ;;  %v27064_v45 = vrot.slane %v17169_v23, %v27575_v41 }
 0xc6f   : > { %16883 = vmatmul.mubr.bf16.gmra.mrb[136].mxu0 %v26576_v5  ;;  %v27577_v5 = vld [vmem:[#allocation23_spill] sm:$0xff] }
 0xc70   : > { %16892 = vmatprep.mubr.bf16.mxu0 %v26596_v47  ;;  %v27068_v30 = vrot.slane %v27577_v5, %v27575_v41  ;;  %v27578_v47 = vld [vmem:[#allocation24_spill] sm:$0xff] }
 0xc77   : > { %16893 = vmatmul.mubr.bf16.gmra.mrb[140].mxu0 %v26593_v37  ;;  %v27071_v37 = vrot.slane %v17169_v23, %v27576_v46 }
 0xc78   : > { %16902 = vmatprep.mubr.bf16.mxu0 %v26613_v14 }
 0xc7f   : > { %16903 = vmatmul.mubr.bf16.gmra.mrb[144].mxu0 %v26610_v7  ;;  %v27075_v7 = vrot.slane %v27578_v47, %v27575_v41 }
 0xc80   : > { %16912 = vmatprep.mubr.bf16.mxu0 %v26630_v10 }
 0xc87   : > { %16913 = vmatmul.mubr.bf16.gmra.mrb[148].mxu0 %v26627_v55 }
 0xc88   : > { %16922 = vmatprep.mubr.bf16.mxu0 %v26647_v53 }
 0xc8f   : > { %16923 = vmatmul.mubr.bf16.gmra.mrb[152].mxu0 %v26644_v3 }
 0xc90   : > { %16932 = vmatprep.mubr.bf16.mxu0 %v26664_v9 }
 0xc97   : > { %16933 = vmatmul.mubr.bf16.gmra.mrb[156].mxu0 %v26661_v27 }
 0xc98   : > { %16942 = vmatprep.mubr.bf16.mxu0 %v26681_v51 }
 0xc9f   : > { %16943 = vmatmul.mubr.bf16.gmra.mrb[160].mxu0 %v26678_v8 }
 0xca0   : > { %16952 = vmatprep.mubr.bf16.mxu0 %v26698_v2 }
 0xca7   : > { %16953 = vmatmul.mubr.bf16.gmra.mrb[164].mxu0 %v26695_v63 }
 0xca8   : > { %16962 = vmatprep.mubr.bf16.mxu0 %v26715_v4 }
 0xcaf   : > { %16963 = vmatmul.mubr.bf16.gmra.mrb[168].mxu0 %v26712_v18 }
 0xcb0   : > { %16972 = vmatprep.mubr.bf16.mxu0 %v26732_v40 }
 0xcb7   : > { %16973 = vmatmul.mubr.bf16.gmra.mrb[172].mxu0 %v26729_v39 }
 0xcb8   : > { %16982 = vmatprep.mubr.bf16.mxu0 %v26749_v34 }
 0xcbf   : > { %16983 = vmatmul.mubr.bf16.gmra.mrb[176].mxu0 %v26746_v15 }
 0xcc0   : > { %16992 = vmatprep.mubr.bf16.mxu0 %v26766_v61 }
 0xcc7   : > { %16993 = vmatmul.mubr.bf16.gmra.mrb[180].mxu0 %v26763_v13 }
 0xcc8   : > { %17002 = vmatprep.mubr.bf16.mxu0 %v26783_v26 }
 0xccf   : > { %17003 = vmatmul.mubr.bf16.gmra.mrb[184].mxu0 %v26780_v20 }
 0xcd0   : > { %17012 = vmatprep.mubr.bf16.mxu0 %v26800_v21 }
 0xcd7   : > { %17013 = vmatmul.mubr.bf16.gmra.mrb[188].mxu0 %v26797_v17 }
 0xcd8   : > { %17022 = vmatprep.mubr.bf16.mxu0 %v26817_v32 }
 0xcdf   : > { %17023 = vmatmul.mubr.bf16.gmra.mrb[192].mxu0 %v26813_v48 }
 0xd3a   : > { %v16874_v14 = vpop.f32.mrb[132].mxu0 }
 0xd3b   : > { %v17105_v55 = vadd.f32 %v27068_v30, %v16874_v14  ;;  %v16876_v10 = vpop.f32.mrb[133].mxu0 }
 0xd3c   : > { %v17106_v3 = vadd.f32 %v27075_v7, %v16876_v10  ;;  %v16878_v53 = vpop.f32.mrb[134].mxu0 }
 0xd3d   : > { %v17181_v27 = vadd.f32 %v27064_v45, %v17105_v55  ;;  %v17107_v9 = vadd.f32 %v27068_v30, %v16878_v53  ;;  %v16880_v8 = vpop.f32.mrb[135].mxu0 }
 0xd3e   : > { %v17182_v46 = vadd.f32 %v27071_v37, %v17106_v3  ;;  %v17108_v51 = vadd.f32 %v27075_v7, %v16880_v8 }
 0xd3f   : > { %v17245_v63 = vmax.f32 %v17181_v27, 0.0  ;;  %v17183_v41 = vadd.f32 %v27064_v45, %v17107_v9 }
 0xd40   : > { %v17246_v2 = vmax.f32 %v17182_v46, 0.0  ;;  %v17184_v18 = vadd.f32 %v27071_v37, %v17108_v51 }
 0xd41   : > { %17309 = vst [vmem:[%s27086_s17] sm:$0xff] %v17245_v63  ;;  %v17247_v4 = vmax.f32 %v17183_v41, 0.0 }
 0xd42   : > { %17310 = vst [vmem:[%s27086_s17 + $0x8] sm:$0xff] %v17246_v2  ;;  %v17248_v39 = vmax.f32 %v17184_v18, 0.0  ;;  %v16884_v40 = vpop.f32.mrb[136].mxu0 }
 0xd43   : > { %17311 = vst [vmem:[%s27086_s17 + $0x10] sm:$0xff] %v17247_v4  ;;  %v17109_v15 = vadd.f32 %v27068_v30, %v16884_v40  ;;  %v16886_v34 = vpop.f32.mrb[137].mxu0 }
 0xd44   : > { %17312 = vst [vmem:[%s27086_s17 + $0x18] sm:$0xff] %v17248_v39  ;;  %v17110_v13 = vadd.f32 %v27075_v7, %v16886_v34  ;;  %v16888_v61 = vpop.f32.mrb[138].mxu0 }
 0xd45   : > { %v17185_v20 = vadd.f32 %v27064_v45, %v17109_v15  ;;  %v17111_v26 = vadd.f32 %v27068_v30, %v16888_v61  ;;  %v16890_v17 = vpop.f32.mrb[139].mxu0 }
 0xd46   : > { %v17186_v21 = vadd.f32 %v27071_v37, %v17110_v13  ;;  %v17112_v48 = vadd.f32 %v27075_v7, %v16890_v17 }
 0xd47   : > { %v17249_v32 = vmax.f32 %v17185_v20, 0.0  ;;  %v17187_v28 = vadd.f32 %v27064_v45, %v17111_v26 }
 0xd48   : > { %v17250_v60 = vmax.f32 %v17186_v21, 0.0  ;;  %v17188_v58 = vadd.f32 %v27071_v37, %v17112_v48 }
 0xd49   : > { %17313 = vst [vmem:[%s27086_s17 + $0x20] sm:$0xff] %v17249_v32  ;;  %v17251_v1 = vmax.f32 %v17187_v28, 0.0 }
 0xd4a   : > { %17314 = vst [vmem:[%s27086_s17 + $0x28] sm:$0xff] %v17250_v60  ;;  %v17252_v52 = vmax.f32 %v17188_v58, 0.0  ;;  %v16894_v24 = vpop.f32.mrb[140].mxu0 }
 0xd4b   : > { %17315 = vst [vmem:[%s27086_s17 + $0x30] sm:$0xff] %v17251_v1  ;;  %v17113_v62 = vadd.f32 %v27068_v30, %v16894_v24  ;;  %v16896_v38 = vpop.f32.mrb[141].mxu0 }
 0xd4c   : > { %17316 = vst [vmem:[%s27086_s17 + $0x38] sm:$0xff] %v17252_v52  ;;  %v17114_v12 = vadd.f32 %v27075_v7, %v16896_v38  ;;  %v16898_v22 = vpop.f32.mrb[142].mxu0 }
 0xd4d   : > { %v17189_v35 = vadd.f32 %v27064_v45, %v17113_v62  ;;  %v17115_v49 = vadd.f32 %v27068_v30, %v16898_v22  ;;  %v16900_v31 = vpop.f32.mrb[143].mxu0 }
 0xd4e   : > { %v17190_v50 = vadd.f32 %v27071_v37, %v17114_v12  ;;  %v17116_v6 = vadd.f32 %v27075_v7, %v16900_v31 }
 0xd4f   : > { %v17253_v19 = vmax.f32 %v17189_v35, 0.0  ;;  %v17191_v11 = vadd.f32 %v27064_v45, %v17115_v49 }
 0xd50   : > { %v17254_v0 = vmax.f32 %v17190_v50, 0.0  ;;  %v17192_v54 = vadd.f32 %v27071_v37, %v17116_v6 }
 0xd51   : > { %17317 = vst [vmem:[%s27086_s17 + $0x40] sm:$0xff] %v17253_v19  ;;  %v17255_v44 = vmax.f32 %v17191_v11, 0.0 }
 0xd52   : > { %17318 = vst [vmem:[%s27086_s17 + $0x48] sm:$0xff] %v17254_v0  ;;  %v17256_v57 = vmax.f32 %v17192_v54, 0.0  ;;  %v16904_v29 = vpop.f32.mrb[144].mxu0 }
 0xd53   : > { %17319 = vst [vmem:[%s27086_s17 + $0x50] sm:$0xff] %v17255_v44  ;;  %v17117_v33 = vadd.f32 %v27068_v30, %v16904_v29  ;;  %v16906_v43 = vpop.f32.mrb[145].mxu0 }
 0xd54   : > { %17320 = vst [vmem:[%s27086_s17 + $0x58] sm:$0xff] %v17256_v57  ;;  %v17118_v56 = vadd.f32 %v27075_v7, %v16906_v43  ;;  %v16908_v36 = vpop.f32.mrb[146].mxu0 }
 0xd55   : > { %v17193_v42 = vadd.f32 %v27064_v45, %v17117_v33  ;;  %v17119_v59 = vadd.f32 %v27068_v30, %v16908_v36  ;;  %v16910_v25 = vpop.f32.mrb[147].mxu0 }
 0xd56   : > { %v17194_v16 = vadd.f32 %v27071_v37, %v17118_v56  ;;  %v17120_v23 = vadd.f32 %v27075_v7, %v16910_v25 }
 0xd57   : > { %v17257_v5 = vmax.f32 %v17193_v42, 0.0  ;;  %v17195_v47 = vadd.f32 %v27064_v45, %v17119_v59 }
 0xd58   : > { %v17258_v14 = vmax.f32 %v17194_v16, 0.0  ;;  %v17196_v55 = vadd.f32 %v27071_v37, %v17120_v23 }
 0xd59   : > { %17321 = vst [vmem:[%s27086_s17 + $0x60] sm:$0xff] %v17257_v5  ;;  %v17259_v10 = vmax.f32 %v17195_v47, 0.0 }
 0xd5a   : > { %17322 = vst [vmem:[%s27086_s17 + $0x68] sm:$0xff] %v17258_v14  ;;  %v17260_v3 = vmax.f32 %v17196_v55, 0.0  ;;  %v16914_v53 = vpop.f32.mrb[148].mxu0 }
 0xd5b   : > { %17323 = vst [vmem:[%s27086_s17 + $0x70] sm:$0xff] %v17259_v10  ;;  %v17121_v27 = vadd.f32 %v27068_v30, %v16914_v53  ;;  %v16916_v9 = vpop.f32.mrb[149].mxu0 }
 0xd5c   : > { %17324 = vst [vmem:[%s27086_s17 + $0x78] sm:$0xff] %v17260_v3  ;;  %v17122_v8 = vadd.f32 %v27075_v7, %v16916_v9  ;;  %v16918_v46 = vpop.f32.mrb[150].mxu0 }
 0xd5d   : > { %v17197_v51 = vadd.f32 %v27064_v45, %v17121_v27  ;;  %v17123_v63 = vadd.f32 %v27068_v30, %v16918_v46  ;;  %v16920_v41 = vpop.f32.mrb[151].mxu0 }
 0xd5e   : > { %v17198_v2 = vadd.f32 %v27071_v37, %v17122_v8  ;;  %v17124_v18 = vadd.f32 %v27075_v7, %v16920_v41 }
 0xd5f   : > { %v17261_v4 = vmax.f32 %v17197_v51, 0.0  ;;  %v17199_v39 = vadd.f32 %v27064_v45, %v17123_v63 }
 0xd60   : > { %v17262_v40 = vmax.f32 %v17198_v2, 0.0  ;;  %v17200_v15 = vadd.f32 %v27071_v37, %v17124_v18 }
 0xd61   : > { %17325 = vst [vmem:[%s27086_s17 + $0x80] sm:$0xff] %v17261_v4  ;;  %v17263_v34 = vmax.f32 %v17199_v39, 0.0 }
 0xd62   : > { %17326 = vst [vmem:[%s27086_s17 + $0x88] sm:$0xff] %v17262_v40  ;;  %v17264_v13 = vmax.f32 %v17200_v15, 0.0  ;;  %v16924_v61 = vpop.f32.mrb[152].mxu0 }
 0xd63   : > { %17327 = vst [vmem:[%s27086_s17 + $0x90] sm:$0xff] %v17263_v34  ;;  %v17125_v20 = vadd.f32 %v27068_v30, %v16924_v61  ;;  %v16926_v26 = vpop.f32.mrb[153].mxu0 }
 0xd64   : > { %17328 = vst [vmem:[%s27086_s17 + $0x98] sm:$0xff] %v17264_v13  ;;  %v17126_v17 = vadd.f32 %v27075_v7, %v16926_v26  ;;  %v16928_v21 = vpop.f32.mrb[154].mxu0 }
 0xd65   : > { %v17201_v48 = vadd.f32 %v27064_v45, %v17125_v20  ;;  %v17127_v32 = vadd.f32 %v27068_v30, %v16928_v21  ;;  %v16930_v28 = vpop.f32.mrb[155].mxu0 }
 0xd66   : > { %v17202_v60 = vadd.f32 %v27071_v37, %v17126_v17  ;;  %v17128_v58 = vadd.f32 %v27075_v7, %v16930_v28 }
 0xd67   : > { %v17265_v1 = vmax.f32 %v17201_v48, 0.0  ;;  %v17203_v52 = vadd.f32 %v27064_v45, %v17127_v32 }
 0xd68   : > { %v17266_v24 = vmax.f32 %v17202_v60, 0.0  ;;  %v17204_v62 = vadd.f32 %v27071_v37, %v17128_v58 }
 0xd69   : > { %17329 = vst [vmem:[%s27086_s17 + $0xa0] sm:$0xff] %v17265_v1  ;;  %v17267_v38 = vmax.f32 %v17203_v52, 0.0 }
 0xd6a   : > { %17330 = vst [vmem:[%s27086_s17 + $0xa8] sm:$0xff] %v17266_v24  ;;  %v17268_v12 = vmax.f32 %v17204_v62, 0.0  ;;  %v16934_v22 = vpop.f32.mrb[156].mxu0 }
 0xd6b   : > { %17331 = vst [vmem:[%s27086_s17 + $0xb0] sm:$0xff] %v17267_v38  ;;  %v17129_v35 = vadd.f32 %v27068_v30, %v16934_v22  ;;  %v16936_v49 = vpop.f32.mrb[157].mxu0 }
 0xd6c   : > { %17332 = vst [vmem:[%s27086_s17 + $0xb8] sm:$0xff] %v17268_v12  ;;  %v17130_v31 = vadd.f32 %v27075_v7, %v16936_v49  ;;  %v16938_v50 = vpop.f32.mrb[158].mxu0 }
 0xd6d   : > { %v17205_v6 = vadd.f32 %v27064_v45, %v17129_v35  ;;  %v17131_v19 = vadd.f32 %v27068_v30, %v16938_v50  ;;  %v16940_v11 = vpop.f32.mrb[159].mxu0 }
 0xd6e   : > { %v17206_v0 = vadd.f32 %v27071_v37, %v17130_v31  ;;  %v17132_v54 = vadd.f32 %v27075_v7, %v16940_v11 }
 0xd6f   : > { %v17269_v44 = vmax.f32 %v17205_v6, 0.0  ;;  %v17207_v57 = vadd.f32 %v27064_v45, %v17131_v19 }
 0xd70   : > { %v17270_v29 = vmax.f32 %v17206_v0, 0.0  ;;  %v17208_v33 = vadd.f32 %v27071_v37, %v17132_v54 }
 0xd71   : > { %17333 = vst [vmem:[%s27086_s17 + $0xc0] sm:$0xff] %v17269_v44  ;;  %v17271_v43 = vmax.f32 %v17207_v57, 0.0 }
 0xd72   : > { %17334 = vst [vmem:[%s27086_s17 + $0xc8] sm:$0xff] %v17270_v29  ;;  %v17272_v56 = vmax.f32 %v17208_v33, 0.0  ;;  %v16944_v36 = vpop.f32.mrb[160].mxu0 }
 0xd73   : > { %17335 = vst [vmem:[%s27086_s17 + $0xd0] sm:$0xff] %v17271_v43  ;;  %v17133_v42 = vadd.f32 %v27068_v30, %v16944_v36  ;;  %v16946_v59 = vpop.f32.mrb[161].mxu0 }
 0xd74   : > { %17336 = vst [vmem:[%s27086_s17 + $0xd8] sm:$0xff] %v17272_v56  ;;  %v17134_v25 = vadd.f32 %v27075_v7, %v16946_v59  ;;  %v16948_v16 = vpop.f32.mrb[162].mxu0 }
 0xd75   : > { %v17209_v23 = vadd.f32 %v27064_v45, %v17133_v42  ;;  %v17135_v5 = vadd.f32 %v27068_v30, %v16948_v16  ;;  %v16950_v47 = vpop.f32.mrb[163].mxu0 }
 0xd76   : > { %v17210_v14 = vadd.f32 %v27071_v37, %v17134_v25  ;;  %v17136_v55 = vadd.f32 %v27075_v7, %v16950_v47 }
 0xd77   : > { %v17273_v10 = vmax.f32 %v17209_v23, 0.0  ;;  %v17211_v3 = vadd.f32 %v27064_v45, %v17135_v5 }
 0xd78   : > { %v17274_v53 = vmax.f32 %v17210_v14, 0.0  ;;  %v17212_v27 = vadd.f32 %v27071_v37, %v17136_v55 }
 0xd79   : > { %17337 = vst [vmem:[%s27086_s17 + $0xe0] sm:$0xff] %v17273_v10  ;;  %v17275_v9 = vmax.f32 %v17211_v3, 0.0 }
 0xd7a   : > { %17338 = vst [vmem:[%s27086_s17 + $0xe8] sm:$0xff] %v17274_v53  ;;  %v17276_v8 = vmax.f32 %v17212_v27, 0.0  ;;  %v16954_v46 = vpop.f32.mrb[164].mxu0 }
 0xd7b   : > { %17339 = vst [vmem:[%s27086_s17 + $0xf0] sm:$0xff] %v17275_v9  ;;  %v17137_v51 = vadd.f32 %v27068_v30, %v16954_v46  ;;  %v16956_v63 = vpop.f32.mrb[165].mxu0 }
 0xd7c   : > { %17340 = vst [vmem:[%s27086_s17 + $0xf8] sm:$0xff] %v17276_v8  ;;  %v17138_v41 = vadd.f32 %v27075_v7, %v16956_v63  ;;  %v16958_v2 = vpop.f32.mrb[166].mxu0 }
 0xd7d   : > { %v17213_v18 = vadd.f32 %v27064_v45, %v17137_v51  ;;  %v17139_v4 = vadd.f32 %v27068_v30, %v16958_v2  ;;  %v16960_v39 = vpop.f32.mrb[167].mxu0 }
 0xd7e   : > { %v17214_v40 = vadd.f32 %v27071_v37, %v17138_v41  ;;  %v17140_v15 = vadd.f32 %v27075_v7, %v16960_v39 }
 0xd7f   : > { %v17277_v34 = vmax.f32 %v17213_v18, 0.0  ;;  %v17215_v13 = vadd.f32 %v27064_v45, %v17139_v4 }
 0xd80   : > { %v17278_v61 = vmax.f32 %v17214_v40, 0.0  ;;  %v17216_v20 = vadd.f32 %v27071_v37, %v17140_v15 }
 0xd81   : > { %17341 = vst [vmem:[%s27086_s17 + $0x100] sm:$0xff] %v17277_v34  ;;  %v17279_v26 = vmax.f32 %v17215_v13, 0.0 }
 0xd82   : > { %17342 = vst [vmem:[%s27086_s17 + $0x108] sm:$0xff] %v17278_v61  ;;  %v17280_v17 = vmax.f32 %v17216_v20, 0.0  ;;  %v16964_v21 = vpop.f32.mrb[168].mxu0 }
 0xd83   : > { %17343 = vst [vmem:[%s27086_s17 + $0x110] sm:$0xff] %v17279_v26  ;;  %v17141_v48 = vadd.f32 %v27068_v30, %v16964_v21  ;;  %v16966_v32 = vpop.f32.mrb[169].mxu0 }
 0xd84   : > { %17344 = vst [vmem:[%s27086_s17 + $0x118] sm:$0xff] %v17280_v17  ;;  %v17142_v28 = vadd.f32 %v27075_v7, %v16966_v32  ;;  %v16968_v60 = vpop.f32.mrb[170].mxu0 }
 0xd85   : > { %v17217_v58 = vadd.f32 %v27064_v45, %v17141_v48  ;;  %v17143_v1 = vadd.f32 %v27068_v30, %v16968_v60  ;;  %v16970_v52 = vpop.f32.mrb[171].mxu0 }
 0xd86   : > { %v17218_v24 = vadd.f32 %v27071_v37, %v17142_v28  ;;  %v17144_v62 = vadd.f32 %v27075_v7, %v16970_v52 }
 0xd87   : > { %v17281_v38 = vmax.f32 %v17217_v58, 0.0  ;;  %v17219_v12 = vadd.f32 %v27064_v45, %v17143_v1 }
 0xd88   : > { %v17282_v22 = vmax.f32 %v17218_v24, 0.0  ;;  %v17220_v35 = vadd.f32 %v27071_v37, %v17144_v62 }
 0xd89   : > { %17345 = vst [vmem:[%s27086_s17 + $0x120] sm:$0xff] %v17281_v38  ;;  %v17283_v49 = vmax.f32 %v17219_v12, 0.0 }
 0xd8a   : > { %17346 = vst [vmem:[%s27086_s17 + $0x128] sm:$0xff] %v17282_v22  ;;  %v17284_v31 = vmax.f32 %v17220_v35, 0.0  ;;  %v16974_v50 = vpop.f32.mrb[172].mxu0 }
 0xd8b   : > { %17347 = vst [vmem:[%s27086_s17 + $0x130] sm:$0xff] %v17283_v49  ;;  %v17145_v6 = vadd.f32 %v27068_v30, %v16974_v50  ;;  %v16976_v19 = vpop.f32.mrb[173].mxu0 }
 0xd8c   : > { %17348 = vst [vmem:[%s27086_s17 + $0x138] sm:$0xff] %v17284_v31  ;;  %v17146_v11 = vadd.f32 %v27075_v7, %v16976_v19  ;;  %v16978_v0 = vpop.f32.mrb[174].mxu0 }
 0xd8d   : > { %v17221_v54 = vadd.f32 %v27064_v45, %v17145_v6  ;;  %v17147_v44 = vadd.f32 %v27068_v30, %v16978_v0  ;;  %v16980_v57 = vpop.f32.mrb[175].mxu0 }
 0xd8e   : > { %v17222_v29 = vadd.f32 %v27071_v37, %v17146_v11  ;;  %v17148_v33 = vadd.f32 %v27075_v7, %v16980_v57 }
 0xd8f   : > { %v17285_v43 = vmax.f32 %v17221_v54, 0.0  ;;  %v17223_v56 = vadd.f32 %v27064_v45, %v17147_v44 }
 0xd90   : > { %v17286_v36 = vmax.f32 %v17222_v29, 0.0  ;;  %v17224_v42 = vadd.f32 %v27071_v37, %v17148_v33 }
 0xd91   : > { %17349 = vst [vmem:[%s27086_s17 + $0x140] sm:$0xff] %v17285_v43  ;;  %v17287_v59 = vmax.f32 %v17223_v56, 0.0 }
 0xd92   : > { %17350 = vst [vmem:[%s27086_s17 + $0x148] sm:$0xff] %v17286_v36  ;;  %v17288_v25 = vmax.f32 %v17224_v42, 0.0  ;;  %v16984_v16 = vpop.f32.mrb[176].mxu0 }
 0xd93   : > { %17351 = vst [vmem:[%s27086_s17 + $0x150] sm:$0xff] %v17287_v59  ;;  %v17149_v23 = vadd.f32 %v27068_v30, %v16984_v16  ;;  %v16986_v5 = vpop.f32.mrb[177].mxu0 }
 0xd94   : > { %17352 = vst [vmem:[%s27086_s17 + $0x158] sm:$0xff] %v17288_v25  ;;  %v17150_v47 = vadd.f32 %v27075_v7, %v16986_v5  ;;  %v16988_v14 = vpop.f32.mrb[178].mxu0 }
 0xd95   : > { %v17225_v55 = vadd.f32 %v27064_v45, %v17149_v23  ;;  %v17151_v10 = vadd.f32 %v27068_v30, %v16988_v14  ;;  %v16990_v3 = vpop.f32.mrb[179].mxu0 }
 0xd96   : > { %v17226_v53 = vadd.f32 %v27071_v37, %v17150_v47  ;;  %v17152_v27 = vadd.f32 %v27075_v7, %v16990_v3 }
 0xd97   : > { %v17289_v9 = vmax.f32 %v17225_v55, 0.0  ;;  %v17227_v8 = vadd.f32 %v27064_v45, %v17151_v10 }
 0xd98   : > { %v17290_v46 = vmax.f32 %v17226_v53, 0.0  ;;  %v17228_v51 = vadd.f32 %v27071_v37, %v17152_v27 }
 0xd99   : > { %17353 = vst [vmem:[%s27086_s17 + $0x160] sm:$0xff] %v17289_v9  ;;  %v17291_v63 = vmax.f32 %v17227_v8, 0.0 }
 0xd9a   : > { %17354 = vst [vmem:[%s27086_s17 + $0x168] sm:$0xff] %v17290_v46  ;;  %v17292_v41 = vmax.f32 %v17228_v51, 0.0  ;;  %v16994_v2 = vpop.f32.mrb[180].mxu0 }
 0xd9b   : > { %17355 = vst [vmem:[%s27086_s17 + $0x170] sm:$0xff] %v17291_v63  ;;  %v17153_v18 = vadd.f32 %v27068_v30, %v16994_v2  ;;  %v16996_v4 = vpop.f32.mrb[181].mxu0 }
 0xd9c   : > { %17356 = vst [vmem:[%s27086_s17 + $0x178] sm:$0xff] %v17292_v41  ;;  %v17154_v39 = vadd.f32 %v27075_v7, %v16996_v4  ;;  %v16998_v40 = vpop.f32.mrb[182].mxu0 }
 0xd9d   : > { %v17229_v15 = vadd.f32 %v27064_v45, %v17153_v18  ;;  %v17155_v34 = vadd.f32 %v27068_v30, %v16998_v40  ;;  %v17000_v13 = vpop.f32.mrb[183].mxu0 }
 0xd9e   : > { %v17230_v61 = vadd.f32 %v27071_v37, %v17154_v39  ;;  %v17156_v20 = vadd.f32 %v27075_v7, %v17000_v13 }
 0xd9f   : > { %v17293_v26 = vmax.f32 %v17229_v15, 0.0  ;;  %v17231_v17 = vadd.f32 %v27064_v45, %v17155_v34 }
 0xda0   : > { %v17294_v21 = vmax.f32 %v17230_v61, 0.0  ;;  %v17232_v48 = vadd.f32 %v27071_v37, %v17156_v20 }
 0xda1   : > { %17357 = vst [vmem:[%s27086_s17 + $0x180] sm:$0xff] %v17293_v26  ;;  %v17295_v32 = vmax.f32 %v17231_v17, 0.0 }
 0xda2   : > { %17358 = vst [vmem:[%s27086_s17 + $0x188] sm:$0xff] %v17294_v21  ;;  %v17296_v28 = vmax.f32 %v17232_v48, 0.0  ;;  %v17004_v60 = vpop.f32.mrb[184].mxu0 }
 0xda3   : > { %17359 = vst [vmem:[%s27086_s17 + $0x190] sm:$0xff] %v17295_v32  ;;  %v17157_v58 = vadd.f32 %v27068_v30, %v17004_v60  ;;  %v17006_v1 = vpop.f32.mrb[185].mxu0 }
 0xda4   : > { %17360 = vst [vmem:[%s27086_s17 + $0x198] sm:$0xff] %v17296_v28  ;;  %v17158_v52 = vadd.f32 %v27075_v7, %v17006_v1  ;;  %v17008_v24 = vpop.f32.mrb[186].mxu0 }
 0xda5   : > { %v17233_v62 = vadd.f32 %v27064_v45, %v17157_v58  ;;  %v17159_v38 = vadd.f32 %v27068_v30, %v17008_v24  ;;  %v17010_v12 = vpop.f32.mrb[187].mxu0 }
 0xda6   : > { %v17234_v22 = vadd.f32 %v27071_v37, %v17158_v52  ;;  %v17160_v35 = vadd.f32 %v27075_v7, %v17010_v12 }
 0xda7   : > { %v17297_v49 = vmax.f32 %v17233_v62, 0.0  ;;  %v17235_v31 = vadd.f32 %v27064_v45, %v17159_v38 }
 0xda8   : > { %v17298_v50 = vmax.f32 %v17234_v22, 0.0  ;;  %v17236_v6 = vadd.f32 %v27071_v37, %v17160_v35 }
 0xda9   : > { %17361 = vst [vmem:[%s27086_s17 + $0x1a0] sm:$0xff] %v17297_v49  ;;  %v17299_v19 = vmax.f32 %v17235_v31, 0.0 }
 0xdaa   : > { %17362 = vst [vmem:[%s27086_s17 + $0x1a8] sm:$0xff] %v17298_v50  ;;  %v17300_v11 = vmax.f32 %v17236_v6, 0.0  ;;  %v17014_v0 = vpop.f32.mrb[188].mxu0 }
 0xdab   : > { %17363 = vst [vmem:[%s27086_s17 + $0x1b0] sm:$0xff] %v17299_v19  ;;  %v17161_v54 = vadd.f32 %v27068_v30, %v17014_v0  ;;  %v17016_v44 = vpop.f32.mrb[189].mxu0 }
 0xdac   : > { %17364 = vst [vmem:[%s27086_s17 + $0x1b8] sm:$0xff] %v17300_v11  ;;  %v17162_v57 = vadd.f32 %v27075_v7, %v17016_v44  ;;  %v17018_v29 = vpop.f32.mrb[190].mxu0 }
 0xdad   : > { %v17237_v33 = vadd.f32 %v27064_v45, %v17161_v54  ;;  %v17163_v43 = vadd.f32 %v27068_v30, %v17018_v29  ;;  %v17020_v56 = vpop.f32.mrb[191].mxu0 }
 0xdae   : > { %v17238_v36 = vadd.f32 %v27071_v37, %v17162_v57  ;;  %v17164_v42 = vadd.f32 %v27075_v7, %v17020_v56 }
 0xdaf   : > { %v17301_v59 = vmax.f32 %v17237_v33, 0.0  ;;  %v17239_v25 = vadd.f32 %v27064_v45, %v17163_v43 }
 0xdb0   : > { %v17302_v16 = vmax.f32 %v17238_v36, 0.0  ;;  %v17240_v23 = vadd.f32 %v27071_v37, %v17164_v42 }
 0xdb1   : > { %17365 = vst [vmem:[%s27086_s17 + $0x1c0] sm:$0xff] %v17301_v59  ;;  %v17303_v5 = vmax.f32 %v17239_v25, 0.0 }
 0xdb2   : > { %17366 = vst [vmem:[%s27086_s17 + $0x1c8] sm:$0xff] %v17302_v16  ;;  %v17304_v47 = vmax.f32 %v17240_v23, 0.0  ;;  %v17024_v14 = vpop.f32.mrb[192].mxu0 }
 0xdb3   : > { %17367 = vst [vmem:[%s27086_s17 + $0x1d0] sm:$0xff] %v17303_v5  ;;  %v17165_v55 = vadd.f32 %v27068_v30, %v17024_v14  ;;  %v17026_v10 = vpop.f32.mrb[193].mxu0 }
 0xdb4   : > { %17368 = vst [vmem:[%s27086_s17 + $0x1d8] sm:$0xff] %v17304_v47  ;;  %v17166_v3 = vadd.f32 %v27075_v7, %v17026_v10  ;;  %v17028_v53 = vpop.f32.mrb[194].mxu0 }
 0xdb5   : > { %v17241_v27 = vadd.f32 %v27064_v45, %v17165_v55  ;;  %v17167_v9 = vadd.f32 %v27068_v30, %v17028_v53  ;;  %v17030_v8 = vpop.f32.mrb[195].mxu0 }
 0xdb6   : > { %v17242_v46 = vadd.f32 %v27071_v37, %v17166_v3  ;;  %v17168_v51 = vadd.f32 %v27075_v7, %v17030_v8 }
 0xdb7   : > { %v17305_v63 = vmax.f32 %v17241_v27, 0.0  ;;  %v17243_v41 = vadd.f32 %v27064_v45, %v17167_v9 }
 0xdb8   : > { %v17306_v2 = vmax.f32 %v17242_v46, 0.0  ;;  %v17244_v18 = vadd.f32 %v27071_v37, %v17168_v51 }
 0xdb9   : > { %17369 = vst [vmem:[%s27086_s17 + $0x1e0] sm:$0xff] %v17305_v63  ;;  %v17307_v4 = vmax.f32 %v17243_v41, 0.0 }
 0xdba   : > { %17370 = vst [vmem:[%s27086_s17 + $0x1e8] sm:$0xff] %v17306_v2  ;;  %v17308_v30 = vmax.f32 %v17244_v18, 0.0 }
 0xdbb   : > { %17371 = vst [vmem:[%s27086_s17 + $0x1f0] sm:$0xff] %v17307_v4 }
 0xdbc   : > { %17372 = vst [vmem:[%s27086_s17 + $0x1f8] sm:$0xff] %v17308_v30 }
 0xdbd   : > { %22280 = shalt.err (!%p22277_p8)
}
 0xdbe   : > { %s22281_s16 = scalar_lea.hbm %s27274_s21, 8192  ;;  %s22285_s8 = scalar_lea.hbm %s27330_s7, 16384 }
 0xdbf   : > { %p22282_p7 = scmp.ne.s32.totalorder %s27274_s21, %s22281_s16  ;;  %p22286_p3 = scmp.lt.u32.totalorder %s27274_s21, %s27330_s7 }
 0xdc0   : > { %p22287_p6 = scmp.lt.u32.totalorder %s22285_s8, %s22281_s16  ;;  %p22289_p0 = scmp.lt.u32.totalorder %s22281_s16, %s27274_s21 }
 0xdc1   : > { %p22283_p9 = pnand %p22282_p7, %p27579_p5 }
 0xdc2   : > { %p22288_p2 = por %p22287_p6, %p22286_p3 }
 0xdc3   : > { %p22284_p4 = pneg %p22283_p9 }
 0xdc4   : > { %p22290_p10 = por %p22289_p0, %p22288_p2 }
 0xdc6   : > { %p22291_p1 = pnand %p22290_p10, %p22284_p4 }
 0xdc8   : > { %22294 = shalt.err (!%p22291_p1)
}
 0xdc9   : > { %s22360_s13 = smov 256   ;;  %s22361_s22 = smov 16  }
 0xdca   : > { %21645 = dma.vmem_to_hbm [thread:$0]  (%p27579_p5), %s27276_s14, 8192, %s27274_s21, %s17374_s30, %s22360_s13, %s22360_s13, %s22361_s22  }
 0xdcb PF: > { %s17402_s19 = sand.u32 1, %s22333_s24   ;;  %p27580_p11 = scmp.ne.s32.totalorder %s27390_s20, 0 }
 0xdcc   : > { %p27581_p12 = scmp.ge.s32.totalorder %s22345_s27, 2  ;;  %s17403_s1 = scalar_lea.sflag [#allocation4], %s17402_s19 }
 0xdce   : > { %p21671_p13 = pnand %p27581_p12, %p27580_p11 }
 0xdd0   : > { %22328 = dma.done.wait (!%p21671_p13), %s17403_s1, 8192  }
 0xdd1   : > { %22330 = vsyncadd (!%p21671_p13), %s17403_s1, 4294959104  ;;  %p23_p8 = scmp.ge.s32.totalorder %s22577_s11, 4   ;;  %s27582_s24 = smov %s22337_s25 }
 0xdd2   : > { %s27583_s25 = smov %s22341_s26  ;;  %s27584_s26 = smov %s22588_s15 }
 0xdd3   : > { %s27585_s27 = smov %s22577_s11  ;;  %25 = sbr.rel (!%p23_p8) target bundleno = 10 (0xa), region = 157 }
 0xdda   :  { %17408 = vsyncpa [#allocation3], 1 }
 0xddb   :  { %17410 = vsyncpa [#allocation3 + $0x1], 1 }
 0xddc   :  { %17411 = vsyncpa [#allocation6], 1 }
 0xddd   :  { %17412 = vsyncpa [#allocation9], 1 }
 0xdde   :  { %17413 = vsyncpa [#allocation12], 1 }
 0xddf   :  { %17414 = vsyncpa [#allocation4], 1 }
 0xde0   :  { %17416 = vsyncpa [#allocation4 + $0x1], 1 }

</bundles_post_ra>
